<compile_context>
chip_gen: v7x
topology: tpu7x:2x2x1
jax: 0.10.0
libtpu: 0.0.40
codegen_flags: <defaults>
</compile_context>

<pallas_src>
import functools

import jax
import jax.numpy as jnp
from jax import lax
from jax.experimental import pallas as pl
from jax.experimental.pallas import tpu as pltpu


def _lrelu(v):
    return jnp.where(v >= 0, v, 0.2 * v)


def _rdb3_kernel(x_ref,
                 w1, b1, w2, b2, w3, b3, w4, b4, w5, b5,
                 out_ref,
                 buf,
                 *, nf, gc, H, W, Wb):
    ctot = nf + 4 * gc
    bdt = buf.dtype

    # Zero only the 1-pixel padding ring and the sublane-alignment tail
    # columns; the interior is fully overwritten below every grid step.
    buf[0:1, :, :] = jnp.zeros((1, Wb, ctot), bdt)
    buf[H + 1:H + 2, :, :] = jnp.zeros((1, Wb, ctot), bdt)
    buf[:, 0:1, :] = jnp.zeros((H + 2, 1, ctot), bdt)
    buf[:, W + 1:Wb, :] = jnp.zeros((H + 2, Wb - W - 1, ctot), bdt)

    # Stage 0: input x into channels [0:nf] (bf16 MXU operand copy).
    buf[1:H + 1, 1:W + 1, 0:nf] = x_ref[0].astype(bdt)

    def conv3x3(cin, wcat_ref, b_ref, cout):
        """3x3 SAME conv over channels [0:cin] of the merged buffer.

        wcat_ref: (3, cin, 3*cout) bf16 — row di holds [W[di,0]|W[di,1]|W[di,2]]
        packed along the output dim, so each kernel row is ONE dot with a
        3x-wider MXU N dimension.
        """
        psum = None
        for di in range(3):
            p = lax.dot_general(
                buf[di:di + H, :, 0:cin],          # (H, Wb, cin)  bf16
                wcat_ref[di],                      # (cin, 3*cout) bf16
                dimension_numbers=(((2,), (0,)), ((), ())),
                preferred_element_type=jnp.float32)  # (H, Wb, 3*cout) f32
            psum = p if psum is None else psum + p
        # Shift-extract the three horizontal taps and add bias (all f32).
        y = b_ref[...]                              # (1, 1, cout)
        for dj in range(3):
            y = y + psum[:, dj:dj + W, dj * cout:(dj + 1) * cout]
        return y                                    # (H, W, cout) f32

    # Dense stages 1..4: conv -> LeakyReLU -> append into the merged buffer.
    cin = nf
    off = nf
    for (w_ref, b_ref) in ((w1, b1), (w2, b2), (w3, b3), (w4, b4)):
        y = _lrelu(conv3x3(cin, w_ref, b_ref, gc))
        buf[1:H + 1, 1:W + 1, off:off + gc] = y.astype(bdt)
        cin += gc
        off += gc

    # Stage 5 + residual (residual uses the original f32 input block).
    x5 = conv3x3(ctot, w5, b5, nf)
    out_ref[0] = (x5 * 0.2 + x_ref[0]).astype(out_ref.dtype)


def residual_dense_block_3(x, params):
    """x: (N, H, W, nf) float32, NHWC layout.  params: HWIO weights + biases."""
    N, H, W, nf = x.shape
    gc = params["w1"].shape[-1]
    ctot = nf + 4 * gc
    Wb = ((W + 2 + 7) // 8) * 8      # sublane-aligned padded width

    def prep_w(w):
        # (3,3,cin,cout) HWIO -> (3, cin, 3*cout): pack the 3 horizontal taps
        # along the output dim so each kernel row is a single MXU dot.
        kh, kw, cin, cout = w.shape
        return (jnp.transpose(w, (0, 2, 1, 3))
                .reshape(kh, cin, kw * cout)
                .astype(jnp.bfloat16))

    args = []
    for k in range(1, 6):
        args.append(prep_w(params[f"w{k}"]))
        args.append(params[f"b{k}"].astype(jnp.float32))   # (1,1,cout) f32

    def full_spec(a):
        return pl.BlockSpec(a.shape, lambda b, _nd=a.ndim: (0,) * _nd)

    kernel = functools.partial(_rdb3_kernel, nf=nf, gc=gc, H=H, W=W, Wb=Wb)

    return pl.pallas_call(
        kernel,
        out_shape=jax.ShapeDtypeStruct((N, H, W, nf), x.dtype),
        grid=(N,),
        in_specs=[pl.BlockSpec((1, H, W, nf), lambda b: (b, 0, 0, 0))]
                 + [full_spec(a) for a in args],
        out_specs=pl.BlockSpec((1, H, W, nf), lambda b: (b, 0, 0, 0)),
        scratch_shapes=[
            pltpu.VMEM((H + 2, Wb, ctot), jnp.bfloat16),   # [x|x1|x2|x3|x4], padded
        ],
        compiler_params=pltpu.CompilerParams(
            dimension_semantics=("parallel",),
            vmem_limit_bytes=64 * 1024 * 1024),
    )(x, *args)


# ---------------- pure-JAX reference (for correctness check) ----------------
def _conv_ref(x, w, b):
    y = lax.conv_general_dilated(
        x, w, window_strides=(1, 1), padding="SAME",
        dimension_numbers=("NHWC", "HWIO", "NHWC"))
    return y + b


def _rdb3_ref(x, p):
    lr = lambda v: jnp.where(v >= 0, v, 0.2 * v)
    x1 = lr(_conv_ref(x, p["w1"], p["b1"]))
    x2 = lr(_conv_ref(jnp.concatenate([x, x1], -1), p["w2"], p["b2"]))
    x3 = lr(_conv_ref(jnp.concatenate([x, x1, x2], -1), p["w3"], p["b3"]))
    x4 = lr(_conv_ref(jnp.concatenate([x, x1, x2, x3], -1), p["w4"], p["b4"]))
    x5 = _conv_ref(jnp.concatenate([x, x1, x2, x3, x4], -1), p["w5"], p["b5"])
    return x5 * 0.2 + x


if __name__ == "__main__":
    key = jax.random.PRNGKey(0)
    N, H, W = 2, 16, 16
    nf, gc = 8, 4                      # num_feat, num_grow_ch (small synthetic)

    ks = jax.random.split(key, 12)

    def winit(k, cin, cout):
        # default_init_weights: kaiming-style init scaled by 0.1 (synthetic).
        return 0.1 * jax.random.normal(k, (3, 3, cin, cout), jnp.float32)

    def binit(k, cout):
        return 0.01 * jax.random.normal(k, (1, 1, cout), jnp.float32)

    params = {
        "w1": winit(ks[0], nf, gc),               "b1": binit(ks[1], gc),
        "w2": winit(ks[2], nf + gc, gc),          "b2": binit(ks[3], gc),
        "w3": winit(ks[4], nf + 2 * gc, gc),      "b3": binit(ks[5], gc),
        "w4": winit(ks[6], nf + 3 * gc, gc),      "b4": binit(ks[7], gc),
        "w5": winit(ks[8], nf + 4 * gc, nf),      "b5": binit(ks[9], nf),
    }

    x = jax.random.normal(ks[10], (N, H, W, nf), jnp.float32)

    out = residual_dense_block_3(x, params)
    out = jax.block_until_ready(out)

    ref = jax.block_until_ready(_rdb3_ref(x, params))
    assert out.shape == (N, H, W, nf)
    # bf16 MXU operands (f32 accumulation) -> looser tolerance vs f32 reference.
    assert jnp.allclose(out, ref, rtol=3e-2, atol=3e-2), \
        float(jnp.max(jnp.abs(out - ref)))

    print("KERNEL_OK")
</pallas_src>

<mosaic_0001>
module attributes {stable_mosaic.version = 11 : i64} {
  func.func @_rdb3_kernel(%arg0: i32, %arg1: memref<1x16x16x8xf32, #tpu.memory_space<vmem>>, %arg2: memref<3x8x12xbf16, #tpu.memory_space<vmem>>, %arg3: memref<1x1x4xf32, #tpu.memory_space<vmem>>, %arg4: memref<3x12x12xbf16, #tpu.memory_space<vmem>>, %arg5: memref<1x1x4xf32, #tpu.memory_space<vmem>>, %arg6: memref<3x16x12xbf16, #tpu.memory_space<vmem>>, %arg7: memref<1x1x4xf32, #tpu.memory_space<vmem>>, %arg8: memref<3x20x12xbf16, #tpu.memory_space<vmem>>, %arg9: memref<1x1x4xf32, #tpu.memory_space<vmem>>, %arg10: memref<3x24x24xbf16, #tpu.memory_space<vmem>>, %arg11: memref<1x1x8xf32, #tpu.memory_space<vmem>>, %arg12: memref<1x16x16x8xf32, #tpu.memory_space<vmem>>, %arg13: memref<18x24x24xbf16, #tpu.memory_space<vmem>>) attributes {dimension_semantics = [#tpu.dimension_semantics<parallel>], iteration_bounds = array<i64: 2>, scalar_prefetch = 0 : i64, scratch_operands = 1 : i64, tpu.core_type = #tpu.core_type<tc>, window_params = [{transform_indices = @transform_0, window_bounds = array<i64: 1, 16, 16, 8>}, {pipeline_mode = #tpu.pipeline_mode<synchronous>, transform_indices = @transform_1, window_bounds = array<i64: 3, 8, 12>}, {pipeline_mode = #tpu.pipeline_mode<synchronous>, transform_indices = @transform_2, window_bounds = array<i64: 1, 1, 4>}, {pipeline_mode = #tpu.pipeline_mode<synchronous>, transform_indices = @transform_3, window_bounds = array<i64: 3, 12, 12>}, {pipeline_mode = #tpu.pipeline_mode<synchronous>, transform_indices = @transform_4, window_bounds = array<i64: 1, 1, 4>}, {pipeline_mode = #tpu.pipeline_mode<synchronous>, transform_indices = @transform_5, window_bounds = array<i64: 3, 16, 12>}, {pipeline_mode = #tpu.pipeline_mode<synchronous>, transform_indices = @transform_6, window_bounds = array<i64: 1, 1, 4>}, {pipeline_mode = #tpu.pipeline_mode<synchronous>, transform_indices = @transform_7, window_bounds = array<i64: 3, 20, 12>}, {pipeline_mode = #tpu.pipeline_mode<synchronous>, transform_indices = @transform_8, window_bounds = array<i64: 1, 1, 4>}, {pipeline_mode = #tpu.pipeline_mode<synchronous>, transform_indices = @transform_9, window_bounds = array<i64: 3, 24, 24>}, {pipeline_mode = #tpu.pipeline_mode<synchronous>, transform_indices = @transform_10, window_bounds = array<i64: 1, 1, 8>}, {transform_indices = @transform_11, window_bounds = array<i64: 1, 16, 16, 8>}]} {
    %cst = arith.constant 0.000000e+00 : bf16
    %0 = vector.broadcast %cst : bf16 to vector<1x24x24xbf16>
    %c0 = arith.constant 0 : index
    %c0_0 = arith.constant 0 : index
    %c0_1 = arith.constant 0 : index
    %1 = vector.load %arg13[%c0, %c0_0, %c0_1] : memref<18x24x24xbf16, #tpu.memory_space<vmem>>, vector<1x24x24xbf16>
    tpu.vector_store %arg13[%c0, %c0_0, %c0_1], %0 {strides = array<i32>} : memref<18x24x24xbf16, #tpu.memory_space<vmem>>, vector<1x24x24xbf16>,
    %cst_2 = arith.constant 0.000000e+00 : bf16
    %2 = vector.broadcast %cst_2 : bf16 to vector<1x24x24xbf16>
    %c17 = arith.constant 17 : index
    %c0_3 = arith.constant 0 : index
    %c0_4 = arith.constant 0 : index
    %3 = vector.load %arg13[%c17, %c0_3, %c0_4] : memref<18x24x24xbf16, #tpu.memory_space<vmem>>, vector<1x24x24xbf16>
    tpu.vector_store %arg13[%c17, %c0_3, %c0_4], %2 {strides = array<i32>} : memref<18x24x24xbf16, #tpu.memory_space<vmem>>, vector<1x24x24xbf16>,
    %cst_5 = arith.constant 0.000000e+00 : bf16
    %4 = vector.broadcast %cst_5 : bf16 to vector<18x1x24xbf16>
    %c0_6 = arith.constant 0 : index
    %c0_7 = arith.constant 0 : index
    %c0_8 = arith.constant 0 : index
    %5 = vector.load %arg13[%c0_6, %c0_7, %c0_8] : memref<18x24x24xbf16, #tpu.memory_space<vmem>>, vector<18x1x24xbf16>
    tpu.vector_store %arg13[%c0_6, %c0_7, %c0_8], %4 {strides = array<i32>} : memref<18x24x24xbf16, #tpu.memory_space<vmem>>, vector<18x1x24xbf16>,
    %cst_9 = arith.constant 0.000000e+00 : bf16
    %6 = vector.broadcast %cst_9 : bf16 to vector<18x7x24xbf16>
    %c0_10 = arith.constant 0 : index
    %c17_11 = arith.constant 17 : index
    %c0_12 = arith.constant 0 : index
    %7 = vector.load %arg13[%c0_10, %c17_11, %c0_12] : memref<18x24x24xbf16, #tpu.memory_space<vmem>>, vector<18x7x24xbf16>
    tpu.vector_store %arg13[%c0_10, %c17_11, %c0_12], %6 {strides = array<i32>} : memref<18x24x24xbf16, #tpu.memory_space<vmem>>, vector<18x7x24xbf16>,
    %c0_13 = arith.constant 0 : index
    %c0_14 = arith.constant 0 : index
    %c0_15 = arith.constant 0 : index
    %c0_16 = arith.constant 0 : index
    %8 = vector.load %arg1[%c0_13, %c0_14, %c0_15, %c0_16] : memref<1x16x16x8xf32, #tpu.memory_space<vmem>>, vector<1x16x16x8xf32>
    %9 = vector.shape_cast %8 : vector<1x16x16x8xf32> to vector<16x16x8xf32>
    %10 = arith.truncf %9 : vector<16x16x8xf32> to vector<16x16x8xbf16>
    %c1 = arith.constant 1 : index
    %c1_17 = arith.constant 1 : index
    %c0_18 = arith.constant 0 : index
    %11 = vector.load %arg13[%c1, %c1_17, %c0_18] : memref<18x24x24xbf16, #tpu.memory_space<vmem>>, vector<16x16x8xbf16>
    tpu.vector_store %arg13[%c1, %c1_17, %c0_18], %10 {strides = array<i32>} : memref<18x24x24xbf16, #tpu.memory_space<vmem>>, vector<16x16x8xbf16>,
    %c0_19 = arith.constant 0 : index
    %c0_20 = arith.constant 0 : index
    %c0_21 = arith.constant 0 : index
    %12 = vector.load %arg13[%c0_19, %c0_20, %c0_21] : memref<18x24x24xbf16, #tpu.memory_space<vmem>>, vector<16x24x8xbf16>
    %c0_22 = arith.constant 0 : index
    %c0_23 = arith.constant 0 : index
    %c0_24 = arith.constant 0 : index
    %13 = vector.load %arg2[%c0_22, %c0_23, %c0_24] : memref<3x8x12xbf16, #tpu.memory_space<vmem>>, vector<1x8x12xbf16>
    %14 = vector.shape_cast %13 : vector<1x8x12xbf16> to vector<8x12xbf16>
    %cst_25 = arith.constant dense<0.000000e+00> : vector<16x24x12xf32>
    %15 = tpu.matmul %12, %14, %cst_25 {dimension_numbers = #tpu.dot_dimension_numbers<[2], [0], [0, 1], [1], [0, 0, 0, 1, 1, 1], [], []>} : vector<16x24x8xbf16>, vector<8x12xbf16>, vector<16x24x12xf32> -> vector<16x24x12xf32>
    %c1_26 = arith.constant 1 : index
    %c0_27 = arith.constant 0 : index
    %c0_28 = arith.constant 0 : index
    %16 = vector.load %arg13[%c1_26, %c0_27, %c0_28] : memref<18x24x24xbf16, #tpu.memory_space<vmem>>, vector<16x24x8xbf16>
    %c1_29 = arith.constant 1 : index
    %c0_30 = arith.constant 0 : index
    %c0_31 = arith.constant 0 : index
    %17 = vector.load %arg2[%c1_29, %c0_30, %c0_31] : memref<3x8x12xbf16, #tpu.memory_space<vmem>>, vector<1x8x12xbf16>
    %18 = vector.shape_cast %17 : vector<1x8x12xbf16> to vector<8x12xbf16>
    %cst_32 = arith.constant dense<0.000000e+00> : vector<16x24x12xf32>
    %19 = tpu.matmul %16, %18, %cst_32 {dimension_numbers = #tpu.dot_dimension_numbers<[2], [0], [0, 1], [1], [0, 0, 0, 1, 1, 1], [], []>} : vector<16x24x8xbf16>, vector<8x12xbf16>, vector<16x24x12xf32> -> vector<16x24x12xf32>
    %20 = arith.addf %15, %19 : vector<16x24x12xf32>
    %c2 = arith.constant 2 : index
    %c0_33 = arith.constant 0 : index
    %c0_34 = arith.constant 0 : index
    %21 = vector.load %arg13[%c2, %c0_33, %c0_34] : memref<18x24x24xbf16, #tpu.memory_space<vmem>>, vector<16x24x8xbf16>
    %c2_35 = arith.constant 2 : index
    %c0_36 = arith.constant 0 : index
    %c0_37 = arith.constant 0 : index
    %22 = vector.load %arg2[%c2_35, %c0_36, %c0_37] : memref<3x8x12xbf16, #tpu.memory_space<vmem>>, vector<1x8x12xbf16>
    %23 = vector.shape_cast %22 : vector<1x8x12xbf16> to vector<8x12xbf16>
    %cst_38 = arith.constant dense<0.000000e+00> : vector<16x24x12xf32>
    %24 = tpu.matmul %21, %23, %cst_38 {dimension_numbers = #tpu.dot_dimension_numbers<[2], [0], [0, 1], [1], [0, 0, 0, 1, 1, 1], [], []>} : vector<16x24x8xbf16>, vector<8x12xbf16>, vector<16x24x12xf32> -> vector<16x24x12xf32>
    %25 = arith.addf %20, %24 : vector<16x24x12xf32>
    %c0_39 = arith.constant 0 : index
    %c0_40 = arith.constant 0 : index
    %c0_41 = arith.constant 0 : index
    %26 = vector.load %arg3[%c0_39, %c0_40, %c0_41] : memref<1x1x4xf32, #tpu.memory_space<vmem>>, vector<1x1x4xf32>
    %27 = vector.extract_strided_slice %25 {offsets = [0, 0, 0], sizes = [16, 16, 4], strides = [1, 1, 1]} : vector<16x24x12xf32> to vector<16x16x4xf32>
    %28 = vector.broadcast %26 : vector<1x1x4xf32> to vector<16x16x4xf32>
    %29 = arith.addf %28, %27 : vector<16x16x4xf32>
    %30 = vector.extract_strided_slice %25 {offsets = [0, 1, 4], sizes = [16, 16, 4], strides = [1, 1, 1]} : vector<16x24x12xf32> to vector<16x16x4xf32>
    %31 = arith.addf %29, %30 : vector<16x16x4xf32>
    %32 = vector.extract_strided_slice %25 {offsets = [0, 2, 8], sizes = [16, 16, 4], strides = [1, 1, 1]} : vector<16x24x12xf32> to vector<16x16x4xf32>
    %33 = arith.addf %31, %32 : vector<16x16x4xf32>
    %cst_42 = arith.constant 0.000000e+00 : f32
    %34 = vector.broadcast %cst_42 : f32 to vector<16x16x4xf32>
    %35 = arith.cmpf oge, %33, %34 : vector<16x16x4xf32>
    %cst_43 = arith.constant 2.000000e-01 : f32
    %36 = vector.broadcast %cst_43 : f32 to vector<16x16x4xf32>
    %37 = arith.mulf %36, %33 : vector<16x16x4xf32>
    %38 = arith.select %35, %33, %37 : vector<16x16x4xi1>, vector<16x16x4xf32>
    %39 = arith.truncf %38 : vector<16x16x4xf32> to vector<16x16x4xbf16>
    %c1_44 = arith.constant 1 : index
    %c1_45 = arith.constant 1 : index
    %c8 = arith.constant 8 : index
    %40 = vector.load %arg13[%c1_44, %c1_45, %c8] : memref<18x24x24xbf16, #tpu.memory_space<vmem>>, vector<16x16x4xbf16>
    tpu.vector_store %arg13[%c1_44, %c1_45, %c8], %39 {strides = array<i32>} : memref<18x24x24xbf16, #tpu.memory_space<vmem>>, vector<16x16x4xbf16>,
    %c0_46 = arith.constant 0 : index
    %c0_47 = arith.constant 0 : index
    %c0_48 = arith.constant 0 : index
    %41 = vector.load %arg13[%c0_46, %c0_47, %c0_48] : memref<18x24x24xbf16, #tpu.memory_space<vmem>>, vector<16x24x12xbf16>
    %c0_49 = arith.constant 0 : index
    %c0_50 = arith.constant 0 : index
    %c0_51 = arith.constant 0 : index
    %42 = vector.load %arg4[%c0_49, %c0_50, %c0_51] : memref<3x12x12xbf16, #tpu.memory_space<vmem>>, vector<1x12x12xbf16>
    %43 = vector.shape_cast %42 : vector<1x12x12xbf16> to vector<12x12xbf16>
    %cst_52 = arith.constant dense<0.000000e+00> : vector<16x24x12xf32>
    %44 = tpu.matmul %41, %43, %cst_52 {dimension_numbers = #tpu.dot_dimension_numbers<[2], [0], [0, 1], [1], [0, 0, 0, 1, 1, 1], [], []>} : vector<16x24x12xbf16>, vector<12x12xbf16>, vector<16x24x12xf32> -> vector<16x24x12xf32>
    %c1_53 = arith.constant 1 : index
    %c0_54 = arith.constant 0 : index
    %c0_55 = arith.constant 0 : index
    %45 = vector.load %arg13[%c1_53, %c0_54, %c0_55] : memref<18x24x24xbf16, #tpu.memory_space<vmem>>, vector<16x24x12xbf16>
    %c1_56 = arith.constant 1 : index
    %c0_57 = arith.constant 0 : index
    %c0_58 = arith.constant 0 : index
    %46 = vector.load %arg4[%c1_56, %c0_57, %c0_58] : memref<3x12x12xbf16, #tpu.memory_space<vmem>>, vector<1x12x12xbf16>
    %47 = vector.shape_cast %46 : vector<1x12x12xbf16> to vector<12x12xbf16>
    %cst_59 = arith.constant dense<0.000000e+00> : vector<16x24x12xf32>
    %48 = tpu.matmul %45, %47, %cst_59 {dimension_numbers = #tpu.dot_dimension_numbers<[2], [0], [0, 1], [1], [0, 0, 0, 1, 1, 1], [], []>} : vector<16x24x12xbf16>, vector<12x12xbf16>, vector<16x24x12xf32> -> vector<16x24x12xf32>
    %49 = arith.addf %44, %48 : vector<16x24x12xf32>
    %c2_60 = arith.constant 2 : index
    %c0_61 = arith.constant 0 : index
    %c0_62 = arith.constant 0 : index
    %50 = vector.load %arg13[%c2_60, %c0_61, %c0_62] : memref<18x24x24xbf16, #tpu.memory_space<vmem>>, vector<16x24x12xbf16>
    %c2_63 = arith.constant 2 : index
    %c0_64 = arith.constant 0 : index
    %c0_65 = arith.constant 0 : index
    %51 = vector.load %arg4[%c2_63, %c0_64, %c0_65] : memref<3x12x12xbf16, #tpu.memory_space<vmem>>, vector<1x12x12xbf16>
    %52 = vector.shape_cast %51 : vector<1x12x12xbf16> to vector<12x12xbf16>
    %cst_66 = arith.constant dense<0.000000e+00> : vector<16x24x12xf32>
    %53 = tpu.matmul %50, %52, %cst_66 {dimension_numbers = #tpu.dot_dimension_numbers<[2], [0], [0, 1], [1], [0, 0, 0, 1, 1, 1], [], []>} : vector<16x24x12xbf16>, vector<12x12xbf16>, vector<16x24x12xf32> -> vector<16x24x12xf32>
    %54 = arith.addf %49, %53 : vector<16x24x12xf32>
    %c0_67 = arith.constant 0 : index
    %c0_68 = arith.constant 0 : index
    %c0_69 = arith.constant 0 : index
    %55 = vector.load %arg5[%c0_67, %c0_68, %c0_69] : memref<1x1x4xf32, #tpu.memory_space<vmem>>, vector<1x1x4xf32>
    %56 = vector.extract_strided_slice %54 {offsets = [0, 0, 0], sizes = [16, 16, 4], strides = [1, 1, 1]} : vector<16x24x12xf32> to vector<16x16x4xf32>
    %57 = vector.broadcast %55 : vector<1x1x4xf32> to vector<16x16x4xf32>
    %58 = arith.addf %57, %56 : vector<16x16x4xf32>
    %59 = vector.extract_strided_slice %54 {offsets = [0, 1, 4], sizes = [16, 16, 4], strides = [1, 1, 1]} : vector<16x24x12xf32> to vector<16x16x4xf32>
    %60 = arith.addf %58, %59 : vector<16x16x4xf32>
    %61 = vector.extract_strided_slice %54 {offsets = [0, 2, 8], sizes = [16, 16, 4], strides = [1, 1, 1]} : vector<16x24x12xf32> to vector<16x16x4xf32>
    %62 = arith.addf %60, %61 : vector<16x16x4xf32>
    %cst_70 = arith.constant 0.000000e+00 : f32
    %63 = vector.broadcast %cst_70 : f32 to vector<16x16x4xf32>
    %64 = arith.cmpf oge, %62, %63 : vector<16x16x4xf32>
    %cst_71 = arith.constant 2.000000e-01 : f32
    %65 = vector.broadcast %cst_71 : f32 to vector<16x16x4xf32>
    %66 = arith.mulf %65, %62 : vector<16x16x4xf32>
    %67 = arith.select %64, %62, %66 : vector<16x16x4xi1>, vector<16x16x4xf32>
    %68 = arith.truncf %67 : vector<16x16x4xf32> to vector<16x16x4xbf16>
    %c1_72 = arith.constant 1 : index
    %c1_73 = arith.constant 1 : index
    %c12 = arith.constant 12 : index
    %69 = vector.load %arg13[%c1_72, %c1_73, %c12] : memref<18x24x24xbf16, #tpu.memory_space<vmem>>, vector<16x16x4xbf16>
    tpu.vector_store %arg13[%c1_72, %c1_73, %c12], %68 {strides = array<i32>} : memref<18x24x24xbf16, #tpu.memory_space<vmem>>, vector<16x16x4xbf16>,
    %c0_74 = arith.constant 0 : index
    %c0_75 = arith.constant 0 : index
    %c0_76 = arith.constant 0 : index
    %70 = vector.load %arg13[%c0_74, %c0_75, %c0_76] : memref<18x24x24xbf16, #tpu.memory_space<vmem>>, vector<16x24x16xbf16>
    %c0_77 = arith.constant 0 : index
    %c0_78 = arith.constant 0 : index
    %c0_79 = arith.constant 0 : index
    %71 = vector.load %arg6[%c0_77, %c0_78, %c0_79] : memref<3x16x12xbf16, #tpu.memory_space<vmem>>, vector<1x16x12xbf16>
    %72 = vector.shape_cast %71 : vector<1x16x12xbf16> to vector<16x12xbf16>
    %cst_80 = arith.constant dense<0.000000e+00> : vector<16x24x12xf32>
    %73 = tpu.matmul %70, %72, %cst_80 {dimension_numbers = #tpu.dot_dimension_numbers<[2], [0], [0, 1], [1], [0, 0, 0, 1, 1, 1], [], []>} : vector<16x24x16xbf16>, vector<16x12xbf16>, vector<16x24x12xf32> -> vector<16x24x12xf32>
    %c1_81 = arith.constant 1 : index
    %c0_82 = arith.constant 0 : index
    %c0_83 = arith.constant 0 : index
    %74 = vector.load %arg13[%c1_81, %c0_82, %c0_83] : memref<18x24x24xbf16, #tpu.memory_space<vmem>>, vector<16x24x16xbf16>
    %c1_84 = arith.constant 1 : index
    %c0_85 = arith.constant 0 : index
    %c0_86 = arith.constant 0 : index
    %75 = vector.load %arg6[%c1_84, %c0_85, %c0_86] : memref<3x16x12xbf16, #tpu.memory_space<vmem>>, vector<1x16x12xbf16>
    %76 = vector.shape_cast %75 : vector<1x16x12xbf16> to vector<16x12xbf16>
    %cst_87 = arith.constant dense<0.000000e+00> : vector<16x24x12xf32>
    %77 = tpu.matmul %74, %76, %cst_87 {dimension_numbers = #tpu.dot_dimension_numbers<[2], [0], [0, 1], [1], [0, 0, 0, 1, 1, 1], [], []>} : vector<16x24x16xbf16>, vector<16x12xbf16>, vector<16x24x12xf32> -> vector<16x24x12xf32>
    %78 = arith.addf %73, %77 : vector<16x24x12xf32>
    %c2_88 = arith.constant 2 : index
    %c0_89 = arith.constant 0 : index
    %c0_90 = arith.constant 0 : index
    %79 = vector.load %arg13[%c2_88, %c0_89, %c0_90] : memref<18x24x24xbf16, #tpu.memory_space<vmem>>, vector<16x24x16xbf16>
    %c2_91 = arith.constant 2 : index
    %c0_92 = arith.constant 0 : index
    %c0_93 = arith.constant 0 : index
    %80 = vector.load %arg6[%c2_91, %c0_92, %c0_93] : memref<3x16x12xbf16, #tpu.memory_space<vmem>>, vector<1x16x12xbf16>
    %81 = vector.shape_cast %80 : vector<1x16x12xbf16> to vector<16x12xbf16>
    %cst_94 = arith.constant dense<0.000000e+00> : vector<16x24x12xf32>
    %82 = tpu.matmul %79, %81, %cst_94 {dimension_numbers = #tpu.dot_dimension_numbers<[2], [0], [0, 1], [1], [0, 0, 0, 1, 1, 1], [], []>} : vector<16x24x16xbf16>, vector<16x12xbf16>, vector<16x24x12xf32> -> vector<16x24x12xf32>
    %83 = arith.addf %78, %82 : vector<16x24x12xf32>
    %c0_95 = arith.constant 0 : index
    %c0_96 = arith.constant 0 : index
    %c0_97 = arith.constant 0 : index
    %84 = vector.load %arg7[%c0_95, %c0_96, %c0_97] : memref<1x1x4xf32, #tpu.memory_space<vmem>>, vector<1x1x4xf32>
    %85 = vector.extract_strided_slice %83 {offsets = [0, 0, 0], sizes = [16, 16, 4], strides = [1, 1, 1]} : vector<16x24x12xf32> to vector<16x16x4xf32>
    %86 = vector.broadcast %84 : vector<1x1x4xf32> to vector<16x16x4xf32>
    %87 = arith.addf %86, %85 : vector<16x16x4xf32>
    %88 = vector.extract_strided_slice %83 {offsets = [0, 1, 4], sizes = [16, 16, 4], strides = [1, 1, 1]} : vector<16x24x12xf32> to vector<16x16x4xf32>
    %89 = arith.addf %87, %88 : vector<16x16x4xf32>
    %90 = vector.extract_strided_slice %83 {offsets = [0, 2, 8], sizes = [16, 16, 4], strides = [1, 1, 1]} : vector<16x24x12xf32> to vector<16x16x4xf32>
    %91 = arith.addf %89, %90 : vector<16x16x4xf32>
    %cst_98 = arith.constant 0.000000e+00 : f32
    %92 = vector.broadcast %cst_98 : f32 to vector<16x16x4xf32>
    %93 = arith.cmpf oge, %91, %92 : vector<16x16x4xf32>
    %cst_99 = arith.constant 2.000000e-01 : f32
    %94 = vector.broadcast %cst_99 : f32 to vector<16x16x4xf32>
    %95 = arith.mulf %94, %91 : vector<16x16x4xf32>
    %96 = arith.select %93, %91, %95 : vector<16x16x4xi1>, vector<16x16x4xf32>
    %97 = arith.truncf %96 : vector<16x16x4xf32> to vector<16x16x4xbf16>
    %c1_100 = arith.constant 1 : index
    %c1_101 = arith.constant 1 : index
    %c16 = arith.constant 16 : index
    %98 = vector.load %arg13[%c1_100, %c1_101, %c16] : memref<18x24x24xbf16, #tpu.memory_space<vmem>>, vector<16x16x4xbf16>
    tpu.vector_store %arg13[%c1_100, %c1_101, %c16], %97 {strides = array<i32>} : memref<18x24x24xbf16, #tpu.memory_space<vmem>>, vector<16x16x4xbf16>,
    %c0_102 = arith.constant 0 : index
    %c0_103 = arith.constant 0 : index
    %c0_104 = arith.constant 0 : index
    %99 = vector.load %arg13[%c0_102, %c0_103, %c0_104] : memref<18x24x24xbf16, #tpu.memory_space<vmem>>, vector<16x24x20xbf16>
    %c0_105 = arith.constant 0 : index
    %c0_106 = arith.constant 0 : index
    %c0_107 = arith.constant 0 : index
    %100 = vector.load %arg8[%c0_105, %c0_106, %c0_107] : memref<3x20x12xbf16, #tpu.memory_space<vmem>>, vector<1x20x12xbf16>
    %101 = vector.shape_cast %100 : vector<1x20x12xbf16> to vector<20x12xbf16>
    %cst_108 = arith.constant dense<0.000000e+00> : vector<16x24x12xf32>
    %102 = tpu.matmul %99, %101, %cst_108 {dimension_numbers = #tpu.dot_dimension_numbers<[2], [0], [0, 1], [1], [0, 0, 0, 1, 1, 1], [], []>} : vector<16x24x20xbf16>, vector<20x12xbf16>, vector<16x24x12xf32> -> vector<16x24x12xf32>
    %c1_109 = arith.constant 1 : index
    %c0_110 = arith.constant 0 : index
    %c0_111 = arith.constant 0 : index
    %103 = vector.load %arg13[%c1_109, %c0_110, %c0_111] : memref<18x24x24xbf16, #tpu.memory_space<vmem>>, vector<16x24x20xbf16>
    %c1_112 = arith.constant 1 : index
    %c0_113 = arith.constant 0 : index
    %c0_114 = arith.constant 0 : index
    %104 = vector.load %arg8[%c1_112, %c0_113, %c0_114] : memref<3x20x12xbf16, #tpu.memory_space<vmem>>, vector<1x20x12xbf16>
    %105 = vector.shape_cast %104 : vector<1x20x12xbf16> to vector<20x12xbf16>
    %cst_115 = arith.constant dense<0.000000e+00> : vector<16x24x12xf32>
    %106 = tpu.matmul %103, %105, %cst_115 {dimension_numbers = #tpu.dot_dimension_numbers<[2], [0], [0, 1], [1], [0, 0, 0, 1, 1, 1], [], []>} : vector<16x24x20xbf16>, vector<20x12xbf16>, vector<16x24x12xf32> -> vector<16x24x12xf32>
    %107 = arith.addf %102, %106 : vector<16x24x12xf32>
    %c2_116 = arith.constant 2 : index
    %c0_117 = arith.constant 0 : index
    %c0_118 = arith.constant 0 : index
    %108 = vector.load %arg13[%c2_116, %c0_117, %c0_118] : memref<18x24x24xbf16, #tpu.memory_space<vmem>>, vector<16x24x20xbf16>
    %c2_119 = arith.constant 2 : index
    %c0_120 = arith.constant 0 : index
    %c0_121 = arith.constant 0 : index
    %109 = vector.load %arg8[%c2_119, %c0_120, %c0_121] : memref<3x20x12xbf16, #tpu.memory_space<vmem>>, vector<1x20x12xbf16>
    %110 = vector.shape_cast %109 : vector<1x20x12xbf16> to vector<20x12xbf16>
    %cst_122 = arith.constant dense<0.000000e+00> : vector<16x24x12xf32>
    %111 = tpu.matmul %108, %110, %cst_122 {dimension_numbers = #tpu.dot_dimension_numbers<[2], [0], [0, 1], [1], [0, 0, 0, 1, 1, 1], [], []>} : vector<16x24x20xbf16>, vector<20x12xbf16>, vector<16x24x12xf32> -> vector<16x24x12xf32>
    %112 = arith.addf %107, %111 : vector<16x24x12xf32>
    %c0_123 = arith.constant 0 : index
    %c0_124 = arith.constant 0 : index
    %c0_125 = arith.constant 0 : index
    %113 = vector.load %arg9[%c0_123, %c0_124, %c0_125] : memref<1x1x4xf32, #tpu.memory_space<vmem>>, vector<1x1x4xf32>
    %114 = vector.extract_strided_slice %112 {offsets = [0, 0, 0], sizes = [16, 16, 4], strides = [1, 1, 1]} : vector<16x24x12xf32> to vector<16x16x4xf32>
    %115 = vector.broadcast %113 : vector<1x1x4xf32> to vector<16x16x4xf32>
    %116 = arith.addf %115, %114 : vector<16x16x4xf32>
    %117 = vector.extract_strided_slice %112 {offsets = [0, 1, 4], sizes = [16, 16, 4], strides = [1, 1, 1]} : vector<16x24x12xf32> to vector<16x16x4xf32>
    %118 = arith.addf %116, %117 : vector<16x16x4xf32>
    %119 = vector.extract_strided_slice %112 {offsets = [0, 2, 8], sizes = [16, 16, 4], strides = [1, 1, 1]} : vector<16x24x12xf32> to vector<16x16x4xf32>
    %120 = arith.addf %118, %119 : vector<16x16x4xf32>
    %cst_126 = arith.constant 0.000000e+00 : f32
    %121 = vector.broadcast %cst_126 : f32 to vector<16x16x4xf32>
    %122 = arith.cmpf oge, %120, %121 : vector<16x16x4xf32>
    %cst_127 = arith.constant 2.000000e-01 : f32
    %123 = vector.broadcast %cst_127 : f32 to vector<16x16x4xf32>
    %124 = arith.mulf %123, %120 : vector<16x16x4xf32>
    %125 = arith.select %122, %120, %124 : vector<16x16x4xi1>, vector<16x16x4xf32>
    %126 = arith.truncf %125 : vector<16x16x4xf32> to vector<16x16x4xbf16>
    %c1_128 = arith.constant 1 : index
    %c1_129 = arith.constant 1 : index
    %c20 = arith.constant 20 : index
    %127 = vector.load %arg13[%c1_128, %c1_129, %c20] : memref<18x24x24xbf16, #tpu.memory_space<vmem>>, vector<16x16x4xbf16>
    tpu.vector_store %arg13[%c1_128, %c1_129, %c20], %126 {strides = array<i32>} : memref<18x24x24xbf16, #tpu.memory_space<vmem>>, vector<16x16x4xbf16>,
    %c0_130 = arith.constant 0 : index
    %c0_131 = arith.constant 0 : index
    %c0_132 = arith.constant 0 : index
    %128 = vector.load %arg13[%c0_130, %c0_131, %c0_132] : memref<18x24x24xbf16, #tpu.memory_space<vmem>>, vector<16x24x24xbf16>
    %c0_133 = arith.constant 0 : index
    %c0_134 = arith.constant 0 : index
    %c0_135 = arith.constant 0 : index
    %129 = vector.load %arg10[%c0_133, %c0_134, %c0_135] : memref<3x24x24xbf16, #tpu.memory_space<vmem>>, vector<1x24x24xbf16>
    %130 = vector.shape_cast %129 : vector<1x24x24xbf16> to vector<24x24xbf16>
    %cst_136 = arith.constant dense<0.000000e+00> : vector<16x24x24xf32>
    %131 = tpu.matmul %128, %130, %cst_136 {dimension_numbers = #tpu.dot_dimension_numbers<[2], [0], [0, 1], [1], [0, 0, 0, 1, 1, 1], [], []>} : vector<16x24x24xbf16>, vector<24x24xbf16>, vector<16x24x24xf32> -> vector<16x24x24xf32>
    %c1_137 = arith.constant 1 : index
    %c0_138 = arith.constant 0 : index
    %c0_139 = arith.constant 0 : index
    %132 = vector.load %arg13[%c1_137, %c0_138, %c0_139] : memref<18x24x24xbf16, #tpu.memory_space<vmem>>, vector<16x24x24xbf16>
    %c1_140 = arith.constant 1 : index
    %c0_141 = arith.constant 0 : index
    %c0_142 = arith.constant 0 : index
    %133 = vector.load %arg10[%c1_140, %c0_141, %c0_142] : memref<3x24x24xbf16, #tpu.memory_space<vmem>>, vector<1x24x24xbf16>
    %134 = vector.shape_cast %133 : vector<1x24x24xbf16> to vector<24x24xbf16>
    %cst_143 = arith.constant dense<0.000000e+00> : vector<16x24x24xf32>
    %135 = tpu.matmul %132, %134, %cst_143 {dimension_numbers = #tpu.dot_dimension_numbers<[2], [0], [0, 1], [1], [0, 0, 0, 1, 1, 1], [], []>} : vector<16x24x24xbf16>, vector<24x24xbf16>, vector<16x24x24xf32> -> vector<16x24x24xf32>
    %136 = arith.addf %131, %135 : vector<16x24x24xf32>
    %c2_144 = arith.constant 2 : index
    %c0_145 = arith.constant 0 : index
    %c0_146 = arith.constant 0 : index
    %137 = vector.load %arg13[%c2_144, %c0_145, %c0_146] : memref<18x24x24xbf16, #tpu.memory_space<vmem>>, vector<16x24x24xbf16>
    %c2_147 = arith.constant 2 : index
    %c0_148 = arith.constant 0 : index
    %c0_149 = arith.constant 0 : index
    %138 = vector.load %arg10[%c2_147, %c0_148, %c0_149] : memref<3x24x24xbf16, #tpu.memory_space<vmem>>, vector<1x24x24xbf16>
    %139 = vector.shape_cast %138 : vector<1x24x24xbf16> to vector<24x24xbf16>
    %cst_150 = arith.constant dense<0.000000e+00> : vector<16x24x24xf32>
    %140 = tpu.matmul %137, %139, %cst_150 {dimension_numbers = #tpu.dot_dimension_numbers<[2], [0], [0, 1], [1], [0, 0, 0, 1, 1, 1], [], []>} : vector<16x24x24xbf16>, vector<24x24xbf16>, vector<16x24x24xf32> -> vector<16x24x24xf32>
    %141 = arith.addf %136, %140 : vector<16x24x24xf32>
    %c0_151 = arith.constant 0 : index
    %c0_152 = arith.constant 0 : index
    %c0_153 = arith.constant 0 : index
    %142 = vector.load %arg11[%c0_151, %c0_152, %c0_153] : memref<1x1x8xf32, #tpu.memory_space<vmem>>, vector<1x1x8xf32>
    %143 = vector.extract_strided_slice %141 {offsets = [0, 0, 0], sizes = [16, 16, 8], strides = [1, 1, 1]} : vector<16x24x24xf32> to vector<16x16x8xf32>
    %144 = vector.broadcast %142 : vector<1x1x8xf32> to vector<16x16x8xf32>
    %145 = arith.addf %144, %143 : vector<16x16x8xf32>
    %146 = vector.extract_strided_slice %141 {offsets = [0, 1, 8], sizes = [16, 16, 8], strides = [1, 1, 1]} : vector<16x24x24xf32> to vector<16x16x8xf32>
    %147 = arith.addf %145, %146 : vector<16x16x8xf32>
    %148 = vector.extract_strided_slice %141 {offsets = [0, 2, 16], sizes = [16, 16, 8], strides = [1, 1, 1]} : vector<16x24x24xf32> to vector<16x16x8xf32>
    %149 = arith.addf %147, %148 : vector<16x16x8xf32>
    %cst_154 = arith.constant 2.000000e-01 : f32
    %150 = vector.broadcast %cst_154 : f32 to vector<16x16x8xf32>
    %151 = arith.mulf %149, %150 : vector<16x16x8xf32>
    %c0_155 = arith.constant 0 : index
    %c0_156 = arith.constant 0 : index
    %c0_157 = arith.constant 0 : index
    %c0_158 = arith.constant 0 : index
    %152 = vector.load %arg1[%c0_155, %c0_156, %c0_157, %c0_158] : memref<1x16x16x8xf32, #tpu.memory_space<vmem>>, vector<1x16x16x8xf32>
    %153 = vector.shape_cast %152 : vector<1x16x16x8xf32> to vector<16x16x8xf32>
    %154 = arith.addf %151, %153 : vector<16x16x8xf32>
    %c0_159 = arith.constant 0 : index
    %c0_160 = arith.constant 0 : index
    %c0_161 = arith.constant 0 : index
    %c0_162 = arith.constant 0 : index
    %155 = vector.load %arg12[%c0_159, %c0_160, %c0_161, %c0_162] : memref<1x16x16x8xf32, #tpu.memory_space<vmem>>, vector<1x16x16x8xf32>
    %156 = vector.shape_cast %155 : vector<1x16x16x8xf32> to vector<16x16x8xf32>
    %157 = vector.shape_cast %154 : vector<16x16x8xf32> to vector<1x16x16x8xf32>
    tpu.vector_store %arg12[%c0_159, %c0_160, %c0_161, %c0_162], %157 {strides = array<i32>} : memref<1x16x16x8xf32, #tpu.memory_space<vmem>>, vector<1x16x16x8xf32>,
    return
  }
  func.func @transform_0(%arg0: i32) -> (i32, i32, i32, i32) {
    %c0_i32 = arith.constant 0 : i32
    %c0_i32_0 = arith.constant 0 : i32
    %c0_i32_1 = arith.constant 0 : i32
    %c0_i32_2 = arith.constant 0 : i32
    return %arg0, %c0_i32, %c0_i32_0, %c0_i32_1 : i32, i32, i32, i32
  }
  func.func @transform_1(%arg0: i32) -> (i32, i32, i32) {
    %c0_i32 = arith.constant 0 : i32
    %c0_i32_0 = arith.constant 0 : i32
    %c0_i32_1 = arith.constant 0 : i32
    %c0_i32_2 = arith.constant 0 : i32
    return %c0_i32, %c0_i32_0, %c0_i32_1 : i32, i32, i32
  }
  func.func @transform_2(%arg0: i32) -> (i32, i32, i32) {
    %c0_i32 = arith.constant 0 : i32
    %c0_i32_0 = arith.constant 0 : i32
    %c0_i32_1 = arith.constant 0 : i32
    %c0_i32_2 = arith.constant 0 : i32
    return %c0_i32, %c0_i32_0, %c0_i32_1 : i32, i32, i32
  }
  func.func @transform_3(%arg0: i32) -> (i32, i32, i32) {
    %c0_i32 = arith.constant 0 : i32
    %c0_i32_0 = arith.constant 0 : i32
    %c0_i32_1 = arith.constant 0 : i32
    %c0_i32_2 = arith.constant 0 : i32
    return %c0_i32, %c0_i32_0, %c0_i32_1 : i32, i32, i32
  }
  func.func @transform_4(%arg0: i32) -> (i32, i32, i32) {
    %c0_i32 = arith.constant 0 : i32
    %c0_i32_0 = arith.constant 0 : i32
    %c0_i32_1 = arith.constant 0 : i32
    %c0_i32_2 = arith.constant 0 : i32
    return %c0_i32, %c0_i32_0, %c0_i32_1 : i32, i32, i32
  }
  func.func @transform_5(%arg0: i32) -> (i32, i32, i32) {
    %c0_i32 = arith.constant 0 : i32
    %c0_i32_0 = arith.constant 0 : i32
    %c0_i32_1 = arith.constant 0 : i32
    %c0_i32_2 = arith.constant 0 : i32
    return %c0_i32, %c0_i32_0, %c0_i32_1 : i32, i32, i32
  }
  func.func @transform_6(%arg0: i32) -> (i32, i32, i32) {
    %c0_i32 = arith.constant 0 : i32
    %c0_i32_0 = arith.constant 0 : i32
    %c0_i32_1 = arith.constant 0 : i32
    %c0_i32_2 = arith.constant 0 : i32
    return %c0_i32, %c0_i32_0, %c0_i32_1 : i32, i32, i32
  }
  func.func @transform_7(%arg0: i32) -> (i32, i32, i32) {
    %c0_i32 = arith.constant 0 : i32
    %c0_i32_0 = arith.constant 0 : i32
    %c0_i32_1 = arith.constant 0 : i32
    %c0_i32_2 = arith.constant 0 : i32
    return %c0_i32, %c0_i32_0, %c0_i32_1 : i32, i32, i32
  }
  func.func @transform_8(%arg0: i32) -> (i32, i32, i32) {
    %c0_i32 = arith.constant 0 : i32
    %c0_i32_0 = arith.constant 0 : i32
    %c0_i32_1 = arith.constant 0 : i32
    %c0_i32_2 = arith.constant 0 : i32
    return %c0_i32, %c0_i32_0, %c0_i32_1 : i32, i32, i32
  }
  func.func @transform_9(%arg0: i32) -> (i32, i32, i32) {
    %c0_i32 = arith.constant 0 : i32
    %c0_i32_0 = arith.constant 0 : i32
    %c0_i32_1 = arith.constant 0 : i32
    %c0_i32_2 = arith.constant 0 : i32
    return %c0_i32, %c0_i32_0, %c0_i32_1 : i32, i32, i32
  }
  func.func @transform_10(%arg0: i32) -> (i32, i32, i32) {
    %c0_i32 = arith.constant 0 : i32
    %c0_i32_0 = arith.constant 0 : i32
    %c0_i32_1 = arith.constant 0 : i32
    %c0_i32_2 = arith.constant 0 : i32
    return %c0_i32, %c0_i32_0, %c0_i32_1 : i32, i32, i32
  }
  func.func @transform_11(%arg0: i32) -> (i32, i32, i32, i32) {
    %c0_i32 = arith.constant 0 : i32
    %c0_i32_0 = arith.constant 0 : i32
    %c0_i32_1 = arith.constant 0 : i32
    %c0_i32_2 = arith.constant 0 : i32
    return %arg0, %c0_i32, %c0_i32_0, %c0_i32_1 : i32, i32, i32, i32
  }
}

</mosaic_0001>

<bundles_post_ra>
// kernel: tpu_custom_call.1
= control target key start
LH: loop header
LB: loop body
LE: loop exit
PB: predicated region body
PF: predicated region fallthrough
CT: control target
= control target key end

     0   :  { %s21804_s0 = inlined_call_operand.hbm [shape: f32[2,16,16,8], index: 0, kind: input, shape index: {}]   ;;  %s21805_s1 = inlined_call_operand.hbm [shape: bf16[3,8,12], index: 1, kind: input, shape index: {}]   ;;  %s21806_s2 = inlined_call_operand.hbm [shape: f32[1,1,4], index: 2, kind: input, shape index: {}]   ;;  %s21807_s3 = inlined_call_operand.hbm [shape: bf16[3,12,12], index: 3, kind: input, shape index: {}]   ;;  %s21808_s4 = inlined_call_operand.hbm [shape: f32[1,1,4], index: 4, kind: input, shape index: {}]   ;;  %s21809_s5 = inlined_call_operand.hbm [shape: bf16[3,16,12], index: 5, kind: input, shape index: {}]   ;;  %s21810_s6 = inlined_call_operand.hbm [shape: f32[1,1,4], index: 6, kind: input, shape index: {}]   ;;  %s21811_s7 = inlined_call_operand.hbm [shape: bf16[3,20,12], index: 7, kind: input, shape index: {}]   ;;  %s21812_s8 = inlined_call_operand.hbm [shape: f32[1,1,4], index: 8, kind: input, shape index: {}]   ;;  %s21813_s9 = inlined_call_operand.hbm [shape: bf16[3,24,24], index: 9, kind: input, shape index: {}]   ;;  %s21814_s10 = inlined_call_operand.hbm [shape: f32[1,1,8], index: 10, kind: input, shape index: {}]   ;;  %s21815_s11 = inlined_call_operand.hbm [shape: f32[2,16,16,8], index: 11, kind: output, shape index: {}]  }
   0x1   :  { %21825 = sst [smem:[#allocation33_spill]] %s21804_s0 }
   0x2   :  { %21826 = sst [smem:[#allocation34_spill]] %s21805_s1 }
   0x3   :  { %21827 = sst [smem:[#allocation35_spill]] %s21815_s11 }
   0x4   :  { %16 = vsyncpa [#allocation4], 0 }
   0x5   :  { %18 = vsyncpa [#allocation4 + $0x1], 0 }
   0x6   :  { %19 = vsyncpa [#allocation7], 0 }
   0x7   :  { %20 = vsyncpa [#allocation10], 0 }
   0x8   :  { %21 = vsyncpa [#allocation13], 0 }
   0x9   :  { %22 = vsyncpa [#allocation16], 0 }
   0xa   :  { %23 = vsyncpa [#allocation19], 0 }
   0xb   :  { %24 = vsyncpa [#allocation5], 0 }
   0xc   :  { %26 = vsyncpa [#allocation5 + $0x1], 0  ;;  %s18109_s17 = smov 0   ;;  %s18111_s18 = smov 0  }
   0xd   :  { %s18113_s19 = smov 0   ;;  %s18115_s20 = smov 0  }
   0xe LB: > { %s18024_s21 = smov [#allocation6]   ;;  %s18130_s23 = sadd.s32 4294967295, %s18022_s20   ;;  %s18022_s20 = sphi %s18115_s20, %s21892_s20   ;;  %s18018_s19 = sphi %s18113_s19, %s21891_s19   ;;  %s18014_s18 = sphi %s18111_s18, %s21890_s18   ;;  %s18010_s17 = sphi %s18109_s17, %s21889_s17  }
   0xf   : > { %s311_s22 = sshll.u32 %s18024_s21, 4  ;;  %p14344_p0 = scmp.ge.s32.totalorder %s18022_s20, 1  ;;  %s18135_s22 = int_to_ptr.vmem [resolvable:$true] %s311_s22 }
  0x10   : > { %p21819_p1 = scmp.eq.s32.totalorder %s18130_s23, 0  ;;  %p299_p2 = scmp.lt.s32.totalorder %s18022_s20, 3 }
  0x11   : > { %s18025_s25 = smov [#allocation9]   ;;  %s18026_s28 = smov [#allocation12]  }
  0x12   : > { %p18137_p3 = pnand %p14344_p0, %p299_p2  ;;  %s335_s26 = sshll.u32 %s18025_s25, 4  ;;  %s18150_s26 = int_to_ptr.vmem [resolvable:$true] %s335_s26 }
  0x13   : > { %s359_s29 = sshll.u32 %s18026_s28, 4  ;;  %s21831_s1 = sld [smem:[#allocation34_spill]]  ;;  %s18152_s29 = int_to_ptr.vmem [resolvable:$true] %s359_s29 }
  0x14   : > { %s21828_s24 = scalar_select %p18137_p3, 1, 0 }
  0x15   : > { %p17124_p5 = pneg %p18137_p3 }
  0x16   : > { %21829 = sst [smem:[#allocation29_spill]] %s21828_s24 }
  0x17   : > { %p18146_p6 = pnand %p17124_p5, %p21819_p1 }
  0x19   : > { %s17626_s13 = scalar_lea.hbm %s21831_s1, 192  ;;  %p18162_p8 = pneg %p18146_p6 }
  0x1a   : > { %p17627_p7 = scmp.ne.s32.totalorder %s21831_s1, %s17626_s13  ;;  %p17633_p11 = scmp.lt.u32.totalorder %s17626_s13, %s21831_s1 }
  0x1c   : > { %p17629_p9 = pnand %p18162_p8, %p17627_p7 }
  0x1e   : > { %p17630_p10 = pneg %p17629_p9 }
  0x20   : > { %p17635_p12 = pnand %p17633_p11, %p17630_p10 }
  0x22   : > { %17638 = shalt.err (!%p17635_p12)
}
  0x23   : > { %s17639_s28 = scalar_lea.vmem %s18135_s22, 192  ;;  %p17647_p5 = scmp.lt.s32.totalorder %s18135_s22, %s18135_s22 }
  0x24   : > { %p17640_p13 = scmp.ne.s32.totalorder %s18135_s22, %s17639_s28  ;;  %p17648_p4 = scmp.lt.s32.totalorder %s17639_s28, %s17639_s28 }
  0x26   : > { %p17642_p0 = pnand %p17640_p13, %p18162_p8  ;;  %p17649_p7 = por %p17648_p4, %p17647_p5 }
  0x28   : > { %p17643_p2 = pneg %p17642_p0 }
  0x2a   : > { %p17650_p9 = pnand %p17649_p7, %p17643_p2 }
  0x2c   : > { %17653 = shalt.err (!%p17650_p9)
}
  0x2d   : > { %s18027_s30 = smov 64   ;;  %s18028_s12 = smov 4  }
  0x2e   : > { %17127 = dma.hbm_to_vmem [thread:$0]  (!%p18146_p6), %s21831_s1, 192, %s18135_s22, [#allocation7], %s18027_s30, %s18027_s30, %s18028_s12  }
  0x2f   : > { %s17654_s25 = scalar_lea.hbm %s21807_s3, 384 }
  0x30   : > { %p17655_p4 = scmp.ne.s32.totalorder %s21807_s3, %s17654_s25  ;;  %p17661_p12 = scmp.lt.u32.totalorder %s17654_s25, %s21807_s3 }
  0x32   : > { %p17657_p10 = pnand %p17655_p4, %p18162_p8 }
  0x34   : > { %p17658_p11 = pneg %p17657_p10 }
  0x36   : > { %p17663_p13 = pnand %p17661_p12, %p17658_p11 }
  0x38   : > { %17666 = shalt.err (!%p17663_p13)
}
  0x39   : > { %s17667_s22 = scalar_lea.vmem %s18150_s26, 384  ;;  %p17675_p7 = scmp.lt.s32.totalorder %s18150_s26, %s18150_s26 }
  0x3a   : > { %p17668_p0 = scmp.ne.s32.totalorder %s18150_s26, %s17667_s22  ;;  %p17676_p9 = scmp.lt.s32.totalorder %s17667_s22, %s17667_s22 }
  0x3c   : > { %p17670_p2 = pnand %p17668_p0, %p18162_p8  ;;  %p17677_p4 = por %p17676_p9, %p17675_p7 }
  0x3e   : > { %p17671_p5 = pneg %p17670_p2 }
  0x40   : > { %p17678_p10 = pnand %p17677_p4, %p17671_p5 }
  0x42   : > { %17681 = shalt.err (!%p17678_p10)
}
  0x43   : > { %17133 = dma.hbm_to_vmem [thread:$0]  (!%p18146_p6), %s21807_s3, 384, %s18150_s26, [#allocation10], %s18027_s30, %s18027_s30, %s18028_s12  }
  0x44   : > { %s17682_s14 = scalar_lea.hbm %s21809_s5, 384 }
  0x45   : > { %p17683_p11 = scmp.ne.s32.totalorder %s21809_s5, %s17682_s14  ;;  %p17689_p0 = scmp.lt.u32.totalorder %s17682_s14, %s21809_s5 }
  0x47   : > { %p17685_p12 = pnand %p17683_p11, %p18162_p8 }
  0x49   : > { %p17686_p13 = pneg %p17685_p12 }
  0x4b   : > { %p17691_p2 = pnand %p17689_p0, %p17686_p13 }
  0x4d   : > { %17694 = shalt.err (!%p17691_p2)
}
  0x4e   : > { %s17695_s26 = scalar_lea.vmem %s18152_s29, 384  ;;  %p17703_p4 = scmp.lt.s32.totalorder %s18152_s29, %s18152_s29 }
  0x4f   : > { %p17696_p5 = scmp.ne.s32.totalorder %s18152_s29, %s17695_s26  ;;  %p17704_p10 = scmp.lt.s32.totalorder %s17695_s26, %s17695_s26 }
  0x51   : > { %p17698_p7 = pnand %p17696_p5, %p18162_p8  ;;  %p17705_p11 = por %p17704_p10, %p17703_p4 }
  0x53   : > { %p17699_p9 = pneg %p17698_p7 }
  0x55   : > { %p17706_p12 = pnand %p17705_p11, %p17699_p9 }
  0x57   : > { %17709 = shalt.err (!%p17706_p12)
}
  0x58   : > { %17139 = dma.hbm_to_vmem [thread:$0]  (!%p18146_p6), %s21809_s5, 384, %s18152_s29, [#allocation13], %s18027_s30, %s18027_s30, %s18028_s12  }
  0x59   : > { %s18029_s11 = smov [#allocation15]   ;;  %s18030_s13 = smov [#allocation18]  }
  0x5a   : > { %s383_s24 = sshll.u32 %s18029_s11, 4  ;;  %s407_s14 = sshll.u32 %s18030_s13, 4  ;;  %s384_s24 = int_to_ptr.vmem [resolvable:$true] %s383_s24  ;;  %s408_s14 = int_to_ptr.vmem [resolvable:$true] %s407_s14 }
  0x5b   : > { %s17710_s25 = scalar_lea.hbm %s21811_s7, 576 }
  0x5c   : > { %p17711_p13 = scmp.ne.s32.totalorder %s21811_s7, %s17710_s25  ;;  %p17717_p5 = scmp.lt.u32.totalorder %s17710_s25, %s21811_s7 }
  0x5e   : > { %p17713_p0 = pnand %p17711_p13, %p18162_p8 }
  0x60   : > { %p17714_p2 = pneg %p17713_p0 }
  0x62   : > { %p17719_p7 = pnand %p17717_p5, %p17714_p2 }
  0x64   : > { %17722 = shalt.err (!%p17719_p7)
}
  0x65   : > { %s17723_s29 = scalar_lea.vmem %s384_s24, 576  ;;  %p17731_p11 = scmp.lt.s32.totalorder %s384_s24, %s384_s24 }
  0x66   : > { %p17724_p9 = scmp.ne.s32.totalorder %s384_s24, %s17723_s29  ;;  %p17732_p12 = scmp.lt.s32.totalorder %s17723_s29, %s17723_s29 }
  0x68   : > { %p17726_p4 = pnand %p17724_p9, %p18162_p8  ;;  %p17733_p1 = por %p17732_p12, %p17731_p11 }
  0x6a   : > { %p17727_p10 = pneg %p17726_p4 }
  0x6c   : > { %p17734_p3 = pnand %p17733_p1, %p17727_p10 }
  0x6e   : > { %17737 = shalt.err (!%p17734_p3)
}
  0x6f   : > { %17145 = dma.hbm_to_vmem [thread:$0]  (!%p18146_p6), %s21811_s7, 576, %s384_s24, [#allocation16], %s18027_s30, %s18027_s30, %s18028_s12  }
  0x70   : > { %s17738_s15 = scalar_lea.hbm %s21813_s9, 576 }
  0x71   : > { %p17739_p1 = scmp.ne.s32.totalorder %s21813_s9, %s17738_s15  ;;  %p17745_p0 = scmp.lt.u32.totalorder %s17738_s15, %s21813_s9 }
  0x73   : > { %p17741_p3 = pnand %p17739_p1, %p18162_p8 }
  0x75   : > { %p17742_p13 = pneg %p17741_p3 }
  0x77   : > { %p17747_p2 = pnand %p17745_p0, %p17742_p13 }
  0x79   : > { %17750 = shalt.err (!%p17747_p2)
}
  0x7a   : > { %s17751_s22 = scalar_lea.vmem %s408_s14, 576  ;;  %p17759_p4 = scmp.lt.s32.totalorder %s408_s14, %s408_s14 }
  0x7b   : > { %p17752_p5 = scmp.ne.s32.totalorder %s408_s14, %s17751_s22  ;;  %p17760_p10 = scmp.lt.s32.totalorder %s17751_s22, %s17751_s22 }
  0x7d   : > { %p17754_p7 = pnand %p17752_p5, %p18162_p8  ;;  %p17761_p11 = por %p17760_p10, %p17759_p4 }
  0x7f   : > { %p17755_p9 = pneg %p17754_p7 }
  0x81   : > { %p17762_p12 = pnand %p17761_p11, %p17755_p9 }
  0x83   : > { %17765 = shalt.err (!%p17762_p12)
}
  0x84   : > { %17151 = dma.hbm_to_vmem [thread:$0]  (!%p18146_p6), %s21813_s9, 576, %s408_s14, [#allocation19], %s18027_s30, %s18027_s30, %s18028_s12  }
  0x85   : > { %s18031_s1 = smov [#allocation8]   ;;  %s18032_s11 = smov [#allocation11]  }
  0x86   : > { %s325_s0 = sshll.u32 %s18031_s1, 4  ;;  %s349_s13 = sshll.u32 %s18032_s11, 4  ;;  %s326_s0 = int_to_ptr.vmem [resolvable:$true] %s325_s0  ;;  %s350_s13 = int_to_ptr.vmem [resolvable:$true] %s349_s13 }
  0x87   : > { %s17766_s25 = scalar_lea.hbm %s21806_s2, 16 }
  0x88   : > { %p17767_p1 = scmp.ne.s32.totalorder %s21806_s2, %s17766_s25  ;;  %p17773_p0 = scmp.lt.u32.totalorder %s17766_s25, %s21806_s2 }
  0x8a   : > { %p17769_p3 = pnand %p17767_p1, %p18162_p8 }
  0x8c   : > { %p17770_p13 = pneg %p17769_p3 }
  0x8e   : > { %p17775_p2 = pnand %p17773_p0, %p17770_p13 }
  0x90   : > { %17778 = shalt.err (!%p17775_p2)
}
  0x91   : > { %s17779_s30 = scalar_lea.vmem %s326_s0, 16  ;;  %s17786_s12 = scalar_lea.vmem %s326_s0, 32 }
  0x92   : > { %p17780_p5 = scmp.ne.s32.totalorder %s326_s0, %s17779_s30  ;;  %p17787_p4 = scmp.lt.s32.totalorder %s326_s0, %s326_s0 }
  0x93   : > { %p17788_p10 = scmp.lt.s32.totalorder %s17786_s12, %s17779_s30 }
  0x94   : > { %p17782_p7 = pnand %p17780_p5, %p18162_p8 }
  0x95   : > { %p17789_p11 = por %p17788_p10, %p17787_p4 }
  0x96   : > { %p17783_p9 = pneg %p17782_p7 }
  0x98   : > { %p17790_p12 = pnand %p17789_p11, %p17783_p9 }
  0x9a   : > { %17793 = shalt.err (!%p17790_p12)
}
  0x9b   : > { %17130 = dma.hbm_to_vmem [thread:$0]  (!%p18146_p6), %s21806_s2, 16, %s326_s0, [#allocation7]  }
  0x9c   : > { %s17794_s15 = scalar_lea.hbm %s21808_s4, 16 }
  0x9d   : > { %p17795_p1 = scmp.ne.s32.totalorder %s21808_s4, %s17794_s15  ;;  %p17801_p0 = scmp.lt.u32.totalorder %s17794_s15, %s21808_s4 }
  0x9f   : > { %p17797_p3 = pnand %p17795_p1, %p18162_p8 }
  0xa1   : > { %p17798_p13 = pneg %p17797_p3 }
  0xa3   : > { %p17803_p2 = pnand %p17801_p0, %p17798_p13 }
  0xa5   : > { %17806 = shalt.err (!%p17803_p2)
}
  0xa6   : > { %s17807_s22 = scalar_lea.vmem %s350_s13, 16  ;;  %s17814_s0 = scalar_lea.vmem %s350_s13, 32 }
  0xa7   : > { %p17808_p5 = scmp.ne.s32.totalorder %s350_s13, %s17807_s22  ;;  %p17815_p4 = scmp.lt.s32.totalorder %s350_s13, %s350_s13 }
  0xa8   : > { %p17816_p10 = scmp.lt.s32.totalorder %s17814_s0, %s17807_s22 }
  0xa9   : > { %p17810_p7 = pnand %p17808_p5, %p18162_p8 }
  0xaa   : > { %p17817_p11 = por %p17816_p10, %p17815_p4 }
  0xab   : > { %p17811_p9 = pneg %p17810_p7 }
  0xad   : > { %p17818_p12 = pnand %p17817_p11, %p17811_p9 }
  0xaf   : > { %17821 = shalt.err (!%p17818_p12)
}
  0xb0   : > { %17136 = dma.hbm_to_vmem [thread:$0]  (!%p18146_p6), %s21808_s4, 16, %s350_s13, [#allocation10]  }
  0xb1   : > { %s18033_s12 = smov [#allocation14]   ;;  %s18034_s29 = smov [#allocation17]  }
  0xb2   : > { %s373_s14 = sshll.u32 %s18033_s12, 4  ;;  %s397_s1 = sshll.u32 %s18034_s29, 4  ;;  %s374_s14 = int_to_ptr.vmem [resolvable:$true] %s373_s14  ;;  %s398_s1 = int_to_ptr.vmem [resolvable:$true] %s397_s1 }
  0xb3   : > { %s17822_s21 = scalar_lea.hbm %s21810_s6, 16 }
  0xb4   : > { %p17823_p1 = scmp.ne.s32.totalorder %s21810_s6, %s17822_s21  ;;  %p17829_p0 = scmp.lt.u32.totalorder %s17822_s21, %s21810_s6 }
  0xb6   : > { %p17825_p3 = pnand %p17823_p1, %p18162_p8 }
  0xb8   : > { %p17826_p13 = pneg %p17825_p3 }
  0xba   : > { %p17831_p2 = pnand %p17829_p0, %p17826_p13 }
  0xbc   : > { %17834 = shalt.err (!%p17831_p2)
}
  0xbd   : > { %s17835_s13 = scalar_lea.vmem %s374_s14, 16  ;;  %s17842_s0 = scalar_lea.vmem %s374_s14, 32 }
  0xbe   : > { %p17836_p5 = scmp.ne.s32.totalorder %s374_s14, %s17835_s13  ;;  %p17843_p4 = scmp.lt.s32.totalorder %s374_s14, %s374_s14 }
  0xbf   : > { %p17844_p10 = scmp.lt.s32.totalorder %s17842_s0, %s17835_s13 }
  0xc0   : > { %p17838_p7 = pnand %p17836_p5, %p18162_p8 }
  0xc1   : > { %p17845_p11 = por %p17844_p10, %p17843_p4 }
  0xc2   : > { %p17839_p9 = pneg %p17838_p7 }
  0xc4   : > { %p17846_p12 = pnand %p17845_p11, %p17839_p9 }
  0xc6   : > { %17849 = shalt.err (!%p17846_p12)
}
  0xc7   : > { %17142 = dma.hbm_to_vmem [thread:$0]  (!%p18146_p6), %s21810_s6, 16, %s374_s14, [#allocation13]  }
  0xc8   : > { %s17850_s11 = scalar_lea.hbm %s21812_s8, 16 }
  0xc9   : > { %p17851_p1 = scmp.ne.s32.totalorder %s21812_s8, %s17850_s11  ;;  %p17857_p0 = scmp.lt.u32.totalorder %s17850_s11, %s21812_s8 }
  0xcb   : > { %p17853_p3 = pnand %p17851_p1, %p18162_p8 }
  0xcd   : > { %p17854_p13 = pneg %p17853_p3 }
  0xcf   : > { %p17859_p2 = pnand %p17857_p0, %p17854_p13 }
  0xd1   : > { %17862 = shalt.err (!%p17859_p2)
}
  0xd2   : > { %s17863_s26 = scalar_lea.vmem %s398_s1, 16  ;;  %s17870_s14 = scalar_lea.vmem %s398_s1, 32 }
  0xd3   : > { %p17864_p5 = scmp.ne.s32.totalorder %s398_s1, %s17863_s26  ;;  %p17871_p4 = scmp.lt.s32.totalorder %s398_s1, %s398_s1 }
  0xd4   : > { %p17872_p10 = scmp.lt.s32.totalorder %s17870_s14, %s17863_s26 }
  0xd5   : > { %p17866_p7 = pnand %p17864_p5, %p18162_p8 }
  0xd6   : > { %p17873_p11 = por %p17872_p10, %p17871_p4 }
  0xd7   : > { %p17867_p9 = pneg %p17866_p7 }
  0xd9   : > { %p17874_p12 = pnand %p17873_p11, %p17867_p9 }
  0xdb   : > { %17877 = shalt.err (!%p17874_p12)
}
  0xdc   : > { %17148 = dma.hbm_to_vmem [thread:$0]  (!%p18146_p6), %s21812_s8, 16, %s398_s1, [#allocation16]  }
  0xdd   : > { %s18035_s0 = smov [#allocation20]   ;;  %s17878_s29 = scalar_lea.hbm %s21814_s10, 16 }
  0xde   : > { %s421_s24 = sshll.u32 %s18035_s0, 4  ;;  %p17879_p1 = scmp.ne.s32.totalorder %s21814_s10, %s17878_s29  ;;  %s422_s24 = int_to_ptr.vmem [resolvable:$true] %s421_s24 }
  0xdf   : > { %p17885_p0 = scmp.lt.u32.totalorder %s17878_s29, %s21814_s10 }
  0xe0   : > { %p17881_p3 = pnand %p17879_p1, %p18162_p8 }
  0xe2   : > { %p17882_p13 = pneg %p17881_p3 }
  0xe4   : > { %p17887_p2 = pnand %p17885_p0, %p17882_p13 }
  0xe6   : > { %17890 = shalt.err (!%p17887_p2)
}
  0xe7   : > { %s17891_s1 = scalar_lea.vmem %s422_s24, 16  ;;  %s17898_s28 = scalar_lea.vmem %s422_s24, 32 }
  0xe8   : > { %p17892_p5 = scmp.ne.s32.totalorder %s422_s24, %s17891_s1  ;;  %p17899_p4 = scmp.lt.s32.totalorder %s422_s24, %s422_s24 }
  0xe9   : > { %p17900_p10 = scmp.lt.s32.totalorder %s17898_s28, %s17891_s1 }
  0xea   : > { %p17894_p7 = pnand %p17892_p5, %p18162_p8 }
  0xeb   : > { %p17901_p11 = por %p17900_p10, %p17899_p4 }
  0xec   : > { %p17895_p9 = pneg %p17894_p7 }
  0xee   : > { %p17902_p12 = pnand %p17901_p11, %p17895_p9 }
  0xf0   : > { %17905 = shalt.err (!%p17902_p12)
}
  0xf1   : > { %17154 = dma.hbm_to_vmem [thread:$0]  (!%p18146_p6), %s21814_s10, 16, %s422_s24, [#allocation19]  }
  0xf2   : > { %s14343_s16 = sadd.s32 4294967294, %s18022_s20   ;;  %s18372_s27 = sadd.s32 1, %s18022_s20  }
  0xf3   : > { %s36_s22 = ssub.s32 %s18022_s20, %s18372_s27  ;;  %s39_s13 = sadd.s32 1, %s18018_s19 }
  0xf4   : > { %p37_p8 = scmp.eq.s32.totalorder %s36_s22, 0  ;;  %p46_p1 = scmp.ne.s32.totalorder %s18018_s19, %s18014_s18 }
  0xf5   : > { %p47_p3 = scmp.eq.s32.totalorder %s18022_s20, 0  ;;  %p52_p13 = scmp.ne.s32.totalorder %s18014_s18, %s18010_s17 }
  0xf6   : > { %s18383_s0 = scalar_select %p37_p8, %s18018_s19, %s39_s13  }
  0xf7   : > { %p18385_p0 = por %p47_p3, %p46_p1  ;;  %p21834_p2 = scmp.eq.s32.totalorder %s18130_s23, 0 }
  0xf8   : > { %p286_p5 = scmp.eq.s32.totalorder %s18130_s23, 1  ;;  %p292_p7 = scmp.eq.s32.totalorder %s14343_s16, 1 }
  0xf9   : > { %p18391_p6 = por %p21834_p2, %p52_p13  ;;  %p17173_p9 = scmp.lt.s32.totalorder %s18022_s20, 2 }
  0xfa   : > { %s432_s12 = sand.u32 1, %s18018_s19   ;;  %p18398_p4 = por %p286_p5, %p46_p1 }
  0xfb   : > { %p18402_p10 = por %p292_p7, %p52_p13  ;;  %s14356_s15 = sshll.u32 %s432_s12, 8 }
  0xfc   : > { %s21836_s29 = scalar_select %p18398_p4, 1, 0 }
  0xfd   : > { %s21837_s11 = scalar_select %p18402_p10, 1, 0 }
  0xfe   : > { %s15280_s21 = sshll.u32 %s18022_s20, 12  ;;  %s21838_s28 = sld [smem:[#allocation33_spill]] }
  0xff   : > { %s436_s14 = scalar_lea.vmem [#allocation3], %s14356_s15  ;;  %p18416_p11 = pnand %p17173_p9, %p18385_p0 }
 0x100   : > { %s443_s16 = sshll.u32 %s436_s14, 4  ;;  %s18420_s13 = scalar_lea.sflag [#allocation4], %s432_s12  ;;  %s18412_s16 = int_to_ptr.vmem [resolvable:$true] %s443_s16 }
 0x101   : > { %p17908_p8 = pneg %p18416_p11 }
 0x104   : > { %s18410_s26 = scalar_lea.hbm %s21838_s28, %s15280_s21  ;;  %s17911_s30 = scalar_lea.hbm %s21838_s28, 8192 }
 0x105   : > { %s17906_s25 = scalar_lea.hbm %s18410_s26, 4096  ;;  %p17912_p13 = scmp.lt.u32.totalorder %s18410_s26, %s21838_s28 }
 0x106   : > { %p17907_p12 = scmp.ne.s32.totalorder %s18410_s26, %s17906_s25  ;;  %p17913_p0 = scmp.lt.u32.totalorder %s17911_s30, %s17906_s25 }
 0x107   : > { %p17915_p5 = scmp.lt.u32.totalorder %s17906_s25, %s18410_s26 }
 0x108   : > { %p17909_p1 = pnand %p17908_p8, %p17907_p12  ;;  %p17914_p2 = por %p17913_p0, %p17912_p13 }
 0x10a   : > { %p17910_p3 = pneg %p17909_p1  ;;  %p17916_p7 = por %p17915_p5, %p17914_p2 }
 0x10c   : > { %p17917_p9 = pnand %p17916_p7, %p17910_p3 }
 0x10e   : > { %17920 = shalt.err (!%p17917_p9)
}
 0x10f   : > { %s17921_s12 = scalar_lea.vmem %s18412_s16, 4096  ;;  %s18036_s15 = smov [#allocation3]  }
 0x110   : > { %p17922_p12 = scmp.ne.s32.totalorder %s18412_s16, %s17921_s12  ;;  %s17926_s21 = sshll.u32 %s18036_s15, 4  ;;  %s17927_s21 = int_to_ptr.vmem [resolvable:$false] %s17926_s21 }
 0x111   : > { %s17928_s1 = scalar_lea.vmem %s17927_s21, 8192  ;;  %p17929_p4 = scmp.lt.s32.totalorder %s18412_s16, %s17927_s21 }
 0x112   : > { %p17924_p1 = pnand %p17922_p12, %p17908_p8  ;;  %p17930_p13 = scmp.lt.s32.totalorder %s17928_s1, %s17921_s12 }
 0x114   : > { %p17925_p10 = pneg %p17924_p1  ;;  %p17931_p0 = por %p17930_p13, %p17929_p4 }
 0x116   : > { %p17932_p2 = pnand %p17931_p0, %p17925_p10 }
 0x118   : > { %17935 = shalt.err (!%p17932_p2)
}
 0x119   : > { %s18037_s25 = smov 128   ;;  %s18038_s30 = smov 8  }
 0x11a   : > { %17158 = dma.hbm_to_vmem [thread:$0]  (!%p18416_p11), %s18410_s26, 4096, %s18412_s16, %s18420_s13, %s18037_s25, %s18037_s25, %s18038_s30  }
 0x11b   : > { %s21840_s14 = sld [smem:[#allocation29_spill]] }
 0x121   : > { %p21841_p8 = scmp.ne.s32.totalorder %s21840_s14, 0 }
 0x123   : > { %455 = sbr.rel (%p21841_p8) target bundleno = 3788 (0xecc), region = 64 }
 0x12a   : > { %s18451_s15 = sand.u32 1, %s18014_s18  }
 0x12b   : > { %s14360_s12 = sshll.u32 %s18451_s15, 8  ;;  %s458_s21 = scalar_lea.sflag [#allocation4], %s18451_s15 }
 0x12c   : > { %s18457_s1 = scalar_lea.vmem [#allocation3], %s14360_s12 }
 0x12d   : > { %17981 = dma.done.wait (%p18391_p6), %s458_s21, 4096  }
 0x12e   : > { %17983 = vsyncadd (%p18391_p6), %s458_s21, 4294963200  ;;  %p21842_p4 = scmp.eq.s32.totalorder %s18130_s23, 0 }
 0x130   : > { %17985 = dma.done.wait (%p21842_p4), [#allocation7], 208   ;;  %p21843_p10 = pmov %p21842_p4 }
 0x131   : > { %p21844_p11 = pmov %p21842_p4 }
 0x132   : > { %17987 = vsyncadd (%p21843_p10), [#allocation7], 4294967088 }
 0x133   : > { %17989 = dma.done.wait (%p21844_p11), [#allocation10], 400   ;;  %p21845_p3 = pmov %p21842_p4 }
 0x135   : > { %17991 = vsyncadd (%p21845_p3), [#allocation10], 4294966896  ;;  %p21846_p5 = pmov %p21845_p3 }
 0x136   : > { %p21847_p7 = pmov %p21845_p3 }
 0x137   : > { %17993 = dma.done.wait (%p21846_p5), [#allocation13], 400  }
 0x138   : > { %17995 = vsyncadd (%p21847_p7), [#allocation13], 4294966896  ;;  %p21848_p6 = pmov %p21845_p3 }
 0x139   : > { %p21849_p9 = pmov %p21845_p3 }
 0x13a   : > { %17997 = dma.done.wait (%p21848_p6), [#allocation16], 592  }
 0x13b   : > { %17999 = vsyncadd (%p21849_p9), [#allocation16], 4294966704  ;;  %p21850_p12 = pmov %p21845_p3 }
 0x13c   : > { %p21851_p1 = pmov %p21845_p3 }
 0x13d   : > { %18001 = dma.done.wait (%p21850_p12), [#allocation19], 592  }
 0x13e   : > { %18003 = vsyncadd (%p21851_p1), [#allocation19], 4294966704  ;;  %vm541_vm0 = vcmask 191488   ;;  %v18039_v0 = vmov 0   ;;  %vm549_vm1 = vcmask 188416   ;;  %vm1523_vm3 = vcmask 1043456  }
 0x13f   : > { %542 = vst.msk [vmem:[#allocation2] sm:$0xf] %vm541_vm0, %v18039_v0  ;;  %543 = vst.msk [vmem:[#allocation2 + $0x4] sm:$0xf] %vm541_vm0, %v18039_v0  ;;  %vm550_vm2 = vsmask.f32 256 }
 0x140   : > { %544 = vst.msk [vmem:[#allocation2 + $0x8] sm:$0xf] %vm541_vm0, %v18039_v0  ;;  %546 = vst.msk [vmem:[#allocation2 + $0xcc] sm:$0xf] %vm541_vm0, %v18039_v0  ;;  %vm607_vm4 = vsmask.f32 7938 }
 0x141   : > { %547 = vst.msk [vmem:[#allocation2 + $0xd0] sm:$0xf] %vm541_vm0, %v18039_v0  ;;  %548 = vst.msk [vmem:[#allocation2 + $0xd4] sm:$0xf] %vm541_vm0, %v18039_v0  ;;  %vm791_vm6 = vsmask.f32 4368 }
 0x142   : > { %vm18490_vm5 = vmand %vm549_vm1, %vm550_vm2  ;;  %vm1114_vm7 = vcmask 60416   ;;  %v1279_v2 = vld [vmem:[#allocation6] sm:$0xf]  ;;  %v1329_v3 = vld [vmem:[#allocation6 + $0x4] sm:$0xf]  ;;  %vm1450_vm9 = vcmask 64512  }
 0x143   : > { %v18494_v4 = vld [vmem:[#allocation6 + $0x8] sm:$0xf]  ;;  %17068 = vmatprep.subr.msk.bf16.mxu0 %vm1523_vm3, %v1279_v2  ;;  %v18498_v5 = vsel %vm1523_vm3, %v1279_v2, 0  ;;  %17067 = vmatprep.subr.msk.bf16.mxu1 %vm1523_vm3, %v1329_v3  ;;  %v1525_v6 = vsel %vm1523_vm3, %v1329_v3, 0  ;;  %vm18504_vm8 = vmand %vm541_vm0, %vm607_vm4  ;;  %v555_v10 = vld [vmem:[#allocation2 + $0xc] sm:$0x1] }
 0x144   : > { %15874 = vmatpush3.bf16.msra.mxu0 %v18498_v5  ;;  %15824 = vmatpush3.bf16.msra.mxu1 %v1525_v6  ;;  %v663_v11 = vld [vmem:[%s18457_s1] sm:$0xff]  ;;  %v664_v12 = vld [vmem:[%s18457_s1 + $0x8] sm:$0xff]  ;;  %vm1121_vm10 = vcmask 57344   ;;  %v556_v13 = vsel %vm18490_vm5, 0, %v555_v10  ;;  %v665_v18 = vld [vmem:[%s18457_s1 + $0x10] sm:$0xff]  ;;  %vm2987_vm14 = vcmask 1045504  }
 0x145   : > { %17070 = vmatprep.subr.msk.bf16.mxu0 %vm1523_vm3, %v18494_v4  ;;  %v15281_v14 = vpack.c.bf16 %v663_v11, %v663_v11  ;;  %v15282_v15 = vpack.c.bf16 %v664_v12, %v664_v12  ;;  %v558_v17 = vld [vmem:[#allocation2 + $0x18] sm:$0x1]  ;;  %17069 = vmatprep.subr.msk.bf16.mxu1 %vm1523_vm3, %v1279_v2  ;;  %557 = vst [vmem:[#allocation2 + $0xc] sm:$0x1] %v556_v13  ;;  %v612_v21 = vld [vmem:[#allocation2 + $0x14] sm:$0xf]  ;;  %vm18534_vm11 = vmor %vm550_vm2, %vm791_vm6 }
 0x146   : > { %v552_v7 = vld [vmem:[#allocation2] sm:$0x1]  ;;  %v559_v20 = vsel %vm18490_vm5, 0, %v558_v17  ;;  %v15283_v22 = vpack.c.bf16 %v665_v18, %v665_v18  ;;  %v666_v28 = vld [vmem:[%s18457_s1 + $0x18] sm:$0xff]  ;;  %v667_v29 = vld [vmem:[%s18457_s1 + $0x20] sm:$0xff]  ;;  %v613_v30 = vsel %vm18504_vm8, 0, %v612_v21 }
 0x147   : > { %v553_v9 = vsel %vm18490_vm5, 0, %v552_v7  ;;  %v609_v16 = vld [vmem:[#allocation2 + $0x8] sm:$0xf]  ;;  %v615_v23 = vld [vmem:[#allocation2 + $0x20] sm:$0xf]  ;;  %v794_v24 = vshrl.u32 %v15281_v14, 16  ;;  %v15284_v37 = vpack.c.bf16 %v666_v28, %v666_v28  ;;  %v15285_v43 = vpack.c.bf16 %v667_v29, %v667_v29  ;;  %vm18542_vm12 = vmand %vm1114_vm7, %vm607_vm4 }
 0x148   : > { %554 = vst [vmem:[#allocation2] sm:$0x1] %v553_v9  ;;  %v610_v19 = vsel %vm18504_vm8, 0, %v609_v16  ;;  %v797_v25 = vshll.u32 %v15281_v14, 16  ;;  %v802_v26 = vshrl.u32 %v15282_v15, 16  ;;  %v805_v27 = vshll.u32 %v15282_v15, 16  ;;  %vm18556_vm13 = vmand %vm1121_vm10, %vm550_vm2 }
 0x149   : > { %611 = vst [vmem:[#allocation2 + $0x8] sm:$0xf] %v610_v19  ;;  %560 = vst [vmem:[#allocation2 + $0x18] sm:$0x1] %v559_v20  ;;  %v811_v31 = vshrl.u32 %v15283_v22, 16  ;;  %v814_v32 = vshll.u32 %v15283_v22, 16 }
 0x14a   : > { %v616_v33 = vsel %vm18504_vm8, 0, %v615_v23  ;;  %v561_v34 = vld [vmem:[#allocation2 + $0x24] sm:$0x1]  ;;  %v796_v35 = vrot.slane %v794_v24, 7  ;;  %v804_v36 = vrot.slane %v802_v26, 7  ;;  %v669_v52 = vld [vmem:[%s18457_s1 + $0x30] sm:$0xff] }
 0x14b   : > { %614 = vst [vmem:[#allocation2 + $0x14] sm:$0xf] %v613_v30  ;;  %617 = vst [vmem:[#allocation2 + $0x20] sm:$0xf] %v616_v33  ;;  %v562_v38 = vsel %vm18490_vm5, 0, %v561_v34  ;;  %v668_v39 = vld [vmem:[%s18457_s1 + $0x28] sm:$0xff]  ;;  %v15287_v9 = vpack.c.bf16 %v669_v52, %v669_v52 }
 0x14c   : > { %v564_v40 = vld [vmem:[#allocation2 + $0x30] sm:$0x1]  ;;  %v813_v42 = vrot.slane %v811_v31, 7  ;;  %563 = vst [vmem:[#allocation2 + $0x24] sm:$0x1] %v562_v38  ;;  %v15286_v44 = vpack.c.bf16 %v668_v39, %v668_v39  ;;  %v799_v47 = vor.u32 %v797_v25, %v796_v35  ;;  %v800_v48 = vrot.slane %v796_v35, 4 }
 0x14d   : > { %v565_v45 = vsel %vm18490_vm5, 0, %v564_v40  ;;  %v807_v49 = vor.u32 %v805_v27, %v804_v36  ;;  %v809_v50 = vrot.slane %v804_v36, 4  ;;  %v618_v51 = vld [vmem:[#allocation2 + $0x2c] sm:$0xf]  ;;  %v819_v56 = vshrl.u32 %v15284_v37, 16  ;;  %v670_v63 = vld [vmem:[%s18457_s1 + $0x38] sm:$0xff] }
 0x14e   : > { %566 = vst [vmem:[#allocation2 + $0x30] sm:$0x1] %v565_v45  ;;  %v816_v54 = vor.u32 %v814_v32, %v813_v42  ;;  %v817_v55 = vrot.slane %v813_v42, 4  ;;  %v822_v57 = vshll.u32 %v15284_v37, 16  ;;  %v1116_v59 = vld [vmem:[#allocation2 + $0xc] sm:$0xf]  ;;  %v15288_v20 = vpack.c.bf16 %v670_v63, %v670_v63 }
 0x14f   : > { %v17240_v53 = vld [vmem:[#allocation2] sm:$0xff]   ;;  %v808_v58 = vsel %vm18534_vm11, %v800_v48, %v807_v49  ;;  %v828_v60 = vshrl.u32 %v15285_v43, 16  ;;  %v831_v61 = vshll.u32 %v15285_v43, 16  ;;  %v836_v62 = vshrl.u32 %v15286_v44, 16  ;;  %v621_v14 = vld [vmem:[#allocation2 + $0x38] sm:$0xf] }
 0x150   : > { %15875 = vmatprep.mubr.msk.bf16.mxu0 %vm1450_vm9, %v17240_v53  ;;  %v1117_v0 = vsel %vm18542_vm12, %v799_v47, %v1116_v59  ;;  %1120 = vst.msk [vmem:[#allocation2 + $0x10] sm:$0xf] %vm1114_vm7, %v808_v58  ;;  %v1126_v3 = vld [vmem:[#allocation2 + $0x18] sm:$0xf]  ;;  %v821_v6 = vrot.slane %v819_v56, 7  ;;  %v839_v7 = vshll.u32 %v15286_v44, 16 }
 0x151   : > { %1118 = vst [vmem:[#allocation2 + $0xc] sm:$0xf] %v1117_v0  ;;  %v1127_v10 = vsel %vm18542_vm12, %v816_v54, %v1126_v3  ;;  %v830_v11 = vrot.slane %v828_v60, 7  ;;  %v838_v12 = vrot.slane %v836_v62, 7  ;;  %v619_v13 = vsel %vm18504_vm8, 0, %v618_v51  ;;  %v671_v31 = vld [vmem:[%s18457_s1 + $0x40] sm:$0xff] }
 0x152   : > { %v1123_v15 = vld [vmem:[#allocation2 + $0x14] sm:$0x1]  ;;  %1128 = vst [vmem:[#allocation2 + $0x18] sm:$0xf] %v1127_v10  ;;  %v824_v16 = vor.u32 %v822_v57, %v821_v6  ;;  %v826_v17 = vrot.slane %v821_v6, 4  ;;  %v845_v19 = vshrl.u32 %v15287_v9, 16  ;;  %v15289_v47 = vpack.c.bf16 %v671_v31, %v671_v31 }
 0x153   : > { %v1130_v18 = vld [vmem:[#allocation2 + $0x20] sm:$0x1]  ;;  %620 = vst [vmem:[#allocation2 + $0x2c] sm:$0xf] %v619_v13  ;;  %v1124_v21 = vsel %vm18556_vm13, %v809_v50, %v1123_v15  ;;  %v833_v22 = vor.u32 %v831_v61, %v830_v11  ;;  %v834_v23 = vrot.slane %v830_v11, 4  ;;  %v841_v24 = vor.u32 %v839_v7, %v838_v12  ;;  %v673_v59 = vld [vmem:[%s18457_s1 + $0x50] sm:$0xff] }
 0x154   : > { %v1133_v25 = vld [vmem:[#allocation2 + $0x24] sm:$0xf]  ;;  %v567_v26 = vld [vmem:[#allocation2 + $0x3c] sm:$0x1]  ;;  %v2416_v27 = vsel %vm1523_vm3, %v18494_v4, 0  ;;  %v825_v28 = vsel %vm18534_vm11, %v817_v55, %v824_v16  ;;  %v1131_v29 = vsel %vm18556_vm13, %v826_v17, %v1130_v18  ;;  %v847_v30 = vrot.slane %v845_v19, 7 }
 0x155   : > { %1125 = vst [vmem:[#allocation2 + $0x14] sm:$0x1] %v1124_v21  ;;  %v570_v32 = vld [vmem:[#allocation2 + $0x48] sm:$0x1]  ;;  %1129 = vst.msk [vmem:[#allocation2 + $0x1c] sm:$0xf] %vm1114_vm7, %v825_v28  ;;  %v842_v33 = vsel %vm18534_vm11, %v834_v23, %v841_v24  ;;  %v1134_v34 = vsel %vm18542_vm12, %v833_v22, %v1133_v25 }
 0x156   : > { %1132 = vst [vmem:[#allocation2 + $0x20] sm:$0x1] %v1131_v29  ;;  %v848_v4 = vshll.u32 %v15287_v9, 16  ;;  %v622_v35 = vsel %vm18504_vm8, 0, %v621_v14  ;;  %v672_v36 = vld [vmem:[%s18457_s1 + $0x48] sm:$0xff]  ;;  %v843_v37 = vrot.slane %v838_v12, 4 }
 0x157   : > { %1135 = vst [vmem:[#allocation2 + $0x24] sm:$0xf] %v1134_v34  ;;  %1136 = vst.msk [vmem:[#allocation2 + $0x28] sm:$0xf] %vm1114_vm7, %v842_v33  ;;  %v1140_v38 = vld [vmem:[#allocation2 + $0x30] sm:$0xf]  ;;  %v15290_v55 = vpack.c.bf16 %v672_v36, %v672_v36 }
 0x158   : > { %623 = vst [vmem:[#allocation2 + $0x38] sm:$0xf] %v622_v35  ;;  %v853_v39 = vshrl.u32 %v15288_v20, 16  ;;  %v856_v40 = vshll.u32 %v15288_v20, 16  ;;  %v568_v42 = vsel %vm18490_vm5, 0, %v567_v26  ;;  %v850_v44 = vor.u32 %v848_v4, %v847_v30  ;;  %v17242_v50 = vld [vmem:[#allocation2 + $0x8] sm:$0xff]  }
 0x159   : > { %v1281_v43 = vld [vmem:[#allocation2 + $0x10] sm:$0xf]  ;;  %v851_v45 = vrot.slane %v847_v30, 4  ;;  %569 = vst [vmem:[#allocation2 + $0x3c] sm:$0x1] %v568_v42  ;;  %v571_v48 = vsel %vm18490_vm5, 0, %v570_v32  ;;  %15876 = vmatmul.mubr.msk.bf16.vlgmr.msra.gmra.mrb[0].mxu0 %vm1450_vm9, %v17242_v50  ;;  %v15291_v20 = vpack.c.bf16 %v673_v59, %v673_v59 }
 0x15a   : > { %v1280_v49 = vld [vmem:[#allocation2 + $0xc] sm:$0xf]  ;;  %v855_v51 = vrot.slane %v853_v39, 7  ;;  %572 = vst [vmem:[#allocation2 + $0x48] sm:$0x1] %v571_v48  ;;  %v1141_v54 = vsel %vm18542_vm12, %v850_v44, %v1140_v38  ;;  %v862_v58 = vshrl.u32 %v15289_v47, 16  ;;  %15924 = vmatpush3.bf16.msra.mxu0 %v2416_v27 }
 0x15b   : > { %v14404_v52 = vcombine.low %v1280_v49, %v1281_v43  ;;  %v1137_v53 = vld [vmem:[#allocation2 + $0x2c] sm:$0x1]  ;;  %1142 = vst [vmem:[#allocation2 + $0x30] sm:$0xf] %v1141_v54  ;;  %v865_v61 = vshll.u32 %v15289_v47, 16  ;;  %v674_v62 = vld [vmem:[%s18457_s1 + $0x58] sm:$0xff] }
 0x15c   : > { %v1138_v56 = vsel %vm18556_vm13, %v843_v37, %v1137_v53  ;;  %v858_v57 = vor.u32 %v856_v40, %v855_v51  ;;  %v17243_v60 = vld [vmem:[#allocation2 + $0x14] sm:$0xff]   ;;  %v864_v6 = vrot.slane %v862_v58, 7  ;;  %v624_v7 = vld [vmem:[#allocation2 + $0x44] sm:$0xf]  ;;  %v860_v10 = vrot.slane %v855_v51, 4  ;;  %v677_v21 = vld [vmem:[%s18457_s1 + $0x70] sm:$0xff] }
 0x15d   : > { %15825 = vmatprep.mubr.msk.bf16.mxu1 %vm1450_vm9, %v14404_v52  ;;  %1139 = vst [vmem:[#allocation2 + $0x2c] sm:$0x1] %v1138_v56  ;;  %v675_v63 = vld [vmem:[%s18457_s1 + $0x60] sm:$0xff]  ;;  %v17244_v0 = vld [vmem:[#allocation2 + $0x10] sm:$0xff]   ;;  %v870_v11 = vshrl.u32 %v15290_v55, 16  ;;  %v873_v12 = vshll.u32 %v15290_v55, 16  ;;  %v15292_v24 = vpack.c.bf16 %v674_v62, %v674_v62  ;;  %v18621_v42 = vpack.c.bf16 %v677_v21, %v677_v21 }
 0x15e   : > { %v859_v3 = vsel %vm18534_vm11, %v851_v45, %v858_v57  ;;  %15826 = vmatmul.mubr.msk.bf16.vlgmr.msra.gmra.mrb[0].mxu1 %vm1450_vm9, %v17243_v60  ;;  %v17245_v9 = vld [vmem:[#allocation2 + $0x1c] sm:$0xff]   ;;  %15879 = vmatprep.mubr.msk.bf16.mxu0 %vm1450_vm9, %v17244_v0  ;;  %v867_v15 = vor.u32 %v865_v61, %v864_v6  ;;  %v868_v16 = vrot.slane %v864_v6, 4  ;;  %v627_v17 = vld [vmem:[#allocation2 + $0x50] sm:$0xf]  ;;  %v573_v25 = vld [vmem:[#allocation2 + $0x54] sm:$0x1]  ;;  %v15293_v26 = vpack.c.bf16 %v675_v63, %v675_v63 }
 0x15f   : > { %1143 = vst.msk [vmem:[#allocation2 + $0x34] sm:$0xf] %vm1114_vm7, %v859_v3  ;;  %v676_v13 = vld [vmem:[%s18457_s1 + $0x68] sm:$0xff]  ;;  %v17246_v14 = vld [vmem:[#allocation2 + $0x18] sm:$0xff]   ;;  %16586 = vmatpush3.bf16.msra.mxu1 %v18498_v5  ;;  %15829 = vmatprep.mubr.msk.bf16.mxu1 %vm1450_vm9, %v17245_v9  ;;  %v18603_v19 = vrot.slane %v870_v11, 7  ;;  %v625_v30 = vsel %vm18504_vm8, 0, %v624_v7 }
 0x160   : > { %v17248_v18 = vld [vmem:[#allocation2 + $0x20] sm:$0xff]   ;;  %v1144_v22 = vld [vmem:[#allocation2 + $0x38] sm:$0x1]  ;;  %v1147_v23 = vld [vmem:[#allocation2 + $0x3c] sm:$0xf]  ;;  %v15294_v32 = vpack.c.bf16 %v676_v13, %v676_v13  ;;  %v879_v4 = vshrl.u32 %v15291_v20, 16 }
 0x161   : > { %v17247_v27 = vld [vmem:[#allocation2 + $0x24] sm:$0xff]   ;;  %v1145_v28 = vsel %vm18556_vm13, %v860_v10, %v1144_v22  ;;  %v875_v29 = vor.u32 %v873_v12, %v18603_v19  ;;  %v1148_v5 = vsel %vm18542_vm12, %v867_v15, %v1147_v23  ;;  %15880 = vmatmul.mubr.msk.bf16.gmra.mrb[4].mxu0 %vm1450_vm9, %v17246_v14  ;;  %626 = vst [vmem:[#allocation2 + $0x44] sm:$0xf] %v625_v30  ;;  %v576_v33 = vld [vmem:[#allocation2 + $0x60] sm:$0x1]  ;;  %v882_v35 = vshll.u32 %v15291_v20, 16 }
 0x162   : > { %1146 = vst [vmem:[#allocation2 + $0x38] sm:$0x1] %v1145_v28  ;;  %1149 = vst [vmem:[#allocation2 + $0x3c] sm:$0xf] %v1148_v5  ;;  %15883 = vmatprep.mubr.msk.bf16.mxu0 %vm1450_vm9, %v17248_v18  ;;  %v628_v36 = vsel %vm18504_vm8, 0, %v627_v17  ;;  %v877_v38 = vrot.slane %v18603_v19, 4 }
 0x163   : > { %v876_v34 = vsel %vm18534_vm11, %v868_v16, %v875_v29  ;;  %v630_v37 = vld [vmem:[#allocation2 + $0x5c] sm:$0xf]  ;;  %v1154_v39 = vld [vmem:[#allocation2 + $0x48] sm:$0xf]  ;;  %629 = vst [vmem:[#allocation2 + $0x50] sm:$0xf] %v628_v36 }
 0x164   : > { %v17249_v31 = vld [vmem:[#allocation2 + $0x2c] sm:$0xff]   ;;  %1150 = vst.msk [vmem:[#allocation2 + $0x40] sm:$0xf] %vm1114_vm7, %v876_v34  ;;  %v887_v40 = vshrl.u32 %v15292_v24, 16  ;;  %v881_v47 = vrot.slane %v879_v4, 7  ;;  %v890_v48 = vshll.u32 %v15292_v24, 16 }
 0x165   : > { %v678_v43 = vld [vmem:[%s18457_s1 + $0x78] sm:$0xff]  ;;  %v17250_v44 = vld [vmem:[#allocation2 + $0x28] sm:$0xff]   ;;  %v574_v49 = vsel %vm18490_vm5, 0, %v573_v25  ;;  %v896_v50 = vshrl.u32 %v15293_v26, 16  ;;  %v899_v52 = vshll.u32 %v15293_v26, 16  ;;  %v904_v53 = vshrl.u32 %v15294_v32, 16 }
 0x166   : > { %15830 = vmatmul.mubr.msk.bf16.gmra.mrb[4].mxu1 %vm1450_vm9, %v17247_v27  ;;  %v17252_v45 = vld [vmem:[#allocation2 + $0x30] sm:$0xff]   ;;  %v889_v51 = vrot.slane %v887_v40, 7  ;;  %575 = vst [vmem:[#allocation2 + $0x54] sm:$0x1] %v574_v49  ;;  %v907_v54 = vshll.u32 %v15294_v32, 16  ;;  %v884_v55 = vor.u32 %v882_v35, %v881_v47  ;;  %v885_v56 = vrot.slane %v881_v47, 4 }
 0x167   : > { %15833 = vmatprep.mubr.msk.bf16.mxu1 %vm1450_vm9, %v17249_v31  ;;  %v898_v57 = vrot.slane %v896_v50, 7  ;;  %v577_v58 = vsel %vm18490_vm5, 0, %v576_v33  ;;  %v679_v59 = vld [vmem:[%s18457_s1 + $0x80] sm:$0xff]  ;;  %v906_v62 = vrot.slane %v904_v53, 7  ;;  %v631_v63 = vsel %vm18504_vm8, 0, %v630_v37  ;;  %v680_v3 = vld [vmem:[%s18457_s1 + $0x88] sm:$0xff] }
 0x168   : > { %v892_v60 = vor.u32 %v890_v48, %v889_v51  ;;  %v894_v61 = vrot.slane %v889_v51, 4  ;;  %578 = vst [vmem:[#allocation2 + $0x60] sm:$0x1] %v577_v58  ;;  %v633_v0 = vld [vmem:[#allocation2 + $0x68] sm:$0xf]  ;;  %v1155_v7 = vsel %vm18542_vm12, %v884_v55, %v1154_v39  ;;  %v15296_v11 = vpack.c.bf16 %v678_v43, %v678_v43  ;;  %v682_v50 = vld [vmem:[%s18457_s1 + $0x98] sm:$0xff] }
 0x169   : > { %v17251_v6 = vld [vmem:[#allocation2 + $0x34] sm:$0xff]   ;;  %v901_v9 = vor.u32 %v899_v52, %v898_v57  ;;  %v902_v10 = vrot.slane %v898_v57, 4  ;;  %632 = vst [vmem:[#allocation2 + $0x5c] sm:$0xf] %v631_v63  ;;  %v579_v12 = vld [vmem:[#allocation2 + $0x6c] sm:$0x1]  ;;  %15884 = vmatmul.mubr.msk.bf16.gmra.mrb[8].mxu0 %vm1450_vm9, %v17250_v44  ;;  %v909_v14 = vor.u32 %v907_v54, %v906_v62  ;;  %v15297_v16 = vpack.c.bf16 %v679_v59, %v679_v59 }
 0x16a   : > { %1156 = vst [vmem:[#allocation2 + $0x48] sm:$0xf] %v1155_v7  ;;  %v893_v13 = vsel %vm18534_vm11, %v885_v56, %v892_v60  ;;  %v911_v15 = vrot.slane %v906_v62, 4  ;;  %15887 = vmatprep.mubr.msk.bf16.mxu0 %vm1450_vm9, %v17252_v45  ;;  %v1151_v18 = vld [vmem:[#allocation2 + $0x44] sm:$0x1]  ;;  %v913_v19 = vshrl.u32 %v18621_v42, 16  ;;  %v15298_v20 = vpack.c.bf16 %v680_v3, %v680_v3 }
 0x16b   : > { %v17253_v17 = vld [vmem:[#allocation2 + $0x3c] sm:$0xff]   ;;  %1157 = vst.msk [vmem:[#allocation2 + $0x4c] sm:$0xf] %vm1114_vm7, %v893_v13  ;;  %v1152_v21 = vsel %vm18556_vm13, %v877_v38, %v1151_v18  ;;  %v1158_v22 = vld [vmem:[#allocation2 + $0x50] sm:$0x1]  ;;  %v910_v23 = vsel %vm18534_vm11, %v902_v10, %v909_v14  ;;  %v916_v24 = vshll.u32 %v18621_v42, 16 }
 0x16c   : > { %v634_v25 = vsel %vm18504_vm8, 0, %v633_v0  ;;  %1153 = vst [vmem:[#allocation2 + $0x44] sm:$0x1] %v1152_v21  ;;  %v1159_v26 = vsel %vm18556_vm13, %v894_v61, %v1158_v22  ;;  %1164 = vst.msk [vmem:[#allocation2 + $0x58] sm:$0xf] %vm1114_vm7, %v910_v23  ;;  %v915_v28 = vrot.slane %v913_v19, 7 }
 0x16d   : > { %v1161_v27 = vld [vmem:[#allocation2 + $0x54] sm:$0xf]  ;;  %635 = vst [vmem:[#allocation2 + $0x68] sm:$0xf] %v634_v25  ;;  %v921_v29 = vshrl.u32 %v15296_v11, 16  ;;  %v924_v5 = vshll.u32 %v15296_v11, 16 }
 0x16e   : > { %15834 = vmatmul.mubr.msk.bf16.gmra.mrb[8].mxu1 %vm1450_vm9, %v17251_v6  ;;  %v17254_v30 = vld [vmem:[#allocation2 + $0x38] sm:$0xff]   ;;  %1160 = vst [vmem:[#allocation2 + $0x50] sm:$0x1] %v1159_v26  ;;  %v1162_v31 = vsel %vm18542_vm12, %v901_v9, %v1161_v27  ;;  %v580_v32 = vsel %vm18490_vm5, 0, %v579_v12  ;;  %v930_v33 = vshrl.u32 %v15297_v16, 16  ;;  %v681_v34 = vld [vmem:[%s18457_s1 + $0x90] sm:$0xff]  ;;  %v918_v4 = vor.u32 %v916_v24, %v915_v28 }
 0x16f   : > { %15837 = vmatprep.mubr.msk.bf16.mxu1 %vm1450_vm9, %v17253_v17  ;;  %1163 = vst [vmem:[#allocation2 + $0x54] sm:$0xf] %v1162_v31  ;;  %v1168_v35 = vld [vmem:[#allocation2 + $0x60] sm:$0xf]  ;;  %v919_v36 = vrot.slane %v915_v28, 4  ;;  %v923_v37 = vrot.slane %v921_v29, 7  ;;  %v15299_v43 = vpack.c.bf16 %v681_v34, %v681_v34  ;;  %v15300_v6 = vpack.c.bf16 %v682_v50, %v682_v50 }
 0x170   : > { %581 = vst [vmem:[#allocation2 + $0x6c] sm:$0x1] %v580_v32  ;;  %v938_v38 = vshrl.u32 %v15298_v20, 16  ;;  %v1165_v39 = vld [vmem:[#allocation2 + $0x5c] sm:$0x1]  ;;  %v932_v40 = vrot.slane %v930_v33, 7  ;;  %v1169_v45 = vsel %vm18542_vm12, %v918_v4, %v1168_v35 }
 0x171   : > { %v933_v42 = vshll.u32 %v15297_v16, 16  ;;  %v1166_v44 = vsel %vm18556_vm13, %v911_v15, %v1165_v39  ;;  %v926_v47 = vor.u32 %v924_v5, %v923_v37  ;;  %v941_v48 = vshll.u32 %v15298_v20, 16  ;;  %15888 = vmatmul.mubr.msk.bf16.gmra.mrb[12].mxu0 %vm1450_vm9, %v17254_v30  ;;  %1170 = vst [vmem:[#allocation2 + $0x60] sm:$0xf] %v1169_v45  ;;  %v582_v53 = vld [vmem:[#allocation2 + $0x78] sm:$0x1] }
 0x172   : > { %1167 = vst [vmem:[#allocation2 + $0x5c] sm:$0x1] %v1166_v44  ;;  %v936_v49 = vrot.slane %v932_v40, 4  ;;  %v940_v52 = vrot.slane %v938_v38, 7  ;;  %v636_v54 = vld [vmem:[#allocation2 + $0x74] sm:$0xf] }
 0x173   : > { %v927_v51 = vsel %vm18534_vm11, %v919_v36, %v926_v47  ;;  %v947_v55 = vshrl.u32 %v15299_v43, 16  ;;  %v17255_v56 = vld [vmem:[#allocation2 + $0x44] sm:$0xff]   ;;  %v583_v57 = vsel %vm18490_vm5, 0, %v582_v53  ;;  %v928_v60 = vrot.slane %v923_v37, 4  ;;  %v639_v21 = vld [vmem:[#allocation2 + $0x80] sm:$0xf] }
 0x174   : > { %1171 = vst.msk [vmem:[#allocation2 + $0x64] sm:$0xf] %vm1114_vm7, %v927_v51  ;;  %v17256_v58 = vld [vmem:[#allocation2 + $0x40] sm:$0xff]   ;;  %v935_v61 = vor.u32 %v933_v42, %v932_v40  ;;  %v943_v62 = vor.u32 %v941_v48, %v940_v52  ;;  %584 = vst [vmem:[#allocation2 + $0x78] sm:$0x1] %v583_v57  ;;  %v637_v63 = vsel %vm18504_vm8, 0, %v636_v54 }
 0x175   : > { %v17257_v59 = vld [vmem:[#allocation2 + $0x4c] sm:$0xff]   ;;  %638 = vst [vmem:[#allocation2 + $0x74] sm:$0xf] %v637_v63  ;;  %v949_v3 = vrot.slane %v947_v55, 7  ;;  %15891 = vmatprep.mubr.msk.bf16.mxu0 %vm1450_vm9, %v17256_v58  ;;  %v950_v10 = vshll.u32 %v15299_v43, 16  ;;  %v945_v17 = vrot.slane %v940_v52, 4 }
 0x176   : > { %15838 = vmatmul.mubr.msk.bf16.gmra.mrb[12].mxu1 %vm1450_vm9, %v17255_v56  ;;  %v17258_v0 = vld [vmem:[#allocation2 + $0x48] sm:$0xff]   ;;  %v17260_v7 = vld [vmem:[#allocation2 + $0x50] sm:$0xff]   ;;  %v944_v9 = vsel %vm18534_vm11, %v936_v49, %v943_v62  ;;  %v955_v20 = vshrl.u32 %v15300_v6, 16  ;;  %v640_v24 = vsel %vm18504_vm8, 0, %v639_v21  ;;  %v958_v26 = vshll.u32 %v15300_v6, 16  ;;  %v17264_v27 = vld [vmem:[#allocation2 + $0x18] sm:$0xff]  }
 0x177   : > { %15841 = vmatprep.mubr.msk.bf16.mxu1 %vm1450_vm9, %v17257_v59  ;;  %v17259_v11 = vld [vmem:[#allocation2 + $0x54] sm:$0xff]   ;;  %v1172_v12 = vld [vmem:[#allocation2 + $0x68] sm:$0x1]  ;;  %v1175_v13 = vld [vmem:[#allocation2 + $0x6c] sm:$0xf]  ;;  %v952_v18 = vor.u32 %v950_v10, %v949_v3  ;;  %v953_v19 = vrot.slane %v949_v3, 4 }
 0x178   : > { %1178 = vst.msk [vmem:[#allocation2 + $0x70] sm:$0xf] %vm1114_vm7, %v944_v9  ;;  %v1173_v15 = vsel %vm18556_vm13, %v928_v60, %v1172_v12  ;;  %v1176_v16 = vsel %vm18542_vm12, %v935_v61, %v1175_v13  ;;  %v957_v25 = vrot.slane %v955_v20, 7  ;;  %641 = vst [vmem:[#allocation2 + $0x80] sm:$0xf] %v640_v24  ;;  %v683_v32 = vld [vmem:[%s18457_s1 + $0xa0] sm:$0xff] }
 0x179   : > { %v17261_v14 = vld [vmem:[#allocation2 + $0x5c] sm:$0xff]   ;;  %15892 = vmatmul.mubr.msk.bf16.gmra.mrb[16].mxu0 %vm1450_vm9, %v17258_v0  ;;  %1174 = vst [vmem:[#allocation2 + $0x68] sm:$0x1] %v1173_v15  ;;  %1177 = vst [vmem:[#allocation2 + $0x6c] sm:$0xf] %v1176_v16  ;;  %v15301_v35 = vpack.c.bf16 %v683_v32, %v683_v32  ;;  %v685_v49 = vld [vmem:[%s18457_s1 + $0xb0] sm:$0xff] }
 0x17a   : > { %15895 = vmatprep.mubr.msk.bf16.mxu0 %vm1450_vm9, %v17260_v7  ;;  %v17262_v22 = vld [vmem:[#allocation2 + $0x58] sm:$0xff]   ;;  %v960_v30 = vor.u32 %v958_v26, %v957_v25  ;;  %v585_v31 = vld [vmem:[#allocation2 + $0x84] sm:$0x1]  ;;  %v962_v34 = vrot.slane %v957_v25, 4  ;;  %v588_v38 = vld [vmem:[#allocation2 + $0x90] sm:$0x1]  ;;  %v15303_v52 = vpack.c.bf16 %v685_v49, %v685_v49 }
 0x17b   : > { %v1182_v23 = vld [vmem:[#allocation2 + $0x78] sm:$0xf]  ;;  %v684_v33 = vld [vmem:[%s18457_s1 + $0xa8] sm:$0xff]  ;;  %v586_v4 = vsel %vm18490_vm5, 0, %v585_v31  ;;  %v642_v39 = vld [vmem:[#allocation2 + $0x8c] sm:$0xf] }
 0x17c   : > { %v1179_v28 = vld [vmem:[#allocation2 + $0x74] sm:$0x1]  ;;  %v1183_v29 = vsel %vm18542_vm12, %v952_v18, %v1182_v23  ;;  %v15302_v36 = vpack.c.bf16 %v684_v33, %v684_v33  ;;  %v961_v37 = vsel %vm18534_vm11, %v953_v19, %v960_v30  ;;  %587 = vst [vmem:[#allocation2 + $0x84] sm:$0x1] %v586_v4  ;;  %v964_v42 = vshrl.u32 %v15301_v35, 16  ;;  %v17266_v56 = vld [vmem:[#allocation2 + $0x20] sm:$0xff]  }
 0x17d   : > { %v1180_v5 = vsel %vm18556_vm13, %v945_v17, %v1179_v28  ;;  %1184 = vst [vmem:[#allocation2 + $0x78] sm:$0xf] %v1183_v29  ;;  %1185 = vst.msk [vmem:[#allocation2 + $0x7c] sm:$0xf] %vm1114_vm7, %v961_v37  ;;  %v967_v44 = vshll.u32 %v15301_v35, 16  ;;  %v589_v48 = vsel %vm18490_vm5, 0, %v588_v38 }
 0x17e   : > { %15842 = vmatmul.mubr.msk.bf16.gmra.mrb[16].mxu1 %vm1450_vm9, %v17259_v11  ;;  %1181 = vst [vmem:[#allocation2 + $0x74] sm:$0x1] %v1180_v5  ;;  %v972_v45 = vshrl.u32 %v15302_v36, 16  ;;  %v975_v47 = vshll.u32 %v15302_v36, 16  ;;  %v966_v50 = vrot.slane %v964_v42, 7  ;;  %v643_v51 = vsel %vm18504_vm8, 0, %v642_v39 }
 0x17f   : > { %15845 = vmatprep.mubr.msk.bf16.mxu1 %vm1450_vm9, %v17261_v14  ;;  %590 = vst [vmem:[#allocation2 + $0x90] sm:$0x1] %v589_v48  ;;  %v1186_v53 = vld [vmem:[#allocation2 + $0x80] sm:$0x1]  ;;  %644 = vst [vmem:[#allocation2 + $0x8c] sm:$0xf] %v643_v51 }
 0x180   : > { %v17263_v40 = vld [vmem:[#allocation2 + $0x64] sm:$0xff]   ;;  %v17265_v43 = vld [vmem:[#allocation2 + $0x6c] sm:$0xff]   ;;  %v974_v54 = vrot.slane %v972_v45, 7  ;;  %v645_v55 = vld [vmem:[#allocation2 + $0x98] sm:$0xf]  ;;  %v1187_v57 = vsel %vm18556_vm13, %v962_v34, %v1186_v53  ;;  %v969_v58 = vor.u32 %v967_v44, %v966_v50  ;;  %v970_v59 = vrot.slane %v966_v50, 4 }
 0x181   : > { %15896 = vmatmul.mubr.msk.bf16.gmra.mrb[20].mxu0 %vm1450_vm9, %v17262_v22  ;;  %v981_v60 = vshrl.u32 %v15303_v52, 16  ;;  %v686_v61 = vld [vmem:[%s18457_s1 + $0xb8] sm:$0xff]  ;;  %v17268_v62 = vld [vmem:[#allocation2 + $0x28] sm:$0xff]   ;;  %1188 = vst [vmem:[#allocation2 + $0x80] sm:$0x1] %v1187_v57  ;;  %v984_v3 = vshll.u32 %v15303_v52, 16 }
 0x182   : > { %15925 = vmatprep.mubr.msk.bf16.mxu0 %vm1450_vm9, %v17264_v27  ;;  %v977_v63 = vor.u32 %v975_v47, %v974_v54  ;;  %v979_v0 = vrot.slane %v974_v54, 4  ;;  %v646_v6 = vsel %vm18504_vm8, 0, %v645_v55  ;;  %v15304_v10 = vpack.c.bf16 %v686_v61, %v686_v61  ;;  %v687_v11 = vld [vmem:[%s18457_s1 + $0xc0] sm:$0xff]  ;;  %v688_v20 = vld [vmem:[%s18457_s1 + $0xc8] sm:$0xff]  ;;  %v689_v5 = vld [vmem:[%s18457_s1 + $0xd0] sm:$0xff]  ;;  %s18040_s24 = smov 120  }
 0x183   : > { %v1189_v7 = vld [vmem:[#allocation2 + $0x84] sm:$0xf]  ;;  %v983_v9 = vrot.slane %v981_v60, 7  ;;  %647 = vst [vmem:[#allocation2 + $0x98] sm:$0xf] %v646_v6  ;;  %v15305_v15 = vpack.c.bf16 %v687_v11, %v687_v11  ;;  %v15306_v24 = vpack.c.bf16 %v688_v20, %v688_v20  ;;  %v17270_v30 = vld [vmem:[#allocation2 + $0x30] sm:$0xff]  }
 0x184   : > { %v978_v12 = vsel %vm18534_vm11, %v970_v59, %v977_v63  ;;  %v1190_v13 = vsel %vm18542_vm12, %v969_v58, %v1189_v7  ;;  %v591_v14 = vld [vmem:[#allocation2 + $0x9c] sm:$0x1]  ;;  %v989_v18 = vshrl.u32 %v15304_v10, 16  ;;  %v992_v19 = vshll.u32 %v15304_v10, 16  ;;  %v594_v4 = vld [vmem:[#allocation2 + $0xa8] sm:$0x1] }
 0x185   : > { %1191 = vst [vmem:[#allocation2 + $0x84] sm:$0xf] %v1190_v13  ;;  %1192 = vst.msk [vmem:[#allocation2 + $0x88] sm:$0xf] %vm1114_vm7, %v978_v12  ;;  %v986_v16 = vor.u32 %v984_v3, %v983_v9  ;;  %v987_v17 = vrot.slane %v983_v9, 4  ;;  %v17267_v21 = vld [vmem:[#allocation2 + $0x74] sm:$0xff]  }
 0x186   : > { %15846 = vmatmul.mubr.msk.bf16.gmra.mrb[20].mxu1 %vm1450_vm9, %v17263_v40  ;;  %v1196_v22 = vld [vmem:[#allocation2 + $0x90] sm:$0xf]  ;;  %v592_v23 = vsel %vm18490_vm5, 0, %v591_v14  ;;  %v998_v25 = vshrl.u32 %v15305_v15, 16  ;;  %v1001_v26 = vshll.u32 %v15305_v15, 16  ;;  %v991_v29 = vrot.slane %v989_v18, 7 }
 0x187   : > { %15849 = vmatprep.mubr.msk.bf16.mxu1 %vm1450_vm9, %v17265_v43  ;;  %v1193_v27 = vld [vmem:[#allocation2 + $0x8c] sm:$0x1]  ;;  %v1197_v28 = vsel %vm18542_vm12, %v986_v16, %v1196_v22  ;;  %593 = vst [vmem:[#allocation2 + $0x9c] sm:$0x1] %v592_v23  ;;  %v1006_v33 = vshrl.u32 %v15306_v24, 16  ;;  %v1009_v34 = vshll.u32 %v15306_v24, 16  ;;  %v15307_v40 = vpack.c.bf16 %v689_v5, %v689_v5 }
 0x188   : > { %v1194_v31 = vsel %vm18556_vm13, %v979_v0, %v1193_v27  ;;  %1198 = vst [vmem:[#allocation2 + $0x90] sm:$0xf] %v1197_v28  ;;  %v1000_v32 = vrot.slane %v998_v25, 7  ;;  %v17269_v35 = vld [vmem:[#allocation2 + $0x7c] sm:$0xff]   ;;  %v994_v37 = vor.u32 %v992_v19, %v991_v29  ;;  %v996_v38 = vrot.slane %v991_v29, 4  ;;  %v690_v42 = vld [vmem:[%s18457_s1 + $0xd8] sm:$0xff] }
 0x189   : > { %15926 = vmatmul.mubr.msk.bf16.vlgmr.msra.gmra.mrb[0].mxu0 %vm1450_vm9, %v17266_v56  ;;  %v17272_v36 = vld [vmem:[#allocation2 + $0x38] sm:$0xff]   ;;  %1195 = vst [vmem:[#allocation2 + $0x8c] sm:$0x1] %v1194_v31  ;;  %v595_v39 = vsel %vm18490_vm5, 0, %v594_v4  ;;  %v1008_v47 = vrot.slane %v1006_v33, 7  ;;  %v15308_v49 = vpack.c.bf16 %v690_v42, %v690_v42  ;;  %v1015_v53 = vshrl.u32 %v15307_v40, 16 }
 0x18a   : > { %15929 = vmatprep.mubr.msk.bf16.mxu0 %vm1450_vm9, %v17268_v62  ;;  %v1200_v43 = vld [vmem:[#allocation2 + $0x98] sm:$0x1]  ;;  %v1003_v44 = vor.u32 %v1001_v26, %v1000_v32  ;;  %v1004_v45 = vrot.slane %v1000_v32, 4  ;;  %596 = vst [vmem:[#allocation2 + $0xa8] sm:$0x1] %v595_v39  ;;  %v995_v50 = vsel %vm18534_vm11, %v987_v17, %v994_v37  ;;  %v1018_v56 = vshll.u32 %v15307_v40, 16 }
 0x18b   : > { %v648_v48 = vld [vmem:[#allocation2 + $0xa4] sm:$0xf]  ;;  %v1201_v51 = vsel %vm18556_vm13, %v996_v38, %v1200_v43  ;;  %1199 = vst.msk [vmem:[#allocation2 + $0x94] sm:$0xf] %vm1114_vm7, %v995_v50  ;;  %v1011_v54 = vor.u32 %v1009_v34, %v1008_v47  ;;  %v1017_v55 = vrot.slane %v1015_v53, 7  ;;  %v1023_v58 = vshrl.u32 %v15308_v49, 16 }
 0x18c   : > { %v649_v52 = vsel %vm18504_vm8, 0, %v648_v48  ;;  %1202 = vst [vmem:[#allocation2 + $0x98] sm:$0x1] %v1201_v51  ;;  %v651_v57 = vld [vmem:[#allocation2 + $0xb0] sm:$0xf]  ;;  %v1026_v59 = vshll.u32 %v15308_v49, 16 }
 0x18d   : > { %650 = vst [vmem:[#allocation2 + $0xa4] sm:$0xf] %v649_v52  ;;  %v17271_v60 = vld [vmem:[#allocation2 + $0x84] sm:$0xff]   ;;  %v1012_v61 = vsel %vm18534_vm11, %v1004_v45, %v1011_v54  ;;  %v652_v63 = vsel %vm18504_vm8, 0, %v651_v57  ;;  %v1020_v3 = vor.u32 %v1018_v56, %v1017_v55  ;;  %v1021_v6 = vrot.slane %v1017_v55, 4  ;;  %v691_v15 = vld [vmem:[%s18457_s1 + $0xe0] sm:$0xff] }
 0x18e   : > { %15850 = vmatmul.mubr.msk.bf16.gmra.mrb[24].mxu1 %vm1450_vm9, %v17267_v21  ;;  %v1203_v62 = vld [vmem:[#allocation2 + $0x9c] sm:$0xf]  ;;  %1206 = vst.msk [vmem:[#allocation2 + $0xa0] sm:$0xf] %vm1114_vm7, %v1012_v61  ;;  %653 = vst [vmem:[#allocation2 + $0xb0] sm:$0xf] %v652_v63  ;;  %v15309_v19 = vpack.c.bf16 %v691_v15, %v691_v15 }
 0x18f   : > { %15853 = vmatprep.mubr.msk.bf16.mxu1 %vm1450_vm9, %v17269_v35  ;;  %v1204_v0 = vsel %vm18542_vm12, %v1003_v44, %v1203_v62  ;;  %v1025_v7 = vrot.slane %v1023_v58, 7  ;;  %v597_v10 = vld [vmem:[#allocation2 + $0xb4] sm:$0x1]  ;;  %v1013_v11 = vrot.slane %v1008_v47, 4  ;;  %v692_v16 = vld [vmem:[%s18457_s1 + $0xe8] sm:$0xff]  ;;  %v17276_v21 = vld [vmem:[#allocation2 + $0x48] sm:$0xff]  }
 0x190   : > { %v17273_v9 = vld [vmem:[#allocation2 + $0x8c] sm:$0xff]   ;;  %1205 = vst [vmem:[#allocation2 + $0x9c] sm:$0xf] %v1204_v0  ;;  %v598_v14 = vsel %vm18490_vm5, 0, %v597_v10  ;;  %v17274_v17 = vld [vmem:[#allocation2 + $0x40] sm:$0xff]   ;;  %v15310_v20 = vpack.c.bf16 %v692_v16, %v692_v16  ;;  %v1032_v26 = vshrl.u32 %v15309_v19, 16 }
 0x191   : > { %15930 = vmatmul.mubr.msk.bf16.gmra.mrb[4].mxu0 %vm1450_vm9, %v17270_v30  ;;  %v1210_v12 = vld [vmem:[#allocation2 + $0xa8] sm:$0xf]  ;;  %v1028_v13 = vor.u32 %v1026_v59, %v1025_v7  ;;  %599 = vst [vmem:[#allocation2 + $0xb4] sm:$0x1] %v598_v14  ;;  %v1030_v23 = vrot.slane %v1025_v7, 4  ;;  %v1035_v27 = vshll.u32 %v15309_v19, 16 }
 0x192   : > { %15933 = vmatprep.mubr.msk.bf16.mxu0 %vm1450_vm9, %v17272_v36  ;;  %v1211_v18 = vsel %vm18542_vm12, %v1020_v3, %v1210_v12  ;;  %v1040_v28 = vshrl.u32 %v15310_v20, 16  ;;  %v1043_v29 = vshll.u32 %v15310_v20, 16  ;;  %v600_v30 = vld [vmem:[#allocation2 + $0xc0] sm:$0x1]  ;;  %v654_v31 = vld [vmem:[#allocation2 + $0xbc] sm:$0xf] }
 0x193   : > { %1212 = vst [vmem:[#allocation2 + $0xa8] sm:$0xf] %v1211_v18  ;;  %v1029_v22 = vsel %vm18534_vm11, %v1021_v6, %v1028_v13  ;;  %v17275_v24 = vld [vmem:[#allocation2 + $0x94] sm:$0xff]   ;;  %v693_v32 = vld [vmem:[%s18457_s1 + $0xf0] sm:$0xff]  ;;  %v1034_v34 = vrot.slane %v1032_v26, 7  ;;  %v601_v38 = vsel %vm18490_vm5, 0, %v600_v30 }
 0x194   : > { %v1207_v25 = vld [vmem:[#allocation2 + $0xa4] sm:$0x1]  ;;  %1213 = vst.msk [vmem:[#allocation2 + $0xac] sm:$0xf] %vm1114_vm7, %v1029_v22  ;;  %v1042_v4 = vrot.slane %v1040_v28, 7  ;;  %v15311_v35 = vpack.c.bf16 %v693_v32, %v693_v32  ;;  %v655_v39 = vsel %vm18504_vm8, 0, %v654_v31 }
 0x195   : > { %v1208_v5 = vsel %vm18556_vm13, %v1013_v11, %v1207_v25  ;;  %v1214_v33 = vld [vmem:[#allocation2 + $0xb0] sm:$0x1]  ;;  %v1037_v42 = vor.u32 %v1035_v27, %v1034_v34  ;;  %v1038_v43 = vrot.slane %v1034_v34, 4  ;;  %602 = vst [vmem:[#allocation2 + $0xc0] sm:$0x1] %v601_v38  ;;  %v17280_v54 = vld [vmem:[#allocation2 + $0x58] sm:$0xff]  }
 0x196   : > { %15854 = vmatmul.mubr.msk.bf16.gmra.mrb[28].mxu1 %vm1450_vm9, %v17271_v60  ;;  %1209 = vst [vmem:[#allocation2 + $0xa4] sm:$0x1] %v1208_v5  ;;  %v1215_v37 = vsel %vm18556_vm13, %v1030_v23, %v1214_v33  ;;  %v17278_v40 = vld [vmem:[#allocation2 + $0x50] sm:$0xff]   ;;  %v1045_v44 = vor.u32 %v1043_v29, %v1042_v4  ;;  %656 = vst [vmem:[#allocation2 + $0xbc] sm:$0xf] %v655_v39  ;;  %v1049_v47 = vshrl.u32 %v15311_v35, 16 }
 0x197   : > { %15857 = vmatprep.mubr.msk.bf16.mxu1 %vm1450_vm9, %v17273_v9  ;;  %v17277_v36 = vld [vmem:[#allocation2 + $0x9c] sm:$0xff]   ;;  %1216 = vst [vmem:[#allocation2 + $0xb0] sm:$0x1] %v1215_v37  ;;  %v1052_v48 = vshll.u32 %v15311_v35, 16  ;;  %v657_v49 = vld [vmem:[#allocation2 + $0xc8] sm:$0xf] }
 0x198   : > { %v1217_v45 = vld [vmem:[#allocation2 + $0xb4] sm:$0xf]  ;;  %v1046_v50 = vsel %vm18534_vm11, %v1038_v43, %v1045_v44  ;;  %v658_v52 = vsel %vm18504_vm8, 0, %v657_v49  ;;  %v1051_v55 = vrot.slane %v1049_v47, 7  ;;  %v1047_v57 = vrot.slane %v1042_v4, 4  ;;  %v17282_v12 = vld [vmem:[#allocation2 + $0x60] sm:$0xff]  }
 0x199   : > { %15934 = vmatmul.mubr.msk.bf16.gmra.mrb[8].mxu0 %vm1450_vm9, %v17274_v17  ;;  %v1218_v51 = vsel %vm18542_vm12, %v1037_v42, %v1217_v45  ;;  %v694_v53 = vld [vmem:[%s18457_s1 + $0xf8] sm:$0xff]  ;;  %1220 = vst.msk [vmem:[#allocation2 + $0xb8] sm:$0xf] %vm1114_vm7, %v1046_v50  ;;  %659 = vst [vmem:[#allocation2 + $0xc8] sm:$0xf] %v658_v52  ;;  %v17284_v13 = vld [vmem:[#allocation2 + $0x68] sm:$0xff]  }
 0x19a   : > { %15937 = vmatprep.mubr.msk.bf16.mxu0 %vm1450_vm9, %v17276_v21  ;;  %1219 = vst [vmem:[#allocation2 + $0xb4] sm:$0xf] %v1218_v51  ;;  %v15312_v56 = vpack.c.bf16 %v694_v53, %v694_v53  ;;  %v1054_v58 = vor.u32 %v1052_v48, %v1051_v55  ;;  %v1055_v62 = vrot.slane %v1051_v55, 4  ;;  %v17286_v18 = vld [vmem:[#allocation2 + $0x70] sm:$0xff]   ;;  %v17289_v19 = vld [vmem:[#allocation2 + $0x78] sm:$0xff]   ;;  %v17288_v21 = vld [vmem:[#allocation2 + $0x60] sm:$0xff]  }
 0x19b   : > { %v17291_v2 = vld [vmem:[#allocation2 + $0x80] sm:$0xff]   ;;  %v17293_v22 = vld [vmem:[#allocation2 + $0x88] sm:$0xff]   ;;  %v17292_v25 = vld [vmem:[#allocation2 + $0x70] sm:$0xff]   ;;  %vm2778_vm15 = vcmask 1046528   ;;  %s18041_s26 = smov 124   ;;  %s18042_s16 = smov 8  }
 0x19c   : > { %v1057_v59 = vshrl.u32 %v15312_v56, 16  ;;  %v1060_v60 = vshll.u32 %v15312_v56, 16  ;;  %v1224_v7 = vld [vmem:[#allocation2 + $0xc0] sm:$0xf]  ;;  %v17290_v23 = vld [vmem:[#allocation2 + $0x68] sm:$0xff]   ;;  %v17295_v28 = vld [vmem:[#allocation2 + $0x90] sm:$0xff]  }
 0x19d   : > { %v17279_v61 = vld [vmem:[#allocation2 + $0xa4] sm:$0xff]   ;;  %v1221_v0 = vld [vmem:[#allocation2 + $0xbc] sm:$0x1]  ;;  %v1225_v9 = vsel %vm18542_vm12, %v1054_v58, %v1224_v7  ;;  %v660_v27 = vld [vmem:[#allocation2 + $0xd4] sm:$0xf]  ;;  %s18043_s22 = smov 12  }
 0x19e   : > { %15858 = vmatmul.mubr.msk.bf16.gmra.mrb[32].mxu1 %vm1450_vm9, %v17275_v24  ;;  %v17281_v63 = vld [vmem:[#allocation2 + $0xac] sm:$0xff]   ;;  %v1059_v3 = vrot.slane %v1057_v59, 7  ;;  %v1222_v6 = vsel %vm18556_vm13, %v1047_v57, %v1221_v0  ;;  %1226 = vst [vmem:[#allocation2 + $0xc0] sm:$0xf] %v1225_v9  ;;  %v661_v29 = vsel %vm18504_vm8, 0, %v660_v27  ;;  %v17297_v5 = vld [vmem:[#allocation2 + $0x98] sm:$0xff]  }
 0x19f   : > { %15861 = vmatprep.mubr.msk.bf16.mxu1 %vm1450_vm9, %v17277_v36  ;;  %1223 = vst [vmem:[#allocation2 + $0xbc] sm:$0x1] %v1222_v6  ;;  %v603_v24 = vld [vmem:[#allocation2 + $0xcc] sm:$0x1]  ;;  %662 = vst [vmem:[#allocation2 + $0xd4] sm:$0xf] %v661_v29 }
 0x1a0   : > { %v1062_v10 = vor.u32 %v1060_v60, %v1059_v3  ;;  %v1064_v11 = vrot.slane %v1059_v3, 4  ;;  %v1228_v15 = vld [vmem:[#allocation2 + $0xc8] sm:$0x1]  ;;  %v604_v26 = vsel %vm18490_vm5, 0, %v603_v24  ;;  %v17294_v30 = vld [vmem:[#allocation2 + $0x78] sm:$0xff]   ;;  %v17296_v31 = vld [vmem:[#allocation2 + $0x80] sm:$0xff]  }
 0x1a1   : > { %15938 = vmatmul.mubr.msk.bf16.gmra.mrb[12].mxu0 %vm1450_vm9, %v17278_v40  ;;  %v17283_v46 = vld [vmem:[#allocation2 + $0xb4] sm:$0xff]   ;;  %605 = vst [vmem:[#allocation2 + $0xcc] sm:$0x1] %v604_v26  ;;  %v17299_v1 = vld [vmem:[#allocation2 + $0xa0] sm:$0xff]   ;;  %v17301_v32 = vld [vmem:[#allocation2 + $0xa8] sm:$0xff]   ;;  %s18044_s13 = smov 16  }
 0x1a2   : > { %15941 = vmatprep.mubr.msk.bf16.mxu0 %vm1450_vm9, %v17280_v54  ;;  %v1063_v14 = vsel %vm18534_vm11, %v1055_v62, %v1062_v10  ;;  %v1229_v16 = vsel %vm18556_vm13, %v1064_v11, %v1228_v15  ;;  %v17298_v8 = vld [vmem:[#allocation2 + $0x88] sm:$0xff]   ;;  %v17300_v33 = vld [vmem:[#allocation2 + $0x90] sm:$0xff]   ;;  %v17302_v35 = vld [vmem:[#allocation2 + $0x98] sm:$0xff]   ;;  %s18045_s25 = smov 20   ;;  %s18046_s30 = smov 112  }
 0x1a3   : > { %1227 = vst.msk [vmem:[#allocation2 + $0xc4] sm:$0xf] %vm1114_vm7, %v1063_v14  ;;  %1230 = vst [vmem:[#allocation2 + $0xc8] sm:$0x1] %v1229_v16  ;;  %v17303_v34 = vld [vmem:[#allocation2 + $0xb0] sm:$0xff]   ;;  %v17304_v36 = vld [vmem:[#allocation2 + $0xa0] sm:$0xff]  }
 0x1a4   : > { %v17306_v39 = vld [vmem:[#allocation2 + $0xa8] sm:$0xff]   ;;  %v17308_v40 = vld [vmem:[#allocation2 + $0xb0] sm:$0xff]   ;;  %s21600_s14 = scalar_lea.vmem [#allocation21], %s14360_s12  ;;  %s15441_s12 = sshll.u32 %s18130_s23, 12 }
 0x1a5   : > { %s14175_s21 = sshll.u32 %s21600_s14, 4  ;;  %p21885_p0 = scmp.ne.s32.totalorder %s21836_s29, 0  ;;  %s21755_s21 = int_to_ptr.vmem [resolvable:$true] %s14175_s21 }
 0x1a6   : > { %15862 = vmatmul.mubr.msk.bf16.gmra.mrb[36].mxu1 %vm1450_vm9, %v17279_v61  ;;  %v17285_v17 = vld [vmem:[#allocation2 + $0xbc] sm:$0xff]   ;;  %v17311_v42 = vld [vmem:[#allocation2 + $0xd0] sm:$0xff]  }
 0x1a7   : > { %15865 = vmatprep.mubr.msk.bf16.mxu1 %vm1450_vm9, %v17281_v63  ;;  %v17305_v4 = vld [vmem:[#allocation2 + $0xb8] sm:$0xff]  }
 0x1a8   : > { %v17310_v43 = vld [vmem:[#allocation2 + $0xb8] sm:$0xff]  }
 0x1a9   : > { %15942 = vmatmul.mubr.msk.bf16.gmra.mrb[16].mxu0 %vm1450_vm9, %v17282_v12 }
 0x1aa   : > { %15945 = vmatprep.mubr.msk.bf16.mxu0 %vm1450_vm9, %v17284_v13  ;;  %v17287_v20 = vld [vmem:[#allocation2 + $0xc4] sm:$0xff]  }
 0x1ab   : > { %v17307_v37 = vld [vmem:[#allocation2 + $0xc0] sm:$0xff]   ;;  %v17309_v38 = vld [vmem:[#allocation2 + $0xc8] sm:$0xff]  }
 0x1ae   : > { %15866 = vmatmul.mubr.msk.bf16.gmra.mrb[40].mxu1 %vm1450_vm9, %v17283_v46 }
 0x1af   : > { %15869 = vmatprep.mubr.msk.bf16.mxu1 %vm1450_vm9, %v17285_v17 }
 0x1b1   : > { %15946 = vmatmul.mubr.msk.bf16.gmra.mrb[20].mxu0 %vm1450_vm9, %v17286_v18 }
 0x1b2   : > { %15949 = vmatprep.mubr.msk.bf16.mxu0 %vm1450_vm9, %v17289_v19 }
 0x1b6   : > { %15870 = vmatmul.mubr.msk.bf16.gmra.mrb[44].mxu1 %vm1450_vm9, %v17287_v20 }
 0x1b7   : > { %15899 = vmatprep.mubr.msk.bf16.mxu1 %vm1450_vm9, %v17288_v21 }
 0x1b9   : > { %15950 = vmatmul.mubr.msk.bf16.gmra.mrb[24].mxu0 %vm1450_vm9, %v17291_v2 }
 0x1ba   : > { %15953 = vmatprep.mubr.msk.bf16.mxu0 %vm1450_vm9, %v17293_v22 }
 0x1be   : > { %15900 = vmatmul.mubr.msk.bf16.vlgmr.msra.gmra.mrb[24].mxu1 %vm1450_vm9, %v17290_v23 }
 0x1bf   : > { %15903 = vmatprep.mubr.msk.bf16.mxu1 %vm1450_vm9, %v17292_v25 }
 0x1c1   : > { %15954 = vmatmul.mubr.msk.bf16.gmra.mrb[28].mxu0 %vm1450_vm9, %v17295_v28 }
 0x1c2   : > { %15957 = vmatprep.mubr.msk.bf16.mxu0 %vm1450_vm9, %v17297_v5 }
 0x1c6   : > { %15904 = vmatmul.mubr.msk.bf16.gmra.mrb[28].mxu1 %vm1450_vm9, %v17294_v30 }
 0x1c7   : > { %15907 = vmatprep.mubr.msk.bf16.mxu1 %vm1450_vm9, %v17296_v31 }
 0x1c9   : > { %15958 = vmatmul.mubr.msk.bf16.gmra.mrb[32].mxu0 %vm1450_vm9, %v17299_v1 }
 0x1ca   : > { %15961 = vmatprep.mubr.msk.bf16.mxu0 %vm1450_vm9, %v17301_v32 }
 0x1ce   : > { %15908 = vmatmul.mubr.msk.bf16.gmra.mrb[32].mxu1 %vm1450_vm9, %v17298_v8 }
 0x1cf   : > { %15911 = vmatprep.mubr.msk.bf16.mxu1 %vm1450_vm9, %v17300_v33 }
 0x1d1   : > { %15962 = vmatmul.mubr.msk.bf16.gmra.mrb[36].mxu0 %vm1450_vm9, %v17303_v34 }
 0x1d2   : > { %15965 = vmatprep.mubr.msk.bf16.mxu0 %vm1450_vm9, %v17305_v4 }
 0x1d6   : > { %15912 = vmatmul.mubr.msk.bf16.gmra.mrb[36].mxu1 %vm1450_vm9, %v17302_v35 }
 0x1d7   : > { %15915 = vmatprep.mubr.msk.bf16.mxu1 %vm1450_vm9, %v17304_v36 }
 0x1d9   : > { %15966 = vmatmul.mubr.msk.bf16.gmra.mrb[40].mxu0 %vm1450_vm9, %v17307_v37 }
 0x1da   : > { %15969 = vmatprep.mubr.msk.bf16.mxu0 %vm1450_vm9, %v17309_v38 }
 0x1de   : > { %15916 = vmatmul.mubr.msk.bf16.gmra.mrb[40].mxu1 %vm1450_vm9, %v17306_v39 }
 0x1df   : > { %15919 = vmatprep.mubr.msk.bf16.mxu1 %vm1450_vm9, %v17308_v40 }
 0x1e1   : > { %15970 = vmatmul.mubr.msk.bf16.gmra.mrb[44].mxu0 %vm1450_vm9, %v17311_v42 }
 0x1e6   : > { %15920 = vmatmul.mubr.msk.bf16.gmra.mrb[44].mxu1 %vm1450_vm9, %v17310_v43 }
 0x231   : > { %v15827_v44 = vpop.f32.mrb[0].mxu1 }
 0x232   : > { %v1561_v45 = vpop.f32.mrb[1].mxu1 }
 0x233   : > { %v15828_v47 = vpop.f32.mrb[2].mxu1 }
 0x234   : > { %v1564_v48 = vpop.f32.mrb[3].mxu1 }
 0x239   : > { %v15831_v49 = vpop.f32.mrb[4].mxu1 }
 0x23a   : > { %v1577_v50 = vpop.f32.mrb[5].mxu1 }
 0x23b   : > { %v15832_v51 = vpop.f32.mrb[6].mxu1 }
 0x23c   : > { %v1580_v52 = vpop.f32.mrb[7].mxu1 }
 0x241   : > { %v18829_v53 = vpop.f32.mrb[8].mxu1 }
 0x242   : > { %v18831_v54 = vpop.f32.mrb[9].mxu1 }
 0x243   : > { %v18833_v55 = vpop.f32.mrb[10].mxu1 }
 0x244   : > { %v18835_v56 = vpop.f32.mrb[11].mxu1 }
 0x249   : > { %v18837_v57 = vpop.f32.mrb[12].mxu1 }
 0x24a   : > { %v18839_v58 = vpop.f32.mrb[13].mxu1 }
 0x24b   : > { %v18841_v59 = vpop.f32.mrb[14].mxu1 }
 0x24c   : > { %v18843_v60 = vpop.f32.mrb[15].mxu1 }
 0x251   : > { %v18845_v61 = vpop.f32.mrb[16].mxu1 }
 0x252   : > { %v18847_v62 = vpop.f32.mrb[17].mxu1 }
 0x253   : > { %v18849_v63 = vpop.f32.mrb[18].mxu1 }
 0x254   : > { %v18851_v0 = vpop.f32.mrb[19].mxu1 }
 0x259   : > { %v18853_v3 = vpop.f32.mrb[20].mxu1 }
 0x25a   : > { %v18855_v6 = vpop.f32.mrb[21].mxu1 }
 0x25b   : > { %v18857_v7 = vpop.f32.mrb[22].mxu1 }
 0x25c   : > { %v18859_v9 = vpop.f32.mrb[23].mxu1  ;;  %v15927_v10 = vpop.f32.mrb[0].mxu0 }
 0x25d   : > { %v16587_v11 = vadd.f32 %v15927_v10, %v15827_v44  ;;  %v2452_v12 = vpop.f32.mrb[1].mxu0 }
 0x25e   : > { %v18861_v13 = vadd.f32 %v2452_v12, %v1561_v45  ;;  %v15928_v14 = vpop.f32.mrb[2].mxu0 }
 0x25f   : > { %v18863_v15 = vadd.f32 %v15928_v14, %v15828_v47  ;;  %v2455_v16 = vpop.f32.mrb[3].mxu0  ;;  %v2782_v17 = vrot.slane %v16587_v11, 1  ;;  %v2991_v18 = vrot.slane %v16587_v11, 2 }
 0x260   : > { %v18865_v46 = vadd.f32 %v2455_v16, %v1564_v48  ;;  %v2988_v19 = vrot.slane %v18861_v13, 2  ;;  %v2779_v21 = vrot.slane %v18861_v13, 1 }
 0x261   : > { %v2784_v30 = vrot.slane %v18863_v15, 1  ;;  %v2993_v32 = vrot.slane %v18863_v15, 2 }
 0x262   : > { %v2989_v20 = vrot.slane %v18865_v46, 2  ;;  %v2780_v2 = vrot.slane %v18865_v46, 1 }
 0x264   : > { %v15931_v22 = vpop.f32.mrb[4].mxu0  ;;  %v2990_v23 = vsel %vm2987_vm14, %v2988_v19, %v2989_v20  ;;  %v2781_v24 = vsel %vm2778_vm15, %v2779_v21, %v2780_v2  ;;  %v2783_v25 = vsel %vm2778_vm15, %v2780_v2, %v2782_v17  ;;  %v2992_v26 = vsel %vm2987_vm14, %v2989_v20, %v2991_v18 }
 0x265   : > { %v18875_v27 = vadd.f32 %v15931_v22, %v15831_v49  ;;  %3068 = vrot.lane.b32.xlu1 %v2990_v23, %s18040_s24  ;;  %2859 = vrot.lane.b32.xlu0 %v2781_v24, %s18041_s26  ;;  %v2468_v28 = vpop.f32.mrb[5].mxu0 }
 0x266   : > { %v18879_v29 = vadd.f32 %v2468_v28, %v1577_v50  ;;  %v15932_v5 = vpop.f32.mrb[6].mxu0 }
 0x267   : > { %v18882_v31 = vadd.f32 %v15932_v5, %v15832_v51  ;;  %v2471_v1 = vpop.f32.mrb[7].mxu0  ;;  %v2789_v4 = vrot.slane %v18875_v27, 1  ;;  %v2998_v35 = vrot.slane %v18875_v27, 2 }
 0x268   : > { %v2785_v8 = vrot.slane %v18879_v29, 1  ;;  %v2994_v33 = vrot.slane %v18879_v29, 2  ;;  %v16594_v34 = vadd.f32 %v2471_v1, %v1580_v52 }
 0x269   : > { %v2790_v36 = vrot.slane %v18882_v31, 1  ;;  %v2999_v37 = vrot.slane %v18882_v31, 2  ;;  %2861 = vrot.lane.b32.xlu0 %v2783_v25, %s18041_s26 }
 0x26a   : > { %v2787_v38 = vrot.slane %v16594_v34, 1  ;;  %v2996_v39 = vrot.slane %v16594_v34, 2  ;;  %v2786_v40 = vsel %vm2778_vm15, %v2784_v30, %v2785_v8  ;;  %v2995_v42 = vsel %vm2987_vm14, %v2993_v32, %v2994_v33 }
 0x26b   : > { %2863 = vrot.lane.b32.xlu1 %v2786_v40, %s18041_s26  ;;  %v3000_v43 = vsel %vm2987_vm14, %v2998_v35, %v2999_v37  ;;  %v2791_v44 = vsel %vm2778_vm15, %v2789_v4, %v2790_v36 }
 0x26c   : > { %v15935_v45 = vpop.f32.mrb[8].mxu0  ;;  %v2788_v47 = vsel %vm2778_vm15, %v2785_v8, %v2787_v38  ;;  %v2997_v48 = vsel %vm2987_vm14, %v2994_v33, %v2996_v39 }
 0x26d   : > { %v18900_v49 = vadd.f32 %v15935_v45, %v18829_v53  ;;  %3070 = vrot.lane.b32.xlu0 %v2992_v26, %s18040_s24  ;;  %v2484_v50 = vpop.f32.mrb[9].mxu0 }
 0x26e   : > { %v16596_v51 = vadd.f32 %v2484_v50, %v18831_v54  ;;  %v15936_v52 = vpop.f32.mrb[10].mxu0 }
 0x26f   : > { %v16597_v10 = vadd.f32 %v15936_v52, %v18833_v55  ;;  %3072 = vrot.lane.b32.xlu1 %v2995_v42, %s18040_s24  ;;  %v2487_v11 = vpop.f32.mrb[11].mxu0  ;;  %v2795_v17 = vrot.slane %v18900_v49, 1  ;;  %v3004_v53 = vrot.slane %v18900_v49, 2 }
 0x270   : > { %v2792_v12 = vrot.slane %v16596_v51, 1  ;;  %v3001_v14 = vrot.slane %v16596_v51, 2  ;;  %v18907_v16 = vadd.f32 %v2487_v11, %v18835_v56 }
 0x271   : > { %v2797_v18 = vrot.slane %v16597_v10, 1  ;;  %v3006_v19 = vrot.slane %v16597_v10, 2  ;;  %3076 = vrot.lane.b32.xlu0 %v3000_v43, %s18040_s24 }
 0x272   : > { %v2794_v54 = vrot.slane %v18907_v16, 1  ;;  %v3003_v55 = vrot.slane %v18907_v16, 2  ;;  %v2793_v20 = vsel %vm2778_vm15, %v2790_v36, %v2792_v12  ;;  %v3002_v21 = vsel %vm2987_vm14, %v2999_v37, %v3001_v14 }
 0x273   : > { %2867 = vrot.lane.b32.xlu1 %v2791_v44, %s18041_s26  ;;  %v2798_v56 = vsel %vm2778_vm15, %v2795_v17, %v2797_v18  ;;  %v3007_v2 = vsel %vm2987_vm14, %v3004_v53, %v3006_v19 }
 0x274   : > { %v15939_v22 = vpop.f32.mrb[12].mxu0  ;;  %v2796_v23 = vsel %vm2778_vm15, %v2794_v54, %v2795_v17  ;;  %v3005_v24 = vsel %vm2987_vm14, %v3003_v55, %v3004_v53 }
 0x275   : > { %v16599_v25 = vadd.f32 %v15939_v22, %v18837_v57  ;;  %2865 = vrot.lane.b32.xlu0 %v2788_v47, %s18041_s26  ;;  %v2500_v26 = vpop.f32.mrb[13].mxu0 }
 0x276   : > { %v18924_v28 = vadd.f32 %v2500_v26, %v18839_v58  ;;  %v15940_v5 = vpop.f32.mrb[14].mxu0 }
 0x277   : > { %v18927_v30 = vadd.f32 %v15940_v5, %v18841_v59  ;;  %3074 = vrot.lane.b32.xlu1 %v2997_v48, %s18040_s24  ;;  %v2503_v1 = vpop.f32.mrb[15].mxu0  ;;  %v2802_v8 = vrot.slane %v16599_v25, 1  ;;  %v3011_v33 = vrot.slane %v16599_v25, 2 }
 0x278   : > { %v18931_v32 = vadd.f32 %v2503_v1, %v18843_v60  ;;  %v2799_v57 = vrot.slane %v18924_v28, 1  ;;  %v3008_v34 = vrot.slane %v18924_v28, 2 }
 0x279   : > { %2869 = vrot.lane.b32.xlu0 %v2793_v20, %s18041_s26  ;;  %v2804_v43 = vrot.slane %v18927_v30, 1  ;;  %v3013_v47 = vrot.slane %v18927_v30, 2 }
 0x27a   : > { %v2800_v58 = vrot.slane %v18931_v32, 1  ;;  %v3009_v4 = vrot.slane %v18931_v32, 2 }
 0x27b   : > { %3078 = vrot.lane.b32.xlu1 %v3002_v21, %s18040_s24 }
 0x27c   : > { %v15943_v59 = vpop.f32.mrb[16].mxu0  ;;  %v2801_v35 = vsel %vm2778_vm15, %v2799_v57, %v2800_v58  ;;  %v2803_v60 = vsel %vm2778_vm15, %v2800_v58, %v2802_v8  ;;  %v3012_v36 = vsel %vm2987_vm14, %v3009_v4, %v3011_v33  ;;  %v3010_v37 = vsel %vm2987_vm14, %v3008_v34, %v3009_v4 }
 0x27d   : > { %v18944_v38 = vadd.f32 %v15943_v59, %v18845_v61  ;;  %2871 = vrot.lane.b32.xlu0 %v2796_v23, %s18041_s26  ;;  %v2516_v39 = vpop.f32.mrb[17].mxu0 }
 0x27e   : > { %v18948_v40 = vadd.f32 %v2516_v39, %v18847_v62  ;;  %v15944_v42 = vpop.f32.mrb[18].mxu0 }
 0x27f   : > { %v18952_v44 = vadd.f32 %v15944_v42, %v18849_v63  ;;  %2873 = vrot.lane.b32.xlu1 %v2798_v56, %s18041_s26  ;;  %v2519_v45 = vpop.f32.mrb[19].mxu0  ;;  %v2809_v62 = vrot.slane %v18944_v38, 1  ;;  %v3018_v51 = vrot.slane %v18944_v38, 2 }
 0x280   : > { %v2805_v61 = vrot.slane %v18948_v40, 1  ;;  %v3014_v48 = vrot.slane %v18948_v40, 2  ;;  %v16606_v50 = vadd.f32 %v2519_v45, %v18851_v0 }
 0x281   : > { %v2810_v52 = vrot.slane %v18952_v44, 1  ;;  %v3019_v63 = vrot.slane %v18952_v44, 2  ;;  %3080 = vrot.lane.b32.xlu0 %v3005_v24, %s18040_s24 }
 0x282   : > { %v2807_v10 = vrot.slane %v16606_v50, 1  ;;  %v3016_v11 = vrot.slane %v16606_v50, 2  ;;  %v2806_v12 = vsel %vm2778_vm15, %v2804_v43, %v2805_v61  ;;  %v3015_v14 = vsel %vm2987_vm14, %v3013_v47, %v3014_v48 }
 0x283   : > { %3082 = vrot.lane.b32.xlu1 %v3007_v2, %s18040_s24  ;;  %v3020_v0 = vsel %vm2987_vm14, %v3018_v51, %v3019_v63  ;;  %v2811_v17 = vsel %vm2778_vm15, %v2809_v62, %v2810_v52 }
 0x284   : > { %v15947_v53 = vpop.f32.mrb[20].mxu0  ;;  %v2808_v18 = vsel %vm2778_vm15, %v2805_v61, %v2807_v10  ;;  %v3017_v19 = vsel %vm2987_vm14, %v3014_v48, %v3016_v11 }
 0x285   : > { %v18972_v54 = vadd.f32 %v15947_v53, %v18853_v3  ;;  %2875 = vrot.lane.b32.xlu0 %v2801_v35, %s18041_s26  ;;  %v2532_v55 = vpop.f32.mrb[21].mxu0 }
 0x286   : > { %v16608_v20 = vadd.f32 %v2532_v55, %v18855_v6  ;;  %v15948_v21 = vpop.f32.mrb[22].mxu0 }
 0x287   : > { %v16609_v56 = vadd.f32 %v15948_v21, %v18857_v7  ;;  %2877 = vrot.lane.b32.xlu1 %v2803_v60, %s18041_s26  ;;  %v2535_v2 = vpop.f32.mrb[23].mxu0  ;;  %v2815_v25 = vrot.slane %v18972_v54, 1  ;;  %v3024_v3 = vrot.slane %v18972_v54, 2 }
 0x288   : > { %v2812_v22 = vrot.slane %v16608_v20, 1  ;;  %v3021_v23 = vrot.slane %v16608_v20, 2  ;;  %v18979_v24 = vadd.f32 %v2535_v2, %v18859_v9 }
 0x289   : > { %v2817_v26 = vrot.slane %v16609_v56, 1  ;;  %v3026_v5 = vrot.slane %v16609_v56, 2  ;;  %3086 = vrot.lane.b32.xlu0 %v3012_v36, %s18040_s24 }
 0x28a   : > { %v2814_v6 = vrot.slane %v18979_v24, 1  ;;  %v3023_v7 = vrot.slane %v18979_v24, 2  ;;  %v2813_v1 = vsel %vm2778_vm15, %v2810_v52, %v2812_v22  ;;  %v3022_v8 = vsel %vm2987_vm14, %v3019_v63, %v3021_v23 }
 0x28b   : > { %3084 = vrot.lane.b32.xlu1 %v3010_v37, %s18040_s24  ;;  %v18990_v9 = vsel %vm2778_vm15, %v2815_v25, %v2817_v26  ;;  %v18993_v33 = vsel %vm2987_vm14, %v3024_v3, %v3026_v5 }
 0x28c   : > { %v15951_v57 = vpop.f32.mrb[24].mxu0  ;;  %v2816_v34 = vsel %vm2778_vm15, %v2814_v6, %v2815_v25  ;;  %v18997_v58 = vsel %vm2987_vm14, %v3023_v7, %v3024_v3 }
 0x28d   : > { %2879 = vrot.lane.b32.xlu0 %v2806_v12, %s18041_s26  ;;  %v2548_v4 = vpop.f32.mrb[25].mxu0 }
 0x28e   : > { %v15952_v59 = vpop.f32.mrb[26].mxu0 }
 0x28f   : > { %3088 = vrot.lane.b32.xlu1 %v3015_v14, %s18040_s24  ;;  %v2551_v35 = vpop.f32.mrb[27].mxu0 }
 0x291   : > { %v15901_v60 = vpop.f32.mrb[24].mxu1  ;;  %3092 = vrot.lane.b32.xlu0 %v3020_v0, %s18040_s24 }
 0x292   : > { %v16611_v36 = vadd.f32 %v15951_v57, %v15901_v60  ;;  %v2077_v37 = vpop.f32.mrb[25].mxu1 }
 0x293   : > { %v19002_v39 = vadd.f32 %v2548_v4, %v2077_v37  ;;  %v15902_v42 = vpop.f32.mrb[26].mxu1  ;;  %2883 = vrot.lane.b32.xlu1 %v2811_v17, %s18041_s26 }
 0x294   : > { %v19004_v43 = vadd.f32 %v15952_v59, %v15902_v42  ;;  %v2080_v45 = vpop.f32.mrb[27].mxu1  ;;  %v15955_v61 = vpop.f32.mrb[28].mxu0  ;;  %v2822_v48 = vrot.slane %v16611_v36, 1  ;;  %v3031_v50 = vrot.slane %v16611_v36, 2 }
 0x295   : > { %v19007_v47 = vadd.f32 %v2551_v35, %v2080_v45  ;;  %2881 = vrot.lane.b32.xlu0 %v2808_v18, %s18041_s26  ;;  %v2564_v62 = vpop.f32.mrb[29].mxu0  ;;  %v2819_v51 = vrot.slane %v19002_v39, 1  ;;  %v3028_v52 = vrot.slane %v19002_v39, 2 }
 0x296   : > { %v15956_v11 = vpop.f32.mrb[30].mxu0  ;;  %v2824_v56 = vrot.slane %v19004_v43, 1  ;;  %v3033_v23 = vrot.slane %v19004_v43, 2 }
 0x297   : > { %v2820_v63 = vrot.slane %v19007_v47, 1  ;;  %v3029_v10 = vrot.slane %v19007_v47, 2  ;;  %3090 = vrot.lane.b32.xlu1 %v3017_v19, %s18040_s24  ;;  %v2567_v12 = vpop.f32.mrb[31].mxu0 }
 0x299   : > { %v15905_v14 = vpop.f32.mrb[28].mxu1  ;;  %v2821_v0 = vsel %vm2778_vm15, %v2819_v51, %v2820_v63  ;;  %v2823_v17 = vsel %vm2778_vm15, %v2820_v63, %v2822_v48  ;;  %v19018_v53 = vsel %vm2987_vm14, %v3029_v10, %v3031_v50  ;;  %v19021_v18 = vsel %vm2987_vm14, %v3028_v52, %v3029_v10  ;;  %2885 = vrot.lane.b32.xlu0 %v2813_v1, %s18041_s26 }
 0x29a   : > { %v19023_v55 = vadd.f32 %v15955_v61, %v15905_v14  ;;  %v2093_v20 = vpop.f32.mrb[29].mxu1 }
 0x29b   : > { %v19026_v21 = vadd.f32 %v2564_v62, %v2093_v20  ;;  %v15906_v19 = vpop.f32.mrb[30].mxu1  ;;  %3094 = vrot.lane.b32.xlu1 %v3022_v8, %s18040_s24 }
 0x29c   : > { %v19029_v2 = vadd.f32 %v15956_v11, %v15906_v19  ;;  %v2096_v22 = vpop.f32.mrb[31].mxu1  ;;  %v15959_v5 = vpop.f32.mrb[32].mxu0  ;;  %v2829_v6 = vrot.slane %v19023_v55, 1  ;;  %v3038_v7 = vrot.slane %v19023_v55, 2 }
 0x29d   : > { %v2825_v25 = vrot.slane %v19026_v21, 1  ;;  %v3034_v3 = vrot.slane %v19026_v21, 2  ;;  %v16618_v26 = vadd.f32 %v2567_v12, %v2096_v22  ;;  %2887 = vrot.lane.b32.xlu0 %v2816_v34, %s18041_s26  ;;  %v2580_v4 = vpop.f32.mrb[33].mxu0 }
 0x29e   : > { %v2830_v1 = vrot.slane %v19029_v2, 1  ;;  %v3039_v57 = vrot.slane %v19029_v2, 2  ;;  %v15960_v35 = vpop.f32.mrb[34].mxu0 }
 0x29f   : > { %v2827_v8 = vrot.slane %v16618_v26, 1  ;;  %v3036_v59 = vrot.slane %v16618_v26, 2  ;;  %v2826_v60 = vsel %vm2778_vm15, %v2824_v56, %v2825_v25  ;;  %v3035_v36 = vsel %vm2987_vm14, %v3033_v23, %v3034_v3  ;;  %2889 = vrot.lane.b32.xlu1 %v18990_v9, %s18041_s26  ;;  %v2583_v37 = vpop.f32.mrb[35].mxu0 }
 0x2a0   : > { %v3040_v42 = vsel %vm2987_vm14, %v3038_v7, %v3039_v57  ;;  %v19046_v45 = vsel %vm2778_vm15, %v2829_v6, %v2830_v1 }
 0x2a1   : > { %v15909_v61 = vpop.f32.mrb[32].mxu1  ;;  %v19049_v34 = vsel %vm2778_vm15, %v2825_v25, %v2827_v8  ;;  %v19052_v48 = vsel %vm2987_vm14, %v3034_v3, %v3036_v59  ;;  %3096 = vrot.lane.b32.xlu0 %v18997_v58, %s18040_s24 }
 0x2a2   : > { %v19054_v50 = vadd.f32 %v15959_v5, %v15909_v61  ;;  %v2109_v62 = vpop.f32.mrb[33].mxu1 }
 0x2a3   : > { %v16620_v9 = vadd.f32 %v2580_v4, %v2109_v62  ;;  %v15910_v51 = vpop.f32.mrb[34].mxu1  ;;  %3098 = vrot.lane.b32.xlu1 %v18993_v33, %s18040_s24 }
 0x2a4   : > { %v16621_v52 = vadd.f32 %v15960_v35, %v15910_v51  ;;  %v2112_v63 = vpop.f32.mrb[35].mxu1  ;;  %v15963_v14 = vpop.f32.mrb[36].mxu0  ;;  %v2835_v20 = vrot.slane %v19054_v50, 1  ;;  %v3044_v19 = vrot.slane %v19054_v50, 2 }
 0x2a5   : > { %v2832_v10 = vrot.slane %v16620_v9, 1  ;;  %v3041_v11 = vrot.slane %v16620_v9, 2  ;;  %v19060_v12 = vadd.f32 %v2583_v37, %v2112_v63  ;;  %2891 = vrot.lane.b32.xlu0 %v2821_v0, %s18041_s26  ;;  %v2596_v58 = vpop.f32.mrb[37].mxu0 }
 0x2a6   : > { %v2837_v56 = vrot.slane %v16621_v52, 1  ;;  %v3046_v22 = vrot.slane %v16621_v52, 2  ;;  %v15964_v3 = vpop.f32.mrb[38].mxu0 }
 0x2a7   : > { %v2834_v23 = vrot.slane %v19060_v12, 1  ;;  %v3043_v25 = vrot.slane %v19060_v12, 2  ;;  %v19068_v33 = vsel %vm2778_vm15, %v2830_v1, %v2832_v10  ;;  %v19071_v26 = vsel %vm2987_vm14, %v3039_v57, %v3041_v11  ;;  %2893 = vrot.lane.b32.xlu1 %v2823_v17, %s18041_s26  ;;  %v2599_v5 = vpop.f32.mrb[39].mxu0 }
 0x2a8   : > { %v19075_v6 = vsel %vm2778_vm15, %v2835_v20, %v2837_v56  ;;  %v19078_v0 = vsel %vm2987_vm14, %v3044_v19, %v3046_v22 }
 0x2a9   : > { %v15913_v7 = vpop.f32.mrb[36].mxu1  ;;  %v19081_v4 = vsel %vm2778_vm15, %v2834_v23, %v2835_v20  ;;  %v19084_v8 = vsel %vm2987_vm14, %v3043_v25, %v3044_v19  ;;  %3102 = vrot.lane.b32.xlu0 %v19018_v53, %s18040_s24 }
 0x2aa   : > { %v16623_v1 = vadd.f32 %v15963_v14, %v15913_v7  ;;  %v2125_v59 = vpop.f32.mrb[37].mxu1 }
 0x2ab   : > { %v19088_v17 = vadd.f32 %v2596_v58, %v2125_v59  ;;  %v15914_v57 = vpop.f32.mrb[38].mxu1  ;;  %3100 = vrot.lane.b32.xlu1 %v19021_v18, %s18040_s24 }
 0x2ac   : > { %v19090_v35 = vadd.f32 %v15964_v3, %v15914_v57  ;;  %v2128_v37 = vpop.f32.mrb[39].mxu1  ;;  %v15967_v62 = vpop.f32.mrb[40].mxu0  ;;  %v2842_v9 = vrot.slane %v16623_v1, 1  ;;  %v3051_v51 = vrot.slane %v16623_v1, 2 }
 0x2ad   : > { %v19094_v61 = vadd.f32 %v2599_v5, %v2128_v37  ;;  %2895 = vrot.lane.b32.xlu0 %v2826_v60, %s18041_s26  ;;  %v2612_v52 = vpop.f32.mrb[41].mxu0  ;;  %v2839_v63 = vrot.slane %v19088_v17, 1  ;;  %v3048_v53 = vrot.slane %v19088_v17, 2 }
 0x2ae   : > { %v15968_v14 = vpop.f32.mrb[42].mxu0  ;;  %v3053_v1 = vrot.slane %v19090_v35, 2 }
 0x2af   : > { %v2840_v10 = vrot.slane %v19094_v61, 1  ;;  %v3049_v11 = vrot.slane %v19094_v61, 2  ;;  %3104 = vrot.lane.b32.xlu1 %v3035_v36, %s18040_s24  ;;  %v2615_v18 = vpop.f32.mrb[43].mxu0  ;;  %v2844_v36 = vrot.slane %v19090_v35, 1 }
 0x2b1   : > { %v15917_v20 = vpop.f32.mrb[40].mxu1  ;;  %v2841_v19 = vsel %vm2778_vm15, %v2839_v63, %v2840_v10  ;;  %v2843_v56 = vsel %vm2778_vm15, %v2840_v10, %v2842_v9  ;;  %v3050_v60 = vsel %vm2987_vm14, %v3048_v53, %v3049_v11  ;;  %v3052_v22 = vsel %vm2987_vm14, %v3049_v11, %v3051_v51  ;;  %3108 = vrot.lane.b32.xlu0 %v3040_v42, %s18040_s24 }
 0x2b2   : > { %v19106_v58 = vadd.f32 %v15967_v62, %v15917_v20  ;;  %v2141_v23 = vpop.f32.mrb[41].mxu1 }
 0x2b3   : > { %v19109_v25 = vadd.f32 %v2612_v52, %v2141_v23  ;;  %v15918_v3 = vpop.f32.mrb[42].mxu1  ;;  %2899 = vrot.lane.b32.xlu1 %v19046_v45, %s18041_s26 }
 0x2b4   : > { %21862 = vst [vmem:[#allocation30_spill] sm:$0xff] %v19106_v58  ;;  %v19112_v5 = vadd.f32 %v15968_v14, %v15918_v3  ;;  %v2144_v7 = vpop.f32.mrb[43].mxu1  ;;  %v15971_v62 = vpop.f32.mrb[44].mxu0  ;;  %v2849_v42 = vrot.slane %v19106_v58, 1  ;;  %v3058_v9 = vrot.slane %v19106_v58, 2 }
 0x2b5   : > { %21863 = vst [vmem:[#allocation31_spill] sm:$0xff] %v19109_v25  ;;  %v2845_v59 = vrot.slane %v19109_v25, 1  ;;  %v3054_v57 = vrot.slane %v19109_v25, 2  ;;  %v16630_v37 = vadd.f32 %v2615_v18, %v2144_v7  ;;  %2897 = vrot.lane.b32.xlu0 %v19049_v34, %s18041_s26  ;;  %v2628_v45 = vpop.f32.mrb[45].mxu0 }
 0x2b6   : > { %21864 = vst [vmem:[#allocation32_spill] sm:$0xff] %v19112_v5  ;;  %v2850_v51 = vrot.slane %v19112_v5, 1  ;;  %v3059_v52 = vrot.slane %v19112_v5, 2  ;;  %v15972_v10 = vpop.f32.mrb[46].mxu0 }
 0x2b7   : > { %v2847_v63 = vrot.slane %v16630_v37, 1  ;;  %v3056_v53 = vrot.slane %v16630_v37, 2  ;;  %v2846_v11 = vsel %vm2778_vm15, %v2844_v36, %v2845_v59  ;;  %v3055_v14 = vsel %vm2987_vm14, %v3053_v1, %v3054_v57  ;;  %3106 = vrot.lane.b32.xlu1 %v19052_v48, %s18040_s24  ;;  %v2631_v18 = vpop.f32.mrb[47].mxu0 }
 0x2b8   : > { %v2851_v20 = vsel %vm2778_vm15, %v2849_v42, %v2850_v51  ;;  %v3060_v23 = vsel %vm2987_vm14, %v3058_v9, %v3059_v52 }
 0x2b9   : > { %v15921_v3 = vpop.f32.mrb[44].mxu1  ;;  %v2848_v7 = vsel %vm2778_vm15, %v2845_v59, %v2847_v63  ;;  %v3057_v34 = vsel %vm2987_vm14, %v3054_v57, %v3056_v53  ;;  %2901 = vrot.lane.b32.xlu0 %v19068_v33, %s18041_s26 }
 0x2ba   : > { %v19133_v5 = vadd.f32 %v15971_v62, %v15921_v3  ;;  %v2157_v37 = vpop.f32.mrb[45].mxu1 }
 0x2bb   : > { %v16632_v36 = vadd.f32 %v2628_v45, %v2157_v37  ;;  %v15922_v1 = vpop.f32.mrb[46].mxu1  ;;  %3110 = vrot.lane.b32.xlu1 %v19071_v26, %s18040_s24 }
 0x2bc   : > { %v16633_v58 = vadd.f32 %v15972_v10, %v15922_v1  ;;  %v2160_v48 = vpop.f32.mrb[47].mxu1  ;;  %v2855_v59 = vrot.slane %v19133_v5, 1  ;;  %v3064_v57 = vrot.slane %v19133_v5, 2 }
 0x2bd   : > { %v2852_v42 = vrot.slane %v16632_v36, 1  ;;  %v3061_v9 = vrot.slane %v16632_v36, 2  ;;  %v19139_v25 = vadd.f32 %v2631_v18, %v2160_v48  ;;  %2903 = vrot.lane.b32.xlu0 %v19081_v4, %s18041_s26 }
 0x2be   : > { %v2857_v62 = vrot.slane %v16633_v58, 1  ;;  %v3066_v63 = vrot.slane %v16633_v58, 2 }
 0x2bf   : > { %v2854_v33 = vrot.slane %v19139_v25, 1  ;;  %v3063_v45 = vrot.slane %v19139_v25, 2  ;;  %v2853_v53 = vsel %vm2778_vm15, %v2850_v51, %v2852_v42  ;;  %v3062_v26 = vsel %vm2987_vm14, %v3059_v52, %v3061_v9  ;;  %2905 = vrot.lane.b32.xlu1 %v19075_v6, %s18041_s26  ;;  %v19171_v6 = vld [vmem:[#allocation8] ss:$0 sm:$0xff] }
 0x2c0   : > { %v2858_v10 = vsel %vm2778_vm15, %v2855_v59, %v2857_v62  ;;  %v19153_v18 = vsel %vm2987_vm14, %v3064_v57, %v3066_v63  ;;  %v2699_v52 = vadd.f32 %v18865_v46, %v19171_v6 }
 0x2c1   : > { %v2856_v58 = vsel %vm2778_vm15, %v2854_v33, %v2855_v59  ;;  %v19157_v4 = vsel %vm2987_vm14, %v3063_v45, %v3064_v57  ;;  %3112 = vrot.lane.b32.xlu0 %v19084_v8, %s18040_s24 }
 0x2c3   : > { %3114 = vrot.lane.b32.xlu1 %v19078_v0, %s18040_s24  ;;  %v2698_v0 = vadd.f32 %v18861_v13, %v19171_v6 }
 0x2c5   : > { %2907 = vrot.lane.b32.xlu0 %v2841_v19, %s18041_s26 }
 0x2c7   : > { %2909 = vrot.lane.b32.xlu1 %v2843_v56, %s18041_s26 }
 0x2c9   : > { %3116 = vrot.lane.b32.xlu0 %v3050_v60, %s18040_s24 }
 0x2cb   : > { %3118 = vrot.lane.b32.xlu1 %v3052_v22, %s18040_s24 }
 0x2cd   : > { %2911 = vrot.lane.b32.xlu0 %v2846_v11, %s18041_s26 }
 0x2cf   : > { %3120 = vrot.lane.b32.xlu1 %v3055_v14, %s18040_s24  ;;  %v2700_v14 = vadd.f32 %v18863_v15, %v19171_v6  ;;  %v2702_v15 = vadd.f32 %v18875_v27, %v19171_v6 }
 0x2d1   : > { %2913 = vrot.lane.b32.xlu0 %v2848_v7, %s18041_s26 }
 0x2d3   : > { %2915 = vrot.lane.b32.xlu1 %v2851_v20, %s18041_s26 }
 0x2d5   : > { %3122 = vrot.lane.b32.xlu0 %v3057_v34, %s18040_s24 }
 0x2d7   : > { %v2860_v8 = vpop.permute.xlu0 %2859  ;;  %3124 = vrot.lane.b32.xlu1 %v3060_v23, %s18040_s24  ;;  %v3069_v56 = vpop.permute.xlu1 %3068 }
 0x2d8   : > { %v2955_v19 = vadd.f32 %v2860_v8, %v2698_v0 }
 0x2d9   : > { %2917 = vrot.lane.b32.xlu0 %v2853_v53, %s18041_s26 }
 0x2da   : > { %v3164_v60 = vadd.f32 %v3069_v56, %v2955_v19 }
 0x2db   : > { %v2862_v22 = vpop.permute.xlu0 %2861  ;;  %2921 = vrot.lane.b32.xlu1 %v2858_v10, %s18041_s26 }
 0x2dc   : > { %vm3196_vm0 = vcmp.ge.f32.partialorder %v3164_v60, 0.0  ;;  %v3228_v51 = vmul.f32 0.2, %v3164_v60  ;;  %v2956_v13 = vadd.f32 %v2862_v22, %v2699_v52 }
 0x2dd   : > { %v2864_v11 = vpop.permute.xlu1 %2863  ;;  %3126 = vrot.lane.b32.xlu0 %v3062_v26, %s18040_s24  ;;  %v2701_v26 = vadd.f32 %v18879_v29, %v19171_v6 }
 0x2de   : > { %v3260_v20 = vsel %vm3196_vm0, %v3164_v60, %v3228_v51  ;;  %v2957_v7 = vadd.f32 %v2864_v11, %v2700_v14  ;;  %v2703_v11 = vadd.f32 %v18882_v31, %v19171_v6 }
 0x2df   : > { %v3071_v23 = vpop.permute.xlu0 %3070  ;;  %v15313_v3 = vpack.c.bf16 %v3260_v20, %v3260_v20 }
 0x2e0   : > { %v3165_v34 = vadd.f32 %v3071_v23, %v2956_v13 }
 0x2e1   : > { %v3073_v37 = vpop.permute.xlu1 %3072  ;;  %2919 = vrot.lane.b32.xlu0 %v2856_v58, %s18041_s26  ;;  %v3389_v36 = vshrl.u32 %v15313_v3, 16  ;;  %v3392_v9 = vshll.u32 %v15313_v3, 16 }
 0x2e2   : > { %vm3197_vm1 = vcmp.ge.f32.partialorder %v3165_v34, 0.0  ;;  %v3229_v1 = vmul.f32 0.2, %v3165_v34  ;;  %v3166_v48 = vadd.f32 %v3073_v37, %v2957_v7 }
 0x2e3   : > { %v3077_v46 = vpop.permute.xlu0 %3076  ;;  %v3391_v42 = vrot.slane %v3389_v36, 7 }
 0x2e4   : > { %v3261_v59 = vsel %vm3197_vm1, %v3165_v34, %v3229_v1  ;;  %vm3198_vm5 = vcmp.ge.f32.partialorder %v3166_v48, 0.0  ;;  %v3230_v57 = vmul.f32 0.2, %v3166_v48 }
 0x2e5   : > { %v15314_v62 = vpack.c.bf16 %v3261_v59, %v3261_v59  ;;  %v2868_v63 = vpop.permute.xlu1 %2867  ;;  %v3394_v33 = vor.u32 %v3392_v9, %v3391_v42  ;;  %v3395_v14 = vrot.slane %v3391_v42, 4 }
 0x2e6   : > { %v3262_v45 = vsel %vm3198_vm5, %v3166_v48, %v3230_v57  ;;  %v2959_v53 = vadd.f32 %v2868_v63, %v2702_v15  ;;  %v17313_v48 = vld [vmem:[#allocation9 + $0x8] sm:$0x3f]   ;;  %v2704_v57 = vadd.f32 %v18907_v16, %v19171_v6 }
 0x2e7   : > { %v15315_v10 = vpack.c.bf16 %v3262_v45, %v3262_v45  ;;  %v2866_v58 = vpop.permute.xlu0 %2865  ;;  %3660 = vrot.lane.b32.xlu1 %v3394_v33, %s18042_s16  ;;  %v3397_v0 = vshrl.u32 %v15314_v62, 16  ;;  %v3400_v22 = vshll.u32 %v15314_v62, 16  ;;  %17071 = vmatprep.subr.msk.bf16.mxu1 %vm2987_vm14, %v17313_v48  ;;  %v4220_v15 = vsel %vm2987_vm14, %v17313_v48, 0 }
 0x2e8   : > { %v3168_v8 = vadd.f32 %v3077_v46, %v2959_v53  ;;  %v2958_v19 = vadd.f32 %v2866_v58, %v2701_v26  ;;  %15974 = vmatpush3.bf16.msra.mxu1 %v4220_v15 }
 0x2e9   : > { %v3075_v56 = vpop.permute.xlu1 %3074  ;;  %v3399_v60 = vrot.slane %v3397_v0, 7  ;;  %v3406_v27 = vshrl.u32 %v15315_v10, 16  ;;  %v3409_v31 = vshll.u32 %v15315_v10, 16  ;;  %v2705_v10 = vadd.f32 %v18900_v49, %v19171_v6 }
 0x2ea   : > { %vm3200_vm6 = vcmp.ge.f32.partialorder %v3168_v8, 0.0  ;;  %v3232_v51 = vmul.f32 0.2, %v3168_v8  ;;  %v3167_v52 = vadd.f32 %v3075_v56, %v2958_v19 }
 0x2eb   : > { %v2870_v13 = vpop.permute.xlu0 %2869  ;;  %v3404_v29 = vrot.slane %v3399_v60, 4  ;;  %v3402_v20 = vor.u32 %v3400_v22, %v3399_v60  ;;  %v3408_v23 = vrot.slane %v3406_v27, 7 }
 0x2ec   : > { %vm3199_vm7 = vcmp.ge.f32.partialorder %v3167_v52, 0.0  ;;  %v3231_v3 = vmul.f32 0.2, %v3167_v52  ;;  %v2960_v7 = vadd.f32 %v2870_v13, %v2703_v11  ;;  %v3264_v34 = vsel %vm3200_vm6, %v3168_v8, %v3232_v51 }
 0x2ed   : > { %v3079_v37 = vpop.permute.xlu1 %3078  ;;  %3664 = vrot.lane.b32.xlu1 %v3404_v29, %s18042_s16  ;;  %v3403_v36 = vsel %vm18534_vm11, %v3395_v14, %v3402_v20  ;;  %v15317_v1 = vpack.c.bf16 %v3264_v34, %v3264_v34  ;;  %v3411_v63 = vor.u32 %v3409_v31, %v3408_v23 }
 0x2ee   : > { %v3263_v46 = vsel %vm3199_vm7, %v3167_v52, %v3231_v3  ;;  %v3169_v9 = vadd.f32 %v3079_v37, %v2960_v7  ;;  %3662 = vrot.lane.b32.xlu0 %v3403_v36, %s18042_s16  ;;  %v3412_v52 = vrot.slane %v3408_v23, 4  ;;  %v2707_v3 = vadd.f32 %v18931_v32, %v19171_v6 }
 0x2ef   : > { %v15316_v42 = vpack.c.bf16 %v3263_v46, %v3263_v46  ;;  %v2872_v59 = vpop.permute.xlu0 %2871  ;;  %v3423_v33 = vshrl.u32 %v15317_v1, 16  ;;  %v3426_v49 = vshll.u32 %v15317_v1, 16 }
 0x2f0   : > { %vm3201_vm8 = vcmp.ge.f32.partialorder %v3169_v9, 0.0  ;;  %v3233_v62 = vmul.f32 0.2, %v3169_v9  ;;  %v2961_v58 = vadd.f32 %v2872_v59, %v2704_v57 }
 0x2f1   : > { %v2874_v45 = vpop.permute.xlu1 %2873  ;;  %v3414_v53 = vshrl.u32 %v15316_v42, 16  ;;  %v3417_v19 = vshll.u32 %v15316_v42, 16  ;;  %v3425_v22 = vrot.slane %v3423_v33, 7  ;;  %v2706_v42 = vadd.f32 %v18924_v28, %v19171_v6 }
 0x2f2   : > { %v3265_v26 = vsel %vm3201_vm8, %v3169_v9, %v3233_v62  ;;  %3666 = vrot.lane.b32.xlu0 %v3411_v63, %s18042_s16  ;;  %v2962_v56 = vadd.f32 %v2874_v45, %v2705_v10 }
 0x2f3   : > { %v15318_v0 = vpack.c.bf16 %v3265_v26, %v3265_v26  ;;  %v3081_v16 = vpop.permute.xlu0 %3080  ;;  %v3416_v8 = vrot.slane %v3414_v53, 7  ;;  %v3428_v48 = vor.u32 %v3426_v49, %v3425_v22  ;;  %v3429_v31 = vrot.slane %v3425_v22, 4 }
 0x2f4   : > { %v3170_v60 = vadd.f32 %v3081_v16, %v2961_v58 }
 0x2f5   : > { %v3083_v27 = vpop.permute.xlu1 %3082  ;;  %v3421_v51 = vrot.slane %v3416_v8, 4  ;;  %v3419_v11 = vor.u32 %v3417_v19, %v3416_v8  ;;  %v3431_v13 = vshrl.u32 %v15318_v0, 16  ;;  %v3434_v23 = vshll.u32 %v15318_v0, 16 }
 0x2f6   : > { %vm3202_vm10 = vcmp.ge.f32.partialorder %v3170_v60, 0.0  ;;  %v3234_v29 = vmul.f32 0.2, %v3170_v60  ;;  %v3171_v14 = vadd.f32 %v3083_v27, %v2962_v56  ;;  %3128 = vrot.lane.b32.xlu0 %v19157_v4, %s18040_s24  ;;  %v2708_v0 = vadd.f32 %v18927_v30, %v19171_v6 }
 0x2f7   : > { %v2876_v20 = vpop.permute.xlu0 %2875  ;;  %3670 = vrot.lane.b32.xlu1 %v3421_v51, %s18042_s16  ;;  %v3420_v7 = vsel %vm18534_vm11, %v3412_v52, %v3419_v11  ;;  %v3433_v34 = vrot.slane %v3431_v13, 7 }
 0x2f8   : > { %v3266_v37 = vsel %vm3202_vm10, %v3170_v60, %v3234_v29  ;;  %vm3203_vm12 = vcmp.ge.f32.partialorder %v3171_v14, 0.0  ;;  %v3235_v36 = vmul.f32 0.2, %v3171_v14  ;;  %v2963_v63 = vadd.f32 %v2876_v20, %v2706_v42 }
 0x2f9   : > { %v15319_v46 = vpack.c.bf16 %v3266_v37, %v3266_v37  ;;  %v2878_v9 = vpop.permute.xlu1 %2877  ;;  %v3436_v4 = vor.u32 %v3434_v23, %v3433_v34  ;;  %v3438_v45 = vrot.slane %v3433_v34, 4  ;;  %v2710_v23 = vadd.f32 %v18944_v38, %v19171_v6 }
 0x2fa   : > { %v3267_v1 = vsel %vm3203_vm12, %v3171_v14, %v3235_v36  ;;  %v2964_v59 = vadd.f32 %v2878_v9, %v2707_v3  ;;  %3672 = vrot.lane.b32.xlu0 %v3428_v48, %s18042_s16 }
 0x2fb   : > { %v15320_v32 = vpack.c.bf16 %v3267_v1, %v3267_v1  ;;  %v3087_v57 = vpop.permute.xlu0 %3086  ;;  %3668 = vrot.lane.b32.xlu1 %v3420_v7, %s18042_s16  ;;  %v3437_v15 = vsel %vm18534_vm11, %v3429_v31, %v3436_v4  ;;  %v3440_v62 = vshrl.u32 %v15319_v46, 16  ;;  %v3443_v3 = vshll.u32 %v15319_v46, 16 }
 0x2fc   : > { %v3173_v33 = vadd.f32 %v3087_v57, %v2964_v59  ;;  %v2709_v4 = vadd.f32 %v18948_v40, %v19171_v6  ;;  %v2711_v40 = vadd.f32 %v18952_v44, %v19171_v6 }
 0x2fd   : > { %v3085_v53 = vpop.permute.xlu1 %3084  ;;  %v3448_v26 = vshrl.u32 %v15320_v32, 16  ;;  %v3442_v58 = vrot.slane %v3440_v62, 7  ;;  %v3451_v19 = vshll.u32 %v15320_v32, 16 }
 0x2fe   : > { %vm3205_vm13 = vcmp.ge.f32.partialorder %v3173_v33, 0.0  ;;  %v3237_v10 = vmul.f32 0.2, %v3173_v33  ;;  %v3172_v28 = vadd.f32 %v3085_v53, %v2963_v63  ;;  %3676 = vrot.lane.b32.xlu0 %v3438_v45, %s18042_s16 }
 0x2ff   : > { %v2880_v16 = vpop.permute.xlu0 %2879  ;;  %3674 = vrot.lane.b32.xlu1 %v3437_v15, %s18042_s16  ;;  %v3450_v8 = vrot.slane %v3448_v26, 7  ;;  %v3446_v11 = vrot.slane %v3442_v58, 4  ;;  %v3445_v36 = vor.u32 %v3443_v3, %v3442_v58 }
 0x300   : > { %v3269_v56 = vsel %vm3205_vm13, %v3173_v33, %v3237_v10  ;;  %vm3204_vm0 = vcmp.ge.f32.partialorder %v3172_v28, 0.0  ;;  %v3236_v60 = vmul.f32 0.2, %v3172_v28  ;;  %v2965_v22 = vadd.f32 %v2880_v16, %v2708_v0 }
 0x301   : > { %v15322_v27 = vpack.c.bf16 %v3269_v56, %v3269_v56  ;;  %v3089_v51 = vpop.permute.xlu1 %3088  ;;  %v3455_v52 = vrot.slane %v3450_v8, 4  ;;  %v3453_v13 = vor.u32 %v3451_v19, %v3450_v8 }
 0x302   : > { %v3268_v29 = vsel %vm3204_vm0, %v3172_v28, %v3236_v60  ;;  %v3174_v14 = vadd.f32 %v3089_v51, %v2965_v22  ;;  %3130 = vrot.lane.b32.xlu0 %v19153_v18, %s18040_s24 }
 0x303   : > { %v3465_v30 = vshrl.u32 %v15322_v27, 16  ;;  %v15321_v49 = vpack.c.bf16 %v3268_v29, %v3268_v29  ;;  %v3093_v20 = vpop.permute.xlu0 %3092  ;;  %3682 = vrot.lane.b32.xlu1 %v3455_v52, %s18042_s16  ;;  %v3454_v7 = vsel %vm18534_vm11, %v3446_v11, %v3453_v13  ;;  %v3468_v32 = vshll.u32 %v15322_v27, 16 }
 0x304   : > { %vm3206_vm1 = vcmp.ge.f32.partialorder %v3174_v14, 0.0  ;;  %v3238_v34 = vmul.f32 0.2, %v3174_v14  ;;  %v2712_v13 = vadd.f32 %v18979_v24, %v19171_v6 }
 0x305   : > { %v2884_v37 = vpop.permute.xlu1 %2883  ;;  %v3457_v48 = vshrl.u32 %v15321_v49, 16  ;;  %v3467_v9 = vrot.slane %v3465_v30, 7  ;;  %v3460_v59 = vshll.u32 %v15321_v49, 16 }
 0x306   : > { %v3270_v31 = vsel %vm3206_vm1, %v3174_v14, %v3238_v34  ;;  %v2967_v18 = vadd.f32 %v2884_v37, %v2710_v23 }
 0x307   : > { %v15323_v1 = vpack.c.bf16 %v3270_v31, %v3270_v31  ;;  %v2882_v42 = vpop.permute.xlu0 %2881  ;;  %3678 = vrot.lane.b32.xlu1 %v3445_v36, %s18042_s16  ;;  %v3459_v46 = vrot.slane %v3457_v48, 7  ;;  %v3470_v33 = vor.u32 %v3468_v32, %v3467_v9  ;;  %v3472_v19 = vrot.slane %v3467_v9, 4 }
 0x308   : > { %v3176_v57 = vadd.f32 %v3093_v20, %v2967_v18  ;;  %v2966_v15 = vadd.f32 %v2882_v42, %v2709_v4 }
 0x309   : > { %v3091_v62 = vpop.permute.xlu1 %3090  ;;  %v3462_v38 = vor.u32 %v3460_v59, %v3459_v46  ;;  %v3463_v63 = vrot.slane %v3459_v46, 4  ;;  %v3474_v45 = vshrl.u32 %v15323_v1, 16  ;;  %v3477_v52 = vshll.u32 %v15323_v1, 16 }
 0x30a   : > { %vm3208_vm5 = vcmp.ge.f32.partialorder %v3176_v57, 0.0  ;;  %v3240_v53 = vmul.f32 0.2, %v3176_v57  ;;  %v3175_v26 = vadd.f32 %v3091_v62, %v2966_v15 }
 0x30b   : > { %v2886_v58 = vpop.permute.xlu0 %2885  ;;  %3680 = vrot.lane.b32.xlu1 %v3454_v7, %s18042_s16  ;;  %3684 = vrot.lane.b32.xlu0 %v3462_v38, %s18042_s16  ;;  %v3471_v10 = vsel %vm18534_vm11, %v3463_v63, %v3470_v33  ;;  %v3476_v56 = vrot.slane %v3474_v45, 7  ;;  %v2713_v7 = vadd.f32 %v18972_v54, %v19171_v6  ;;  %v2715_v33 = vadd.f32 %v19007_v47, %v19171_v6 }
 0x30c   : > { %vm3207_vm6 = vcmp.ge.f32.partialorder %v3175_v26, 0.0  ;;  %v3239_v28 = vmul.f32 0.2, %v3175_v26  ;;  %v2968_v0 = vadd.f32 %v2886_v58, %v2711_v40  ;;  %v3272_v16 = vsel %vm3208_vm5, %v3176_v57, %v3240_v53 }
 0x30d   : > { %v3095_v8 = vpop.permute.xlu1 %3094  ;;  %v15325_v60 = vpack.c.bf16 %v3272_v16, %v3272_v16  ;;  %v3479_v14 = vor.u32 %v3477_v52, %v3476_v56  ;;  %v3480_v31 = vrot.slane %v3476_v56, 4 }
 0x30e   : > { %v3271_v22 = vsel %vm3207_vm6, %v3175_v26, %v3239_v28  ;;  %v3177_v27 = vadd.f32 %v3095_v8, %v2968_v0  ;;  %v2714_v28 = vadd.f32 %v19002_v39, %v19171_v6 }
 0x30f   : > { %v15324_v51 = vpack.c.bf16 %v3271_v22, %v3271_v22  ;;  %v2888_v44 = vpop.permute.xlu0 %2887  ;;  %3686 = vrot.lane.b32.xlu1 %v3471_v10, %s18042_s16  ;;  %3688 = vrot.lane.b32.xlu0 %v3472_v19, %s18042_s16  ;;  %v3491_v49 = vshrl.u32 %v15325_v60, 16  ;;  %v3494_v57 = vshll.u32 %v15325_v60, 16 }
 0x310   : > { %vm3209_vm7 = vcmp.ge.f32.partialorder %v3177_v27, 0.0  ;;  %v3241_v11 = vmul.f32 0.2, %v3177_v27  ;;  %v2969_v3 = vadd.f32 %v2888_v44, %v2712_v13  ;;  %v2716_v13 = vadd.f32 %v19004_v43, %v19171_v6 }
 0x311   : > { %v2890_v29 = vpop.permute.xlu1 %2889  ;;  %v3482_v30 = vshrl.u32 %v15324_v51, 16  ;;  %v3485_v36 = vshll.u32 %v15324_v51, 16  ;;  %v3493_v42 = vrot.slane %v3491_v49, 7 }
 0x312   : > { %v3273_v20 = vsel %vm3209_vm7, %v3177_v27, %v3241_v11  ;;  %v2970_v48 = vadd.f32 %v2890_v29, %v2713_v7 }
 0x313   : > { %v15326_v34 = vpack.c.bf16 %v3273_v20, %v3273_v20  ;;  %v3097_v23 = vpop.permute.xlu0 %3096  ;;  %3690 = vrot.lane.b32.xlu1 %v3479_v14, %s18042_s16  ;;  %v3484_v37 = vrot.slane %v3482_v30, 7  ;;  %v3496_v26 = vor.u32 %v3494_v57, %v3493_v42  ;;  %v3497_v40 = vrot.slane %v3493_v42, 4 }
 0x314   : > { %v3178_v9 = vadd.f32 %v3097_v23, %v2969_v3  ;;  %v2718_v42 = vadd.f32 %v19023_v55, %v19171_v6 }
 0x315   : > { %v3499_v18 = vshrl.u32 %v15326_v34, 16  ;;  %v3099_v24 = vpop.permute.xlu1 %3098  ;;  %v3489_v4 = vrot.slane %v3484_v37, 4  ;;  %v3487_v1 = vor.u32 %v3485_v36, %v3484_v37  ;;  %v3502_v62 = vshll.u32 %v15326_v34, 16 }
 0x316   : > { %vm3210_vm8 = vcmp.ge.f32.partialorder %v3178_v9, 0.0  ;;  %v3242_v46 = vmul.f32 0.2, %v3178_v9  ;;  %v3179_v59 = vadd.f32 %v3099_v24, %v2970_v48 }
 0x317   : > { %v2892_v32 = vpop.permute.xlu0 %2891  ;;  %3694 = vrot.lane.b32.xlu0 %v3489_v4, %s18042_s16  ;;  %v3488_v54 = vsel %vm18534_vm11, %v3480_v31, %v3487_v1  ;;  %v3501_v15 = vrot.slane %v3499_v18, 7 }
 0x318   : > { %v3274_v38 = vsel %vm3210_vm8, %v3178_v9, %v3242_v46  ;;  %vm3211_vm10 = vcmp.ge.f32.partialorder %v3179_v59, 0.0  ;;  %v3243_v63 = vmul.f32 0.2, %v3179_v59  ;;  %3692 = vrot.lane.b32.xlu1 %v3488_v54, %s18042_s16  ;;  %v2971_v60 = vadd.f32 %v2892_v32, %v2714_v28  ;;  %v19264_v46 = vld [vmem:[#allocation9] sm:$0x3f]  }
 0x319   : > { %v15327_v45 = vpack.c.bf16 %v3274_v38, %v3274_v38  ;;  %v2894_v53 = vpop.permute.xlu1 %2893  ;;  %v3504_v58 = vor.u32 %v3502_v62, %v3501_v15  ;;  %v3506_v27 = vrot.slane %v3501_v15, 4  ;;  %v2717_v62 = vadd.f32 %v19026_v21, %v19171_v6  ;;  %17072 = vmatprep.subr.msk.bf16.mxu1 %vm2987_vm14, %v19264_v46 }
 0x31a   : > { %v3275_v10 = vsel %vm3211_vm10, %v3179_v59, %v3243_v63  ;;  %v2972_v0 = vadd.f32 %v2894_v53, %v2715_v33  ;;  %v2719_v21 = vadd.f32 %v19029_v2, %v19171_v6 }
 0x31b   : > { %v15328_v16 = vpack.c.bf16 %v3275_v10, %v3275_v10  ;;  %v3103_v8 = vpop.permute.xlu0 %3102  ;;  %3696 = vrot.lane.b32.xlu0 %v3496_v26, %s18042_s16  ;;  %v3505_v19 = vsel %vm18534_vm11, %v3497_v40, %v3504_v58  ;;  %v3508_v56 = vshrl.u32 %v15327_v45, 16  ;;  %v3511_v44 = vshll.u32 %v15327_v45, 16 }
 0x31c   : > { %v3181_v47 = vadd.f32 %v3103_v8, %v2972_v0  ;;  %3698 = vrot.lane.b32.xlu1 %v3505_v19, %s18042_s16 }
 0x31d   : > { %v3101_v22 = vpop.permute.xlu1 %3100  ;;  %v3510_v51 = vrot.slane %v3508_v56, 7  ;;  %v3516_v52 = vshrl.u32 %v15328_v16, 16  ;;  %v3519_v49 = vshll.u32 %v15328_v16, 16 }
 0x31e   : > { %vm3213_vm12 = vcmp.ge.f32.partialorder %v3181_v47, 0.0  ;;  %v3245_v39 = vmul.f32 0.2, %v3181_v47  ;;  %v3180_v11 = vadd.f32 %v3101_v22, %v2971_v60 }
 0x31f   : > { %v2896_v29 = vpop.permute.xlu0 %2895  ;;  %3700 = vrot.lane.b32.xlu0 %v3506_v27, %s18042_s16  ;;  %v3513_v14 = vor.u32 %v3511_v44, %v3510_v51  ;;  %v3518_v30 = vrot.slane %v3516_v52, 7  ;;  %v3514_v36 = vrot.slane %v3510_v51, 4 }
 0x320   : > { %v3277_v20 = vsel %vm3213_vm12, %v3181_v47, %v3245_v39  ;;  %vm3212_vm13 = vcmp.ge.f32.partialorder %v3180_v11, 0.0  ;;  %v3244_v3 = vmul.f32 0.2, %v3180_v11  ;;  %v2973_v7 = vadd.f32 %v2896_v29, %v2716_v13 }
 0x321   : > { %v15330_v34 = vpack.c.bf16 %v3277_v20, %v3277_v20  ;;  %v3105_v23 = vpop.permute.xlu1 %3104  ;;  %3702 = vrot.lane.b32.xlu1 %v3513_v14, %s18042_s16  ;;  %v3523_v37 = vrot.slane %v3518_v30, 4  ;;  %v3521_v48 = vor.u32 %v3519_v49, %v3518_v30  ;;  %v2720_v49 = vadd.f32 %v19060_v12, %v19171_v6 }
 0x322   : > { %v3276_v9 = vsel %vm3212_vm13, %v3180_v11, %v3244_v3  ;;  %v3182_v31 = vadd.f32 %v3105_v23, %v2973_v7 }
 0x323   : > { %v3533_v43 = vshrl.u32 %v15330_v34, 16  ;;  %v15329_v18 = vpack.c.bf16 %v3276_v9, %v3276_v9  ;;  %v3109_v24 = vpop.permute.xlu0 %3108  ;;  %3706 = vrot.lane.b32.xlu0 %v3523_v37, %s18042_s16  ;;  %v3522_v4 = vsel %vm18534_vm11, %v3514_v36, %v3521_v48  ;;  %v3536_v55 = vshll.u32 %v15330_v34, 16 }
 0x324   : > { %vm3214_vm0 = vcmp.ge.f32.partialorder %v3182_v31, 0.0  ;;  %v3246_v1 = vmul.f32 0.2, %v3182_v31  ;;  %v2721_v37 = vadd.f32 %v19054_v50, %v19171_v6 }
 0x325   : > { %v2900_v59 = vpop.permute.xlu1 %2899  ;;  %3704 = vrot.lane.b32.xlu1 %v3522_v4, %s18042_s16  ;;  %v3525_v32 = vshrl.u32 %v15329_v18, 16  ;;  %v3535_v54 = vrot.slane %v3533_v43, 7  ;;  %v3528_v45 = vshll.u32 %v15329_v18, 16 }
 0x326   : > { %v3278_v57 = vsel %vm3214_vm0, %v3182_v31, %v3246_v1  ;;  %v2975_v15 = vadd.f32 %v2900_v59, %v2718_v42 }
 0x327   : > { %v15331_v38 = vpack.c.bf16 %v3278_v57, %v3278_v57  ;;  %v2898_v63 = vpop.permute.xlu0 %2897  ;;  %v3527_v33 = vrot.slane %v3525_v32, 7  ;;  %v3538_v28 = vor.u32 %v3536_v55, %v3535_v54  ;;  %v3540_v52 = vrot.slane %v3535_v54, 4 }
 0x328   : > { %v3184_v53 = vadd.f32 %v3109_v24, %v2975_v15  ;;  %v2974_v26 = vadd.f32 %v2898_v63, %v2717_v62 }
 0x329   : > { %v3107_v40 = vpop.permute.xlu1 %3106  ;;  %v3530_v58 = vor.u32 %v3528_v45, %v3527_v33  ;;  %v3531_v10 = vrot.slane %v3527_v33, 4  ;;  %v3542_v0 = vshrl.u32 %v15331_v38, 16  ;;  %v3545_v47 = vshll.u32 %v15331_v38, 16 }
 0x32a   : > { %vm3216_vm1 = vcmp.ge.f32.partialorder %v3184_v53, 0.0  ;;  %v3248_v16 = vmul.f32 0.2, %v3184_v53  ;;  %v3183_v8 = vadd.f32 %v3107_v40, %v2974_v26  ;;  %v2722_v45 = vadd.f32 %v19088_v17, %v19171_v6 }
 0x32b   : > { %v2902_v19 = vpop.permute.xlu0 %2901  ;;  %3708 = vrot.lane.b32.xlu0 %v3530_v58, %s18042_s16  ;;  %v3539_v56 = vsel %vm18534_vm11, %v3531_v10, %v3538_v28  ;;  %v3544_v60 = vrot.slane %v3542_v0, 7  ;;  %v2723_v0 = vadd.f32 %v19094_v61, %v19171_v6 }
 0x32c   : > { %vm3215_vm5 = vcmp.ge.f32.partialorder %v3183_v8, 0.0  ;;  %v3247_v22 = vmul.f32 0.2, %v3183_v8  ;;  %v2976_v27 = vadd.f32 %v2902_v19, %v2719_v21  ;;  %3710 = vrot.lane.b32.xlu1 %v3539_v56, %s18042_s16  ;;  %v3280_v51 = vsel %vm3216_vm1, %v3184_v53, %v3248_v16 }
 0x32d   : > { %v3111_v44 = vpop.permute.xlu1 %3110  ;;  %v3547_v39 = vor.u32 %v3545_v47, %v3544_v60  ;;  %v15333_v11 = vpack.c.bf16 %v3280_v51, %v3280_v51  ;;  %v3548_v24 = vrot.slane %v3544_v60, 4 }
 0x32e   : > { %v3279_v13 = vsel %vm3215_vm5, %v3183_v8, %v3247_v22  ;;  %v3185_v2 = vadd.f32 %v3111_v44, %v2976_v27 }
 0x32f   : > { %v15332_v29 = vpack.c.bf16 %v3279_v13, %v3279_v13  ;;  %v2904_v14 = vpop.permute.xlu0 %2903  ;;  %3712 = vrot.lane.b32.xlu0 %v3540_v52, %s18042_s16  ;;  %v3559_v7 = vshrl.u32 %v15333_v11, 16  ;;  %v3562_v15 = vshll.u32 %v15333_v11, 16  ;;  %v2724_v52 = vadd.f32 %v19090_v35, %v19171_v6 }
 0x330   : > { %vm3217_vm6 = vcmp.ge.f32.partialorder %v3185_v2, 0.0  ;;  %v3249_v30 = vmul.f32 0.2, %v3185_v2  ;;  %3714 = vrot.lane.b32.xlu1 %v3547_v39, %s18042_s16  ;;  %v2977_v23 = vadd.f32 %v2904_v14, %v2720_v49 }
 0x331   : > { %v2906_v20 = vpop.permute.xlu1 %2905  ;;  %v3550_v3 = vshrl.u32 %v15332_v29, 16  ;;  %v3553_v31 = vshll.u32 %v15332_v29, 16  ;;  %v3561_v59 = vrot.slane %v3559_v7, 7 }
 0x332   : > { %v3281_v34 = vsel %vm3217_vm6, %v3185_v2, %v3249_v30  ;;  %v2978_v43 = vadd.f32 %v2906_v20, %v2721_v37  ;;  %vm3804_vm6 = vcmask 93248  }
 0x333   : > { %v15334_v36 = vpack.c.bf16 %v3281_v34, %v3281_v34  ;;  %v3113_v48 = vpop.permute.xlu0 %3112  ;;  %v3552_v9 = vrot.slane %v3550_v3, 7  ;;  %v3564_v26 = vor.u32 %v3562_v15, %v3561_v59  ;;  %v3565_v40 = vrot.slane %v3561_v59, 4 }
 0x334   : > { %v3186_v18 = vadd.f32 %v3113_v48, %v2977_v23 }
 0x335   : > { %v3567_v4 = vshrl.u32 %v15334_v36, 16  ;;  %v3115_v1 = vpop.permute.xlu1 %3114  ;;  %v3557_v12 = vrot.slane %v3552_v9, 4  ;;  %v3555_v42 = vor.u32 %v3553_v31, %v3552_v9  ;;  %v3570_v38 = vshll.u32 %v15334_v36, 16 }
 0x336   : > { %vm3218_vm7 = vcmp.ge.f32.partialorder %v3186_v18, 0.0  ;;  %v3250_v32 = vmul.f32 0.2, %v3186_v18  ;;  %v3187_v54 = vadd.f32 %v3115_v1, %v2978_v43  ;;  %v21865_v43 = vld [vmem:[#allocation31_spill] sm:$0xff] }
 0x337   : > { %v2908_v57 = vpop.permute.xlu0 %2907  ;;  %3718 = vrot.lane.b32.xlu0 %v3557_v12, %s18042_s16  ;;  %v3556_v50 = vsel %vm18534_vm11, %v3548_v24, %v3555_v42  ;;  %v3569_v62 = vrot.slane %v3567_v4, 7 }
 0x338   : > { %v3282_v63 = vsel %vm3218_vm7, %v3186_v18, %v3250_v32  ;;  %vm3219_vm8 = vcmp.ge.f32.partialorder %v3187_v54, 0.0  ;;  %v3251_v33 = vmul.f32 0.2, %v3187_v54  ;;  %3716 = vrot.lane.b32.xlu1 %v3556_v50, %s18042_s16  ;;  %v2979_v28 = vadd.f32 %v2908_v57, %v2722_v45  ;;  %v21866_v32 = vld [vmem:[#allocation30_spill] sm:$0xff]  ;;  %vm19323_vm7 = vmand %vm3804_vm6, %vm607_vm4 }
 0x339   : > { %v15335_v55 = vpack.c.bf16 %v3282_v63, %v3282_v63  ;;  %v2910_v53 = vpop.permute.xlu1 %2909  ;;  %v3572_v58 = vor.u32 %v3570_v38, %v3569_v62  ;;  %v3574_v22 = vrot.slane %v3569_v62, 4  ;;  %v2725_v18 = vadd.f32 %v21865_v43, %v19171_v6 }
 0x33a   : > { %v3283_v10 = vsel %vm3219_vm8, %v3187_v54, %v3251_v33  ;;  %v2980_v19 = vadd.f32 %v2910_v53, %v2723_v0  ;;  %v2726_v54 = vadd.f32 %v21866_v32, %v19171_v6  ;;  %vm3810_vm8 = vcmask 90176  }
 0x33b   : > { %v15336_v16 = vpack.c.bf16 %v3283_v10, %v3283_v10  ;;  %v3117_v8 = vpop.permute.xlu0 %3116  ;;  %3720 = vrot.lane.b32.xlu0 %v3564_v26, %s18042_s16  ;;  %v3573_v21 = vsel %vm18534_vm11, %v3565_v40, %v3572_v58  ;;  %v3576_v17 = vshrl.u32 %v15335_v55, 16  ;;  %v3579_v51 = vshll.u32 %v15335_v55, 16 }
 0x33c   : > { %v3188_v56 = vadd.f32 %v3117_v8, %v2979_v28  ;;  %3722 = vrot.lane.b32.xlu1 %v3573_v21, %s18042_s16 }
 0x33d   : > { %v3584_v60 = vshrl.u32 %v15336_v16, 16  ;;  %v3119_v47 = vpop.permute.xlu1 %3118  ;;  %v3578_v27 = vrot.slane %v3576_v17, 7  ;;  %v3587_v11 = vshll.u32 %v15336_v16, 16 }
 0x33e   : > { %vm3220_vm10 = vcmp.ge.f32.partialorder %v3188_v56, 0.0  ;;  %v3252_v44 = vmul.f32 0.2, %v3188_v56  ;;  %v3189_v61 = vadd.f32 %v3119_v47, %v2980_v19  ;;  %v21867_v19 = vld [vmem:[#allocation32_spill] sm:$0xff] }
 0x33f   : > { %v3586_v39 = vrot.slane %v3584_v60, 7  ;;  %v2912_v13 = vpop.permute.xlu0 %2911  ;;  %3724 = vrot.lane.b32.xlu0 %v3574_v22, %s18042_s16  ;;  %v3581_v2 = vor.u32 %v3579_v51, %v3578_v27  ;;  %v3582_v7 = vrot.slane %v3578_v27, 4 }
 0x340   : > { %v3284_v29 = vsel %vm3220_vm10, %v3188_v56, %v3252_v44  ;;  %vm3221_vm12 = vcmp.ge.f32.partialorder %v3189_v61, 0.0  ;;  %v3253_v14 = vmul.f32 0.2, %v3189_v61  ;;  %v2981_v30 = vadd.f32 %v2912_v13, %v2724_v52  ;;  %vm19334_vm10 = vmand %vm3810_vm8, %vm550_vm2 }
 0x341   : > { %v15337_v49 = vpack.c.bf16 %v3284_v29, %v3284_v29  ;;  %v3121_v20 = vpop.permute.xlu1 %3120  ;;  %3726 = vrot.lane.b32.xlu1 %v3581_v2, %s18042_s16  ;;  %v3591_v3 = vrot.slane %v3586_v39, 4  ;;  %v3589_v34 = vor.u32 %v3587_v11, %v3586_v39  ;;  %v2727_v56 = vadd.f32 %v21867_v19, %v19171_v6 }
 0x342   : > { %v3285_v23 = vsel %vm3221_vm12, %v3189_v61, %v3253_v14  ;;  %v3190_v37 = vadd.f32 %v3121_v20, %v2981_v30  ;;  %vm4146_vm12 = vcmask 97280  }
 0x343   : > { %v3593_v35 = vshrl.u32 %v15337_v49, 16  ;;  %v15338_v36 = vpack.c.bf16 %v3285_v23, %v3285_v23  ;;  %v2914_v48 = vpop.permute.xlu0 %2913  ;;  %3730 = vrot.lane.b32.xlu0 %v3591_v3, %s18042_s16  ;;  %v3590_v9 = vsel %vm18534_vm11, %v3582_v7, %v3589_v34  ;;  %v3596_v4 = vshll.u32 %v15337_v49, 16 }
 0x344   : > { %vm3222_vm13 = vcmp.ge.f32.partialorder %v3190_v37, 0.0  ;;  %v3254_v31 = vmul.f32 0.2, %v3190_v37  ;;  %v2982_v59 = vadd.f32 %v2914_v48, %v2725_v18 }
 0x345   : > { %v3595_v24 = vrot.slane %v3593_v35, 7  ;;  %v3601_v1 = vshrl.u32 %v15338_v36, 16  ;;  %v2916_v12 = vpop.permute.xlu1 %2915  ;;  %3728 = vrot.lane.b32.xlu1 %v3590_v9, %s18042_s16  ;;  %v3604_v50 = vshll.u32 %v15338_v36, 16 }
 0x346   : > { %v3286_v42 = vsel %vm3222_vm13, %v3190_v37, %v3254_v31  ;;  %v2983_v63 = vadd.f32 %v2916_v12, %v2726_v54  ;;  %v17618_v31 = vld [vmem:[#allocation2 + $0xc] sm:$0xf] }
 0x347   : > { %v3603_v57 = vrot.slane %v3601_v1, 7  ;;  %v15339_v15 = vpack.c.bf16 %v3286_v42, %v3286_v42  ;;  %v3123_v62 = vpop.permute.xlu0 %3122  ;;  %v3598_v38 = vor.u32 %v3596_v4, %v3595_v24  ;;  %v3599_v53 = vrot.slane %v3595_v24, 4 }
 0x348   : > { %v3191_v33 = vadd.f32 %v3123_v62, %v2982_v59  ;;  %v3812_v59 = vld [vmem:[#allocation2 + $0x14] sm:$0x1]  ;;  %v17619_v62 = vld [vmem:[#allocation8] ss:$0 sm:$0xff] }
 0x349   : > { %v3610_v45 = vshrl.u32 %v15339_v15, 16  ;;  %v3125_v55 = vpop.permute.xlu1 %3124  ;;  %3732 = vrot.lane.b32.xlu0 %v3598_v38, %s18042_s16  ;;  %v3606_v26 = vor.u32 %v3604_v50, %v3603_v57  ;;  %v3613_v28 = vshll.u32 %v15339_v15, 16  ;;  %v3608_v8 = vrot.slane %v3603_v57, 4  ;;  %v3815_v50 = vld [vmem:[#allocation2 + $0x18] sm:$0xf] }
 0x34a   : > { %vm3223_vm0 = vcmp.ge.f32.partialorder %v3191_v33, 0.0  ;;  %v3255_v40 = vmul.f32 0.2, %v3191_v33  ;;  %v3192_v58 = vadd.f32 %v3125_v55, %v2983_v63  ;;  %v2728_v38 = vadd.f32 %v17619_v62, %v19139_v25 }
 0x34b   : > { %v3612_v10 = vrot.slane %v3610_v45, 7  ;;  %v2918_v0 = vpop.permute.xlu0 %2917  ;;  %v3607_v16 = vsel %vm18534_vm11, %v3599_v53, %v3606_v26  ;;  %v3819_v45 = vld [vmem:[#allocation2 + $0x20] sm:$0x1] }
 0x34c   : > { %v3287_v21 = vsel %vm3223_vm0, %v3191_v33, %v3255_v40  ;;  %vm3224_vm1 = vcmp.ge.f32.partialorder %v3192_v58, 0.0  ;;  %v3256_v17 = vmul.f32 0.2, %v3192_v58  ;;  %3734 = vrot.lane.b32.xlu1 %v3607_v16, %s18042_s16  ;;  %v2984_v27 = vadd.f32 %v2918_v0, %v2727_v56  ;;  %v3822_v0 = vld [vmem:[#allocation2 + $0x24] sm:$0xf] }
 0x34d   : > { %v15340_v60 = vpack.c.bf16 %v3287_v21, %v3287_v21  ;;  %3736 = vrot.lane.b32.xlu0 %v3608_v8, %s18042_s16  ;;  %v3615_v47 = vor.u32 %v3613_v28, %v3612_v10  ;;  %v3616_v14 = vrot.slane %v3612_v10, 4  ;;  %v19315_v3 = vpop.permute.xlu1 %2921  ;;  %v4645_v56 = vsel %vm2987_vm14, %v19264_v46, 0 }
 0x34e   : > { %v3288_v22 = vsel %vm3224_vm1, %v3192_v58, %v3256_v17 }
 0x34f   : > { %v3618_v51 = vshrl.u32 %v15340_v60, 16  ;;  %v15341_v44 = vpack.c.bf16 %v3288_v22, %v3288_v22  ;;  %v3127_v61 = vpop.permute.xlu0 %3126  ;;  %v3621_v11 = vshll.u32 %v15340_v60, 16 }
 0x350   : > { %v3193_v52 = vadd.f32 %v3127_v61, %v2984_v27  ;;  %3738 = vrot.lane.b32.xlu1 %v3615_v47, %s18042_s16  ;;  %v3826_v47 = vld [vmem:[#allocation2 + $0x2c] sm:$0x1] }
 0x351   : > { %v3620_v39 = vrot.slane %v3618_v51, 7  ;;  %v3627_v13 = vshrl.u32 %v15341_v44, 16  ;;  %v3630_v20 = vshll.u32 %v15341_v44, 16  ;;  %v2729_v51 = vadd.f32 %v17619_v62, %v19133_v5  ;;  %v3843_v62 = vld [vmem:[#allocation2 + $0x48] sm:$0xf] }
 0x352   : > { %vm3225_vm5 = vcmp.ge.f32.partialorder %v3193_v52, 0.0  ;;  %v3257_v2 = vmul.f32 0.2, %v3193_v52 }
 0x353   : > { %v3629_v6 = vrot.slane %v3627_v13, 7  ;;  %v3625_v29 = vrot.slane %v3620_v39, 4  ;;  %v3623_v30 = vor.u32 %v3621_v11, %v3620_v39  ;;  %v2920_v1 = vpop.permute.xlu0 %2919  ;;  %v2986_v46 = vadd.f32 %v19315_v3, %v2729_v51  ;;  %v3833_v11 = vld [vmem:[#allocation2 + $0x38] sm:$0x1] }
 0x354   : > { %v3289_v49 = vsel %vm3225_vm5, %v3193_v52, %v3257_v2  ;;  %v2985_v33 = vadd.f32 %v2920_v1, %v2728_v38 }
 0x355   : > { %v15342_v7 = vpack.c.bf16 %v3289_v49, %v3289_v49  ;;  %3742 = vrot.lane.b32.xlu0 %v3625_v29, %s18042_s16  ;;  %v3624_v34 = vsel %vm18534_vm11, %v3616_v14, %v3623_v30  ;;  %v3632_v35 = vor.u32 %v3630_v20, %v3629_v6  ;;  %v3633_v24 = vrot.slane %v3629_v6, 4  ;;  %v3829_v30 = vld [vmem:[#allocation2 + $0x30] sm:$0xf] }
 0x356   : > { %3740 = vrot.lane.b32.xlu1 %v3624_v34, %s18042_s16 }
 0x357   : > { %v3635_v23 = vshrl.u32 %v15342_v7, 16  ;;  %v3638_v48 = vshll.u32 %v15342_v7, 16 }
 0x359   : > { %v3637_v36 = vrot.slane %v3635_v23, 7  ;;  %v3661_v9 = vpop.permute.xlu1 %3660  ;;  %3744 = vrot.lane.b32.xlu0 %v3632_v35, %s18042_s16  ;;  %v3836_v35 = vld [vmem:[#allocation2 + $0x3c] sm:$0xf] }
 0x35a   : > { %v3806_v43 = vsel %vm19323_vm7, %v3661_v9, %v17618_v31 }
 0x35b   : > { %3807 = vst [vmem:[#allocation2 + $0xc] sm:$0xf] %v3806_v43  ;;  %v3642_v18 = vrot.slane %v3637_v36, 4  ;;  %v3640_v4 = vor.u32 %v3638_v48, %v3637_v36 }
 0x35d   : > { %3748 = vrot.lane.b32.xlu0 %v3642_v18, %s18042_s16  ;;  %v3641_v12 = vsel %vm18534_vm11, %v3633_v24, %v3640_v4  ;;  %v3840_v24 = vld [vmem:[#allocation2 + $0x44] sm:$0x1] }
 0x35e   : > { %3746 = vrot.lane.b32.xlu1 %v3641_v12, %s18042_s16 }
 0x35f   : > { %v3665_v32 = vpop.permute.xlu1 %3664 }
 0x360   : > { %v3813_v54 = vsel %vm19334_vm10, %v3665_v32, %v3812_v59  ;;  %v3663_v57 = vpop.permute.xlu0 %3662  ;;  %v19369_v59 = vld [vmem:[#allocation9 + $0x10] sm:$0x3f]  }
 0x361   : > { %3814 = vst [vmem:[#allocation2 + $0x14] sm:$0x1] %v3813_v54  ;;  %3809 = vst.msk [vmem:[#allocation2 + $0x10] sm:$0xf] %vm3804_vm6, %v3663_v57 }
 0x362   : > { %v3970_v55 = vld [vmem:[#allocation2 + $0xc] sm:$0xf] }
 0x363   : > { %v17340_v37 = vld [vmem:[#allocation2 + $0x8] sm:$0xff]  }
 0x364   : > { %v3667_v15 = vpop.permute.xlu0 %3666 }
 0x365   : > { %v3816_v63 = vsel %vm19323_vm7, %v3667_v15, %v3815_v50 }
 0x366   : > { %3817 = vst [vmem:[#allocation2 + $0x18] sm:$0xf] %v3816_v63 }
 0x368   : > { %v3129_v53 = vpop.permute.xlu0 %3128  ;;  %v3971_v26 = vld [vmem:[#allocation2 + $0x10] sm:$0xf] }
 0x369   : > { %v3194_v40 = vadd.f32 %v3129_v53, %v2985_v33  ;;  %v3671_v58 = vpop.permute.xlu1 %3670  ;;  %v14581_v10 = vcombine.low %v3970_v55, %v3971_v26 }
 0x36a   : > { %v3820_v28 = vsel %vm19334_vm10, %v3671_v58, %v3819_v45  ;;  %v3847_v45 = vld [vmem:[#allocation2 + $0x50] sm:$0x1]  ;;  %v3850_v58 = vld [vmem:[#allocation2 + $0x54] sm:$0xf] }
 0x36b   : > { %vm3226_vm13 = vcmp.ge.f32.partialorder %v3194_v40, 0.0  ;;  %v3258_v16 = vmul.f32 0.2, %v3194_v40  ;;  %3821 = vst [vmem:[#allocation2 + $0x20] sm:$0x1] %v3820_v28  ;;  %15975 = vmatprep.mubr.msk.bf16.mxu1 %vm4146_vm12, %v14581_v10 }
 0x36c   : > { %v3673_v25 = vpop.permute.xlu0 %3672 }
 0x36d   : > { %v3290_v8 = vsel %vm3226_vm13, %v3194_v40, %v3258_v16  ;;  %v3823_v21 = vsel %vm19323_vm7, %v3673_v25, %v3822_v0  ;;  %v3669_v17 = vpop.permute.xlu1 %3668  ;;  %v17314_v19 = vld [vmem:[#allocation2 + $0x14] sm:$0xff]   ;;  %v3854_v25 = vld [vmem:[#allocation2 + $0x5c] sm:$0x1] }
 0x36e   : > { %v15343_v60 = vpack.c.bf16 %v3290_v8, %v3290_v8  ;;  %3824 = vst [vmem:[#allocation2 + $0x24] sm:$0xf] %v3823_v21  ;;  %3818 = vst.msk [vmem:[#allocation2 + $0x1c] sm:$0xf] %vm3804_vm6, %v3669_v17  ;;  %15976 = vmatmul.mubr.msk.bf16.vlgmr.msra.gmra.mrb[48].mxu1 %vm4146_vm12, %v17314_v19  ;;  %v3857_v21 = vld [vmem:[#allocation2 + $0x60] sm:$0xf] }
 0x36f   : > { %16024 = vmatpush3.bf16.msra.mxu1 %v4645_v56 }
 0x370   : > { %v3644_v22 = vshrl.u32 %v15343_v60, 16  ;;  %v3677_v27 = vpop.permute.xlu0 %3676  ;;  %v3647_v39 = vshll.u32 %v15343_v60, 16  ;;  %17073 = vmatprep.subr.msk.bf16.mxu1 %vm2987_vm14, %v19369_v59  ;;  %v3861_v60 = vld [vmem:[#allocation2 + $0x68] sm:$0x1] }
 0x371   : > { %v3827_v44 = vsel %vm19334_vm10, %v3677_v27, %v3826_v47  ;;  %v3675_v61 = vpop.permute.xlu1 %3674 }
 0x372   : > { %v3646_v52 = vrot.slane %v3644_v22, 7  ;;  %3828 = vst [vmem:[#allocation2 + $0x2c] sm:$0x1] %v3827_v44  ;;  %3825 = vst.msk [vmem:[#allocation2 + $0x28] sm:$0xf] %vm3804_vm6, %v3675_v61 }
 0x373   : > { %v3864_v61 = vld [vmem:[#allocation2 + $0x6c] sm:$0xf] }
 0x374   : > { %v3131_v13 = vpop.permute.xlu0 %3130  ;;  %v3649_v2 = vor.u32 %v3647_v39, %v3646_v52  ;;  %v3650_v1 = vrot.slane %v3646_v52, 4 }
 0x375   : > { %v3195_v6 = vadd.f32 %v3131_v13, %v2986_v46  ;;  %v3683_v29 = vpop.permute.xlu1 %3682  ;;  %v17315_v14 = vld [vmem:[#allocation2 + $0x1c] sm:$0xff]   ;;  %v3868_v46 = vld [vmem:[#allocation2 + $0x74] sm:$0x1] }
 0x376   : > { %v3834_v5 = vsel %vm19334_vm10, %v3683_v29, %v3833_v11  ;;  %3750 = vrot.lane.b32.xlu1 %v3649_v2, %s18042_s16  ;;  %15979 = vmatprep.mubr.msk.bf16.mxu1 %vm4146_vm12, %v17315_v14  ;;  %v17342_v42 = vld [vmem:[#allocation2 + $0x18] sm:$0xff]  }
 0x377   : > { %vm3227_vm0 = vcmp.ge.f32.partialorder %v3195_v6, 0.0  ;;  %v3259_v49 = vmul.f32 0.2, %v3195_v6  ;;  %3835 = vst [vmem:[#allocation2 + $0x38] sm:$0x1] %v3834_v5 }
 0x379   : > { %v3291_v20 = vsel %vm3227_vm0, %v3195_v6, %v3259_v49  ;;  %v3679_v7 = vpop.permute.xlu1 %3678  ;;  %v17316_v3 = vld [vmem:[#allocation2 + $0x24] sm:$0xff]   ;;  %v3871_v6 = vld [vmem:[#allocation2 + $0x78] sm:$0xf] }
 0x37a   : > { %v15344_v34 = vpack.c.bf16 %v3291_v20, %v3291_v20  ;;  %v3830_v23 = vsel %vm19323_vm7, %v3679_v7, %v3829_v30  ;;  %15980 = vmatmul.mubr.msk.bf16.gmra.mrb[52].mxu1 %vm4146_vm12, %v17316_v3  ;;  %v3875_v20 = vld [vmem:[#allocation2 + $0x80] sm:$0x1] }
 0x37b   : > { %3831 = vst [vmem:[#allocation2 + $0x30] sm:$0xf] %v3830_v23  ;;  %v3878_v23 = vld [vmem:[#allocation2 + $0x84] sm:$0xf] }
 0x37c   : > { %v3652_v36 = vshrl.u32 %v15344_v34, 16  ;;  %v3655_v43 = vshll.u32 %v15344_v34, 16 }
 0x37d   : > { %v3681_v48 = vpop.permute.xlu1 %3680  ;;  %v3685_v9 = vpop.permute.xlu0 %3684 }
 0x37e   : > { %v3654_v31 = vrot.slane %v3652_v36, 7  ;;  %3832 = vst.msk [vmem:[#allocation2 + $0x34] sm:$0xf] %vm3804_vm6, %v3681_v48  ;;  %v3837_v18 = vsel %vm19323_vm7, %v3685_v9, %v3836_v35 }
 0x37f   : > { %3838 = vst [vmem:[#allocation2 + $0x3c] sm:$0xf] %v3837_v18  ;;  %v3885_v18 = vld [vmem:[#allocation2 + $0x90] sm:$0xf] }
 0x380   : > { %v3659_v4 = vrot.slane %v3654_v31, 4  ;;  %v3657_v12 = vor.u32 %v3655_v43, %v3654_v31  ;;  %v3882_v31 = vld [vmem:[#allocation2 + $0x8c] sm:$0x1] }
 0x381   : > { %v3687_v32 = vpop.permute.xlu1 %3686  ;;  %v3689_v54 = vpop.permute.xlu0 %3688 }
 0x382   : > { %3839 = vst.msk [vmem:[#allocation2 + $0x40] sm:$0xf] %vm3804_vm6, %v3687_v32  ;;  %v3841_v57 = vsel %vm19334_vm10, %v3689_v54, %v3840_v24  ;;  %3754 = vrot.lane.b32.xlu0 %v3659_v4, %s18042_s16  ;;  %v3658_v50 = vsel %vm18534_vm11, %v3650_v1, %v3657_v12  ;;  %v17317_v15 = vld [vmem:[#allocation2 + $0x2c] sm:$0xff]   ;;  %v3889_v12 = vld [vmem:[#allocation2 + $0x98] sm:$0x1] }
 0x383   : > { %3842 = vst [vmem:[#allocation2 + $0x44] sm:$0x1] %v3841_v57  ;;  %3752 = vrot.lane.b32.xlu1 %v3658_v50, %s18042_s16  ;;  %15983 = vmatprep.mubr.msk.bf16.mxu1 %vm4146_vm12, %v17317_v15 }
 0x385   : > { %v3691_v38 = vpop.permute.xlu1 %3690  ;;  %v17318_v63 = vld [vmem:[#allocation2 + $0x34] sm:$0xff]  }
 0x386   : > { %v3844_v33 = vsel %vm19323_vm7, %v3691_v38, %v3843_v62  ;;  %15984 = vmatmul.mubr.msk.bf16.gmra.mrb[56].mxu1 %vm4146_vm12, %v17318_v63  ;;  %v3892_v62 = vld [vmem:[#allocation2 + $0x9c] sm:$0xf] }
 0x387   : > { %3845 = vst [vmem:[#allocation2 + $0x48] sm:$0xf] %v3844_v33 }
 0x389   : > { %v3695_v55 = vpop.permute.xlu0 %3694  ;;  %v17319_v53 = vld [vmem:[#allocation2 + $0x3c] sm:$0xff]  }
 0x38a   : > { %v3848_v26 = vsel %vm19334_vm10, %v3695_v55, %v3847_v45  ;;  %v3693_v40 = vpop.permute.xlu1 %3692  ;;  %15987 = vmatprep.mubr.msk.bf16.mxu1 %vm4146_vm12, %v17319_v53  ;;  %v3896_v45 = vld [vmem:[#allocation2 + $0xa4] sm:$0x1] }
 0x38b   : > { %3849 = vst [vmem:[#allocation2 + $0x50] sm:$0x1] %v3848_v26  ;;  %3846 = vst.msk [vmem:[#allocation2 + $0x4c] sm:$0xf] %vm3804_vm6, %v3693_v40 }
 0x38d   : > { %v3697_v10 = vpop.permute.xlu0 %3696 }
 0x38e   : > { %v3851_v28 = vsel %vm19323_vm7, %v3697_v10, %v3850_v58  ;;  %v3699_v0 = vpop.permute.xlu1 %3698  ;;  %v17320_v16 = vld [vmem:[#allocation2 + $0x44] sm:$0xff]  }
 0x38f   : > { %3852 = vst [vmem:[#allocation2 + $0x54] sm:$0xf] %v3851_v28  ;;  %3853 = vst.msk [vmem:[#allocation2 + $0x58] sm:$0xf] %vm3804_vm6, %v3699_v0  ;;  %15988 = vmatmul.mubr.msk.bf16.gmra.mrb[60].mxu1 %vm4146_vm12, %v17320_v16  ;;  %v3899_v58 = vld [vmem:[#allocation2 + $0xa8] sm:$0xf] }
 0x390   : > { %v3903_v0 = vld [vmem:[#allocation2 + $0xb0] sm:$0x1] }
 0x391   : > { %v3701_v8 = vpop.permute.xlu0 %3700 }
 0x392   : > { %v3855_v17 = vsel %vm19334_vm10, %v3701_v8, %v3854_v25  ;;  %v17321_v19 = vld [vmem:[#allocation2 + $0x4c] sm:$0xff]  }
 0x393   : > { %3856 = vst [vmem:[#allocation2 + $0x5c] sm:$0x1] %v3855_v17  ;;  %v3703_v56 = vpop.permute.xlu1 %3702  ;;  %15991 = vmatprep.mubr.msk.bf16.mxu1 %vm4146_vm12, %v17321_v19  ;;  %v3906_v17 = vld [vmem:[#allocation2 + $0xb4] sm:$0xf] }
 0x394   : > { %v3858_v47 = vsel %vm19323_vm7, %v3703_v56, %v3857_v21 }
 0x395   : > { %3859 = vst [vmem:[#allocation2 + $0x60] sm:$0xf] %v3858_v47  ;;  %v3707_v22 = vpop.permute.xlu0 %3706  ;;  %v3910_v47 = vld [vmem:[#allocation2 + $0xbc] sm:$0x1] }
 0x396   : > { %v3862_v27 = vsel %vm19334_vm10, %v3707_v22, %v3861_v60  ;;  %v17322_v51 = vld [vmem:[#allocation2 + $0x54] sm:$0xff]  }
 0x397   : > { %3863 = vst [vmem:[#allocation2 + $0x68] sm:$0x1] %v3862_v27  ;;  %v3705_v44 = vpop.permute.xlu1 %3704  ;;  %15992 = vmatmul.mubr.msk.bf16.gmra.mrb[64].mxu1 %vm4146_vm12, %v17322_v51 }
 0x398   : > { %3860 = vst.msk [vmem:[#allocation2 + $0x64] sm:$0xf] %vm3804_vm6, %v3705_v44 }
 0x39c   : > { %v17323_v52 = vld [vmem:[#allocation2 + $0x5c] sm:$0xff]  }
 0x39d   : > { %v3709_v39 = vpop.permute.xlu0 %3708  ;;  %15995 = vmatprep.mubr.msk.bf16.mxu1 %vm4146_vm12, %v17323_v52  ;;  %v3913_v52 = vld [vmem:[#allocation2 + $0xc0] sm:$0xf] }
 0x39e   : > { %v3865_v11 = vsel %vm19323_vm7, %v3709_v39, %v3864_v61  ;;  %v3711_v13 = vpop.permute.xlu1 %3710 }
 0x39f   : > { %3866 = vst [vmem:[#allocation2 + $0x6c] sm:$0xf] %v3865_v11  ;;  %3867 = vst.msk [vmem:[#allocation2 + $0x70] sm:$0xf] %vm3804_vm6, %v3711_v13  ;;  %v17324_v2 = vld [vmem:[#allocation2 + $0x64] sm:$0xff]  }
 0x3a0   : > { %15996 = vmatmul.mubr.msk.bf16.gmra.mrb[68].mxu1 %vm4146_vm12, %v17324_v2  ;;  %v3917_v13 = vld [vmem:[#allocation2 + $0xc8] sm:$0x1] }
 0x3a1   : > { %v3713_v29 = vpop.permute.xlu0 %3712 }
 0x3a2   : > { %v3869_v14 = vsel %vm19334_vm10, %v3713_v29, %v3868_v46  ;;  %v3715_v5 = vpop.permute.xlu1 %3714 }
 0x3a3   : > { %3870 = vst [vmem:[#allocation2 + $0x74] sm:$0x1] %v3869_v14  ;;  %v3872_v30 = vsel %vm19323_vm7, %v3715_v5, %v3871_v6  ;;  %v17338_v14 = vld [vmem:[#allocation2] sm:$0xff]  }
 0x3a4   : > { %3873 = vst [vmem:[#allocation2 + $0x78] sm:$0xf] %v3872_v30  ;;  %v5121_v30 = vsel %vm2987_vm14, %v19369_v59, 0  ;;  %v17347_v59 = vld [vmem:[#allocation2 + $0x40] sm:$0xff]  }
 0x3a6   : > { %v17326_v49 = vld [vmem:[#allocation2 + $0x6c] sm:$0xff]  }
 0x3a7   : > { %15999 = vmatprep.mubr.msk.bf16.mxu1 %vm4146_vm12, %v17326_v49  ;;  %v17341_v49 = vld [vmem:[#allocation2 + $0x10] sm:$0xff]  }
 0x3a9   : > { %v3719_v7 = vpop.permute.xlu0 %3718 }
 0x3aa   : > { %v3876_v3 = vsel %vm19334_vm10, %v3719_v7, %v3875_v20  ;;  %v3717_v34 = vpop.permute.xlu1 %3716  ;;  %v17343_v20 = vld [vmem:[#allocation2 + $0x20] sm:$0xff]   ;;  %v17344_v7 = vld [vmem:[#allocation2 + $0x28] sm:$0xff]  }
 0x3ab   : > { %3877 = vst [vmem:[#allocation2 + $0x80] sm:$0x1] %v3876_v3  ;;  %3874 = vst.msk [vmem:[#allocation2 + $0x7c] sm:$0xf] %vm3804_vm6, %v3717_v34  ;;  %v17327_v35 = vld [vmem:[#allocation2 + $0x74] sm:$0xff]  }
 0x3ac   : > { %16000 = vmatmul.mubr.msk.bf16.gmra.mrb[72].mxu1 %vm4146_vm12, %v17327_v35  ;;  %v17345_v3 = vld [vmem:[#allocation2 + $0x30] sm:$0xff]   ;;  %v17346_v34 = vld [vmem:[#allocation2 + $0x38] sm:$0xff]  }
 0x3ad   : > { %v3721_v36 = vpop.permute.xlu0 %3720  ;;  %v17349_v35 = vld [vmem:[#allocation2 + $0x50] sm:$0xff]  }
 0x3ae   : > { %v3879_v48 = vsel %vm19323_vm7, %v3721_v36, %v3878_v23  ;;  %v3723_v9 = vpop.permute.xlu1 %3722  ;;  %v17348_v23 = vld [vmem:[#allocation2 + $0x48] sm:$0xff]   ;;  %v17350_v36 = vld [vmem:[#allocation2 + $0x58] sm:$0xff]  }
 0x3af   : > { %3880 = vst [vmem:[#allocation2 + $0x84] sm:$0xf] %v3879_v48  ;;  %3881 = vst.msk [vmem:[#allocation2 + $0x88] sm:$0xf] %vm3804_vm6, %v3723_v9  ;;  %v17351_v48 = vld [vmem:[#allocation2 + $0x60] sm:$0xff]   ;;  %v17352_v9 = vld [vmem:[#allocation2 + $0x68] sm:$0xff]  }
 0x3b1   : > { %v3725_v43 = vpop.permute.xlu0 %3724 }
 0x3b2   : > { %v3883_v24 = vsel %vm19334_vm10, %v3725_v43, %v3882_v31  ;;  %v17328_v4 = vld [vmem:[#allocation2 + $0x7c] sm:$0xff]   ;;  %v17353_v31 = vld [vmem:[#allocation2 + $0x70] sm:$0xff]  }
 0x3b3   : > { %3884 = vst [vmem:[#allocation2 + $0x8c] sm:$0x1] %v3883_v24  ;;  %v3727_v1 = vpop.permute.xlu1 %3726  ;;  %16003 = vmatprep.mubr.msk.bf16.mxu1 %vm4146_vm12, %v17328_v4  ;;  %v17354_v43 = vld [vmem:[#allocation2 + $0x78] sm:$0xff]  }
 0x3b4   : > { %v3886_v32 = vsel %vm19323_vm7, %v3727_v1, %v3885_v18 }
 0x3b5   : > { %3887 = vst [vmem:[#allocation2 + $0x90] sm:$0xf] %v3886_v32  ;;  %v3731_v54 = vpop.permute.xlu0 %3730 }
 0x3b6   : > { %v3890_v57 = vsel %vm19334_vm10, %v3731_v54, %v3889_v12  ;;  %v17329_v50 = vld [vmem:[#allocation2 + $0x84] sm:$0xff]  }
 0x3b7   : > { %3891 = vst [vmem:[#allocation2 + $0x98] sm:$0x1] %v3890_v57  ;;  %v3729_v15 = vpop.permute.xlu1 %3728  ;;  %16004 = vmatmul.mubr.msk.bf16.gmra.mrb[76].mxu1 %vm4146_vm12, %v17329_v50  ;;  %v17355_v18 = vld [vmem:[#allocation2 + $0x80] sm:$0xff]   ;;  %v17363_v50 = vld [vmem:[#allocation2 + $0x18] sm:$0xff]  }
 0x3b8   : > { %3888 = vst.msk [vmem:[#allocation2 + $0x94] sm:$0xf] %vm3804_vm6, %v3729_v15  ;;  %v17364_v15 = vld [vmem:[#allocation2 + $0x20] sm:$0xff]  }
 0x3ba   : > { %v17356_v24 = vld [vmem:[#allocation2 + $0x88] sm:$0xff]  }
 0x3bb   : > { %v3733_v38 = vpop.permute.xlu0 %3732 }
 0x3bc   : > { %v3893_v63 = vsel %vm19323_vm7, %v3733_v38, %v3892_v62  ;;  %v17330_v33 = vld [vmem:[#allocation2 + $0x8c] sm:$0xff]  }
 0x3bd   : > { %3894 = vst [vmem:[#allocation2 + $0x9c] sm:$0xf] %v3893_v63  ;;  %16007 = vmatprep.mubr.msk.bf16.mxu1 %vm4146_vm12, %v17330_v33  ;;  %v17365_v62 = vld [vmem:[#allocation2 + $0x28] sm:$0xff]   ;;  %v17366_v38 = vld [vmem:[#allocation2 + $0x30] sm:$0xff]   ;;  %v17367_v63 = vld [vmem:[#allocation2 + $0x38] sm:$0xff]  }
 0x3be   : > { %v3735_v55 = vpop.permute.xlu1 %3734  ;;  %v17368_v33 = vld [vmem:[#allocation2 + $0x40] sm:$0xff]  }
 0x3bf   : > { %3895 = vst.msk [vmem:[#allocation2 + $0xa0] sm:$0xf] %vm3804_vm6, %v3735_v55  ;;  %v3737_v53 = vpop.permute.xlu0 %3736  ;;  %v17331_v26 = vld [vmem:[#allocation2 + $0x94] sm:$0xff]  }
 0x3c0   : > { %v3897_v40 = vsel %vm19334_vm10, %v3737_v53, %v3896_v45  ;;  %16008 = vmatmul.mubr.msk.bf16.gmra.mrb[80].mxu1 %vm4146_vm12, %v17331_v26  ;;  %v17357_v4 = vld [vmem:[#allocation2 + $0x90] sm:$0xff]   ;;  %v17369_v45 = vld [vmem:[#allocation2 + $0x48] sm:$0xff]   ;;  %v17371_v53 = vld [vmem:[#allocation2 + $0x58] sm:$0xff]  }
 0x3c1   : > { %3898 = vst [vmem:[#allocation2 + $0xa4] sm:$0x1] %v3897_v40  ;;  %v17370_v55 = vld [vmem:[#allocation2 + $0x50] sm:$0xff]   ;;  %v17372_v26 = vld [vmem:[#allocation2 + $0x60] sm:$0xff]   ;;  %v17373_v40 = vld [vmem:[#allocation2 + $0x68] sm:$0xff]  }
 0x3c2   : > { %v3739_v10 = vpop.permute.xlu1 %3738 }
 0x3c3   : > { %v3900_v28 = vsel %vm19323_vm7, %v3739_v10, %v3899_v58  ;;  %v17374_v58 = vld [vmem:[#allocation2 + $0x70] sm:$0xff]   ;;  %v17375_v10 = vld [vmem:[#allocation2 + $0x78] sm:$0xff]  }
 0x3c4   : > { %3901 = vst [vmem:[#allocation2 + $0xa8] sm:$0xf] %v3900_v28  ;;  %v17358_v1 = vld [vmem:[#allocation2 + $0x98] sm:$0xff]   ;;  %v17376_v28 = vld [vmem:[#allocation2 + $0x80] sm:$0xff]  }
 0x3c6   : > { %v17332_v16 = vld [vmem:[#allocation2 + $0x9c] sm:$0xff]  }
 0x3c7   : > { %v3743_v25 = vpop.permute.xlu0 %3742  ;;  %16011 = vmatprep.mubr.msk.bf16.mxu1 %vm4146_vm12, %v17332_v16  ;;  %v17378_v16 = vld [vmem:[#allocation2 + $0x90] sm:$0xff]  }
 0x3c8   : > { %v3904_v8 = vsel %vm19334_vm10, %v3743_v25, %v3903_v0  ;;  %v3741_v21 = vpop.permute.xlu1 %3740  ;;  %v17359_v12 = vld [vmem:[#allocation2 + $0xa0] sm:$0xff]   ;;  %v17377_v0 = vld [vmem:[#allocation2 + $0x88] sm:$0xff]   ;;  %v17379_v25 = vld [vmem:[#allocation2 + $0x98] sm:$0xff]  }
 0x3c9   : > { %3905 = vst [vmem:[#allocation2 + $0xb0] sm:$0x1] %v3904_v8  ;;  %3902 = vst.msk [vmem:[#allocation2 + $0xac] sm:$0xf] %vm3804_vm6, %v3741_v21  ;;  %v17380_v8 = vld [vmem:[#allocation2 + $0xa0] sm:$0xff]  }
 0x3cb   : > { %v3745_v19 = vpop.permute.xlu0 %3744  ;;  %v17333_v56 = vld [vmem:[#allocation2 + $0xa4] sm:$0xff]  }
 0x3cc   : > { %v3907_v60 = vsel %vm19323_vm7, %v3745_v19, %v3906_v17  ;;  %16012 = vmatmul.mubr.msk.bf16.gmra.mrb[84].mxu1 %vm4146_vm12, %v17333_v56 }
 0x3cd   : > { %3908 = vst [vmem:[#allocation2 + $0xb4] sm:$0xf] %v3907_v60 }
 0x3cf   : > { %v3749_v22 = vpop.permute.xlu0 %3748 }
 0x3d0   : > { %v3911_v27 = vsel %vm19334_vm10, %v3749_v22, %v3910_v47  ;;  %v3747_v51 = vpop.permute.xlu1 %3746  ;;  %v17334_v44 = vld [vmem:[#allocation2 + $0xac] sm:$0xff]  }
 0x3d1   : > { %3912 = vst [vmem:[#allocation2 + $0xbc] sm:$0x1] %v3911_v27  ;;  %3909 = vst.msk [vmem:[#allocation2 + $0xb8] sm:$0xf] %vm3804_vm6, %v3747_v51  ;;  %16015 = vmatprep.mubr.msk.bf16.mxu1 %vm4146_vm12, %v17334_v44  ;;  %v17360_v32 = vld [vmem:[#allocation2 + $0xa8] sm:$0xff]   ;;  %v17386_v47 = vld [vmem:[#allocation2 + $0xd0] sm:$0xff]  }
 0x3d2   : > { %v17381_v21 = vld [vmem:[#allocation2 + $0xa8] sm:$0xff]  }
 0x3d4   : > { %v17361_v54 = vld [vmem:[#allocation2 + $0xb0] sm:$0xff]  }
 0x3d5   : > { %v17382_v17 = vld [vmem:[#allocation2 + $0xb0] sm:$0xff]  }
 0x3d8   : > { %v17335_v61 = vld [vmem:[#allocation2 + $0xb4] sm:$0xff]  }
 0x3d9   : > { %16016 = vmatmul.mubr.msk.bf16.gmra.mrb[88].mxu1 %vm4146_vm12, %v17335_v61  ;;  %v17362_v57 = vld [vmem:[#allocation2 + $0xb8] sm:$0xff]  }
 0x3da   : > { %v17383_v19 = vld [vmem:[#allocation2 + $0xb8] sm:$0xff]  }
 0x3e8   : > { %v3751_v39 = vpop.permute.xlu1 %3750 }
 0x3e9   : > { %v3914_v46 = vsel %vm19323_vm7, %v3751_v39, %v3913_v52 }
 0x3ea   : > { %3915 = vst [vmem:[#allocation2 + $0xc0] sm:$0xf] %v3914_v46 }
 0x3f1   : > { %v17336_v11 = vld [vmem:[#allocation2 + $0xbc] sm:$0xff]  }
 0x3f2   : > { %16019 = vmatprep.mubr.msk.bf16.mxu1 %vm4146_vm12, %v17336_v11 }
 0x3f4   : > { %v3755_v2 = vpop.permute.xlu0 %3754 }
 0x3f5   : > { %v3918_v6 = vsel %vm19334_vm10, %v3755_v2, %v3917_v13  ;;  %v3753_v29 = vpop.permute.xlu1 %3752 }
 0x3f6   : > { %3919 = vst [vmem:[#allocation2 + $0xc8] sm:$0x1] %v3918_v6  ;;  %3916 = vst.msk [vmem:[#allocation2 + $0xc4] sm:$0xf] %vm3804_vm6, %v3753_v29 }
 0x3fd   : > { %v17337_v5 = vld [vmem:[#allocation2 + $0xc4] sm:$0xff]  }
 0x3fe   : > { %16020 = vmatmul.mubr.msk.bf16.gmra.mrb[92].mxu1 %vm4146_vm12, %v17337_v5  ;;  %v17384_v56 = vld [vmem:[#allocation2 + $0xc0] sm:$0xff]   ;;  %v17385_v60 = vld [vmem:[#allocation2 + $0xc8] sm:$0xff]  }
 0x3ff   : > { %16025 = vmatprep.mubr.msk.bf16.mxu1 %vm4146_vm12, %v17338_v14 }
 0x406   : > { %16026 = vmatmul.mubr.msk.bf16.vlgmr.msra.gmra.mrb[48].mxu1 %vm4146_vm12, %v17340_v37 }
 0x407   : > { %16074 = vmatpush3.bf16.msra.mxu1 %v5121_v30  ;;  %16029 = vmatprep.mubr.msk.bf16.mxu1 %vm4146_vm12, %v17341_v49 }
 0x40e   : > { %16030 = vmatmul.mubr.msk.bf16.gmra.mrb[52].mxu1 %vm4146_vm12, %v17342_v42 }
 0x40f   : > { %16033 = vmatprep.mubr.msk.bf16.mxu1 %vm4146_vm12, %v17343_v20 }
 0x416   : > { %16034 = vmatmul.mubr.msk.bf16.gmra.mrb[56].mxu1 %vm4146_vm12, %v17344_v7 }
 0x417   : > { %16037 = vmatprep.mubr.msk.bf16.mxu1 %vm4146_vm12, %v17345_v3 }
 0x41e   : > { %16038 = vmatmul.mubr.msk.bf16.gmra.mrb[60].mxu1 %vm4146_vm12, %v17346_v34 }
 0x41f   : > { %16041 = vmatprep.mubr.msk.bf16.mxu1 %vm4146_vm12, %v17347_v59 }
 0x426   : > { %16042 = vmatmul.mubr.msk.bf16.gmra.mrb[64].mxu1 %vm4146_vm12, %v17348_v23 }
 0x427   : > { %16045 = vmatprep.mubr.msk.bf16.mxu1 %vm4146_vm12, %v17349_v35 }
 0x42e   : > { %16046 = vmatmul.mubr.msk.bf16.gmra.mrb[68].mxu1 %vm4146_vm12, %v17350_v36 }
 0x42f   : > { %16049 = vmatprep.mubr.msk.bf16.mxu1 %vm4146_vm12, %v17351_v48 }
 0x436   : > { %16050 = vmatmul.mubr.msk.bf16.gmra.mrb[72].mxu1 %vm4146_vm12, %v17352_v9 }
 0x437   : > { %16053 = vmatprep.mubr.msk.bf16.mxu1 %vm4146_vm12, %v17353_v31 }
 0x43e   : > { %16054 = vmatmul.mubr.msk.bf16.gmra.mrb[76].mxu1 %vm4146_vm12, %v17354_v43 }
 0x43f   : > { %16057 = vmatprep.mubr.msk.bf16.mxu1 %vm4146_vm12, %v17355_v18 }
 0x446   : > { %16058 = vmatmul.mubr.msk.bf16.gmra.mrb[80].mxu1 %vm4146_vm12, %v17356_v24 }
 0x447   : > { %16061 = vmatprep.mubr.msk.bf16.mxu1 %vm4146_vm12, %v17357_v4 }
 0x44e   : > { %16062 = vmatmul.mubr.msk.bf16.gmra.mrb[84].mxu1 %vm4146_vm12, %v17358_v1 }
 0x44f   : > { %16065 = vmatprep.mubr.msk.bf16.mxu1 %vm4146_vm12, %v17359_v12 }
 0x456   : > { %16066 = vmatmul.mubr.msk.bf16.gmra.mrb[88].mxu1 %vm4146_vm12, %v17360_v32 }
 0x457   : > { %16069 = vmatprep.mubr.msk.bf16.mxu1 %vm4146_vm12, %v17361_v54 }
 0x45e   : > { %16070 = vmatmul.mubr.msk.bf16.gmra.mrb[92].mxu1 %vm4146_vm12, %v17362_v57 }
 0x45f   : > { %16075 = vmatprep.mubr.msk.bf16.mxu1 %vm4146_vm12, %v17363_v50 }
 0x466   : > { %16076 = vmatmul.mubr.msk.bf16.vlgmr.msra.gmra.mrb[48].mxu1 %vm4146_vm12, %v17364_v15 }
 0x467   : > { %16079 = vmatprep.mubr.msk.bf16.mxu1 %vm4146_vm12, %v17365_v62 }
 0x46e   : > { %16080 = vmatmul.mubr.msk.bf16.gmra.mrb[52].mxu1 %vm4146_vm12, %v17366_v38 }
 0x46f   : > { %16083 = vmatprep.mubr.msk.bf16.mxu1 %vm4146_vm12, %v17367_v63 }
 0x476   : > { %16084 = vmatmul.mubr.msk.bf16.gmra.mrb[56].mxu1 %vm4146_vm12, %v17368_v33 }
 0x477   : > { %16087 = vmatprep.mubr.msk.bf16.mxu1 %vm4146_vm12, %v17369_v45 }
 0x47e   : > { %16088 = vmatmul.mubr.msk.bf16.gmra.mrb[60].mxu1 %vm4146_vm12, %v17370_v55 }
 0x47f   : > { %16091 = vmatprep.mubr.msk.bf16.mxu1 %vm4146_vm12, %v17371_v53 }
 0x486   : > { %16092 = vmatmul.mubr.msk.bf16.gmra.mrb[64].mxu1 %vm4146_vm12, %v17372_v26 }
 0x487   : > { %16095 = vmatprep.mubr.msk.bf16.mxu1 %vm4146_vm12, %v17373_v40 }
 0x48e   : > { %16096 = vmatmul.mubr.msk.bf16.gmra.mrb[68].mxu1 %vm4146_vm12, %v17374_v58 }
 0x48f   : > { %16099 = vmatprep.mubr.msk.bf16.mxu1 %vm4146_vm12, %v17375_v10 }
 0x496   : > { %16100 = vmatmul.mubr.msk.bf16.gmra.mrb[72].mxu1 %vm4146_vm12, %v17376_v28 }
 0x497   : > { %16103 = vmatprep.mubr.msk.bf16.mxu1 %vm4146_vm12, %v17377_v0 }
 0x49e   : > { %16104 = vmatmul.mubr.msk.bf16.gmra.mrb[76].mxu1 %vm4146_vm12, %v17378_v16 }
 0x49f   : > { %16107 = vmatprep.mubr.msk.bf16.mxu1 %vm4146_vm12, %v17379_v25 }
 0x4a6   : > { %16108 = vmatmul.mubr.msk.bf16.gmra.mrb[80].mxu1 %vm4146_vm12, %v17380_v8 }
 0x4a7   : > { %16111 = vmatprep.mubr.msk.bf16.mxu1 %vm4146_vm12, %v17381_v21 }
 0x4ae   : > { %16112 = vmatmul.mubr.msk.bf16.gmra.mrb[84].mxu1 %vm4146_vm12, %v17382_v17 }
 0x4af   : > { %16115 = vmatprep.mubr.msk.bf16.mxu1 %vm4146_vm12, %v17383_v19 }
 0x4b6   : > { %16116 = vmatmul.mubr.msk.bf16.gmra.mrb[88].mxu1 %vm4146_vm12, %v17384_v56 }
 0x4b7   : > { %16119 = vmatprep.mubr.msk.bf16.mxu1 %vm4146_vm12, %v17385_v60 }
 0x4be   : > { %16120 = vmatmul.mubr.msk.bf16.gmra.mrb[92].mxu1 %vm4146_vm12, %v17386_v47 }
 0x539   : > { %v16077_v22 = vpop.f32.mrb[48].mxu1 }
 0x53a   : > { %v19505_v27 = vpop.f32.mrb[49].mxu1  ;;  %v5486_v44 = vrot.slane %v16077_v22, 1  ;;  %v5694_v61 = vrot.slane %v16077_v22, 2 }
 0x53b   : > { %v19507_v51 = vpop.f32.mrb[50].mxu1  ;;  %v5483_v39 = vrot.slane %v19505_v27, 1  ;;  %v5691_v46 = vrot.slane %v19505_v27, 2 }
 0x53c   : > { %v19509_v52 = vpop.f32.mrb[51].mxu1  ;;  %v5488_v30 = vrot.slane %v19507_v51, 1  ;;  %v5696_v49 = vrot.slane %v19507_v51, 2 }
 0x53d   : > { %v5484_v11 = vrot.slane %v19509_v52, 1  ;;  %v5692_v13 = vrot.slane %v19509_v52, 2 }
 0x53f   : > { %v5487_v2 = vsel %vm2778_vm15, %v5484_v11, %v5486_v44  ;;  %v5485_v6 = vsel %vm2778_vm15, %v5483_v39, %v5484_v11  ;;  %v5693_v29 = vsel %vm2987_vm14, %v5691_v46, %v5692_v13  ;;  %v5695_v14 = vsel %vm2987_vm14, %v5692_v13, %v5694_v61 }
 0x540   : > { %5565 = vrot.lane.b32.xlu1 %v5487_v2, %s18041_s26  ;;  %5563 = vrot.lane.b32.xlu0 %v5485_v6, %s18041_s26 }
 0x541   : > { %v19521_v5 = vpop.f32.mrb[52].mxu1 }
 0x542   : > { %v19523_v37 = vpop.f32.mrb[53].mxu1  ;;  %v5493_v3 = vrot.slane %v19521_v5, 1  ;;  %v5701_v34 = vrot.slane %v19521_v5, 2 }
 0x543   : > { %v5489_v42 = vrot.slane %v19523_v37, 1  ;;  %v5697_v20 = vrot.slane %v19523_v37, 2  ;;  %v19529_v7 = vpop.f32.mrb[54].mxu1 }
 0x544   : > { %v5494_v59 = vrot.slane %v19529_v7, 1  ;;  %v5702_v23 = vrot.slane %v19529_v7, 2  ;;  %5771 = vrot.lane.b32.xlu1 %v5693_v29, %s18040_s24  ;;  %5773 = vrot.lane.b32.xlu0 %v5695_v14, %s18040_s24  ;;  %v5176_v35 = vpop.f32.mrb[55].mxu1 }
 0x545   : > { %v5491_v36 = vrot.slane %v5176_v35, 1  ;;  %v5699_v48 = vrot.slane %v5176_v35, 2  ;;  %v5698_v9 = vsel %vm2987_vm14, %v5696_v49, %v5697_v20  ;;  %v5490_v31 = vsel %vm2778_vm15, %v5488_v30, %v5489_v42 }
 0x546   : > { %v5703_v43 = vsel %vm2987_vm14, %v5701_v34, %v5702_v23  ;;  %v5495_v18 = vsel %vm2778_vm15, %v5493_v3, %v5494_v59 }
 0x547   : > { %v5700_v24 = vsel %vm2987_vm14, %v5697_v20, %v5699_v48  ;;  %v5492_v4 = vsel %vm2778_vm15, %v5489_v42, %v5491_v36 }
 0x548   : > { %5775 = vrot.lane.b32.xlu1 %v5698_v9, %s18040_s24  ;;  %5567 = vrot.lane.b32.xlu0 %v5490_v31, %s18041_s26 }
 0x549   : > { %v19545_v1 = vpop.f32.mrb[56].mxu1 }
 0x54a   : > { %v5189_v12 = vpop.f32.mrb[57].mxu1  ;;  %v5499_v50 = vrot.slane %v19545_v1, 1  ;;  %v5707_v15 = vrot.slane %v19545_v1, 2 }
 0x54b   : > { %v5496_v32 = vrot.slane %v5189_v12, 1  ;;  %v5704_v54 = vrot.slane %v5189_v12, 2  ;;  %v16086_v57 = vpop.f32.mrb[58].mxu1 }
 0x54c   : > { %v5501_v62 = vrot.slane %v16086_v57, 1  ;;  %v5709_v38 = vrot.slane %v16086_v57, 2  ;;  %5779 = vrot.lane.b32.xlu0 %v5703_v43, %s18040_s24  ;;  %5571 = vrot.lane.b32.xlu1 %v5495_v18, %s18041_s26  ;;  %v19551_v63 = vpop.f32.mrb[59].mxu1 }
 0x54d   : > { %v5498_v33 = vrot.slane %v19551_v63, 1  ;;  %v5706_v45 = vrot.slane %v19551_v63, 2  ;;  %v5705_v55 = vsel %vm2987_vm14, %v5702_v23, %v5704_v54  ;;  %v5497_v53 = vsel %vm2778_vm15, %v5494_v59, %v5496_v32 }
 0x54e   : > { %v5502_v26 = vsel %vm2778_vm15, %v5499_v50, %v5501_v62  ;;  %v5710_v40 = vsel %vm2987_vm14, %v5707_v15, %v5709_v38 }
 0x54f   : > { %v5500_v58 = vsel %vm2778_vm15, %v5498_v33, %v5499_v50  ;;  %v5708_v10 = vsel %vm2987_vm14, %v5706_v45, %v5707_v15 }
 0x550   : > { %5777 = vrot.lane.b32.xlu1 %v5700_v24, %s18040_s24  ;;  %5569 = vrot.lane.b32.xlu0 %v5492_v4, %s18041_s26 }
 0x551   : > { %v16089_v28 = vpop.f32.mrb[60].mxu1 }
 0x552   : > { %v19563_v0 = vpop.f32.mrb[61].mxu1  ;;  %v5506_v25 = vrot.slane %v16089_v28, 1  ;;  %v5714_v8 = vrot.slane %v16089_v28, 2 }
 0x553   : > { %v19565_v16 = vpop.f32.mrb[62].mxu1  ;;  %v5503_v17 = vrot.slane %v19563_v0, 1  ;;  %v5711_v19 = vrot.slane %v19563_v0, 2 }
 0x554   : > { %5781 = vrot.lane.b32.xlu1 %v5705_v55, %s18040_s24  ;;  %5573 = vrot.lane.b32.xlu0 %v5497_v53, %s18041_s26  ;;  %v19569_v21 = vpop.f32.mrb[63].mxu1  ;;  %v5508_v11 = vrot.slane %v19565_v16, 1  ;;  %v5716_v13 = vrot.slane %v19565_v16, 2 }
 0x555   : > { %v5504_v56 = vrot.slane %v19569_v21, 1  ;;  %v5712_v60 = vrot.slane %v19569_v21, 2 }
 0x557   : > { %v5507_v47 = vsel %vm2778_vm15, %v5504_v56, %v5506_v25  ;;  %v5505_v22 = vsel %vm2778_vm15, %v5503_v17, %v5504_v56  ;;  %v5713_v44 = vsel %vm2987_vm14, %v5711_v19, %v5712_v60  ;;  %v5715_v61 = vsel %vm2987_vm14, %v5712_v60, %v5714_v8 }
 0x558   : > { %5577 = vrot.lane.b32.xlu1 %v5502_v26, %s18041_s26  ;;  %5575 = vrot.lane.b32.xlu0 %v5500_v58, %s18041_s26 }
 0x559   : > { %v19581_v39 = vpop.f32.mrb[64].mxu1 }
 0x55a   : > { %v19583_v46 = vpop.f32.mrb[65].mxu1  ;;  %v5513_v14 = vrot.slane %v19581_v39, 1  ;;  %v5721_v30 = vrot.slane %v19581_v39, 2 }
 0x55b   : > { %v5509_v2 = vrot.slane %v19583_v46, 1  ;;  %v5717_v6 = vrot.slane %v19583_v46, 2  ;;  %v19589_v29 = vpop.f32.mrb[66].mxu1 }
 0x55c   : > { %v5514_v49 = vrot.slane %v19589_v29, 1  ;;  %v5722_v42 = vrot.slane %v19589_v29, 2  ;;  %5785 = vrot.lane.b32.xlu1 %v5710_v40, %s18040_s24  ;;  %5783 = vrot.lane.b32.xlu0 %v5708_v10, %s18040_s24  ;;  %v5224_v20 = vpop.f32.mrb[67].mxu1 }
 0x55d   : > { %v5511_v3 = vrot.slane %v5224_v20, 1  ;;  %v5719_v34 = vrot.slane %v5224_v20, 2  ;;  %v5718_v59 = vsel %vm2987_vm14, %v5716_v13, %v5717_v6  ;;  %v5510_v23 = vsel %vm2778_vm15, %v5508_v11, %v5509_v2 }
 0x55e   : > { %v5723_v35 = vsel %vm2987_vm14, %v5721_v30, %v5722_v42  ;;  %v5515_v36 = vsel %vm2778_vm15, %v5513_v14, %v5514_v49 }
 0x55f   : > { %v5720_v48 = vsel %vm2987_vm14, %v5717_v6, %v5719_v34  ;;  %v5512_v9 = vsel %vm2778_vm15, %v5509_v2, %v5511_v3 }
 0x560   : > { %5581 = vrot.lane.b32.xlu1 %v5507_v47, %s18041_s26  ;;  %5579 = vrot.lane.b32.xlu0 %v5505_v22, %s18041_s26 }
 0x561   : > { %v19605_v31 = vpop.f32.mrb[68].mxu1 }
 0x562   : > { %v5237_v43 = vpop.f32.mrb[69].mxu1  ;;  %v5519_v12 = vrot.slane %v19605_v31, 1  ;;  %v5727_v32 = vrot.slane %v19605_v31, 2 }
 0x563   : > { %v5516_v18 = vrot.slane %v5237_v43, 1  ;;  %v5724_v24 = vrot.slane %v5237_v43, 2  ;;  %v16098_v4 = vpop.f32.mrb[70].mxu1 }
 0x564   : > { %v5521_v54 = vrot.slane %v16098_v4, 1  ;;  %v5729_v57 = vrot.slane %v16098_v4, 2  ;;  %5787 = vrot.lane.b32.xlu1 %v5713_v44, %s18040_s24  ;;  %5789 = vrot.lane.b32.xlu0 %v5715_v61, %s18040_s24  ;;  %v19611_v50 = vpop.f32.mrb[71].mxu1 }
 0x565   : > { %v5518_v15 = vrot.slane %v19611_v50, 1  ;;  %v5726_v62 = vrot.slane %v19611_v50, 2  ;;  %v5725_v38 = vsel %vm2987_vm14, %v5722_v42, %v5724_v24  ;;  %v5517_v33 = vsel %vm2778_vm15, %v5514_v49, %v5516_v18 }
 0x566   : > { %v5522_v45 = vsel %vm2778_vm15, %v5519_v12, %v5521_v54  ;;  %v5730_v55 = vsel %vm2987_vm14, %v5727_v32, %v5729_v57 }
 0x567   : > { %v5520_v53 = vsel %vm2778_vm15, %v5518_v15, %v5519_v12  ;;  %v5728_v26 = vsel %vm2987_vm14, %v5726_v62, %v5727_v32 }
 0x568   : > { %5791 = vrot.lane.b32.xlu1 %v5718_v59, %s18040_s24  ;;  %5583 = vrot.lane.b32.xlu0 %v5510_v23, %s18041_s26 }
 0x569   : > { %v16101_v40 = vpop.f32.mrb[72].mxu1 }
 0x56a   : > { %v19623_v58 = vpop.f32.mrb[73].mxu1  ;;  %v5526_v28 = vrot.slane %v16101_v40, 1  ;;  %v5734_v25 = vrot.slane %v16101_v40, 2 }
 0x56b   : > { %v19625_v10 = vpop.f32.mrb[74].mxu1  ;;  %v5523_v17 = vrot.slane %v19623_v58, 1  ;;  %v5731_v19 = vrot.slane %v19623_v58, 2 }
 0x56c   : > { %5795 = vrot.lane.b32.xlu0 %v5723_v35, %s18040_s24  ;;  %5587 = vrot.lane.b32.xlu1 %v5515_v36, %s18041_s26  ;;  %v19629_v8 = vpop.f32.mrb[75].mxu1  ;;  %v5528_v2 = vrot.slane %v19625_v10, 1  ;;  %v5736_v6 = vrot.slane %v19625_v10, 2 }
 0x56d   : > { %v5524_v56 = vrot.slane %v19629_v8, 1  ;;  %v5732_v60 = vrot.slane %v19629_v8, 2 }
 0x56f   : > { %v5527_v47 = vsel %vm2778_vm15, %v5524_v56, %v5526_v28  ;;  %v5525_v22 = vsel %vm2778_vm15, %v5523_v17, %v5524_v56  ;;  %v5733_v44 = vsel %vm2987_vm14, %v5731_v19, %v5732_v60  ;;  %v5735_v61 = vsel %vm2987_vm14, %v5732_v60, %v5734_v25 }
 0x570   : > { %5793 = vrot.lane.b32.xlu1 %v5720_v48, %s18040_s24  ;;  %5585 = vrot.lane.b32.xlu0 %v5512_v9, %s18041_s26 }
 0x571   : > { %v19641_v11 = vpop.f32.mrb[76].mxu1 }
 0x572   : > { %v19643_v13 = vpop.f32.mrb[77].mxu1  ;;  %v5533_v42 = vrot.slane %v19641_v11, 1  ;;  %v5741_v20 = vrot.slane %v19641_v11, 2 }
 0x573   : > { %v5529_v14 = vrot.slane %v19643_v13, 1  ;;  %v5737_v30 = vrot.slane %v19643_v13, 2  ;;  %v19649_v49 = vpop.f32.mrb[78].mxu1 }
 0x574   : > { %v5534_v3 = vrot.slane %v19649_v49, 1  ;;  %v5742_v34 = vrot.slane %v19649_v49, 2  ;;  %5797 = vrot.lane.b32.xlu1 %v5725_v38, %s18040_s24  ;;  %5589 = vrot.lane.b32.xlu0 %v5517_v33, %s18041_s26  ;;  %v5272_v59 = vpop.f32.mrb[79].mxu1 }
 0x575   : > { %v5531_v23 = vrot.slane %v5272_v59, 1  ;;  %v5739_v35 = vrot.slane %v5272_v59, 2  ;;  %v5738_v36 = vsel %vm2987_vm14, %v5736_v6, %v5737_v30  ;;  %v5530_v48 = vsel %vm2778_vm15, %v5528_v2, %v5529_v14 }
 0x576   : > { %v5743_v9 = vsel %vm2987_vm14, %v5741_v20, %v5742_v34  ;;  %v5535_v43 = vsel %vm2778_vm15, %v5533_v42, %v5534_v3 }
 0x577   : > { %v19662_v18 = vsel %vm2987_vm14, %v5737_v30, %v5739_v35  ;;  %v19665_v24 = vsel %vm2778_vm15, %v5529_v14, %v5531_v23 }
 0x578   : > { %5593 = vrot.lane.b32.xlu1 %v5522_v45, %s18041_s26  ;;  %5591 = vrot.lane.b32.xlu0 %v5520_v53, %s18041_s26 }
 0x579   : > { %v19669_v4 = vpop.f32.mrb[80].mxu1 }
 0x57a   : > { %v5285_v12 = vpop.f32.mrb[81].mxu1  ;;  %v5539_v15 = vrot.slane %v19669_v4, 1  ;;  %v5747_v62 = vrot.slane %v19669_v4, 2 }
 0x57b   : > { %v5536_v32 = vrot.slane %v5285_v12, 1  ;;  %v5744_v54 = vrot.slane %v5285_v12, 2  ;;  %v16110_v57 = vpop.f32.mrb[82].mxu1 }
 0x57c   : > { %v5541_v38 = vrot.slane %v16110_v57, 1  ;;  %v5749_v33 = vrot.slane %v16110_v57, 2  ;;  %5801 = vrot.lane.b32.xlu1 %v5730_v55, %s18040_s24  ;;  %5799 = vrot.lane.b32.xlu0 %v5728_v26, %s18040_s24  ;;  %v19675_v40 = vpop.f32.mrb[83].mxu1 }
 0x57d   : > { %v5538_v45 = vrot.slane %v19675_v40, 1  ;;  %v5746_v53 = vrot.slane %v19675_v40, 2  ;;  %v5745_v28 = vsel %vm2987_vm14, %v5742_v34, %v5744_v54  ;;  %v5537_v25 = vsel %vm2778_vm15, %v5534_v3, %v5536_v32 }
 0x57e   : > { %v19682_v17 = vsel %vm2778_vm15, %v5539_v15, %v5541_v38  ;;  %v19685_v19 = vsel %vm2987_vm14, %v5747_v62, %v5749_v33 }
 0x57f   : > { %v19688_v55 = vsel %vm2778_vm15, %v5538_v45, %v5539_v15  ;;  %v19691_v26 = vsel %vm2987_vm14, %v5746_v53, %v5747_v62 }
 0x580   : > { %5597 = vrot.lane.b32.xlu1 %v5527_v47, %s18041_s26  ;;  %5595 = vrot.lane.b32.xlu0 %v5525_v22, %s18041_s26 }
 0x581   : > { %v16113_v56 = vpop.f32.mrb[84].mxu1 }
 0x582   : > { %v19695_v60 = vpop.f32.mrb[85].mxu1  ;;  %v5546_v6 = vrot.slane %v16113_v56, 1  ;;  %v5754_v14 = vrot.slane %v16113_v56, 2 }
 0x583   : > { %v19697_v2 = vpop.f32.mrb[86].mxu1  ;;  %v5543_v42 = vrot.slane %v19695_v60, 1  ;;  %v5751_v20 = vrot.slane %v19695_v60, 2 }
 0x584   : > { %5803 = vrot.lane.b32.xlu1 %v5733_v44, %s18040_s24  ;;  %5805 = vrot.lane.b32.xlu0 %v5735_v61, %s18040_s24  ;;  %v19701_v30 = vpop.f32.mrb[87].mxu1  ;;  %v5548_v35 = vrot.slane %v19697_v2, 1  ;;  %v5756_v12 = vrot.slane %v19697_v2, 2 }
 0x585   : > { %v5544_v47 = vrot.slane %v19701_v30, 1  ;;  %v5752_v22 = vrot.slane %v19701_v30, 2 }
 0x587   : > { %v5547_v3 = vsel %vm2778_vm15, %v5544_v47, %v5546_v6  ;;  %v5545_v34 = vsel %vm2778_vm15, %v5543_v42, %v5544_v47  ;;  %v5755_v59 = vsel %vm2987_vm14, %v5752_v22, %v5754_v14  ;;  %v5753_v44 = vsel %vm2987_vm14, %v5751_v20, %v5752_v22 }
 0x588   : > { %5807 = vrot.lane.b32.xlu1 %v5738_v36, %s18040_s24  ;;  %5599 = vrot.lane.b32.xlu0 %v5530_v48, %s18041_s26 }
 0x589   : > { %v19713_v61 = vpop.f32.mrb[88].mxu1 }
 0x58a   : > { %v19715_v23 = vpop.f32.mrb[89].mxu1  ;;  %v5553_v15 = vrot.slane %v19713_v61, 1  ;;  %v5761_v36 = vrot.slane %v19713_v61, 2 }
 0x58b   : > { %v5549_v32 = vrot.slane %v19715_v23, 1  ;;  %v5757_v54 = vrot.slane %v19715_v23, 2  ;;  %v19721_v57 = vpop.f32.mrb[90].mxu1 }
 0x58c   : > { %v5554_v48 = vrot.slane %v19721_v57, 1  ;;  %v5762_v62 = vrot.slane %v19721_v57, 2  ;;  %5811 = vrot.lane.b32.xlu0 %v5743_v9, %s18040_s24  ;;  %5603 = vrot.lane.b32.xlu1 %v5535_v43, %s18041_s26  ;;  %v5320_v38 = vpop.f32.mrb[91].mxu1 }
 0x58d   : > { %v5551_v33 = vrot.slane %v5320_v38, 1  ;;  %v5759_v45 = vrot.slane %v5320_v38, 2  ;;  %v5758_v53 = vsel %vm2987_vm14, %v5756_v12, %v5757_v54  ;;  %v5550_v56 = vsel %vm2778_vm15, %v5548_v35, %v5549_v32 }
 0x58e   : > { %v5555_v6 = vsel %vm2778_vm15, %v5553_v15, %v5554_v48  ;;  %v5763_v14 = vsel %vm2987_vm14, %v5761_v36, %v5762_v62 }
 0x58f   : > { %v5552_v42 = vsel %vm2778_vm15, %v5549_v32, %v5551_v33  ;;  %v5760_v20 = vsel %vm2987_vm14, %v5757_v54, %v5759_v45 }
 0x590   : > { %5809 = vrot.lane.b32.xlu1 %v19662_v18, %s18040_s24  ;;  %5601 = vrot.lane.b32.xlu0 %v19665_v24, %s18041_s26 }
 0x591   : > { %v19739_v9 = vpop.f32.mrb[92].mxu1 }
 0x592   : > { %v5333_v43 = vpop.f32.mrb[93].mxu1  ;;  %v5559_v12 = vrot.slane %v19739_v9, 1  ;;  %v5767_v15 = vrot.slane %v19739_v9, 2 }
 0x593   : > { %v5556_v47 = vrot.slane %v5333_v43, 1  ;;  %v5764_v22 = vrot.slane %v5333_v43, 2  ;;  %v16122_v35 = vpop.f32.mrb[94].mxu1 }
 0x594   : > { %v5561_v36 = vrot.slane %v16122_v35, 1  ;;  %v5769_v32 = vrot.slane %v16122_v35, 2  ;;  %5813 = vrot.lane.b32.xlu1 %v5745_v28, %s18040_s24  ;;  %5605 = vrot.lane.b32.xlu0 %v5537_v25, %s18041_s26  ;;  %v19745_v18 = vpop.f32.mrb[95].mxu1  ;;  %v17387_v25 = vld [vmem:[#allocation12 + $0x8] sm:$0xff]  }
 0x595   : > { %v5558_v24 = vrot.slane %v19745_v18, 1  ;;  %v5766_v54 = vrot.slane %v19745_v18, 2  ;;  %v5557_v38 = vsel %vm2778_vm15, %v5554_v48, %v5556_v47  ;;  %v5765_v45 = vsel %vm2987_vm14, %v5762_v62, %v5764_v22  ;;  %16123 = vmatprep.subr.bf16.mxu0 %v17387_v25 }
 0x596   : > { %v5562_v33 = vsel %vm2778_vm15, %v5559_v12, %v5561_v36  ;;  %v19753_v43 = vsel %vm2987_vm14, %v5767_v15, %v5769_v32  ;;  %16124 = vmatpush3.bf16.msra.mxu0 %v17387_v25 }
 0x597   : > { %v5560_v35 = vsel %vm2778_vm15, %v5558_v24, %v5559_v12  ;;  %v19757_v28 = vsel %vm2987_vm14, %v5766_v54, %v5767_v15 }
 0x598   : > { %5609 = vrot.lane.b32.xlu1 %v19682_v17, %s18041_s26  ;;  %5607 = vrot.lane.b32.xlu0 %v19688_v55, %s18041_s26  ;;  %v19775_v17 = vld [vmem:[#allocation11] ss:$0 sm:$0xff] }
 0x599   : > { %v5407_v15 = vadd.f32 %v19521_v5, %v19775_v17 }
 0x59c   : > { %5817 = vrot.lane.b32.xlu1 %v19685_v19, %s18040_s24  ;;  %5815 = vrot.lane.b32.xlu0 %v19691_v26, %s18040_s24  ;;  %v5403_v26 = vadd.f32 %v19775_v17, %v19505_v27 }
 0x5a0   : > { %5613 = vrot.lane.b32.xlu1 %v5547_v3, %s18041_s26  ;;  %5611 = vrot.lane.b32.xlu0 %v5545_v34, %s18041_s26  ;;  %v5404_v3 = vadd.f32 %v19775_v17, %v19509_v52 }
 0x5a4   : > { %5821 = vrot.lane.b32.xlu1 %v5755_v59, %s18040_s24  ;;  %5819 = vrot.lane.b32.xlu0 %v5753_v44, %s18040_s24 }
 0x5a8   : > { %5823 = vrot.lane.b32.xlu1 %v5758_v53, %s18040_s24  ;;  %5615 = vrot.lane.b32.xlu0 %v5550_v56, %s18041_s26  ;;  %v5405_v56 = vadd.f32 %v19507_v51, %v19775_v17 }
 0x5ac   : > { %5619 = vrot.lane.b32.xlu1 %v5555_v6, %s18041_s26  ;;  %5617 = vrot.lane.b32.xlu0 %v5552_v42, %s18041_s26 }
 0x5b0   : > { %5827 = vrot.lane.b32.xlu1 %v5763_v14, %s18040_s24  ;;  %5825 = vrot.lane.b32.xlu0 %v5760_v20, %s18040_s24 }
 0x5b2   : > { %v5566_v19 = vpop.permute.xlu1 %5565  ;;  %v5564_v55 = vpop.permute.xlu0 %5563 }
 0x5b3   : > { %v5660_v34 = vadd.f32 %v5566_v19, %v5404_v3  ;;  %v5659_v59 = vadd.f32 %v5564_v55, %v5403_v26  ;;  %v5406_v26 = vadd.f32 %v19775_v17, %v19523_v37  ;;  %v5408_v37 = vadd.f32 %v19529_v7, %v19775_v17 }
 0x5b4   : > { %5621 = vrot.lane.b32.xlu0 %v5557_v38, %s18041_s26  ;;  %5625 = vrot.lane.b32.xlu1 %v5562_v33, %s18041_s26 }
 0x5b6   : > { %v5772_v44 = vpop.permute.xlu1 %5771  ;;  %v5774_v48 = vpop.permute.xlu0 %5773 }
 0x5b7   : > { %v5867_v62 = vadd.f32 %v5772_v44, %v5659_v59  ;;  %v5868_v53 = vadd.f32 %v5774_v48, %v5660_v34 }
 0x5b8   : > { %5829 = vrot.lane.b32.xlu0 %v5765_v45, %s18040_s24 }
 0x5b9   : > { %vm5899_vm1 = vcmp.ge.f32.partialorder %v5867_v62, 0.0  ;;  %v5931_v27 = vmul.f32 0.2, %v5867_v62  ;;  %vm5900_vm5 = vcmp.ge.f32.partialorder %v5868_v53, 0.0  ;;  %v5932_v6 = vmul.f32 0.2, %v5868_v53 }
 0x5ba   : > { %v5776_v52 = vpop.permute.xlu1 %5775  ;;  %v5568_v14 = vpop.permute.xlu0 %5567 }
 0x5bb   : > { %v5963_v42 = vsel %vm5899_vm1, %v5867_v62, %v5931_v27  ;;  %v5964_v20 = vsel %vm5900_vm5, %v5868_v53, %v5932_v6  ;;  %v5661_v47 = vadd.f32 %v5568_v14, %v5405_v56 }
 0x5bc   : > { %v15345_v22 = vpack.c.bf16 %v5963_v42, %v5963_v42  ;;  %v15346_v12 = vpack.c.bf16 %v5964_v20, %v5964_v20  ;;  %5623 = vrot.lane.b32.xlu0 %v5560_v35, %s18041_s26 }
 0x5bd   : > { %v5869_v36 = vadd.f32 %v5776_v52, %v5661_v47 }
 0x5be   : > { %v6092_v51 = vshrl.u32 %v15345_v22, 16  ;;  %v6100_v32 = vshrl.u32 %v15346_v12, 16  ;;  %v5780_v24 = vpop.permute.xlu0 %5779  ;;  %v5572_v54 = vpop.permute.xlu1 %5571  ;;  %v6095_v25 = vshll.u32 %v15345_v22, 16  ;;  %v6103_v55 = vshll.u32 %v15346_v12, 16 }
 0x5bf   : > { %vm5901_vm6 = vcmp.ge.f32.partialorder %v5869_v36, 0.0  ;;  %v5933_v38 = vmul.f32 0.2, %v5869_v36  ;;  %v5663_v33 = vadd.f32 %v5572_v54, %v5407_v15 }
 0x5c0   : > { %v6094_v45 = vrot.slane %v6092_v51, 7  ;;  %v6102_v19 = vrot.slane %v6100_v32, 7 }
 0x5c1   : > { %v5965_v3 = vsel %vm5901_vm6, %v5869_v36, %v5933_v38  ;;  %v5871_v35 = vadd.f32 %v5780_v24, %v5663_v33 }
 0x5c2   : > { %v15347_v34 = vpack.c.bf16 %v5965_v3, %v5965_v3  ;;  %v5778_v59 = vpop.permute.xlu1 %5777  ;;  %v5570_v5 = vpop.permute.xlu0 %5569  ;;  %v6097_v44 = vor.u32 %v6095_v25, %v6094_v45  ;;  %v6098_v48 = vrot.slane %v6094_v45, 4  ;;  %v6105_v62 = vor.u32 %v6103_v55, %v6102_v19 }
 0x5c3   : > { %vm5903_vm7 = vcmp.ge.f32.partialorder %v5871_v35, 0.0  ;;  %v5935_v53 = vmul.f32 0.2, %v5871_v35  ;;  %v5662_v56 = vadd.f32 %v5570_v5, %v5406_v26  ;;  %v6107_v22 = vrot.slane %v6102_v19, 4 }
 0x5c4   : > { %6363 = vrot.lane.b32.xlu1 %v6097_v44, %s18043_s22  ;;  %v6106_v27 = vsel %vm18534_vm11, %v6098_v48, %v6105_v62  ;;  %v6109_v6 = vshrl.u32 %v15347_v34, 16  ;;  %v6112_v15 = vshll.u32 %v15347_v34, 16  ;;  %v5410_v25 = vadd.f32 %v19545_v1, %v19775_v17 }
 0x5c5   : > { %v5967_v52 = vsel %vm5903_vm7, %v5871_v35, %v5935_v53  ;;  %v5870_v14 = vadd.f32 %v5778_v59, %v5662_v56  ;;  %6365 = vrot.lane.b32.xlu0 %v6106_v27, %s18043_s22  ;;  %v5409_v19 = vadd.f32 %v19775_v17, %v19551_v63 }
 0x5c6   : > { %v15349_v42 = vpack.c.bf16 %v5967_v52, %v5967_v52  ;;  %v5782_v20 = vpop.permute.xlu1 %5781  ;;  %v5574_v47 = vpop.permute.xlu0 %5573  ;;  %v6111_v12 = vrot.slane %v6109_v6, 7 }
 0x5c7   : > { %vm5902_vm8 = vcmp.ge.f32.partialorder %v5870_v14, 0.0  ;;  %v5934_v36 = vmul.f32 0.2, %v5870_v14  ;;  %v5664_v51 = vadd.f32 %v5574_v47, %v5408_v37 }
 0x5c8   : > { %6367 = vrot.lane.b32.xlu1 %v6107_v22, %s18043_s22  ;;  %v6114_v32 = vor.u32 %v6112_v15, %v6111_v12  ;;  %v6126_v24 = vshrl.u32 %v15349_v42, 16  ;;  %v6129_v53 = vshll.u32 %v15349_v42, 16  ;;  %v6115_v6 = vrot.slane %v6111_v12, 4 }
 0x5c9   : > { %v5966_v54 = vsel %vm5902_vm8, %v5870_v14, %v5934_v36  ;;  %v5872_v38 = vadd.f32 %v5782_v20, %v5664_v51  ;;  %v5411_v12 = vadd.f32 %v19775_v17, %v19563_v0  ;;  %v5412_v51 = vadd.f32 %v19775_v17, %v19569_v21 }
 0x5ca   : > { %v15348_v7 = vpack.c.bf16 %v5966_v54, %v5966_v54  ;;  %v5578_v33 = vpop.permute.xlu1 %5577  ;;  %v5576_v45 = vpop.permute.xlu0 %5575  ;;  %6369 = vrot.lane.b32.xlu0 %v6114_v32, %s18043_s22  ;;  %v6128_v3 = vrot.slane %v6126_v24, 7 }
 0x5cb   : > { %vm5904_vm10 = vcmp.ge.f32.partialorder %v5872_v38, 0.0  ;;  %v5936_v55 = vmul.f32 0.2, %v5872_v38  ;;  %v5666_v34 = vadd.f32 %v5578_v33, %v5410_v25  ;;  %v5665_v59 = vadd.f32 %v5576_v45, %v5409_v19 }
 0x5cc   : > { %v6117_v26 = vshrl.u32 %v15348_v7, 16  ;;  %v6120_v56 = vshll.u32 %v15348_v7, 16  ;;  %v6131_v37 = vor.u32 %v6129_v53, %v6128_v3  ;;  %v6132_v19 = vrot.slane %v6128_v3, 4 }
 0x5cd   : > { %v5968_v35 = vsel %vm5904_vm10, %v5872_v38, %v5936_v55 }
 0x5ce   : > { %v15350_v5 = vpack.c.bf16 %v5968_v35, %v5968_v35  ;;  %v5786_v44 = vpop.permute.xlu1 %5785  ;;  %v5784_v48 = vpop.permute.xlu0 %5783  ;;  %5831 = vrot.lane.b32.xlu0 %v19757_v28, %s18040_s24  ;;  %v6119_v62 = vrot.slane %v6117_v26, 7 }
 0x5cf   : > { %v5874_v1 = vadd.f32 %v5786_v44, %v5666_v34  ;;  %v5873_v27 = vadd.f32 %v5784_v48, %v5665_v59 }
 0x5d0   : > { %v6124_v63 = vrot.slane %v6119_v62, 4  ;;  %v6122_v52 = vor.u32 %v6120_v56, %v6119_v62  ;;  %v6134_v14 = vshrl.u32 %v15350_v5, 16  ;;  %v6137_v36 = vshll.u32 %v15350_v5, 16 }
 0x5d1   : > { %vm5906_vm12 = vcmp.ge.f32.partialorder %v5874_v1, 0.0  ;;  %v5938_v20 = vmul.f32 0.2, %v5874_v1  ;;  %vm5905_vm13 = vcmp.ge.f32.partialorder %v5873_v27, 0.0  ;;  %v5937_v47 = vmul.f32 0.2, %v5873_v27 }
 0x5d2   : > { %v5582_v22 = vpop.permute.xlu1 %5581  ;;  %v5580_v15 = vpop.permute.xlu0 %5579  ;;  %6373 = vrot.lane.b32.xlu1 %v6124_v63, %s18043_s22  ;;  %6375 = vrot.lane.b32.xlu0 %v6131_v37, %s18043_s22  ;;  %v6123_v28 = vsel %vm18534_vm11, %v6115_v6, %v6122_v52  ;;  %v6136_v42 = vrot.slane %v6134_v14, 7  ;;  %v5413_v5 = vadd.f32 %v19565_v16, %v19775_v17 }
 0x5d3   : > { %v5970_v32 = vsel %vm5906_vm12, %v5874_v1, %v5938_v20  ;;  %v5969_v24 = vsel %vm5905_vm13, %v5873_v27, %v5937_v47  ;;  %v5668_v45 = vadd.f32 %v5582_v22, %v5412_v51  ;;  %v5667_v25 = vadd.f32 %v5580_v15, %v5411_v12 }
 0x5d4   : > { %v15352_v54 = vpack.c.bf16 %v5970_v32, %v5970_v32  ;;  %v15351_v38 = vpack.c.bf16 %v5969_v24, %v5969_v24  ;;  %v6141_v7 = vrot.slane %v6136_v42, 4  ;;  %v6139_v33 = vor.u32 %v6137_v36, %v6136_v42 }
 0x5d5   : > { %v5415_v22 = vadd.f32 %v19581_v39, %v19775_v17 }
 0x5d6   : > { %v6151_v55 = vshrl.u32 %v15352_v54, 16  ;;  %v6143_v26 = vshrl.u32 %v15351_v38, 16  ;;  %v5788_v35 = vpop.permute.xlu1 %5787  ;;  %v5790_v34 = vpop.permute.xlu0 %5789  ;;  %6371 = vrot.lane.b32.xlu1 %v6123_v28, %s18043_s22  ;;  %6379 = vrot.lane.b32.xlu0 %v6141_v7, %s18043_s22  ;;  %v6140_v21 = vsel %vm18534_vm11, %v6132_v19, %v6139_v33  ;;  %v6154_v48 = vshll.u32 %v15352_v54, 16 }
 0x5d7   : > { %v5875_v0 = vadd.f32 %v5788_v35, %v5667_v25  ;;  %v5876_v59 = vadd.f32 %v5790_v34, %v5668_v45  ;;  %v6146_v28 = vshll.u32 %v15351_v38, 16  ;;  %v5414_v45 = vadd.f32 %v19775_v17, %v19583_v46 }
 0x5d8   : > { %v6153_v44 = vrot.slane %v6151_v55, 7  ;;  %v6145_v62 = vrot.slane %v6143_v26, 7  ;;  %v5416_v46 = vadd.f32 %v19589_v29, %v19775_v17 }
 0x5d9   : > { %vm5907_vm0 = vcmp.ge.f32.partialorder %v5875_v0, 0.0  ;;  %v5939_v3 = vmul.f32 0.2, %v5875_v0  ;;  %vm5908_vm1 = vcmp.ge.f32.partialorder %v5876_v59, 0.0  ;;  %v5940_v53 = vmul.f32 0.2, %v5876_v59 }
 0x5da   : > { %v5792_v56 = vpop.permute.xlu1 %5791  ;;  %v5584_v1 = vpop.permute.xlu0 %5583  ;;  %6377 = vrot.lane.b32.xlu1 %v6140_v21, %s18043_s22  ;;  %5833 = vrot.lane.b32.xlu0 %v19753_v43, %s18040_s24  ;;  %v6149_v27 = vrot.slane %v6145_v62, 4  ;;  %v6156_v6 = vor.u32 %v6154_v48, %v6153_v44  ;;  %v6158_v20 = vrot.slane %v6153_v44, 4  ;;  %v6148_v33 = vor.u32 %v6146_v28, %v6145_v62 }
 0x5db   : > { %v5971_v63 = vsel %vm5907_vm0, %v5875_v0, %v5939_v3  ;;  %v5972_v37 = vsel %vm5908_vm1, %v5876_v59, %v5940_v53  ;;  %v5669_v52 = vadd.f32 %v5584_v1, %v5413_v5 }
 0x5dc   : > { %v15353_v16 = vpack.c.bf16 %v5971_v63, %v5971_v63  ;;  %v15354_v14 = vpack.c.bf16 %v5972_v37, %v5972_v37  ;;  %v6157_v47 = vsel %vm18534_vm11, %v6149_v27, %v6156_v6 }
 0x5dd   : > { %v5877_v15 = vadd.f32 %v5792_v56, %v5669_v52 }
 0x5de   : > { %v6160_v42 = vshrl.u32 %v15353_v16, 16  ;;  %v6168_v36 = vshrl.u32 %v15354_v14, 16  ;;  %v5796_v12 = vpop.permute.xlu0 %5795  ;;  %v5588_v43 = vpop.permute.xlu1 %5587  ;;  %6385 = vrot.lane.b32.xlu1 %v6158_v20, %s18043_s22  ;;  %v6163_v54 = vshll.u32 %v15353_v16, 16  ;;  %v6171_v25 = vshll.u32 %v15354_v14, 16 }
 0x5df   : > { %vm5909_vm5 = vcmp.ge.f32.partialorder %v5877_v15, 0.0  ;;  %v5941_v51 = vmul.f32 0.2, %v5877_v15  ;;  %v5671_v32 = vadd.f32 %v5588_v43, %v5415_v22  ;;  %v5418_v22 = vadd.f32 %v19605_v31, %v19775_v17 }
 0x5e0   : > { %v6162_v24 = vrot.slane %v6160_v42, 7  ;;  %v6170_v7 = vrot.slane %v6168_v36, 7 }
 0x5e1   : > { %v5973_v39 = vsel %vm5909_vm5, %v5877_v15, %v5941_v51  ;;  %v5879_v19 = vadd.f32 %v5796_v12, %v5671_v32 }
 0x5e2   : > { %v15355_v38 = vpack.c.bf16 %v5973_v39, %v5973_v39  ;;  %v5794_v55 = vpop.permute.xlu1 %5793  ;;  %v5586_v26 = vpop.permute.xlu0 %5585  ;;  %6381 = vrot.lane.b32.xlu1 %v6148_v33, %s18043_s22  ;;  %v6165_v35 = vor.u32 %v6163_v54, %v6162_v24  ;;  %v6166_v34 = vrot.slane %v6162_v24, 4  ;;  %v6173_v21 = vor.u32 %v6171_v25, %v6170_v7 }
 0x5e3   : > { %vm5911_vm6 = vcmp.ge.f32.partialorder %v5879_v19, 0.0  ;;  %v5943_v0 = vmul.f32 0.2, %v5879_v19  ;;  %v5670_v59 = vadd.f32 %v5586_v26, %v5414_v45  ;;  %v6175_v56 = vrot.slane %v6170_v7, 4 }
 0x5e4   : > { %6387 = vrot.lane.b32.xlu0 %v6165_v35, %s18043_s22  ;;  %v6177_v5 = vshrl.u32 %v15355_v38, 16  ;;  %v6174_v62 = vsel %vm18534_vm11, %v6166_v34, %v6173_v21  ;;  %v6180_v20 = vshll.u32 %v15355_v38, 16 }
 0x5e5   : > { %v5975_v44 = vsel %vm5911_vm6, %v5879_v19, %v5943_v0  ;;  %v5878_v48 = vadd.f32 %v5794_v55, %v5670_v59 }
 0x5e6   : > { %v5798_v3 = vpop.permute.xlu1 %5797  ;;  %v5590_v53 = vpop.permute.xlu0 %5589  ;;  %6383 = vrot.lane.b32.xlu1 %v6157_v47, %s18043_s22  ;;  %v15357_v6 = vpack.c.bf16 %v5975_v44, %v5975_v44  ;;  %v6179_v63 = vrot.slane %v6177_v5, 7  ;;  %v5417_v47 = vadd.f32 %v19775_v17, %v19611_v50  ;;  %v5420_v44 = vadd.f32 %v19775_v17, %v19629_v8 }
 0x5e7   : > { %vm5910_vm7 = vcmp.ge.f32.partialorder %v5878_v48, 0.0  ;;  %v5942_v1 = vmul.f32 0.2, %v5878_v48  ;;  %v5672_v27 = vadd.f32 %v5590_v53, %v5416_v46  ;;  %v5419_v46 = vadd.f32 %v19775_v17, %v19623_v58 }
 0x5e8   : > { %6391 = vrot.lane.b32.xlu0 %v6175_v56, %s18043_s22  ;;  %v6182_v28 = vor.u32 %v6180_v20, %v6179_v63  ;;  %v6194_v36 = vshrl.u32 %v15357_v6, 16  ;;  %v6183_v25 = vrot.slane %v6179_v63, 4  ;;  %v6197_v59 = vshll.u32 %v15357_v6, 16 }
 0x5e9   : > { %v5974_v37 = vsel %vm5910_vm7, %v5878_v48, %v5942_v1  ;;  %v5880_v52 = vadd.f32 %v5798_v3, %v5672_v27  ;;  %v5421_v6 = vadd.f32 %v19625_v10, %v19775_v17 }
 0x5ea   : > { %v15356_v29 = vpack.c.bf16 %v5974_v37, %v5974_v37  ;;  %v5594_v16 = vpop.permute.xlu1 %5593  ;;  %v5592_v14 = vpop.permute.xlu0 %5591  ;;  %6389 = vrot.lane.b32.xlu1 %v6174_v62, %s18043_s22  ;;  %v6196_v19 = vrot.slane %v6194_v36, 7 }
 0x5eb   : > { %vm5912_vm8 = vcmp.ge.f32.partialorder %v5880_v52, 0.0  ;;  %v5944_v15 = vmul.f32 0.2, %v5880_v52  ;;  %v5674_v43 = vadd.f32 %v5594_v16, %v5418_v22  ;;  %v5673_v51 = vadd.f32 %v5592_v14, %v5417_v47 }
 0x5ec   : > { %v6185_v42 = vshrl.u32 %v15356_v29, 16  ;;  %v6188_v33 = vshll.u32 %v15356_v29, 16  ;;  %v6199_v56 = vor.u32 %v6197_v59, %v6196_v19  ;;  %v6200_v37 = vrot.slane %v6196_v19, 4 }
 0x5ed   : > { %v5976_v12 = vsel %vm5912_vm8, %v5880_v52, %v5944_v15 }
 0x5ee   : > { %v15358_v32 = vpack.c.bf16 %v5976_v12, %v5976_v12  ;;  %v5802_v24 = vpop.permute.xlu1 %5801  ;;  %v5800_v54 = vpop.permute.xlu0 %5799  ;;  %6393 = vrot.lane.b32.xlu1 %v6182_v28, %s18043_s22  ;;  %v6187_v7 = vrot.slane %v6185_v42, 7 }
 0x5ef   : > { %v5882_v45 = vadd.f32 %v5802_v24, %v5674_v43  ;;  %v5881_v31 = vadd.f32 %v5800_v54, %v5673_v51 }
 0x5f0   : > { %v6192_v39 = vrot.slane %v6187_v7, 4  ;;  %v6190_v50 = vor.u32 %v6188_v33, %v6187_v7  ;;  %v6202_v38 = vshrl.u32 %v15358_v32, 16  ;;  %v6205_v5 = vshll.u32 %v15358_v32, 16 }
 0x5f1   : > { %vm5914_vm10 = vcmp.ge.f32.partialorder %v5882_v45, 0.0  ;;  %v5946_v55 = vmul.f32 0.2, %v5882_v45  ;;  %vm5913_vm12 = vcmp.ge.f32.partialorder %v5881_v31, 0.0  ;;  %v5945_v26 = vmul.f32 0.2, %v5881_v31 }
 0x5f2   : > { %v5598_v35 = vpop.permute.xlu1 %5597  ;;  %v5596_v34 = vpop.permute.xlu0 %5595  ;;  %6397 = vrot.lane.b32.xlu0 %v6192_v39, %s18043_s22  ;;  %v6191_v0 = vsel %vm18534_vm11, %v6183_v25, %v6190_v50  ;;  %v6204_v21 = vrot.slane %v6202_v38, 7  ;;  %v5423_v50 = vadd.f32 %v19641_v11, %v19775_v17  ;;  %v5422_v11 = vadd.f32 %v19775_v17, %v19643_v13 }
 0x5f3   : > { %v5978_v48 = vsel %vm5914_vm10, %v5882_v45, %v5946_v55  ;;  %v5977_v62 = vsel %vm5913_vm12, %v5881_v31, %v5945_v26  ;;  %6395 = vrot.lane.b32.xlu1 %v6191_v0, %s18043_s22  ;;  %v5676_v27 = vadd.f32 %v5598_v35, %v5420_v44  ;;  %v5675_v63 = vadd.f32 %v5596_v34, %v5419_v46  ;;  %v19866_v34 = vld [vmem:[#allocation12] sm:$0xff]  }
 0x5f4   : > { %v15360_v3 = vpack.c.bf16 %v5978_v48, %v5978_v48  ;;  %v15359_v53 = vpack.c.bf16 %v5977_v62, %v5977_v62  ;;  %v6207_v1 = vor.u32 %v6205_v5, %v6204_v21  ;;  %v6209_v22 = vrot.slane %v6204_v21, 4  ;;  %16173 = vmatprep.subr.bf16.mxu0 %v19866_v34 }
 0x5f5   : > { %v5424_v13 = vadd.f32 %v19649_v49, %v19775_v17 }
 0x5f6   : > { %v6219_v52 = vshrl.u32 %v15360_v3, 16  ;;  %v6211_v29 = vshrl.u32 %v15359_v53, 16  ;;  %v5804_v58 = vpop.permute.xlu1 %5803  ;;  %v5806_v16 = vpop.permute.xlu0 %5805  ;;  %6399 = vrot.lane.b32.xlu0 %v6199_v56, %s18043_s22  ;;  %v6208_v20 = vsel %vm18534_vm11, %v6200_v37, %v6207_v1  ;;  %v6222_v15 = vshll.u32 %v15360_v3, 16 }
 0x5f7   : > { %v5883_v8 = vadd.f32 %v5804_v58, %v5675_v63  ;;  %v5884_v14 = vadd.f32 %v5806_v16, %v5676_v27  ;;  %v6214_v42 = vshll.u32 %v15359_v53, 16  ;;  %6401 = vrot.lane.b32.xlu1 %v6208_v20, %s18043_s22 }
 0x5f8   : > { %v6221_v47 = vrot.slane %v6219_v52, 7  ;;  %v6213_v28 = vrot.slane %v6211_v29, 7 }
 0x5f9   : > { %vm5915_vm13 = vcmp.ge.f32.partialorder %v5883_v8, 0.0  ;;  %v5947_v10 = vmul.f32 0.2, %v5883_v8  ;;  %vm5916_vm0 = vcmp.ge.f32.partialorder %v5884_v14, 0.0  ;;  %v5948_v36 = vmul.f32 0.2, %v5884_v14 }
 0x5fa   : > { %v5808_v12 = vpop.permute.xlu1 %5807  ;;  %v5600_v43 = vpop.permute.xlu0 %5599  ;;  %6403 = vrot.lane.b32.xlu0 %v6209_v22, %s18043_s22  ;;  %v6216_v51 = vor.u32 %v6214_v42, %v6213_v28  ;;  %v6217_v32 = vrot.slane %v6213_v28, 4  ;;  %v6224_v24 = vor.u32 %v6222_v15, %v6221_v47  ;;  %v6226_v25 = vrot.slane %v6221_v47, 4 }
 0x5fb   : > { %v5979_v54 = vsel %vm5915_vm13, %v5883_v8, %v5947_v10  ;;  %v5980_v7 = vsel %vm5916_vm0, %v5884_v14, %v5948_v36  ;;  %v5677_v33 = vadd.f32 %v5600_v43, %v5421_v6 }
 0x5fc   : > { %v15361_v45 = vpack.c.bf16 %v5979_v54, %v5979_v54  ;;  %v15362_v31 = vpack.c.bf16 %v5980_v7, %v5980_v7  ;;  %6405 = vrot.lane.b32.xlu1 %v6216_v51, %s18043_s22  ;;  %v6225_v39 = vsel %vm18534_vm11, %v6217_v32, %v6224_v24  ;;  %v5426_v32 = vadd.f32 %v19669_v4, %v19775_v17 }
 0x5fd   : > { %v5885_v19 = vadd.f32 %v5808_v12, %v5677_v33  ;;  %v5425_v24 = vadd.f32 %v19775_v17, %v19675_v40 }
 0x5fe   : > { %v6228_v38 = vshrl.u32 %v15361_v45, 16  ;;  %v6236_v55 = vshrl.u32 %v15362_v31, 16  ;;  %v5812_v26 = vpop.permute.xlu0 %5811  ;;  %v5604_v35 = vpop.permute.xlu1 %5603  ;;  %6409 = vrot.lane.b32.xlu0 %v6226_v25, %s18043_s22  ;;  %v6231_v5 = vshll.u32 %v15361_v45, 16  ;;  %v6239_v44 = vshll.u32 %v15362_v31, 16 }
 0x5ff   : > { %vm5917_vm1 = vcmp.ge.f32.partialorder %v5885_v19, 0.0  ;;  %v5949_v0 = vmul.f32 0.2, %v5885_v19  ;;  %v5679_v59 = vadd.f32 %v5604_v35, %v5423_v50 }
 0x600   : > { %v6230_v21 = vrot.slane %v6228_v38, 7  ;;  %v6238_v46 = vrot.slane %v6236_v55, 7  ;;  %6407 = vrot.lane.b32.xlu1 %v6225_v39, %s18043_s22 }
 0x601   : > { %v5981_v48 = vsel %vm5917_vm1, %v5885_v19, %v5949_v0  ;;  %v5887_v62 = vadd.f32 %v5812_v26, %v5679_v59 }
 0x602   : > { %v15363_v3 = vpack.c.bf16 %v5981_v48, %v5981_v48  ;;  %v5810_v53 = vpop.permute.xlu1 %5809  ;;  %v5602_v56 = vpop.permute.xlu0 %5601  ;;  %v6233_v1 = vor.u32 %v6231_v5, %v6230_v21  ;;  %v6234_v27 = vrot.slane %v6230_v21, 4  ;;  %v6241_v63 = vor.u32 %v6239_v44, %v6238_v46 }
 0x603   : > { %vm5919_vm5 = vcmp.ge.f32.partialorder %v5887_v62, 0.0  ;;  %v5951_v37 = vmul.f32 0.2, %v5887_v62  ;;  %v5678_v6 = vadd.f32 %v5602_v56, %v5422_v11  ;;  %v6243_v20 = vrot.slane %v6238_v46, 4 }
 0x604   : > { %6411 = vrot.lane.b32.xlu0 %v6233_v1, %s18043_s22  ;;  %v6242_v52 = vsel %vm18534_vm11, %v6234_v27, %v6241_v63  ;;  %v6245_v29 = vshrl.u32 %v15363_v3, 16  ;;  %v6248_v47 = vshll.u32 %v15363_v3, 16  ;;  %v5427_v56 = vadd.f32 %v19775_v17, %v19695_v60 }
 0x605   : > { %v5983_v58 = vsel %vm5919_vm5, %v5887_v62, %v5951_v37  ;;  %v5886_v16 = vadd.f32 %v5810_v53, %v5678_v6  ;;  %6413 = vrot.lane.b32.xlu1 %v6242_v52, %s18043_s22  ;;  %v5428_v1 = vadd.f32 %v19775_v17, %v19701_v30 }
 0x606   : > { %v5814_v8 = vpop.permute.xlu1 %5813  ;;  %v5606_v14 = vpop.permute.xlu0 %5605  ;;  %v6247_v22 = vrot.slane %v6245_v29, 7  ;;  %v15365_v42 = vpack.c.bf16 %v5983_v58, %v5983_v58 }
 0x607   : > { %vm5918_vm6 = vcmp.ge.f32.partialorder %v5886_v16, 0.0  ;;  %v5950_v15 = vmul.f32 0.2, %v5886_v16  ;;  %v5680_v28 = vadd.f32 %v5606_v14, %v5424_v13 }
 0x608   : > { %6415 = vrot.lane.b32.xlu0 %v6243_v20, %s18043_s22  ;;  %v6250_v10 = vor.u32 %v6248_v47, %v6247_v22  ;;  %v6262_v33 = vshrl.u32 %v15365_v42, 16  ;;  %v6251_v0 = vrot.slane %v6247_v22, 4  ;;  %v6265_v62 = vshll.u32 %v15365_v42, 16 }
 0x609   : > { %v5982_v36 = vsel %vm5918_vm6, %v5886_v16, %v5950_v15  ;;  %v5888_v12 = vadd.f32 %v5814_v8, %v5680_v28  ;;  %v5429_v8 = vadd.f32 %v19697_v2, %v19775_v17 }
 0x60a   : > { %v15364_v43 = vpack.c.bf16 %v5982_v36, %v5982_v36  ;;  %v5610_v49 = vpop.permute.xlu1 %5609  ;;  %v5608_v51 = vpop.permute.xlu0 %5607  ;;  %6417 = vrot.lane.b32.xlu1 %v6250_v10, %s18043_s22  ;;  %v6264_v21 = vrot.slane %v6262_v33, 7 }
 0x60b   : > { %vm5920_vm7 = vcmp.ge.f32.partialorder %v5888_v12, 0.0  ;;  %v5952_v54 = vmul.f32 0.2, %v5888_v12  ;;  %v5682_v31 = vadd.f32 %v5610_v49, %v5426_v32  ;;  %v5681_v25 = vadd.f32 %v5608_v51, %v5425_v24 }
 0x60c   : > { %v6253_v7 = vshrl.u32 %v15364_v43, 16  ;;  %v6256_v55 = vshll.u32 %v15364_v43, 16  ;;  %v6267_v52 = vor.u32 %v6265_v62, %v6264_v21  ;;  %v6268_v16 = vrot.slane %v6264_v21, 4 }
 0x60d   : > { %v5984_v45 = vsel %vm5920_vm7, %v5888_v12, %v5952_v54  ;;  %vm6507_vm7 = vcmask 126048  }
 0x60e   : > { %v15366_v39 = vpack.c.bf16 %v5984_v45, %v5984_v45  ;;  %v5818_v50 = vpop.permute.xlu1 %5817  ;;  %v5816_v19 = vpop.permute.xlu0 %5815  ;;  %v6255_v38 = vrot.slane %v6253_v7, 7 }
 0x60f   : > { %v5890_v26 = vadd.f32 %v5818_v50, %v5682_v31  ;;  %v5889_v35 = vadd.f32 %v5816_v19, %v5681_v25 }
 0x610   : > { %v6260_v59 = vrot.slane %v6255_v38, 4  ;;  %v6258_v4 = vor.u32 %v6256_v55, %v6255_v38  ;;  %v6270_v5 = vshrl.u32 %v15366_v39, 16  ;;  %v6273_v53 = vshll.u32 %v15366_v39, 16 }
 0x611   : > { %vm5922_vm8 = vcmp.ge.f32.partialorder %v5890_v26, 0.0  ;;  %v5954_v40 = vmul.f32 0.2, %v5890_v26  ;;  %vm5921_vm10 = vcmp.ge.f32.partialorder %v5889_v35, 0.0  ;;  %v5953_v46 = vmul.f32 0.2, %v5889_v35 }
 0x612   : > { %v5614_v44 = vpop.permute.xlu1 %5613  ;;  %v5612_v11 = vpop.permute.xlu0 %5611  ;;  %6421 = vrot.lane.b32.xlu0 %v6260_v59, %s18043_s22  ;;  %v6259_v48 = vsel %vm18534_vm11, %v6251_v0, %v6258_v4  ;;  %v6272_v3 = vrot.slane %v6270_v5, 7  ;;  %v5431_v0 = vadd.f32 %v19713_v61, %v19775_v17  ;;  %v5430_v59 = vadd.f32 %v19775_v17, %v19715_v23 }
 0x613   : > { %v5986_v27 = vsel %vm5922_vm8, %v5890_v26, %v5954_v40  ;;  %v5985_v63 = vsel %vm5921_vm10, %v5889_v35, %v5953_v46  ;;  %6419 = vrot.lane.b32.xlu1 %v6259_v48, %s18043_s22  ;;  %v5684_v13 = vadd.f32 %v5614_v44, %v5428_v1  ;;  %v5683_v58 = vadd.f32 %v5612_v11, %v5427_v56  ;;  %vm19925_vm8 = vmand %vm6507_vm7, %vm607_vm4 }
 0x614   : > { %v15368_v37 = vpack.c.bf16 %v5986_v27, %v5986_v27  ;;  %v15367_v6 = vpack.c.bf16 %v5985_v63, %v5985_v63  ;;  %v6275_v29 = vor.u32 %v6273_v53, %v6272_v3  ;;  %v6277_v28 = vrot.slane %v6272_v3, 4 }
 0x615   : > { %vm6513_vm10 = vcmask 122976  }
 0x616   : > { %v6287_v14 = vshrl.u32 %v15368_v37, 16  ;;  %v6279_v20 = vshrl.u32 %v15367_v6, 16  ;;  %v5822_v60 = vpop.permute.xlu1 %5821  ;;  %v5820_v22 = vpop.permute.xlu0 %5819  ;;  %6423 = vrot.lane.b32.xlu0 %v6267_v52, %s18043_s22  ;;  %v6276_v15 = vsel %vm18534_vm11, %v6268_v16, %v6275_v29  ;;  %v6290_v10 = vshll.u32 %v15368_v37, 16 }
 0x617   : > { %v5892_v30 = vadd.f32 %v5822_v60, %v5684_v13  ;;  %v5891_v47 = vadd.f32 %v5820_v22, %v5683_v58  ;;  %v6282_v12 = vshll.u32 %v15367_v6, 16  ;;  %6425 = vrot.lane.b32.xlu1 %v6276_v15, %s18043_s22 }
 0x618   : > { %v6289_v42 = vrot.slane %v6287_v14, 7  ;;  %v6281_v36 = vrot.slane %v6279_v20, 7 }
 0x619   : > { %vm5924_vm12 = vcmp.ge.f32.partialorder %v5892_v30, 0.0  ;;  %v5956_v2 = vmul.f32 0.2, %v5892_v30  ;;  %vm5923_vm13 = vcmp.ge.f32.partialorder %v5891_v47, 0.0  ;;  %v5955_v43 = vmul.f32 0.2, %v5891_v47 }
 0x61a   : > { %v5824_v49 = vpop.permute.xlu1 %5823  ;;  %v5616_v51 = vpop.permute.xlu0 %5615  ;;  %6427 = vrot.lane.b32.xlu0 %v6277_v28, %s18043_s22  ;;  %v6284_v32 = vor.u32 %v6282_v12, %v6281_v36  ;;  %v6285_v24 = vrot.slane %v6281_v36, 4  ;;  %v6292_v54 = vor.u32 %v6290_v10, %v6289_v42  ;;  %v6294_v39 = vrot.slane %v6289_v42, 4 }
 0x61b   : > { %v5988_v7 = vsel %vm5924_vm12, %v5892_v30, %v5956_v2  ;;  %v5987_v33 = vsel %vm5923_vm13, %v5891_v47, %v5955_v43  ;;  %v5685_v45 = vadd.f32 %v5616_v51, %v5429_v8  ;;  %v5432_v8 = vadd.f32 %v19721_v57, %v19775_v17  ;;  %vm19936_vm12 = vmand %vm6513_vm10, %vm550_vm2 }
 0x61c   : > { %v15370_v31 = vpack.c.bf16 %v5988_v7, %v5988_v7  ;;  %v15369_v25 = vpack.c.bf16 %v5987_v33, %v5987_v33  ;;  %6429 = vrot.lane.b32.xlu1 %v6284_v32, %s18043_s22  ;;  %v6293_v50 = vsel %vm18534_vm11, %v6285_v24, %v6292_v54  ;;  %vm6850_vm13 = vcmask 130048  }
 0x61d   : > { %v5893_v19 = vadd.f32 %v5824_v49, %v5685_v45 }
 0x61e   : > { %v6304_v38 = vshrl.u32 %v15370_v31, 16  ;;  %v6296_v55 = vshrl.u32 %v15369_v25, 16  ;;  %v5620_v26 = vpop.permute.xlu1 %5619  ;;  %v5618_v35 = vpop.permute.xlu0 %5617  ;;  %6433 = vrot.lane.b32.xlu0 %v6294_v39, %s18043_s22  ;;  %v6307_v5 = vshll.u32 %v15370_v31, 16  ;;  %v6299_v46 = vshll.u32 %v15369_v25, 16 }
 0x61f   : > { %vm5925_vm0 = vcmp.ge.f32.partialorder %v5893_v19, 0.0  ;;  %v5957_v4 = vmul.f32 0.2, %v5893_v19  ;;  %v5687_v11 = vadd.f32 %v5620_v26, %v5431_v0  ;;  %v5686_v48 = vadd.f32 %v5618_v35, %v5430_v59  ;;  %v17620_v0 = vld [vmem:[#allocation2 + $0xc] sm:$0xf] }
 0x620   : > { %v6306_v21 = vrot.slane %v6304_v38, 7  ;;  %v6298_v40 = vrot.slane %v6296_v55, 7  ;;  %6431 = vrot.lane.b32.xlu1 %v6293_v50, %s18043_s22 }
 0x621   : > { %v5989_v44 = vsel %vm5925_vm0, %v5893_v19, %v5957_v4 }
 0x622   : > { %v15371_v62 = vpack.c.bf16 %v5989_v44, %v5989_v44  ;;  %v5828_v3 = vpop.permute.xlu1 %5827  ;;  %v5826_v53 = vpop.permute.xlu0 %5825  ;;  %v6301_v56 = vor.u32 %v6299_v46, %v6298_v40  ;;  %v6302_v1 = vrot.slane %v6298_v40, 4  ;;  %v6309_v61 = vor.u32 %v6307_v5, %v6306_v21  ;;  %v6515_v40 = vld [vmem:[#allocation2 + $0x14] sm:$0x1] }
 0x623   : > { %v5895_v27 = vadd.f32 %v5828_v3, %v5687_v11  ;;  %v5894_v63 = vadd.f32 %v5826_v53, %v5686_v48  ;;  %v6311_v13 = vrot.slane %v6306_v21, 4  ;;  %v6518_v11 = vld [vmem:[#allocation2 + $0x18] sm:$0xf] }
 0x624   : > { %6435 = vrot.lane.b32.xlu0 %v6301_v56, %s18043_s22  ;;  %v6310_v23 = vsel %vm18534_vm11, %v6302_v1, %v6309_v61  ;;  %v6313_v37 = vshrl.u32 %v15371_v62, 16  ;;  %v6316_v16 = vshll.u32 %v15371_v62, 16  ;;  %v5433_v62 = vadd.f32 %v19775_v17, %v19745_v18 }
 0x625   : > { %vm5927_vm1 = vcmp.ge.f32.partialorder %v5895_v27, 0.0  ;;  %v5959_v6 = vmul.f32 0.2, %v5895_v27  ;;  %vm5926_vm5 = vcmp.ge.f32.partialorder %v5894_v63, 0.0  ;;  %v5958_v52 = vmul.f32 0.2, %v5894_v63  ;;  %6437 = vrot.lane.b32.xlu1 %v6310_v23, %s18043_s22 }
 0x626   : > { %v5622_v29 = vpop.permute.xlu0 %5621  ;;  %v6315_v58 = vrot.slane %v6313_v37, 7  ;;  %v19920_v33 = vpop.permute.xlu1 %5625  ;;  %v6522_v37 = vld [vmem:[#allocation2 + $0x20] sm:$0x1] }
 0x627   : > { %v5991_v14 = vsel %vm5927_vm1, %v5895_v27, %v5959_v6  ;;  %v5990_v20 = vsel %vm5926_vm5, %v5894_v63, %v5958_v52  ;;  %v5688_v47 = vadd.f32 %v5622_v29, %v5432_v8  ;;  %v6525_v52 = vld [vmem:[#allocation2 + $0x24] sm:$0xf] }
 0x628   : > { %v15373_v60 = vpack.c.bf16 %v5991_v14, %v5991_v14  ;;  %v15372_v22 = vpack.c.bf16 %v5990_v20, %v5990_v20  ;;  %6439 = vrot.lane.b32.xlu0 %v6311_v13, %s18043_s22  ;;  %v6318_v30 = vor.u32 %v6316_v16, %v6315_v58  ;;  %v6319_v49 = vrot.slane %v6315_v58, 4  ;;  %v6529_v20 = vld [vmem:[#allocation2 + $0x2c] sm:$0x1] }
 0x62a   : > { %v6330_v15 = vshrl.u32 %v15373_v60, 16  ;;  %v6321_v28 = vshrl.u32 %v15372_v22, 16  ;;  %v5830_v42 = vpop.permute.xlu0 %5829  ;;  %6441 = vrot.lane.b32.xlu1 %v6318_v30, %s18043_s22  ;;  %v6324_v12 = vshll.u32 %v15372_v22, 16  ;;  %v6333_v24 = vshll.u32 %v15373_v60, 16  ;;  %v17621_v22 = vld [vmem:[#allocation11] ss:$0 sm:$0xff] }
 0x62b   : > { %v5896_v10 = vadd.f32 %v5830_v42, %v5688_v47  ;;  %v5434_v30 = vadd.f32 %v17621_v22, %v19739_v9 }
 0x62c   : > { %v6323_v36 = vrot.slane %v6321_v28, 7  ;;  %v6332_v43 = vrot.slane %v6330_v15, 7 }
 0x62d   : > { %vm5928_vm6 = vcmp.ge.f32.partialorder %v5896_v10, 0.0  ;;  %v5960_v2 = vmul.f32 0.2, %v5896_v10  ;;  %v5690_v42 = vadd.f32 %v19920_v33, %v5434_v30 }
 0x62e   : > { %v6328_v57 = vrot.slane %v6323_v36, 4  ;;  %v6326_v51 = vor.u32 %v6324_v12, %v6323_v36  ;;  %v6335_v31 = vor.u32 %v6333_v24, %v6332_v43  ;;  %v5624_v25 = vpop.permute.xlu0 %5623  ;;  %v6336_v26 = vrot.slane %v6332_v43, 4 }
 0x62f   : > { %v5992_v32 = vsel %vm5928_vm6, %v5896_v10, %v5960_v2  ;;  %v5689_v53 = vadd.f32 %v5624_v25, %v5433_v62 }
 0x630   : > { %v15374_v54 = vpack.c.bf16 %v5992_v32, %v5992_v32  ;;  %6445 = vrot.lane.b32.xlu0 %v6328_v57, %s18043_s22  ;;  %v6327_v7 = vsel %vm18534_vm11, %v6319_v49, %v6326_v51 }
 0x631   : > { %6443 = vrot.lane.b32.xlu1 %v6327_v7, %s18043_s22 }
 0x632   : > { %v6338_v45 = vshrl.u32 %v15374_v54, 16  ;;  %v6341_v50 = vshll.u32 %v15374_v54, 16  ;;  %v6532_v54 = vld [vmem:[#allocation2 + $0x30] sm:$0xf] }
 0x634   : > { %v6340_v39 = vrot.slane %v6338_v45, 7  ;;  %6447 = vrot.lane.b32.xlu0 %v6335_v31, %s18043_s22 }
 0x636   : > { %v6364_v38 = vpop.permute.xlu1 %6363  ;;  %v6345_v55 = vrot.slane %v6340_v39, 4  ;;  %v6343_v35 = vor.u32 %v6341_v50, %v6340_v39  ;;  %v6539_v39 = vld [vmem:[#allocation2 + $0x3c] sm:$0xf] }
 0x637   : > { %v6509_v59 = vsel %vm19925_vm8, %v6364_v38, %v17620_v0  ;;  %v6366_v4 = vpop.permute.xlu0 %6365 }
 0x638   : > { %6510 = vst [vmem:[#allocation2 + $0xc] sm:$0xf] %v6509_v59  ;;  %6512 = vst.msk [vmem:[#allocation2 + $0x10] sm:$0xf] %vm6507_vm7, %v6366_v4  ;;  %6451 = vrot.lane.b32.xlu0 %v6345_v55, %s18043_s22  ;;  %v6344_v21 = vsel %vm18534_vm11, %v6336_v26, %v6343_v35  ;;  %v19969_v59 = vld [vmem:[#allocation12 + $0x10] sm:$0xff]  }
 0x639   : > { %6449 = vrot.lane.b32.xlu1 %v6344_v21, %s18043_s22  ;;  %v6543_v4 = vld [vmem:[#allocation2 + $0x44] sm:$0x1] }
 0x63a   : > { %v6368_v46 = vpop.permute.xlu1 %6367 }
 0x63b   : > { %v6516_v44 = vsel %vm19936_vm12, %v6368_v46, %v6515_v40 }
 0x63c   : > { %6517 = vst [vmem:[#allocation2 + $0x14] sm:$0x1] %v6516_v44  ;;  %v6370_v48 = vpop.permute.xlu0 %6369 }
 0x63d   : > { %v6519_v3 = vsel %vm19925_vm8, %v6370_v48, %v6518_v11  ;;  %v6546_v48 = vld [vmem:[#allocation2 + $0x48] sm:$0xf] }
 0x63e   : > { %6520 = vst [vmem:[#allocation2 + $0x18] sm:$0xf] %v6519_v3 }
 0x63f   : > { %v6673_v56 = vld [vmem:[#allocation2 + $0xc] sm:$0xf]  ;;  %v6674_v1 = vld [vmem:[#allocation2 + $0x10] sm:$0xf] }
 0x640   : > { %v5832_v61 = vpop.permute.xlu0 %5831  ;;  %v14761_v27 = vcombine.low %v6673_v56, %v6674_v1  ;;  %v6550_v56 = vld [vmem:[#allocation2 + $0x50] sm:$0x1]  ;;  %v17415_v19 = vld [vmem:[#allocation2 + $0x8] sm:$0xff]  }
 0x641   : > { %v5897_v63 = vadd.f32 %v5832_v61, %v5689_v53 }
 0x642   : > { %16125 = vmatprep.mubr.msk.bf16.mxu0 %vm6850_vm13, %v14761_v27 }
 0x643   : > { %vm5929_vm0 = vcmp.ge.f32.partialorder %v5897_v63, 0.0  ;;  %v5961_v23 = vmul.f32 0.2, %v5897_v63 }
 0x644   : > { %v6374_v6 = vpop.permute.xlu1 %6373  ;;  %v6376_v29 = vpop.permute.xlu0 %6375 }
 0x645   : > { %v5993_v18 = vsel %vm5929_vm0, %v5897_v63, %v5961_v23  ;;  %v6523_v17 = vsel %vm19936_vm12, %v6374_v6, %v6522_v37  ;;  %v6526_v13 = vsel %vm19925_vm8, %v6376_v29, %v6525_v52  ;;  %v17389_v58 = vld [vmem:[#allocation2 + $0x14] sm:$0xff]  }
 0x646   : > { %v15375_v16 = vpack.c.bf16 %v5993_v18, %v5993_v18  ;;  %6524 = vst [vmem:[#allocation2 + $0x20] sm:$0x1] %v6523_v17  ;;  %6527 = vst [vmem:[#allocation2 + $0x24] sm:$0xf] %v6526_v13  ;;  %16126 = vmatmul.mubr.msk.bf16.vlgmr.msra.gmra.mrb[48].mxu0 %vm6850_vm13, %v17389_v58  ;;  %v6553_v23 = vld [vmem:[#allocation2 + $0x54] sm:$0xf] }
 0x647   : > { %16174 = vmatpush3.bf16.msra.mxu0 %v19866_v34  ;;  %v6536_v34 = vld [vmem:[#allocation2 + $0x38] sm:$0x1]  ;;  %v6557_v18 = vld [vmem:[#allocation2 + $0x5c] sm:$0x1] }
 0x648   : > { %v6347_v8 = vshrl.u32 %v15375_v16, 16  ;;  %v6372_v14 = vpop.permute.xlu1 %6371  ;;  %v6380_v60 = vpop.permute.xlu0 %6379  ;;  %v6350_v28 = vshll.u32 %v15375_v16, 16  ;;  %16223 = vmatprep.subr.bf16.mxu0 %v19969_v59  ;;  %v6560_v16 = vld [vmem:[#allocation2 + $0x60] sm:$0xf] }
 0x649   : > { %6521 = vst.msk [vmem:[#allocation2 + $0x1c] sm:$0xf] %vm6507_vm7, %v6372_v14  ;;  %v6530_v47 = vsel %vm19936_vm12, %v6380_v60, %v6529_v20  ;;  %v6564_v20 = vld [vmem:[#allocation2 + $0x68] sm:$0x1] }
 0x64a   : > { %v6349_v15 = vrot.slane %v6347_v8, 7  ;;  %6531 = vst [vmem:[#allocation2 + $0x2c] sm:$0x1] %v6530_v47 }
 0x64c   : > { %v6378_v10 = vpop.permute.xlu1 %6377  ;;  %v5834_v36 = vpop.permute.xlu0 %5833  ;;  %v6352_v12 = vor.u32 %v6350_v28, %v6349_v15  ;;  %v6353_v35 = vrot.slane %v6349_v15, 4  ;;  %v6567_v15 = vld [vmem:[#allocation2 + $0x6c] sm:$0xf] }
 0x64d   : > { %6528 = vst.msk [vmem:[#allocation2 + $0x28] sm:$0xf] %vm6507_vm7, %v6378_v10  ;;  %v5898_v2 = vadd.f32 %v5834_v36, %v5690_v42 }
 0x64e   : > { %6453 = vrot.lane.b32.xlu1 %v6352_v12, %s18043_s22  ;;  %v6571_v12 = vld [vmem:[#allocation2 + $0x74] sm:$0x1] }
 0x64f   : > { %vm5930_vm1 = vcmp.ge.f32.partialorder %v5898_v2, 0.0  ;;  %v5962_v9 = vmul.f32 0.2, %v5898_v2 }
 0x650   : > { %v6386_v43 = vpop.permute.xlu1 %6385  ;;  %v17390_v57 = vld [vmem:[#allocation2 + $0x1c] sm:$0xff]  }
 0x651   : > { %v5994_v49 = vsel %vm5930_vm1, %v5898_v2, %v5962_v9  ;;  %v6537_v51 = vsel %vm19936_vm12, %v6386_v43, %v6536_v34  ;;  %16129 = vmatprep.mubr.msk.bf16.mxu0 %vm6850_vm13, %v17390_v57  ;;  %v6574_v43 = vld [vmem:[#allocation2 + $0x78] sm:$0xf] }
 0x652   : > { %v15376_v32 = vpack.c.bf16 %v5994_v49, %v5994_v49  ;;  %6538 = vst [vmem:[#allocation2 + $0x38] sm:$0x1] %v6537_v51  ;;  %v17417_v5 = vld [vmem:[#allocation2 + $0x18] sm:$0xff]  }
 0x654   : > { %v6355_v24 = vshrl.u32 %v15376_v32, 16  ;;  %v6382_v7 = vpop.permute.xlu1 %6381  ;;  %v17391_v33 = vld [vmem:[#allocation2 + $0x24] sm:$0xff]   ;;  %v6358_v25 = vshll.u32 %v15376_v32, 16  ;;  %v6578_v32 = vld [vmem:[#allocation2 + $0x80] sm:$0x1] }
 0x655   : > { %v6533_v45 = vsel %vm19925_vm8, %v6382_v7, %v6532_v54  ;;  %16130 = vmatmul.mubr.msk.bf16.gmra.mrb[52].mxu0 %vm6850_vm13, %v17391_v33 }
 0x656   : > { %v6357_v31 = vrot.slane %v6355_v24, 7  ;;  %6534 = vst [vmem:[#allocation2 + $0x30] sm:$0xf] %v6533_v45  ;;  %v6388_v50 = vpop.permute.xlu0 %6387  ;;  %v6581_v45 = vld [vmem:[#allocation2 + $0x84] sm:$0xf] }
 0x657   : > { %v6540_v38 = vsel %vm19925_vm8, %v6388_v50, %v6539_v39  ;;  %v6585_v50 = vld [vmem:[#allocation2 + $0x8c] sm:$0x1] }
 0x658   : > { %6541 = vst [vmem:[#allocation2 + $0x3c] sm:$0xf] %v6540_v38  ;;  %v6384_v55 = vpop.permute.xlu1 %6383  ;;  %v6362_v26 = vrot.slane %v6357_v31, 4  ;;  %v6360_v0 = vor.u32 %v6358_v25, %v6357_v31 }
 0x659   : > { %6535 = vst.msk [vmem:[#allocation2 + $0x34] sm:$0xf] %vm6507_vm7, %v6384_v55 }
 0x65a   : > { %6457 = vrot.lane.b32.xlu0 %v6362_v26, %s18043_s22  ;;  %v6392_v21 = vpop.permute.xlu0 %6391  ;;  %v6361_v40 = vsel %vm18534_vm11, %v6353_v35, %v6360_v0  ;;  %v6588_v35 = vld [vmem:[#allocation2 + $0x90] sm:$0xf] }
 0x65b   : > { %v6544_v46 = vsel %vm19936_vm12, %v6392_v21, %v6543_v4  ;;  %6455 = vrot.lane.b32.xlu1 %v6361_v40, %s18043_s22  ;;  %v6592_v21 = vld [vmem:[#allocation2 + $0x98] sm:$0x1]  ;;  %s21884_s22 = sld [smem:[#allocation35_spill]] }
 0x65c   : > { %6545 = vst [vmem:[#allocation2 + $0x44] sm:$0x1] %v6544_v46  ;;  %v6390_v44 = vpop.permute.xlu1 %6389 }
 0x65d   : > { %6542 = vst.msk [vmem:[#allocation2 + $0x40] sm:$0xf] %vm6507_vm7, %v6390_v44  ;;  %v17392_v11 = vld [vmem:[#allocation2 + $0x2c] sm:$0xff]  }
 0x65e   : > { %16133 = vmatprep.mubr.msk.bf16.mxu0 %vm6850_vm13, %v17392_v11 }
 0x660   : > { %v6394_v62 = vpop.permute.xlu1 %6393  ;;  %v17393_v3 = vld [vmem:[#allocation2 + $0x34] sm:$0xff]  }
 0x661   : > { %v6547_v53 = vsel %vm19925_vm8, %v6394_v62, %v6546_v48  ;;  %16134 = vmatmul.mubr.msk.bf16.gmra.mrb[56].mxu0 %vm6850_vm13, %v17393_v3  ;;  %v6595_v48 = vld [vmem:[#allocation2 + $0x9c] sm:$0xf] }
 0x662   : > { %6548 = vst [vmem:[#allocation2 + $0x48] sm:$0xf] %v6547_v53 }
 0x664   : > { %v6398_v1 = vpop.permute.xlu0 %6397  ;;  %v17394_v61 = vld [vmem:[#allocation2 + $0x3c] sm:$0xff]  }
 0x665   : > { %v6551_v27 = vsel %vm19936_vm12, %v6398_v1, %v6550_v56  ;;  %v6396_v63 = vpop.permute.xlu1 %6395  ;;  %16137 = vmatprep.mubr.msk.bf16.mxu0 %vm6850_vm13, %v17394_v61  ;;  %v6599_v1 = vld [vmem:[#allocation2 + $0xa4] sm:$0x1] }
 0x666   : > { %6552 = vst [vmem:[#allocation2 + $0x50] sm:$0x1] %v6551_v27  ;;  %6549 = vst.msk [vmem:[#allocation2 + $0x4c] sm:$0xf] %vm6507_vm7, %v6396_v63 }
 0x668   : > { %v6400_v37 = vpop.permute.xlu0 %6399 }
 0x669   : > { %v6554_v6 = vsel %vm19925_vm8, %v6400_v37, %v6553_v23  ;;  %v17395_v52 = vld [vmem:[#allocation2 + $0x44] sm:$0xff]   ;;  %v6402_v29 = vpop.permute.xlu1 %6401 }
 0x66a   : > { %6555 = vst [vmem:[#allocation2 + $0x54] sm:$0xf] %v6554_v6  ;;  %6556 = vst.msk [vmem:[#allocation2 + $0x58] sm:$0xf] %vm6507_vm7, %v6402_v29  ;;  %16138 = vmatmul.mubr.msk.bf16.gmra.mrb[60].mxu0 %vm6850_vm13, %v17395_v52  ;;  %v6602_v23 = vld [vmem:[#allocation2 + $0xa8] sm:$0xf] }
 0x66b   : > { %v6606_v29 = vld [vmem:[#allocation2 + $0xb0] sm:$0x1] }
 0x66c   : > { %v6404_v17 = vpop.permute.xlu0 %6403 }
 0x66d   : > { %v6558_v13 = vsel %vm19936_vm12, %v6404_v17, %v6557_v18  ;;  %v17396_v58 = vld [vmem:[#allocation2 + $0x4c] sm:$0xff]  }
 0x66e   : > { %6559 = vst [vmem:[#allocation2 + $0x5c] sm:$0x1] %v6558_v13  ;;  %v6406_v8 = vpop.permute.xlu1 %6405  ;;  %16141 = vmatprep.mubr.msk.bf16.mxu0 %vm6850_vm13, %v17396_v58 }
 0x66f   : > { %v6561_v14 = vsel %vm19925_vm8, %v6406_v8, %v6560_v16  ;;  %v6609_v16 = vld [vmem:[#allocation2 + $0xb4] sm:$0xf] }
 0x670   : > { %6562 = vst [vmem:[#allocation2 + $0x60] sm:$0xf] %v6561_v14  ;;  %v6410_v60 = vpop.permute.xlu0 %6409 }
 0x671   : > { %v6565_v22 = vsel %vm19936_vm12, %v6410_v60, %v6564_v20  ;;  %v17397_v47 = vld [vmem:[#allocation2 + $0x54] sm:$0xff]   ;;  %v6613_v20 = vld [vmem:[#allocation2 + $0xbc] sm:$0x1] }
 0x672   : > { %6566 = vst [vmem:[#allocation2 + $0x68] sm:$0x1] %v6565_v22  ;;  %v6408_v30 = vpop.permute.xlu1 %6407  ;;  %16142 = vmatmul.mubr.msk.bf16.gmra.mrb[64].mxu0 %vm6850_vm13, %v17397_v47 }
 0x673   : > { %6563 = vst.msk [vmem:[#allocation2 + $0x64] sm:$0xf] %vm6507_vm7, %v6408_v30 }
 0x676   : > { %v6412_v28 = vpop.permute.xlu0 %6411 }
 0x677   : > { %v6568_v42 = vsel %vm19925_vm8, %v6412_v28, %v6567_v15  ;;  %v6414_v10 = vpop.permute.xlu1 %6413  ;;  %v17398_v36 = vld [vmem:[#allocation2 + $0x5c] sm:$0xff]  }
 0x678   : > { %6569 = vst [vmem:[#allocation2 + $0x6c] sm:$0xf] %v6568_v42  ;;  %6570 = vst.msk [vmem:[#allocation2 + $0x70] sm:$0xf] %vm6507_vm7, %v6414_v10  ;;  %16145 = vmatprep.mubr.msk.bf16.mxu0 %vm6850_vm13, %v17398_v36  ;;  %v6616_v28 = vld [vmem:[#allocation2 + $0xc0] sm:$0xf] }
 0x67a   : > { %v6416_v2 = vpop.permute.xlu0 %6415  ;;  %v17399_v34 = vld [vmem:[#allocation2 + $0x64] sm:$0xff]  }
 0x67b   : > { %v6572_v9 = vsel %vm19936_vm12, %v6416_v2, %v6571_v12  ;;  %16146 = vmatmul.mubr.msk.bf16.gmra.mrb[68].mxu0 %vm6850_vm13, %v17399_v34  ;;  %v6620_v12 = vld [vmem:[#allocation2 + $0xc8] sm:$0x1] }
 0x67c   : > { %6573 = vst [vmem:[#allocation2 + $0x74] sm:$0x1] %v6572_v9  ;;  %v6418_v57 = vpop.permute.xlu1 %6417 }
 0x67d   : > { %v6575_v49 = vsel %vm19925_vm8, %v6418_v57, %v6574_v43  ;;  %v17413_v43 = vld [vmem:[#allocation2] sm:$0xff]  }
 0x67e   : > { %6576 = vst [vmem:[#allocation2 + $0x78] sm:$0xf] %v6575_v49  ;;  %v17416_v49 = vld [vmem:[#allocation2 + $0x10] sm:$0xff]  }
 0x67f   : > { %v17401_v51 = vld [vmem:[#allocation2 + $0x6c] sm:$0xff]  }
 0x680   : > { %16149 = vmatprep.mubr.msk.bf16.mxu0 %vm6850_vm13, %v17401_v51  ;;  %v17418_v51 = vld [vmem:[#allocation2 + $0x20] sm:$0xff]  }
 0x684   : > { %v6422_v24 = vpop.permute.xlu0 %6421 }
 0x685   : > { %v6579_v54 = vsel %vm19936_vm12, %v6422_v24, %v6578_v32  ;;  %v6420_v7 = vpop.permute.xlu1 %6419  ;;  %v17402_v33 = vld [vmem:[#allocation2 + $0x74] sm:$0xff]   ;;  %v17419_v32 = vld [vmem:[#allocation2 + $0x28] sm:$0xff]  }
 0x686   : > { %6580 = vst [vmem:[#allocation2 + $0x80] sm:$0x1] %v6579_v54  ;;  %6577 = vst.msk [vmem:[#allocation2 + $0x7c] sm:$0xf] %vm6507_vm7, %v6420_v7  ;;  %16150 = vmatmul.mubr.msk.bf16.gmra.mrb[72].mxu0 %vm6850_vm13, %v17402_v33  ;;  %v17420_v24 = vld [vmem:[#allocation2 + $0x30] sm:$0xff]   ;;  %v17421_v54 = vld [vmem:[#allocation2 + $0x38] sm:$0xff]  }
 0x687   : > { %v17422_v7 = vld [vmem:[#allocation2 + $0x40] sm:$0xff]   ;;  %v17424_v33 = vld [vmem:[#allocation2 + $0x50] sm:$0xff]  }
 0x688   : > { %v6424_v31 = vpop.permute.xlu0 %6423 }
 0x689   : > { %v6582_v25 = vsel %vm19925_vm8, %v6424_v31, %v6581_v45  ;;  %v6426_v39 = vpop.permute.xlu1 %6425  ;;  %v17425_v45 = vld [vmem:[#allocation2 + $0x58] sm:$0xff]   ;;  %v17426_v31 = vld [vmem:[#allocation2 + $0x60] sm:$0xff]  }
 0x68a   : > { %6583 = vst [vmem:[#allocation2 + $0x84] sm:$0xf] %v6582_v25  ;;  %6584 = vst.msk [vmem:[#allocation2 + $0x88] sm:$0xf] %vm6507_vm7, %v6426_v39  ;;  %v17427_v25 = vld [vmem:[#allocation2 + $0x68] sm:$0xff]   ;;  %v17428_v39 = vld [vmem:[#allocation2 + $0x70] sm:$0xff]  }
 0x68c   : > { %v6428_v38 = vpop.permute.xlu0 %6427 }
 0x68d   : > { %v6586_v55 = vsel %vm19936_vm12, %v6428_v38, %v6585_v50  ;;  %v17403_v26 = vld [vmem:[#allocation2 + $0x7c] sm:$0xff]  }
 0x68e   : > { %6587 = vst [vmem:[#allocation2 + $0x8c] sm:$0x1] %v6586_v55  ;;  %v6430_v0 = vpop.permute.xlu1 %6429  ;;  %16153 = vmatprep.mubr.msk.bf16.mxu0 %vm6850_vm13, %v17403_v26  ;;  %v17429_v50 = vld [vmem:[#allocation2 + $0x78] sm:$0xff]  }
 0x68f   : > { %v6589_v4 = vsel %vm19925_vm8, %v6430_v0, %v6588_v35 }
 0x690   : > { %6590 = vst [vmem:[#allocation2 + $0x90] sm:$0xf] %v6589_v4  ;;  %v6434_v40 = vpop.permute.xlu0 %6433 }
 0x691   : > { %v6593_v46 = vsel %vm19936_vm12, %v6434_v40, %v6592_v21  ;;  %v17404_v11 = vld [vmem:[#allocation2 + $0x84] sm:$0xff]  }
 0x692   : > { %6594 = vst [vmem:[#allocation2 + $0x98] sm:$0x1] %v6593_v46  ;;  %v6432_v44 = vpop.permute.xlu1 %6431  ;;  %16154 = vmatmul.mubr.msk.bf16.gmra.mrb[76].mxu0 %vm6850_vm13, %v17404_v11  ;;  %v17430_v38 = vld [vmem:[#allocation2 + $0x80] sm:$0xff]   ;;  %v17438_v46 = vld [vmem:[#allocation2 + $0x18] sm:$0xff]   ;;  %v17440_v11 = vld [vmem:[#allocation2 + $0x28] sm:$0xff]  }
 0x693   : > { %6591 = vst.msk [vmem:[#allocation2 + $0x94] sm:$0xf] %vm6507_vm7, %v6432_v44  ;;  %v17439_v44 = vld [vmem:[#allocation2 + $0x20] sm:$0xff]  }
 0x695   : > { %v17431_v55 = vld [vmem:[#allocation2 + $0x88] sm:$0xff]  }
 0x696   : > { %v6436_v62 = vpop.permute.xlu0 %6435 }
 0x697   : > { %v6596_v3 = vsel %vm19925_vm8, %v6436_v62, %v6595_v48  ;;  %v6438_v53 = vpop.permute.xlu1 %6437  ;;  %v17405_v56 = vld [vmem:[#allocation2 + $0x8c] sm:$0xff]   ;;  %v17442_v62 = vld [vmem:[#allocation2 + $0x38] sm:$0xff]  }
 0x698   : > { %6597 = vst [vmem:[#allocation2 + $0x9c] sm:$0xf] %v6596_v3  ;;  %6598 = vst.msk [vmem:[#allocation2 + $0xa0] sm:$0xf] %vm6507_vm7, %v6438_v53  ;;  %16157 = vmatprep.mubr.msk.bf16.mxu0 %vm6850_vm13, %v17405_v56  ;;  %v17441_v48 = vld [vmem:[#allocation2 + $0x30] sm:$0xff]   ;;  %v17443_v3 = vld [vmem:[#allocation2 + $0x40] sm:$0xff]  }
 0x699   : > { %v17444_v53 = vld [vmem:[#allocation2 + $0x48] sm:$0xff]   ;;  %v17445_v56 = vld [vmem:[#allocation2 + $0x50] sm:$0xff]  }
 0x69a   : > { %v6440_v61 = vpop.permute.xlu0 %6439  ;;  %v17406_v27 = vld [vmem:[#allocation2 + $0x94] sm:$0xff]  }
 0x69b   : > { %v6600_v63 = vsel %vm19936_vm12, %v6440_v61, %v6599_v1  ;;  %16158 = vmatmul.mubr.msk.bf16.gmra.mrb[80].mxu0 %vm6850_vm13, %v17406_v27  ;;  %v17432_v26 = vld [vmem:[#allocation2 + $0x90] sm:$0xff]   ;;  %v17446_v1 = vld [vmem:[#allocation2 + $0x58] sm:$0xff]   ;;  %v17447_v61 = vld [vmem:[#allocation2 + $0x60] sm:$0xff]  }
 0x69c   : > { %6601 = vst [vmem:[#allocation2 + $0xa4] sm:$0x1] %v6600_v63  ;;  %v6442_v37 = vpop.permute.xlu1 %6441  ;;  %v17448_v27 = vld [vmem:[#allocation2 + $0x68] sm:$0xff]   ;;  %v17449_v63 = vld [vmem:[#allocation2 + $0x70] sm:$0xff]  }
 0x69d   : > { %v6603_v6 = vsel %vm19925_vm8, %v6442_v37, %v6602_v23  ;;  %v17450_v23 = vld [vmem:[#allocation2 + $0x78] sm:$0xff]   ;;  %v17451_v37 = vld [vmem:[#allocation2 + $0x80] sm:$0xff]  }
 0x69e   : > { %6604 = vst [vmem:[#allocation2 + $0xa8] sm:$0xf] %v6603_v6  ;;  %v17452_v6 = vld [vmem:[#allocation2 + $0x88] sm:$0xff]  }
 0x69f   : > { %v17407_v52 = vld [vmem:[#allocation2 + $0x9c] sm:$0xff]  }
 0x6a0   : > { %16161 = vmatprep.mubr.msk.bf16.mxu0 %vm6850_vm13, %v17407_v52  ;;  %v17433_v35 = vld [vmem:[#allocation2 + $0x98] sm:$0xff]   ;;  %v17453_v52 = vld [vmem:[#allocation2 + $0x90] sm:$0xff]  }
 0x6a2   : > { %v6446_v18 = vpop.permute.xlu0 %6445 }
 0x6a3   : > { %v6607_v17 = vsel %vm19936_vm12, %v6446_v18, %v6606_v29  ;;  %v6444_v13 = vpop.permute.xlu1 %6443  ;;  %v17434_v0 = vld [vmem:[#allocation2 + $0xa0] sm:$0xff]   ;;  %v17454_v29 = vld [vmem:[#allocation2 + $0x98] sm:$0xff]  }
 0x6a4   : > { %6608 = vst [vmem:[#allocation2 + $0xb0] sm:$0x1] %v6607_v17  ;;  %6605 = vst.msk [vmem:[#allocation2 + $0xac] sm:$0xf] %vm6507_vm7, %v6444_v13  ;;  %v17455_v18 = vld [vmem:[#allocation2 + $0xa0] sm:$0xff]  }
 0x6a5   : > { %v17408_v58 = vld [vmem:[#allocation2 + $0xa4] sm:$0xff]  }
 0x6a6   : > { %v6448_v8 = vpop.permute.xlu0 %6447  ;;  %16162 = vmatmul.mubr.msk.bf16.gmra.mrb[84].mxu0 %vm6850_vm13, %v17408_v58 }
 0x6a7   : > { %v6610_v14 = vsel %vm19925_vm8, %v6448_v8, %v6609_v16 }
 0x6a8   : > { %6611 = vst [vmem:[#allocation2 + $0xb4] sm:$0xf] %v6610_v14  ;;  %v17461_v14 = vld [vmem:[#allocation2 + $0xd0] sm:$0xff]  }
 0x6aa   : > { %v6452_v60 = vpop.permute.xlu0 %6451 }
 0x6ab   : > { %v6614_v22 = vsel %vm19936_vm12, %v6452_v60, %v6613_v20  ;;  %v6450_v30 = vpop.permute.xlu1 %6449  ;;  %v17409_v47 = vld [vmem:[#allocation2 + $0xac] sm:$0xff]  }
 0x6ac   : > { %6615 = vst [vmem:[#allocation2 + $0xbc] sm:$0x1] %v6614_v22  ;;  %6612 = vst.msk [vmem:[#allocation2 + $0xb8] sm:$0xf] %vm6507_vm7, %v6450_v30  ;;  %16165 = vmatprep.mubr.msk.bf16.mxu0 %vm6850_vm13, %v17409_v47  ;;  %v17435_v4 = vld [vmem:[#allocation2 + $0xa8] sm:$0xff]  }
 0x6ad   : > { %v17456_v17 = vld [vmem:[#allocation2 + $0xa8] sm:$0xff]  }
 0x6af   : > { %v17436_v21 = vld [vmem:[#allocation2 + $0xb0] sm:$0xff]  }
 0x6b0   : > { %v17457_v13 = vld [vmem:[#allocation2 + $0xb0] sm:$0xff]  }
 0x6b3   : > { %v17410_v15 = vld [vmem:[#allocation2 + $0xb4] sm:$0xff]  }
 0x6b4   : > { %16166 = vmatmul.mubr.msk.bf16.gmra.mrb[88].mxu0 %vm6850_vm13, %v17410_v15  ;;  %v17437_v40 = vld [vmem:[#allocation2 + $0xb8] sm:$0xff]  }
 0x6b5   : > { %v17458_v58 = vld [vmem:[#allocation2 + $0xb8] sm:$0xff]  }
 0x6c0   : > { %v6454_v42 = vpop.permute.xlu1 %6453 }
 0x6c1   : > { %v6617_v10 = vsel %vm19925_vm8, %v6454_v42, %v6616_v28 }
 0x6c2   : > { %6618 = vst [vmem:[#allocation2 + $0xc0] sm:$0xf] %v6617_v10 }
 0x6c9   : > { %v17411_v36 = vld [vmem:[#allocation2 + $0xbc] sm:$0xff]  }
 0x6ca   : > { %16169 = vmatprep.mubr.msk.bf16.mxu0 %vm6850_vm13, %v17411_v36 }
 0x6cc   : > { %v6458_v2 = vpop.permute.xlu0 %6457 }
 0x6cd   : > { %v6621_v34 = vsel %vm19936_vm12, %v6458_v2, %v6620_v12  ;;  %v6456_v9 = vpop.permute.xlu1 %6455  ;;  %vm9625_vm12 = vcmask 1041408  }
 0x6ce   : > { %6622 = vst [vmem:[#allocation2 + $0xc8] sm:$0x1] %v6621_v34  ;;  %6619 = vst.msk [vmem:[#allocation2 + $0xc4] sm:$0xf] %vm6507_vm7, %v6456_v9 }
 0x6d5   : > { %v17412_v57 = vld [vmem:[#allocation2 + $0xc4] sm:$0xff]  }
 0x6d6   : > { %16170 = vmatmul.mubr.msk.bf16.gmra.mrb[92].mxu0 %vm6850_vm13, %v17412_v57  ;;  %v17459_v16 = vld [vmem:[#allocation2 + $0xc0] sm:$0xff]   ;;  %v17460_v8 = vld [vmem:[#allocation2 + $0xc8] sm:$0xff]  }
 0x6d7   : > { %16175 = vmatprep.mubr.msk.bf16.mxu0 %vm6850_vm13, %v17413_v43 }
 0x6de   : > { %16176 = vmatmul.mubr.msk.bf16.vlgmr.msra.gmra.mrb[48].mxu0 %vm6850_vm13, %v17415_v19 }
 0x6df   : > { %16224 = vmatpush3.bf16.msra.mxu0 %v19969_v59  ;;  %16179 = vmatprep.mubr.msk.bf16.mxu0 %vm6850_vm13, %v17416_v49  ;;  %v17423_v59 = vld [vmem:[#allocation2 + $0x48] sm:$0xff]  }
 0x6e6   : > { %16180 = vmatmul.mubr.msk.bf16.gmra.mrb[52].mxu0 %vm6850_vm13, %v17417_v5 }
 0x6e7   : > { %16183 = vmatprep.mubr.msk.bf16.mxu0 %vm6850_vm13, %v17418_v51 }
 0x6ee   : > { %16184 = vmatmul.mubr.msk.bf16.gmra.mrb[56].mxu0 %vm6850_vm13, %v17419_v32 }
 0x6ef   : > { %16187 = vmatprep.mubr.msk.bf16.mxu0 %vm6850_vm13, %v17420_v24 }
 0x6f6   : > { %16188 = vmatmul.mubr.msk.bf16.gmra.mrb[60].mxu0 %vm6850_vm13, %v17421_v54 }
 0x6f7   : > { %16191 = vmatprep.mubr.msk.bf16.mxu0 %vm6850_vm13, %v17422_v7 }
 0x6fe   : > { %16192 = vmatmul.mubr.msk.bf16.gmra.mrb[64].mxu0 %vm6850_vm13, %v17423_v59 }
 0x6ff   : > { %16195 = vmatprep.mubr.msk.bf16.mxu0 %vm6850_vm13, %v17424_v33 }
 0x706   : > { %16196 = vmatmul.mubr.msk.bf16.gmra.mrb[68].mxu0 %vm6850_vm13, %v17425_v45 }
 0x707   : > { %16199 = vmatprep.mubr.msk.bf16.mxu0 %vm6850_vm13, %v17426_v31 }
 0x70e   : > { %16200 = vmatmul.mubr.msk.bf16.gmra.mrb[72].mxu0 %vm6850_vm13, %v17427_v25 }
 0x70f   : > { %16203 = vmatprep.mubr.msk.bf16.mxu0 %vm6850_vm13, %v17428_v39 }
 0x716   : > { %16204 = vmatmul.mubr.msk.bf16.gmra.mrb[76].mxu0 %vm6850_vm13, %v17429_v50 }
 0x717   : > { %16207 = vmatprep.mubr.msk.bf16.mxu0 %vm6850_vm13, %v17430_v38 }
 0x71e   : > { %16208 = vmatmul.mubr.msk.bf16.gmra.mrb[80].mxu0 %vm6850_vm13, %v17431_v55 }
 0x71f   : > { %16211 = vmatprep.mubr.msk.bf16.mxu0 %vm6850_vm13, %v17432_v26 }
 0x726   : > { %16212 = vmatmul.mubr.msk.bf16.gmra.mrb[84].mxu0 %vm6850_vm13, %v17433_v35 }
 0x727   : > { %16215 = vmatprep.mubr.msk.bf16.mxu0 %vm6850_vm13, %v17434_v0 }
 0x72e   : > { %16216 = vmatmul.mubr.msk.bf16.gmra.mrb[88].mxu0 %vm6850_vm13, %v17435_v4 }
 0x72f   : > { %16219 = vmatprep.mubr.msk.bf16.mxu0 %vm6850_vm13, %v17436_v21 }
 0x736   : > { %16220 = vmatmul.mubr.msk.bf16.gmra.mrb[92].mxu0 %vm6850_vm13, %v17437_v40 }
 0x737   : > { %16225 = vmatprep.mubr.msk.bf16.mxu0 %vm6850_vm13, %v17438_v46 }
 0x73e   : > { %16226 = vmatmul.mubr.msk.bf16.vlgmr.msra.gmra.mrb[48].mxu0 %vm6850_vm13, %v17439_v44 }
 0x73f   : > { %16229 = vmatprep.mubr.msk.bf16.mxu0 %vm6850_vm13, %v17440_v11 }
 0x746   : > { %16230 = vmatmul.mubr.msk.bf16.gmra.mrb[52].mxu0 %vm6850_vm13, %v17441_v48 }
 0x747   : > { %16233 = vmatprep.mubr.msk.bf16.mxu0 %vm6850_vm13, %v17442_v62 }
 0x74e   : > { %16234 = vmatmul.mubr.msk.bf16.gmra.mrb[56].mxu0 %vm6850_vm13, %v17443_v3 }
 0x74f   : > { %16237 = vmatprep.mubr.msk.bf16.mxu0 %vm6850_vm13, %v17444_v53 }
 0x756   : > { %16238 = vmatmul.mubr.msk.bf16.gmra.mrb[60].mxu0 %vm6850_vm13, %v17445_v56 }
 0x757   : > { %16241 = vmatprep.mubr.msk.bf16.mxu0 %vm6850_vm13, %v17446_v1 }
 0x75e   : > { %16242 = vmatmul.mubr.msk.bf16.gmra.mrb[64].mxu0 %vm6850_vm13, %v17447_v61 }
 0x75f   : > { %16245 = vmatprep.mubr.msk.bf16.mxu0 %vm6850_vm13, %v17448_v27 }
 0x766   : > { %16246 = vmatmul.mubr.msk.bf16.gmra.mrb[68].mxu0 %vm6850_vm13, %v17449_v63 }
 0x767   : > { %16249 = vmatprep.mubr.msk.bf16.mxu0 %vm6850_vm13, %v17450_v23 }
 0x76e   : > { %16250 = vmatmul.mubr.msk.bf16.gmra.mrb[72].mxu0 %vm6850_vm13, %v17451_v37 }
 0x76f   : > { %16253 = vmatprep.mubr.msk.bf16.mxu0 %vm6850_vm13, %v17452_v6 }
 0x776   : > { %16254 = vmatmul.mubr.msk.bf16.gmra.mrb[76].mxu0 %vm6850_vm13, %v17453_v52 }
 0x777   : > { %16257 = vmatprep.mubr.msk.bf16.mxu0 %vm6850_vm13, %v17454_v29 }
 0x77e   : > { %16258 = vmatmul.mubr.msk.bf16.gmra.mrb[80].mxu0 %vm6850_vm13, %v17455_v18 }
 0x77f   : > { %16261 = vmatprep.mubr.msk.bf16.mxu0 %vm6850_vm13, %v17456_v17 }
 0x786   : > { %16262 = vmatmul.mubr.msk.bf16.gmra.mrb[84].mxu0 %vm6850_vm13, %v17457_v13 }
 0x787   : > { %16265 = vmatprep.mubr.msk.bf16.mxu0 %vm6850_vm13, %v17458_v58 }
 0x78e   : > { %16266 = vmatmul.mubr.msk.bf16.gmra.mrb[88].mxu0 %vm6850_vm13, %v17459_v16 }
 0x78f   : > { %16269 = vmatprep.mubr.msk.bf16.mxu0 %vm6850_vm13, %v17460_v8 }
 0x796   : > { %16270 = vmatmul.mubr.msk.bf16.gmra.mrb[92].mxu0 %vm6850_vm13, %v17461_v14 }
 0x811   : > { %v16227_v20 = vpop.f32.mrb[48].mxu0 }
 0x812   : > { %v20104_v60 = vpop.f32.mrb[49].mxu0  ;;  %v8183_v30 = vrot.slane %v16227_v20, 1  ;;  %v8391_v47 = vrot.slane %v16227_v20, 2 }
 0x813   : > { %v20106_v22 = vpop.f32.mrb[50].mxu0  ;;  %v8180_v28 = vrot.slane %v20104_v60, 1  ;;  %v8388_v42 = vrot.slane %v20104_v60, 2 }
 0x814   : > { %v20108_v15 = vpop.f32.mrb[51].mxu0  ;;  %v8185_v19 = vrot.slane %v20106_v22, 1  ;;  %v8393_v49 = vrot.slane %v20106_v22, 2 }
 0x815   : > { %v8181_v10 = vrot.slane %v20108_v15, 1  ;;  %v8389_v36 = vrot.slane %v20108_v15, 2 }
 0x817   : > { %v8184_v12 = vsel %vm2778_vm15, %v8181_v10, %v8183_v30  ;;  %v8182_v2 = vsel %vm2778_vm15, %v8180_v28, %v8181_v10  ;;  %v8390_v34 = vsel %vm2987_vm14, %v8388_v42, %v8389_v36  ;;  %v8392_v9 = vsel %vm2987_vm14, %v8389_v36, %v8391_v47 }
 0x818   : > { %8262 = vrot.lane.b32.xlu1 %v8184_v12, %s18041_s26  ;;  %8260 = vrot.lane.b32.xlu0 %v8182_v2, %s18041_s26 }
 0x819   : > { %v20120_v43 = vpop.f32.mrb[52].mxu0 }
 0x81a   : > { %v20122_v57 = vpop.f32.mrb[53].mxu0  ;;  %v8190_v24 = vrot.slane %v20120_v43, 1  ;;  %v8398_v54 = vrot.slane %v20120_v43, 2 }
 0x81b   : > { %v8186_v5 = vrot.slane %v20122_v57, 1  ;;  %v8394_v51 = vrot.slane %v20122_v57, 2  ;;  %v20128_v32 = vpop.f32.mrb[54].mxu0 }
 0x81c   : > { %v8191_v7 = vrot.slane %v20128_v32, 1  ;;  %v8399_v59 = vrot.slane %v20128_v32, 2  ;;  %8468 = vrot.lane.b32.xlu1 %v8390_v34, %s18040_s24  ;;  %8470 = vrot.lane.b32.xlu0 %v8392_v9, %s18040_s24  ;;  %v7873_v33 = vpop.f32.mrb[55].mxu0 }
 0x81d   : > { %v8188_v45 = vrot.slane %v7873_v33, 1  ;;  %v8396_v31 = vrot.slane %v7873_v33, 2  ;;  %v8395_v25 = vsel %vm2987_vm14, %v8393_v49, %v8394_v51  ;;  %v8187_v39 = vsel %vm2778_vm15, %v8185_v19, %v8186_v5 }
 0x81e   : > { %v8400_v50 = vsel %vm2987_vm14, %v8398_v54, %v8399_v59  ;;  %v8192_v38 = vsel %vm2778_vm15, %v8190_v24, %v8191_v7 }
 0x81f   : > { %v8397_v55 = vsel %vm2987_vm14, %v8394_v51, %v8396_v31  ;;  %v8189_v26 = vsel %vm2778_vm15, %v8186_v5, %v8188_v45 }
 0x820   : > { %8472 = vrot.lane.b32.xlu1 %v8395_v25, %s18040_s24  ;;  %8264 = vrot.lane.b32.xlu0 %v8187_v39, %s18041_s26 }
 0x821   : > { %v20144_v35 = vpop.f32.mrb[56].mxu0 }
 0x822   : > { %v7886_v0 = vpop.f32.mrb[57].mxu0  ;;  %v8196_v46 = vrot.slane %v20144_v35, 1  ;;  %v8404_v44 = vrot.slane %v20144_v35, 2 }
 0x823   : > { %v8193_v4 = vrot.slane %v7886_v0, 1  ;;  %v8401_v21 = vrot.slane %v7886_v0, 2  ;;  %v16236_v40 = vpop.f32.mrb[58].mxu0 }
 0x824   : > { %v8198_v11 = vrot.slane %v16236_v40, 1  ;;  %v8406_v48 = vrot.slane %v16236_v40, 2  ;;  %8476 = vrot.lane.b32.xlu0 %v8400_v50, %s18040_s24  ;;  %8268 = vrot.lane.b32.xlu1 %v8192_v38, %s18041_s26  ;;  %v20150_v62 = vpop.f32.mrb[59].mxu0 }
 0x825   : > { %v8195_v3 = vrot.slane %v20150_v62, 1  ;;  %v8403_v53 = vrot.slane %v20150_v62, 2  ;;  %v8402_v56 = vsel %vm2987_vm14, %v8399_v59, %v8401_v21  ;;  %v8194_v1 = vsel %vm2778_vm15, %v8191_v7, %v8193_v4 }
 0x826   : > { %v8199_v61 = vsel %vm2778_vm15, %v8196_v46, %v8198_v11  ;;  %v8407_v27 = vsel %vm2987_vm14, %v8404_v44, %v8406_v48 }
 0x827   : > { %v8197_v63 = vsel %vm2778_vm15, %v8195_v3, %v8196_v46  ;;  %v8405_v23 = vsel %vm2987_vm14, %v8403_v53, %v8404_v44 }
 0x828   : > { %8474 = vrot.lane.b32.xlu1 %v8397_v55, %s18040_s24  ;;  %8266 = vrot.lane.b32.xlu0 %v8189_v26, %s18041_s26 }
 0x829   : > { %v16239_v37 = vpop.f32.mrb[60].mxu0 }
 0x82a   : > { %v20162_v6 = vpop.f32.mrb[61].mxu0  ;;  %v8203_v29 = vrot.slane %v16239_v37, 1  ;;  %v8411_v18 = vrot.slane %v16239_v37, 2 }
 0x82b   : > { %v20164_v52 = vpop.f32.mrb[62].mxu0  ;;  %v8200_v13 = vrot.slane %v20162_v6, 1  ;;  %v8408_v58 = vrot.slane %v20162_v6, 2 }
 0x82c   : > { %8478 = vrot.lane.b32.xlu1 %v8402_v56, %s18040_s24  ;;  %8270 = vrot.lane.b32.xlu0 %v8194_v1, %s18041_s26  ;;  %v20168_v17 = vpop.f32.mrb[63].mxu0  ;;  %v8205_v10 = vrot.slane %v20164_v52, 1  ;;  %v8413_v36 = vrot.slane %v20164_v52, 2 }
 0x82d   : > { %v8201_v16 = vrot.slane %v20168_v17, 1  ;;  %v8409_v8 = vrot.slane %v20168_v17, 2 }
 0x82f   : > { %v8204_v14 = vsel %vm2778_vm15, %v8201_v16, %v8203_v29  ;;  %v8202_v20 = vsel %vm2778_vm15, %v8200_v13, %v8201_v16  ;;  %v8410_v30 = vsel %vm2987_vm14, %v8408_v58, %v8409_v8  ;;  %v8412_v47 = vsel %vm2987_vm14, %v8409_v8, %v8411_v18 }
 0x830   : > { %8274 = vrot.lane.b32.xlu1 %v8199_v61, %s18041_s26  ;;  %8272 = vrot.lane.b32.xlu0 %v8197_v63, %s18041_s26 }
 0x831   : > { %v20180_v28 = vpop.f32.mrb[64].mxu0 }
 0x832   : > { %v20182_v42 = vpop.f32.mrb[65].mxu0  ;;  %v8210_v9 = vrot.slane %v20180_v28, 1  ;;  %v8418_v19 = vrot.slane %v20180_v28, 2 }
 0x833   : > { %v8206_v12 = vrot.slane %v20182_v42, 1  ;;  %v8414_v2 = vrot.slane %v20182_v42, 2  ;;  %v20188_v34 = vpop.f32.mrb[66].mxu0 }
 0x834   : > { %v8211_v49 = vrot.slane %v20188_v34, 1  ;;  %v8419_v5 = vrot.slane %v20188_v34, 2  ;;  %8482 = vrot.lane.b32.xlu1 %v8407_v27, %s18040_s24  ;;  %8480 = vrot.lane.b32.xlu0 %v8405_v23, %s18040_s24  ;;  %v7921_v51 = vpop.f32.mrb[67].mxu0 }
 0x835   : > { %v8208_v24 = vrot.slane %v7921_v51, 1  ;;  %v8416_v54 = vrot.slane %v7921_v51, 2  ;;  %v8415_v7 = vsel %vm2987_vm14, %v8413_v36, %v8414_v2  ;;  %v8207_v59 = vsel %vm2778_vm15, %v8205_v10, %v8206_v12 }
 0x836   : > { %v8420_v33 = vsel %vm2987_vm14, %v8418_v19, %v8419_v5  ;;  %v8212_v45 = vsel %vm2778_vm15, %v8210_v9, %v8211_v49 }
 0x837   : > { %v8417_v31 = vsel %vm2987_vm14, %v8414_v2, %v8416_v54  ;;  %v8209_v25 = vsel %vm2778_vm15, %v8206_v12, %v8208_v24 }
 0x838   : > { %8278 = vrot.lane.b32.xlu1 %v8204_v14, %s18041_s26  ;;  %8276 = vrot.lane.b32.xlu0 %v8202_v20, %s18041_s26 }
 0x839   : > { %v20204_v39 = vpop.f32.mrb[68].mxu0 }
 0x83a   : > { %v7934_v50 = vpop.f32.mrb[69].mxu0  ;;  %v8216_v0 = vrot.slane %v20204_v39, 1  ;;  %v8424_v4 = vrot.slane %v20204_v39, 2 }
 0x83b   : > { %v8213_v38 = vrot.slane %v7934_v50, 1  ;;  %v8421_v55 = vrot.slane %v7934_v50, 2  ;;  %v16248_v26 = vpop.f32.mrb[70].mxu0 }
 0x83c   : > { %v8218_v21 = vrot.slane %v16248_v26, 1  ;;  %v8426_v40 = vrot.slane %v16248_v26, 2  ;;  %8484 = vrot.lane.b32.xlu1 %v8410_v30, %s18040_s24  ;;  %8486 = vrot.lane.b32.xlu0 %v8412_v47, %s18040_s24  ;;  %v20210_v46 = vpop.f32.mrb[71].mxu0 }
 0x83d   : > { %v8215_v44 = vrot.slane %v20210_v46, 1  ;;  %v8423_v11 = vrot.slane %v20210_v46, 2  ;;  %v8422_v48 = vsel %vm2987_vm14, %v8419_v5, %v8421_v55  ;;  %v8214_v3 = vsel %vm2778_vm15, %v8211_v49, %v8213_v38 }
 0x83e   : > { %v8219_v53 = vsel %vm2778_vm15, %v8216_v0, %v8218_v21  ;;  %v8427_v56 = vsel %vm2987_vm14, %v8424_v4, %v8426_v40 }
 0x83f   : > { %v8217_v1 = vsel %vm2778_vm15, %v8215_v44, %v8216_v0  ;;  %v8425_v61 = vsel %vm2987_vm14, %v8423_v11, %v8424_v4 }
 0x840   : > { %8488 = vrot.lane.b32.xlu1 %v8415_v7, %s18040_s24  ;;  %8280 = vrot.lane.b32.xlu0 %v8207_v59, %s18041_s26 }
 0x841   : > { %v16251_v27 = vpop.f32.mrb[72].mxu0 }
 0x842   : > { %v20222_v63 = vpop.f32.mrb[73].mxu0  ;;  %v8223_v37 = vrot.slane %v16251_v27, 1  ;;  %v8431_v29 = vrot.slane %v16251_v27, 2 }
 0x843   : > { %v20224_v23 = vpop.f32.mrb[74].mxu0  ;;  %v8220_v13 = vrot.slane %v20222_v63, 1  ;;  %v8428_v58 = vrot.slane %v20222_v63, 2 }
 0x844   : > { %8492 = vrot.lane.b32.xlu0 %v8420_v33, %s18040_s24  ;;  %8284 = vrot.lane.b32.xlu1 %v8212_v45, %s18041_s26  ;;  %v20228_v18 = vpop.f32.mrb[75].mxu0  ;;  %v8225_v12 = vrot.slane %v20224_v23, 1  ;;  %v8433_v2 = vrot.slane %v20224_v23, 2 }
 0x845   : > { %v8221_v16 = vrot.slane %v20228_v18, 1  ;;  %v8429_v8 = vrot.slane %v20228_v18, 2 }
 0x847   : > { %v8224_v14 = vsel %vm2778_vm15, %v8221_v16, %v8223_v37  ;;  %v8222_v20 = vsel %vm2778_vm15, %v8220_v13, %v8221_v16  ;;  %v8430_v30 = vsel %vm2987_vm14, %v8428_v58, %v8429_v8  ;;  %v8432_v47 = vsel %vm2987_vm14, %v8429_v8, %v8431_v29 }
 0x848   : > { %8490 = vrot.lane.b32.xlu1 %v8417_v31, %s18040_s24  ;;  %8282 = vrot.lane.b32.xlu0 %v8209_v25, %s18041_s26 }
 0x849   : > { %v20240_v10 = vpop.f32.mrb[76].mxu0 }
 0x84a   : > { %v20242_v36 = vpop.f32.mrb[77].mxu0  ;;  %v8230_v5 = vrot.slane %v20240_v10, 1  ;;  %v8438_v51 = vrot.slane %v20240_v10, 2 }
 0x84b   : > { %v8226_v9 = vrot.slane %v20242_v36, 1  ;;  %v8434_v19 = vrot.slane %v20242_v36, 2  ;;  %v20248_v49 = vpop.f32.mrb[78].mxu0 }
 0x84c   : > { %v8231_v24 = vrot.slane %v20248_v49, 1  ;;  %v8439_v54 = vrot.slane %v20248_v49, 2  ;;  %8494 = vrot.lane.b32.xlu1 %v8422_v48, %s18040_s24  ;;  %8286 = vrot.lane.b32.xlu0 %v8214_v3, %s18041_s26  ;;  %v7969_v7 = vpop.f32.mrb[79].mxu0 }
 0x84d   : > { %v8228_v59 = vrot.slane %v7969_v7, 1  ;;  %v8436_v33 = vrot.slane %v7969_v7, 2  ;;  %v8435_v45 = vsel %vm2987_vm14, %v8433_v2, %v8434_v19  ;;  %v8227_v31 = vsel %vm2778_vm15, %v8225_v12, %v8226_v9 }
 0x84e   : > { %v8440_v25 = vsel %vm2987_vm14, %v8438_v51, %v8439_v54  ;;  %v8232_v50 = vsel %vm2778_vm15, %v8230_v5, %v8231_v24 }
 0x84f   : > { %v20261_v38 = vsel %vm2987_vm14, %v8434_v19, %v8436_v33  ;;  %v20264_v55 = vsel %vm2778_vm15, %v8226_v9, %v8228_v59 }
 0x850   : > { %8290 = vrot.lane.b32.xlu1 %v8219_v53, %s18041_s26  ;;  %8288 = vrot.lane.b32.xlu0 %v8217_v1, %s18041_s26 }
 0x851   : > { %v20268_v26 = vpop.f32.mrb[80].mxu0 }
 0x852   : > { %v7982_v0 = vpop.f32.mrb[81].mxu0  ;;  %v8236_v44 = vrot.slane %v20268_v26, 1  ;;  %v8444_v11 = vrot.slane %v20268_v26, 2 }
 0x853   : > { %v8233_v4 = vrot.slane %v7982_v0, 1  ;;  %v8441_v21 = vrot.slane %v7982_v0, 2  ;;  %v16260_v40 = vpop.f32.mrb[82].mxu0 }
 0x854   : > { %v8238_v48 = vrot.slane %v16260_v40, 1  ;;  %v8446_v3 = vrot.slane %v16260_v40, 2  ;;  %8498 = vrot.lane.b32.xlu1 %v8427_v56, %s18040_s24  ;;  %8496 = vrot.lane.b32.xlu0 %v8425_v61, %s18040_s24  ;;  %v20274_v27 = vpop.f32.mrb[83].mxu0 }
 0x855   : > { %v8235_v53 = vrot.slane %v20274_v27, 1  ;;  %v8443_v1 = vrot.slane %v20274_v27, 2  ;;  %v8442_v37 = vsel %vm2987_vm14, %v8439_v54, %v8441_v21  ;;  %v8234_v29 = vsel %vm2778_vm15, %v8231_v24, %v8233_v4 }
 0x856   : > { %v20281_v13 = vsel %vm2778_vm15, %v8236_v44, %v8238_v48  ;;  %v20284_v58 = vsel %vm2987_vm14, %v8444_v11, %v8446_v3 }
 0x857   : > { %v20287_v56 = vsel %vm2778_vm15, %v8235_v53, %v8236_v44  ;;  %v20290_v61 = vsel %vm2987_vm14, %v8443_v1, %v8444_v11 }
 0x858   : > { %8294 = vrot.lane.b32.xlu1 %v8224_v14, %s18041_s26  ;;  %8292 = vrot.lane.b32.xlu0 %v8222_v20, %s18041_s26 }
 0x859   : > { %v16263_v16 = vpop.f32.mrb[84].mxu0 }
 0x85a   : > { %v20294_v8 = vpop.f32.mrb[85].mxu0  ;;  %v8243_v2 = vrot.slane %v16263_v16, 1  ;;  %v8451_v9 = vrot.slane %v16263_v16, 2 }
 0x85b   : > { %v20296_v12 = vpop.f32.mrb[86].mxu0  ;;  %v8240_v5 = vrot.slane %v20294_v8, 1  ;;  %v8448_v51 = vrot.slane %v20294_v8, 2 }
 0x85c   : > { %8500 = vrot.lane.b32.xlu1 %v8430_v30, %s18040_s24  ;;  %8502 = vrot.lane.b32.xlu0 %v8432_v47, %s18040_s24  ;;  %v20300_v19 = vpop.f32.mrb[87].mxu0  ;;  %v8245_v33 = vrot.slane %v20296_v12, 1  ;;  %v8453_v0 = vrot.slane %v20296_v12, 2 }
 0x85d   : > { %v8241_v14 = vrot.slane %v20300_v19, 1  ;;  %v8449_v20 = vrot.slane %v20300_v19, 2 }
 0x85f   : > { %v8244_v24 = vsel %vm2778_vm15, %v8241_v14, %v8243_v2  ;;  %v8242_v54 = vsel %vm2778_vm15, %v8240_v5, %v8241_v14  ;;  %v8452_v7 = vsel %vm2987_vm14, %v8449_v20, %v8451_v9  ;;  %v8450_v30 = vsel %vm2987_vm14, %v8448_v51, %v8449_v20 }
 0x860   : > { %8504 = vrot.lane.b32.xlu1 %v8435_v45, %s18040_s24  ;;  %8296 = vrot.lane.b32.xlu0 %v8227_v31, %s18041_s26 }
 0x861   : > { %v20312_v47 = vpop.f32.mrb[88].mxu0 }
 0x862   : > { %v20314_v59 = vpop.f32.mrb[89].mxu0  ;;  %v8250_v44 = vrot.slane %v20312_v47, 1  ;;  %v8458_v45 = vrot.slane %v20312_v47, 2 }
 0x863   : > { %v8246_v4 = vrot.slane %v20314_v59, 1  ;;  %v8454_v21 = vrot.slane %v20314_v59, 2  ;;  %v20320_v40 = vpop.f32.mrb[90].mxu0 }
 0x864   : > { %v8251_v31 = vrot.slane %v20320_v40, 1  ;;  %v8459_v11 = vrot.slane %v20320_v40, 2  ;;  %8508 = vrot.lane.b32.xlu0 %v8440_v25, %s18040_s24  ;;  %8300 = vrot.lane.b32.xlu1 %v8232_v50, %s18041_s26  ;;  %v8017_v48 = vpop.f32.mrb[91].mxu0 }
 0x865   : > { %v8248_v3 = vrot.slane %v8017_v48, 1  ;;  %v8456_v53 = vrot.slane %v8017_v48, 2  ;;  %v8455_v1 = vsel %vm2987_vm14, %v8453_v0, %v8454_v21  ;;  %v8247_v16 = vsel %vm2778_vm15, %v8245_v33, %v8246_v4 }
 0x866   : > { %v8252_v2 = vsel %vm2778_vm15, %v8250_v44, %v8251_v31  ;;  %v8460_v9 = vsel %vm2987_vm14, %v8458_v45, %v8459_v11 }
 0x867   : > { %v8249_v5 = vsel %vm2778_vm15, %v8246_v4, %v8248_v3  ;;  %v8457_v51 = vsel %vm2987_vm14, %v8454_v21, %v8456_v53 }
 0x868   : > { %8506 = vrot.lane.b32.xlu1 %v20261_v38, %s18040_s24  ;;  %8298 = vrot.lane.b32.xlu0 %v20264_v55, %s18041_s26 }
 0x869   : > { %v20338_v25 = vpop.f32.mrb[92].mxu0 }
 0x86a   : > { %v8030_v50 = vpop.f32.mrb[93].mxu0  ;;  %v8256_v0 = vrot.slane %v20338_v25, 1  ;;  %v8464_v44 = vrot.slane %v20338_v25, 2 }
 0x86b   : > { %v8253_v14 = vrot.slane %v8030_v50, 1  ;;  %v8461_v20 = vrot.slane %v8030_v50, 2  ;;  %v16272_v33 = vpop.f32.mrb[94].mxu0 }
 0x86c   : > { %v8258_v45 = vrot.slane %v16272_v33, 1  ;;  %v8466_v4 = vrot.slane %v16272_v33, 2  ;;  %8510 = vrot.lane.b32.xlu1 %v8442_v37, %s18040_s24  ;;  %8302 = vrot.lane.b32.xlu0 %v8234_v29, %s18041_s26  ;;  %v20344_v38 = vpop.f32.mrb[95].mxu0  ;;  %v17462_v29 = vld [vmem:[#allocation15 + $0xc] sm:$0xff]  }
 0x86d   : > { %v8255_v55 = vrot.slane %v20344_v38, 1  ;;  %v8463_v21 = vrot.slane %v20344_v38, 2  ;;  %v8254_v48 = vsel %vm2778_vm15, %v8251_v31, %v8253_v14  ;;  %v8462_v53 = vsel %vm2987_vm14, %v8459_v11, %v8461_v20  ;;  %16273 = vmatprep.subr.bf16.mxu1 %v17462_v29 }
 0x86e   : > { %v8259_v3 = vsel %vm2778_vm15, %v8256_v0, %v8258_v45  ;;  %v20352_v50 = vsel %vm2987_vm14, %v8464_v44, %v8466_v4  ;;  %16274 = vmatpush3.bf16.msra.mxu1 %v17462_v29 }
 0x86f   : > { %v8257_v33 = vsel %vm2778_vm15, %v8255_v55, %v8256_v0  ;;  %v20356_v37 = vsel %vm2987_vm14, %v8463_v21, %v8464_v44 }
 0x870   : > { %8306 = vrot.lane.b32.xlu1 %v20281_v13, %s18041_s26  ;;  %8304 = vrot.lane.b32.xlu0 %v20287_v56, %s18041_s26  ;;  %v20374_v13 = vld [vmem:[#allocation14] ss:$0 sm:$0xff] }
 0x871   : > { %v8104_v44 = vadd.f32 %v20120_v43, %v20374_v13 }
 0x874   : > { %8514 = vrot.lane.b32.xlu1 %v20284_v58, %s18040_s24  ;;  %8512 = vrot.lane.b32.xlu0 %v20290_v61, %s18040_s24  ;;  %v8100_v61 = vadd.f32 %v20374_v13, %v20104_v60 }
 0x878   : > { %8310 = vrot.lane.b32.xlu1 %v8244_v24, %s18041_s26  ;;  %8308 = vrot.lane.b32.xlu0 %v8242_v54, %s18041_s26  ;;  %v8101_v24 = vadd.f32 %v20374_v13, %v20108_v15 }
 0x87c   : > { %8518 = vrot.lane.b32.xlu1 %v8452_v7, %s18040_s24  ;;  %8516 = vrot.lane.b32.xlu0 %v8450_v30, %s18040_s24 }
 0x880   : > { %8520 = vrot.lane.b32.xlu1 %v8455_v1, %s18040_s24  ;;  %8312 = vrot.lane.b32.xlu0 %v8247_v16, %s18041_s26  ;;  %v8102_v16 = vadd.f32 %v20106_v22, %v20374_v13 }
 0x884   : > { %8316 = vrot.lane.b32.xlu1 %v8252_v2, %s18041_s26  ;;  %8314 = vrot.lane.b32.xlu0 %v8249_v5, %s18041_s26 }
 0x888   : > { %8524 = vrot.lane.b32.xlu1 %v8460_v9, %s18040_s24  ;;  %8522 = vrot.lane.b32.xlu0 %v8457_v51, %s18040_s24 }
 0x88a   : > { %v8263_v58 = vpop.permute.xlu1 %8262  ;;  %v8261_v56 = vpop.permute.xlu0 %8260 }
 0x88b   : > { %v8357_v54 = vadd.f32 %v8263_v58, %v8101_v24  ;;  %v8356_v7 = vadd.f32 %v8261_v56, %v8100_v61  ;;  %v8103_v61 = vadd.f32 %v20374_v13, %v20122_v57  ;;  %v8105_v57 = vadd.f32 %v20128_v32, %v20374_v13 }
 0x88c   : > { %8318 = vrot.lane.b32.xlu0 %v8254_v48, %s18041_s26  ;;  %8322 = vrot.lane.b32.xlu1 %v8259_v3, %s18041_s26 }
 0x88e   : > { %v8469_v30 = vpop.permute.xlu1 %8468  ;;  %v8471_v31 = vpop.permute.xlu0 %8470 }
 0x88f   : > { %v8564_v11 = vadd.f32 %v8469_v30, %v8356_v7  ;;  %v8565_v1 = vadd.f32 %v8471_v31, %v8357_v54 }
 0x890   : > { %8526 = vrot.lane.b32.xlu0 %v8462_v53, %s18040_s24 }
 0x891   : > { %vm8596_vm5 = vcmp.ge.f32.partialorder %v8564_v11, 0.0  ;;  %v8628_v60 = vmul.f32 0.2, %v8564_v11  ;;  %vm8597_vm6 = vcmp.ge.f32.partialorder %v8565_v1, 0.0  ;;  %v8629_v2 = vmul.f32 0.2, %v8565_v1 }
 0x892   : > { %v8473_v15 = vpop.permute.xlu1 %8472  ;;  %v8265_v9 = vpop.permute.xlu0 %8264 }
 0x893   : > { %v8660_v5 = vsel %vm8596_vm5, %v8564_v11, %v8628_v60  ;;  %v8661_v51 = vsel %vm8597_vm6, %v8565_v1, %v8629_v2  ;;  %v8358_v14 = vadd.f32 %v8265_v9, %v8102_v16 }
 0x894   : > { %v15377_v20 = vpack.c.bf16 %v8660_v5, %v8660_v5  ;;  %v15378_v0 = vpack.c.bf16 %v8661_v51, %v8661_v51  ;;  %8320 = vrot.lane.b32.xlu0 %v8257_v33, %s18041_s26 }
 0x895   : > { %v8566_v45 = vadd.f32 %v8473_v15, %v8358_v14 }
 0x896   : > { %v8789_v22 = vshrl.u32 %v15377_v20, 16  ;;  %v8797_v4 = vshrl.u32 %v15378_v0, 16  ;;  %v8477_v55 = vpop.permute.xlu0 %8476  ;;  %v8269_v21 = vpop.permute.xlu1 %8268  ;;  %v8792_v29 = vshll.u32 %v15377_v20, 16  ;;  %v8800_v56 = vshll.u32 %v15378_v0, 16 }
 0x897   : > { %vm8598_vm7 = vcmp.ge.f32.partialorder %v8566_v45, 0.0  ;;  %v8630_v48 = vmul.f32 0.2, %v8566_v45  ;;  %v8360_v3 = vadd.f32 %v8269_v21, %v8104_v44  ;;  %v17464_v21 = vld [vmem:[#allocation15 + $0x14] ss:$0 sps:$4 sm:$0x33]  }
 0x898   : > { %v8791_v53 = vrot.slane %v8789_v22, 7  ;;  %v8799_v58 = vrot.slane %v8797_v4, 7  ;;  %17074 = vmatprep.subr.msk.bf16.mxu1 %vm9625_vm12, %v17464_v21 }
 0x899   : > { %v8662_v24 = vsel %vm8598_vm7, %v8566_v45, %v8630_v48  ;;  %v8568_v33 = vadd.f32 %v8477_v55, %v8360_v3 }
 0x89a   : > { %v15379_v54 = vpack.c.bf16 %v8662_v24, %v8662_v24  ;;  %v8475_v7 = vpop.permute.xlu1 %8474  ;;  %v8267_v43 = vpop.permute.xlu0 %8266  ;;  %v8794_v30 = vor.u32 %v8792_v29, %v8791_v53  ;;  %v8795_v31 = vrot.slane %v8791_v53, 4  ;;  %v8802_v11 = vor.u32 %v8800_v56, %v8799_v58 }
 0x89b   : > { %vm8600_vm8 = vcmp.ge.f32.partialorder %v8568_v33, 0.0  ;;  %v8632_v1 = vmul.f32 0.2, %v8568_v33  ;;  %v8359_v16 = vadd.f32 %v8267_v43, %v8103_v61  ;;  %v8804_v20 = vrot.slane %v8799_v58, 4 }
 0x89c   : > { %9060 = vrot.lane.b32.xlu1 %v8794_v30, %s18044_s13  ;;  %v8803_v60 = vsel %vm18534_vm11, %v8795_v31, %v8802_v11  ;;  %v8806_v2 = vshrl.u32 %v15379_v54, 16  ;;  %v8809_v44 = vshll.u32 %v15379_v54, 16  ;;  %v9627_v58 = vsel %vm9625_vm12, %v17464_v21, 0 }
 0x89d   : > { %v8664_v15 = vsel %vm8600_vm8, %v8568_v33, %v8632_v1  ;;  %v8567_v9 = vadd.f32 %v8475_v7, %v8359_v16  ;;  %9062 = vrot.lane.b32.xlu0 %v8803_v60, %s18044_s13  ;;  %v8107_v56 = vadd.f32 %v20144_v35, %v20374_v13  ;;  %v8106_v61 = vadd.f32 %v20374_v13, %v20150_v62 }
 0x89e   : > { %v15381_v5 = vpack.c.bf16 %v8664_v15, %v8664_v15  ;;  %v8479_v51 = vpop.permute.xlu1 %8478  ;;  %v8271_v14 = vpop.permute.xlu0 %8270  ;;  %v8808_v0 = vrot.slane %v8806_v2, 7  ;;  %16276 = vmatpush3.bf16.msra.mxu1 %v9627_v58 }
 0x89f   : > { %vm8599_vm10 = vcmp.ge.f32.partialorder %v8567_v9, 0.0  ;;  %v8631_v45 = vmul.f32 0.2, %v8567_v9  ;;  %v8361_v22 = vadd.f32 %v8271_v14, %v8105_v57 }
 0x8a0   : > { %9064 = vrot.lane.b32.xlu1 %v8804_v20, %s18044_s13  ;;  %v8811_v4 = vor.u32 %v8809_v44, %v8808_v0  ;;  %v8823_v55 = vshrl.u32 %v15381_v5, 16  ;;  %v8826_v60 = vshll.u32 %v15381_v5, 16  ;;  %v8812_v62 = vrot.slane %v8808_v0, 4 }
 0x8a1   : > { %v8663_v48 = vsel %vm8599_vm10, %v8567_v9, %v8631_v45  ;;  %v8569_v32 = vadd.f32 %v8479_v51, %v8361_v22  ;;  %v8108_v0 = vadd.f32 %v20374_v13, %v20162_v6 }
 0x8a2   : > { %v15380_v3 = vpack.c.bf16 %v8663_v48, %v8663_v48  ;;  %v8275_v53 = vpop.permute.xlu1 %8274  ;;  %v8273_v29 = vpop.permute.xlu0 %8272  ;;  %9066 = vrot.lane.b32.xlu0 %v8811_v4, %s18044_s13  ;;  %v8825_v54 = vrot.slane %v8823_v55, 7  ;;  %v8109_v55 = vadd.f32 %v20374_v13, %v20168_v17 }
 0x8a3   : > { %vm8601_vm13 = vcmp.ge.f32.partialorder %v8569_v32, 0.0  ;;  %v8633_v24 = vmul.f32 0.2, %v8569_v32  ;;  %v8363_v43 = vadd.f32 %v8275_v53, %v8107_v56  ;;  %v8362_v30 = vadd.f32 %v8273_v29, %v8106_v61 }
 0x8a4   : > { %v8814_v33 = vshrl.u32 %v15380_v3, 16  ;;  %v8817_v35 = vshll.u32 %v15380_v3, 16  ;;  %v8828_v9 = vor.u32 %v8826_v60, %v8825_v54  ;;  %v8829_v61 = vrot.slane %v8825_v54, 4 }
 0x8a5   : > { %v8665_v7 = vsel %vm8601_vm13, %v8569_v32, %v8633_v24 }
 0x8a6   : > { %v15382_v31 = vpack.c.bf16 %v8665_v7, %v8665_v7  ;;  %v8483_v11 = vpop.permute.xlu1 %8482  ;;  %v8481_v1 = vpop.permute.xlu0 %8480  ;;  %8528 = vrot.lane.b32.xlu0 %v20356_v37, %s18040_s24  ;;  %v8816_v16 = vrot.slane %v8814_v33, 7 }
 0x8a7   : > { %v8571_v2 = vadd.f32 %v8483_v11, %v8363_v43  ;;  %v8570_v57 = vadd.f32 %v8481_v1, %v8362_v30 }
 0x8a8   : > { %v8821_v15 = vrot.slane %v8816_v16, 4  ;;  %v8819_v51 = vor.u32 %v8817_v35, %v8816_v16  ;;  %v8831_v14 = vshrl.u32 %v15382_v31, 16  ;;  %v8834_v4 = vshll.u32 %v15382_v31, 16 }
 0x8a9   : > { %vm8603_vm0 = vcmp.ge.f32.partialorder %v8571_v2, 0.0  ;;  %v8635_v20 = vmul.f32 0.2, %v8571_v2  ;;  %vm8602_vm1 = vcmp.ge.f32.partialorder %v8570_v57, 0.0  ;;  %v8634_v44 = vmul.f32 0.2, %v8570_v57 }
 0x8aa   : > { %v8279_v45 = vpop.permute.xlu1 %8278  ;;  %v8277_v22 = vpop.permute.xlu0 %8276  ;;  %9070 = vrot.lane.b32.xlu1 %v8821_v15, %s18044_s13  ;;  %9072 = vrot.lane.b32.xlu0 %v8828_v9, %s18044_s13  ;;  %v8820_v37 = vsel %vm18534_vm11, %v8812_v62, %v8819_v51  ;;  %v8833_v5 = vrot.slane %v8831_v14, 7  ;;  %v8110_v31 = vadd.f32 %v20164_v52, %v20374_v13 }
 0x8ab   : > { %v8667_v21 = vsel %vm8603_vm0, %v8571_v2, %v8635_v20  ;;  %v8666_v48 = vsel %vm8602_vm1, %v8570_v57, %v8634_v44  ;;  %v8365_v58 = vadd.f32 %v8279_v45, %v8109_v55  ;;  %v8364_v56 = vadd.f32 %v8277_v22, %v8108_v0 }
 0x8ac   : > { %v15384_v32 = vpack.c.bf16 %v8667_v21, %v8667_v21  ;;  %v15383_v3 = vpack.c.bf16 %v8666_v48, %v8666_v48  ;;  %v8838_v53 = vrot.slane %v8833_v5, 4  ;;  %v8836_v29 = vor.u32 %v8834_v4, %v8833_v5 }
 0x8ad   : > { %v8112_v45 = vadd.f32 %v20180_v28, %v20374_v13 }
 0x8ae   : > { %v8848_v24 = vshrl.u32 %v15384_v32, 16  ;;  %v8840_v33 = vshrl.u32 %v15383_v3, 16  ;;  %v8485_v7 = vpop.permute.xlu1 %8484  ;;  %v8487_v43 = vpop.permute.xlu0 %8486  ;;  %9068 = vrot.lane.b32.xlu1 %v8820_v37, %s18044_s13  ;;  %9076 = vrot.lane.b32.xlu0 %v8838_v53, %s18044_s13  ;;  %v8837_v17 = vsel %vm18534_vm11, %v8829_v61, %v8836_v29  ;;  %v8851_v1 = vshll.u32 %v15384_v32, 16 }
 0x8af   : > { %v8572_v6 = vadd.f32 %v8485_v7, %v8364_v56  ;;  %v8573_v30 = vadd.f32 %v8487_v43, %v8365_v58  ;;  %v8843_v37 = vshll.u32 %v15383_v3, 16  ;;  %v8111_v58 = vadd.f32 %v20374_v13, %v20182_v42 }
 0x8b0   : > { %v8850_v11 = vrot.slane %v8848_v24, 7  ;;  %v8842_v16 = vrot.slane %v8840_v33, 7  ;;  %v8113_v42 = vadd.f32 %v20188_v34, %v20374_v13 }
 0x8b1   : > { %vm8604_vm5 = vcmp.ge.f32.partialorder %v8572_v6, 0.0  ;;  %v8636_v54 = vmul.f32 0.2, %v8572_v6  ;;  %vm8605_vm6 = vcmp.ge.f32.partialorder %v8573_v30, 0.0  ;;  %v8637_v60 = vmul.f32 0.2, %v8573_v30 }
 0x8b2   : > { %v8489_v35 = vpop.permute.xlu1 %8488  ;;  %v8281_v2 = vpop.permute.xlu0 %8280  ;;  %9074 = vrot.lane.b32.xlu1 %v8837_v17, %s18044_s13  ;;  %8530 = vrot.lane.b32.xlu0 %v20352_v50, %s18040_s24  ;;  %v8846_v57 = vrot.slane %v8842_v16, 4  ;;  %v8853_v62 = vor.u32 %v8851_v1, %v8850_v11  ;;  %v8855_v20 = vrot.slane %v8850_v11, 4  ;;  %v8845_v29 = vor.u32 %v8843_v37, %v8842_v16 }
 0x8b3   : > { %v8668_v15 = vsel %vm8604_vm5, %v8572_v6, %v8636_v54  ;;  %v8669_v9 = vsel %vm8605_vm6, %v8573_v30, %v8637_v60  ;;  %v8366_v51 = vadd.f32 %v8281_v2, %v8110_v31 }
 0x8b4   : > { %v15385_v52 = vpack.c.bf16 %v8668_v15, %v8668_v15  ;;  %v15386_v14 = vpack.c.bf16 %v8669_v9, %v8669_v9  ;;  %v8854_v44 = vsel %vm18534_vm11, %v8846_v57, %v8853_v62 }
 0x8b5   : > { %v8574_v22 = vadd.f32 %v8489_v35, %v8366_v51 }
 0x8b6   : > { %v8857_v5 = vshrl.u32 %v15385_v52, 16  ;;  %v8865_v4 = vshrl.u32 %v15386_v14, 16  ;;  %v8493_v0 = vpop.permute.xlu0 %8492  ;;  %v8285_v50 = vpop.permute.xlu1 %8284  ;;  %9082 = vrot.lane.b32.xlu1 %v8855_v20, %s18044_s13  ;;  %v8860_v32 = vshll.u32 %v15385_v52, 16  ;;  %v8868_v56 = vshll.u32 %v15386_v14, 16 }
 0x8b7   : > { %vm8606_vm7 = vcmp.ge.f32.partialorder %v8574_v22, 0.0  ;;  %v8638_v55 = vmul.f32 0.2, %v8574_v22  ;;  %v8368_v21 = vadd.f32 %v8285_v50, %v8112_v45  ;;  %v8115_v45 = vadd.f32 %v20204_v39, %v20374_v13 }
 0x8b8   : > { %v8859_v48 = vrot.slane %v8857_v5, 7  ;;  %v8867_v53 = vrot.slane %v8865_v4, 7 }
 0x8b9   : > { %v8670_v28 = vsel %vm8606_vm7, %v8574_v22, %v8638_v55  ;;  %v8576_v61 = vadd.f32 %v8493_v0, %v8368_v21 }
 0x8ba   : > { %v15387_v3 = vpack.c.bf16 %v8670_v28, %v8670_v28  ;;  %v8491_v24 = vpop.permute.xlu1 %8490  ;;  %v8283_v33 = vpop.permute.xlu0 %8282  ;;  %9078 = vrot.lane.b32.xlu1 %v8845_v29, %s18044_s13  ;;  %v8862_v7 = vor.u32 %v8860_v32, %v8859_v48  ;;  %v8863_v43 = vrot.slane %v8859_v48, 4  ;;  %v8870_v17 = vor.u32 %v8868_v56, %v8867_v53 }
 0x8bb   : > { %vm8608_vm8 = vcmp.ge.f32.partialorder %v8576_v61, 0.0  ;;  %v8640_v6 = vmul.f32 0.2, %v8576_v61  ;;  %v8367_v30 = vadd.f32 %v8283_v33, %v8111_v58  ;;  %v8872_v35 = vrot.slane %v8867_v53, 4 }
 0x8bc   : > { %9084 = vrot.lane.b32.xlu0 %v8862_v7, %s18044_s13  ;;  %v8874_v31 = vshrl.u32 %v15387_v3, 16  ;;  %v8871_v16 = vsel %vm18534_vm11, %v8863_v43, %v8870_v17  ;;  %v8877_v20 = vshll.u32 %v15387_v3, 16 }
 0x8bd   : > { %v8672_v11 = vsel %vm8608_vm8, %v8576_v61, %v8640_v6  ;;  %v8575_v1 = vadd.f32 %v8491_v24, %v8367_v30 }
 0x8be   : > { %v8495_v54 = vpop.permute.xlu1 %8494  ;;  %v8287_v60 = vpop.permute.xlu0 %8286  ;;  %9080 = vrot.lane.b32.xlu1 %v8854_v44, %s18044_s13  ;;  %v15389_v62 = vpack.c.bf16 %v8672_v11, %v8672_v11  ;;  %v8876_v15 = vrot.slane %v8874_v31, 7  ;;  %v8114_v44 = vadd.f32 %v20374_v13, %v20210_v46  ;;  %v8117_v11 = vadd.f32 %v20374_v13, %v20228_v18 }
 0x8bf   : > { %vm8607_vm10 = vcmp.ge.f32.partialorder %v8575_v1, 0.0  ;;  %v8639_v2 = vmul.f32 0.2, %v8575_v1  ;;  %v8369_v57 = vadd.f32 %v8287_v60, %v8113_v42  ;;  %v8116_v42 = vadd.f32 %v20374_v13, %v20222_v63 }
 0x8c0   : > { %9088 = vrot.lane.b32.xlu0 %v8872_v35, %s18044_s13  ;;  %v8879_v37 = vor.u32 %v8877_v20, %v8876_v15  ;;  %v8891_v4 = vshrl.u32 %v15389_v62, 16  ;;  %v8880_v56 = vrot.slane %v8876_v15, 4  ;;  %v8894_v30 = vshll.u32 %v15389_v62, 16 }
 0x8c1   : > { %v8671_v9 = vsel %vm8607_vm10, %v8575_v1, %v8639_v2  ;;  %v8577_v51 = vadd.f32 %v8495_v54, %v8369_v57  ;;  %v8118_v62 = vadd.f32 %v20224_v23, %v20374_v13 }
 0x8c2   : > { %v15388_v34 = vpack.c.bf16 %v8671_v9, %v8671_v9  ;;  %v8291_v52 = vpop.permute.xlu1 %8290  ;;  %v8289_v14 = vpop.permute.xlu0 %8288  ;;  %9086 = vrot.lane.b32.xlu1 %v8871_v16, %s18044_s13  ;;  %v8893_v61 = vrot.slane %v8891_v4, 7 }
 0x8c3   : > { %vm8609_vm13 = vcmp.ge.f32.partialorder %v8577_v51, 0.0  ;;  %v8641_v22 = vmul.f32 0.2, %v8577_v51  ;;  %v8371_v50 = vadd.f32 %v8291_v52, %v8115_v45  ;;  %v8370_v55 = vadd.f32 %v8289_v14, %v8114_v44 }
 0x8c4   : > { %v8882_v5 = vshrl.u32 %v15388_v34, 16  ;;  %v8885_v29 = vshll.u32 %v15388_v34, 16  ;;  %v8896_v35 = vor.u32 %v8894_v30, %v8893_v61  ;;  %v8897_v9 = vrot.slane %v8893_v61, 4 }
 0x8c5   : > { %v8673_v0 = vsel %vm8609_vm13, %v8577_v51, %v8641_v22 }
 0x8c6   : > { %v15390_v21 = vpack.c.bf16 %v8673_v0, %v8673_v0  ;;  %v8499_v48 = vpop.permute.xlu1 %8498  ;;  %v8497_v32 = vpop.permute.xlu0 %8496  ;;  %9090 = vrot.lane.b32.xlu1 %v8879_v37, %s18044_s13  ;;  %v8884_v53 = vrot.slane %v8882_v5, 7 }
 0x8c7   : > { %v8579_v58 = vadd.f32 %v8499_v48, %v8371_v50  ;;  %v8578_v39 = vadd.f32 %v8497_v32, %v8370_v55 }
 0x8c8   : > { %v8889_v28 = vrot.slane %v8884_v53, 4  ;;  %v8887_v46 = vor.u32 %v8885_v29, %v8884_v53  ;;  %v8899_v3 = vshrl.u32 %v15390_v21, 16  ;;  %v8902_v31 = vshll.u32 %v15390_v21, 16 }
 0x8c9   : > { %vm8611_vm0 = vcmp.ge.f32.partialorder %v8579_v58, 0.0  ;;  %v8643_v24 = vmul.f32 0.2, %v8579_v58  ;;  %vm8610_vm1 = vcmp.ge.f32.partialorder %v8578_v39, 0.0  ;;  %v8642_v33 = vmul.f32 0.2, %v8578_v39 }
 0x8ca   : > { %v8295_v7 = vpop.permute.xlu1 %8294  ;;  %v8293_v43 = vpop.permute.xlu0 %8292  ;;  %9094 = vrot.lane.b32.xlu0 %v8889_v28, %s18044_s13  ;;  %v8888_v6 = vsel %vm18534_vm11, %v8880_v56, %v8887_v46  ;;  %v8901_v17 = vrot.slane %v8899_v3, 7  ;;  %v8120_v46 = vadd.f32 %v20240_v10, %v20374_v13  ;;  %v8119_v10 = vadd.f32 %v20374_v13, %v20242_v36 }
 0x8cb   : > { %v8675_v1 = vsel %vm8611_vm0, %v8579_v58, %v8643_v24  ;;  %v8674_v16 = vsel %vm8610_vm1, %v8578_v39, %v8642_v33  ;;  %9092 = vrot.lane.b32.xlu1 %v8888_v6, %s18044_s13  ;;  %v8373_v57 = vadd.f32 %v8295_v7, %v8117_v11  ;;  %v8372_v15 = vadd.f32 %v8293_v43, %v8116_v42  ;;  %v20467_v43 = vld [vmem:[#allocation15] sm:$0xff]  }
 0x8cc   : > { %v15392_v54 = vpack.c.bf16 %v8675_v1, %v8675_v1  ;;  %v15391_v60 = vpack.c.bf16 %v8674_v16, %v8674_v16  ;;  %v8904_v2 = vor.u32 %v8902_v31, %v8901_v17  ;;  %v8906_v45 = vrot.slane %v8901_v17, 4  ;;  %16325 = vmatprep.subr.bf16.mxu1 %v20467_v43 }
 0x8cd   : > { %v8121_v36 = vadd.f32 %v20248_v49, %v20374_v13 }
 0x8ce   : > { %v8916_v51 = vshrl.u32 %v15392_v54, 16  ;;  %v8908_v34 = vshrl.u32 %v15391_v60, 16  ;;  %v8501_v63 = vpop.permute.xlu1 %8500  ;;  %v8503_v52 = vpop.permute.xlu0 %8502  ;;  %9096 = vrot.lane.b32.xlu0 %v8896_v35, %s18044_s13  ;;  %v8905_v20 = vsel %vm18534_vm11, %v8897_v9, %v8904_v2  ;;  %v8919_v22 = vshll.u32 %v15392_v54, 16 }
 0x8cf   : > { %v8580_v18 = vadd.f32 %v8501_v63, %v8372_v15  ;;  %v8581_v14 = vadd.f32 %v8503_v52, %v8373_v57  ;;  %v8911_v5 = vshll.u32 %v15391_v60, 16  ;;  %9098 = vrot.lane.b32.xlu1 %v8905_v20, %s18044_s13 }
 0x8d0   : > { %v8918_v44 = vrot.slane %v8916_v51, 7  ;;  %v8910_v37 = vrot.slane %v8908_v34, 7 }
 0x8d1   : > { %vm8612_vm5 = vcmp.ge.f32.partialorder %v8580_v18, 0.0  ;;  %v8644_v23 = vmul.f32 0.2, %v8580_v18  ;;  %vm8613_vm6 = vcmp.ge.f32.partialorder %v8581_v14, 0.0  ;;  %v8645_v4 = vmul.f32 0.2, %v8581_v14 }
 0x8d2   : > { %v8505_v0 = vpop.permute.xlu1 %8504  ;;  %v8297_v50 = vpop.permute.xlu0 %8296  ;;  %9100 = vrot.lane.b32.xlu0 %v8906_v45, %s18044_s13  ;;  %v8913_v55 = vor.u32 %v8911_v5, %v8910_v37  ;;  %v8914_v21 = vrot.slane %v8910_v37, 4  ;;  %v8921_v48 = vor.u32 %v8919_v22, %v8918_v44  ;;  %v8923_v56 = vrot.slane %v8918_v44, 4 }
 0x8d3   : > { %v8676_v32 = vsel %vm8612_vm5, %v8580_v18, %v8644_v23  ;;  %v8677_v53 = vsel %vm8613_vm6, %v8581_v14, %v8645_v4  ;;  %v8374_v29 = vadd.f32 %v8297_v50, %v8118_v62 }
 0x8d4   : > { %v15393_v58 = vpack.c.bf16 %v8676_v32, %v8676_v32  ;;  %v15394_v39 = vpack.c.bf16 %v8677_v53, %v8677_v53  ;;  %9102 = vrot.lane.b32.xlu1 %v8913_v55, %s18044_s13  ;;  %v8922_v28 = vsel %vm18534_vm11, %v8914_v21, %v8921_v48  ;;  %v8123_v21 = vadd.f32 %v20268_v26, %v20374_v13 }
 0x8d5   : > { %v8582_v61 = vadd.f32 %v8505_v0, %v8374_v29  ;;  %v8122_v48 = vadd.f32 %v20374_v13, %v20274_v27 }
 0x8d6   : > { %v8925_v3 = vshrl.u32 %v15393_v58, 16  ;;  %v8933_v24 = vshrl.u32 %v15394_v39, 16  ;;  %v8509_v33 = vpop.permute.xlu0 %8508  ;;  %v8301_v7 = vpop.permute.xlu1 %8300  ;;  %9106 = vrot.lane.b32.xlu0 %v8923_v56, %s18044_s13  ;;  %v8928_v31 = vshll.u32 %v15393_v58, 16  ;;  %v8936_v11 = vshll.u32 %v15394_v39, 16 }
 0x8d7   : > { %vm8614_vm7 = vcmp.ge.f32.partialorder %v8582_v61, 0.0  ;;  %v8646_v6 = vmul.f32 0.2, %v8582_v61  ;;  %v8376_v30 = vadd.f32 %v8301_v7, %v8120_v46 }
 0x8d8   : > { %v8927_v17 = vrot.slane %v8925_v3, 7  ;;  %v8935_v42 = vrot.slane %v8933_v24, 7  ;;  %9104 = vrot.lane.b32.xlu1 %v8922_v28, %s18044_s13 }
 0x8d9   : > { %v8678_v1 = vsel %vm8614_vm7, %v8582_v61, %v8646_v6  ;;  %v8584_v16 = vadd.f32 %v8509_v33, %v8376_v30 }
 0x8da   : > { %v15395_v54 = vpack.c.bf16 %v8678_v1, %v8678_v1  ;;  %v8507_v60 = vpop.permute.xlu1 %8506  ;;  %v8299_v35 = vpop.permute.xlu0 %8298  ;;  %v8930_v2 = vor.u32 %v8928_v31, %v8927_v17  ;;  %v8931_v57 = vrot.slane %v8927_v17, 4  ;;  %v8938_v15 = vor.u32 %v8936_v11, %v8935_v42 }
 0x8db   : > { %vm8616_vm8 = vcmp.ge.f32.partialorder %v8584_v16, 0.0  ;;  %v8648_v9 = vmul.f32 0.2, %v8584_v16  ;;  %v8375_v62 = vadd.f32 %v8299_v35, %v8119_v10  ;;  %v8940_v20 = vrot.slane %v8935_v42, 4 }
 0x8dc   : > { %9108 = vrot.lane.b32.xlu0 %v8930_v2, %s18044_s13  ;;  %v8939_v51 = vsel %vm18534_vm11, %v8931_v57, %v8938_v15  ;;  %v8942_v34 = vshrl.u32 %v15395_v54, 16  ;;  %v8945_v44 = vshll.u32 %v15395_v54, 16  ;;  %v8124_v35 = vadd.f32 %v20374_v13, %v20294_v8 }
 0x8dd   : > { %v8680_v63 = vsel %vm8616_vm8, %v8584_v16, %v8648_v9  ;;  %v8583_v52 = vadd.f32 %v8507_v60, %v8375_v62  ;;  %9110 = vrot.lane.b32.xlu1 %v8939_v51, %s18044_s13  ;;  %v8125_v2 = vadd.f32 %v20374_v13, %v20300_v19 }
 0x8de   : > { %v8511_v18 = vpop.permute.xlu1 %8510  ;;  %v8303_v14 = vpop.permute.xlu0 %8302  ;;  %v8944_v45 = vrot.slane %v8942_v34, 7  ;;  %v15397_v5 = vpack.c.bf16 %v8680_v63, %v8680_v63 }
 0x8df   : > { %vm8615_vm10 = vcmp.ge.f32.partialorder %v8583_v52, 0.0  ;;  %v8647_v22 = vmul.f32 0.2, %v8583_v52  ;;  %v8377_v37 = vadd.f32 %v8303_v14, %v8121_v36 }
 0x8e0   : > { %9112 = vrot.lane.b32.xlu0 %v8940_v20, %s18044_s13  ;;  %v8947_v23 = vor.u32 %v8945_v44, %v8944_v45  ;;  %v8959_v29 = vshrl.u32 %v15397_v5, 16  ;;  %v8948_v6 = vrot.slane %v8944_v45, 4  ;;  %v8962_v16 = vshll.u32 %v15397_v5, 16 }
 0x8e1   : > { %v8679_v4 = vsel %vm8615_vm10, %v8583_v52, %v8647_v22  ;;  %v8585_v0 = vadd.f32 %v8511_v18, %v8377_v37  ;;  %v8126_v18 = vadd.f32 %v20296_v12, %v20374_v13 }
 0x8e2   : > { %v15396_v50 = vpack.c.bf16 %v8679_v4, %v8679_v4  ;;  %v8307_v49 = vpop.permute.xlu1 %8306  ;;  %v8305_v55 = vpop.permute.xlu0 %8304  ;;  %9114 = vrot.lane.b32.xlu1 %v8947_v23, %s18044_s13  ;;  %v8961_v17 = vrot.slane %v8959_v29, 7 }
 0x8e3   : > { %vm8617_vm13 = vcmp.ge.f32.partialorder %v8585_v0, 0.0  ;;  %v8649_v32 = vmul.f32 0.2, %v8585_v0  ;;  %v8379_v39 = vadd.f32 %v8307_v49, %v8123_v21  ;;  %v8378_v56 = vadd.f32 %v8305_v55, %v8122_v48 }
 0x8e4   : > { %v8950_v53 = vshrl.u32 %v15396_v50, 16  ;;  %v8953_v24 = vshll.u32 %v15396_v50, 16  ;;  %v8964_v51 = vor.u32 %v8962_v16, %v8961_v17  ;;  %v8965_v52 = vrot.slane %v8961_v17, 4 }
 0x8e5   : > { %v8681_v58 = vsel %vm8617_vm13, %v8585_v0, %v8649_v32 }
 0x8e6   : > { %v15398_v28 = vpack.c.bf16 %v8681_v58, %v8681_v58  ;;  %v8515_v46 = vpop.permute.xlu1 %8514  ;;  %v8513_v61 = vpop.permute.xlu0 %8512  ;;  %v8952_v3 = vrot.slane %v8950_v53, 7 }
 0x8e7   : > { %v8587_v33 = vadd.f32 %v8515_v46, %v8379_v39  ;;  %v8586_v7 = vadd.f32 %v8513_v61, %v8378_v56 }
 0x8e8   : > { %v8957_v30 = vrot.slane %v8952_v3, 4  ;;  %v8955_v26 = vor.u32 %v8953_v24, %v8952_v3  ;;  %v8967_v31 = vshrl.u32 %v15398_v28, 16  ;;  %v8970_v60 = vshll.u32 %v15398_v28, 16 }
 0x8e9   : > { %vm8619_vm0 = vcmp.ge.f32.partialorder %v8587_v33, 0.0  ;;  %v8651_v27 = vmul.f32 0.2, %v8587_v33  ;;  %vm8618_vm1 = vcmp.ge.f32.partialorder %v8586_v7, 0.0  ;;  %v8650_v42 = vmul.f32 0.2, %v8586_v7 }
 0x8ea   : > { %v8311_v11 = vpop.permute.xlu1 %8310  ;;  %v8309_v10 = vpop.permute.xlu0 %8308  ;;  %9118 = vrot.lane.b32.xlu0 %v8957_v30, %s18044_s13  ;;  %v8956_v1 = vsel %vm18534_vm11, %v8948_v6, %v8955_v26  ;;  %v8969_v54 = vrot.slane %v8967_v31, 7  ;;  %v8128_v6 = vadd.f32 %v20312_v47, %v20374_v13  ;;  %v8127_v30 = vadd.f32 %v20374_v13, %v20314_v59 }
 0x8eb   : > { %v8683_v57 = vsel %vm8619_vm0, %v8587_v33, %v8651_v27  ;;  %v8682_v15 = vsel %vm8618_vm1, %v8586_v7, %v8650_v42  ;;  %9116 = vrot.lane.b32.xlu1 %v8956_v1, %s18044_s13  ;;  %v8381_v36 = vadd.f32 %v8311_v11, %v8125_v2  ;;  %v8380_v63 = vadd.f32 %v8309_v10, %v8124_v35 }
 0x8ec   : > { %v15400_v9 = vpack.c.bf16 %v8683_v57, %v8683_v57  ;;  %v15399_v62 = vpack.c.bf16 %v8682_v15, %v8682_v15  ;;  %v8972_v34 = vor.u32 %v8970_v60, %v8969_v54  ;;  %v8974_v37 = vrot.slane %v8969_v54, 4 }
 0x8ed   : > { %vm9204_vm0 = vcmask 158848  }
 0x8ee   : > { %v8984_v14 = vshrl.u32 %v15400_v9, 16  ;;  %v8976_v20 = vshrl.u32 %v15399_v62, 16  ;;  %v8519_v8 = vpop.permute.xlu1 %8518  ;;  %v8517_v45 = vpop.permute.xlu0 %8516  ;;  %9120 = vrot.lane.b32.xlu0 %v8964_v51, %s18044_s13  ;;  %v8973_v22 = vsel %vm18534_vm11, %v8965_v52, %v8972_v34  ;;  %v8987_v23 = vshll.u32 %v15400_v9, 16  ;;  %vm20526_vm1 = vmand %vm9204_vm0, %vm607_vm4 }
 0x8ef   : > { %v8589_v19 = vadd.f32 %v8519_v8, %v8381_v36  ;;  %v8588_v44 = vadd.f32 %v8517_v45, %v8380_v63  ;;  %v8979_v0 = vshll.u32 %v15399_v62, 16  ;;  %9122 = vrot.lane.b32.xlu1 %v8973_v22, %s18044_s13 }
 0x8f0   : > { %v8986_v5 = vrot.slane %v8984_v14, 7  ;;  %v8978_v4 = vrot.slane %v8976_v20, 7 }
 0x8f1   : > { %vm8621_vm5 = vcmp.ge.f32.partialorder %v8589_v19, 0.0  ;;  %v8653_v12 = vmul.f32 0.2, %v8589_v19  ;;  %vm8620_vm6 = vcmp.ge.f32.partialorder %v8588_v44, 0.0  ;;  %v8652_v50 = vmul.f32 0.2, %v8588_v44 }
 0x8f2   : > { %v8521_v49 = vpop.permute.xlu1 %8520  ;;  %v8313_v55 = vpop.permute.xlu0 %8312  ;;  %9124 = vrot.lane.b32.xlu0 %v8974_v37, %s18044_s13  ;;  %v8981_v21 = vor.u32 %v8979_v0, %v8978_v4  ;;  %v8982_v48 = vrot.slane %v8978_v4, 4  ;;  %v8989_v32 = vor.u32 %v8987_v23, %v8986_v5  ;;  %v8991_v28 = vrot.slane %v8986_v5, 4 }
 0x8f3   : > { %v8685_v53 = vsel %vm8621_vm5, %v8589_v19, %v8653_v12  ;;  %v8684_v29 = vsel %vm8620_vm6, %v8588_v44, %v8652_v50  ;;  %v8382_v58 = vadd.f32 %v8313_v55, %v8126_v18  ;;  %v8129_v18 = vadd.f32 %v20320_v40, %v20374_v13 }
 0x8f4   : > { %v15402_v39 = vpack.c.bf16 %v8685_v53, %v8685_v53  ;;  %v15401_v56 = vpack.c.bf16 %v8684_v29, %v8684_v29  ;;  %9126 = vrot.lane.b32.xlu1 %v8981_v21, %s18044_s13  ;;  %v8990_v46 = vsel %vm18534_vm11, %v8982_v48, %v8989_v32  ;;  %vm9210_vm5 = vcmask 155776  }
 0x8f5   : > { %v8590_v61 = vadd.f32 %v8521_v49, %v8382_v58  ;;  %vm20537_vm6 = vmand %vm9210_vm5, %vm550_vm2 }
 0x8f6   : > { %v9001_v3 = vshrl.u32 %v15402_v39, 16  ;;  %v8993_v24 = vshrl.u32 %v15401_v56, 16  ;;  %v8317_v33 = vpop.permute.xlu1 %8316  ;;  %v8315_v7 = vpop.permute.xlu0 %8314  ;;  %9130 = vrot.lane.b32.xlu0 %v8991_v28, %s18044_s13  ;;  %v9004_v31 = vshll.u32 %v15402_v39, 16  ;;  %v8996_v42 = vshll.u32 %v15401_v56, 16 }
 0x8f7   : > { %vm8622_vm7 = vcmp.ge.f32.partialorder %v8590_v61, 0.0  ;;  %v8654_v26 = vmul.f32 0.2, %v8590_v61  ;;  %v8384_v10 = vadd.f32 %v8317_v33, %v8128_v6  ;;  %v8383_v1 = vadd.f32 %v8315_v7, %v8127_v30  ;;  %v17622_v7 = vld [vmem:[#allocation2 + $0xc] sm:$0xf] }
 0x8f8   : > { %v9003_v17 = vrot.slane %v9001_v3, 7  ;;  %v8995_v27 = vrot.slane %v8993_v24, 7  ;;  %9128 = vrot.lane.b32.xlu1 %v8990_v46, %s18044_s13 }
 0x8f9   : > { %v8686_v11 = vsel %vm8622_vm7, %v8590_v61, %v8654_v26  ;;  %vm9552_vm7 = vcmask 162816  }
 0x8fa   : > { %v15403_v16 = vpack.c.bf16 %v8686_v11, %v8686_v11  ;;  %v8525_v54 = vpop.permute.xlu1 %8524  ;;  %v8523_v60 = vpop.permute.xlu0 %8522  ;;  %v8998_v35 = vor.u32 %v8996_v42, %v8995_v27  ;;  %v8999_v2 = vrot.slane %v8995_v27, 4  ;;  %v9006_v47 = vor.u32 %v9004_v31, %v9003_v17  ;;  %v9212_v31 = vld [vmem:[#allocation2 + $0x14] sm:$0x1]  ;;  %v9215_v11 = vld [vmem:[#allocation2 + $0x18] sm:$0xf] }
 0x8fb   : > { %v8592_v57 = vadd.f32 %v8525_v54, %v8384_v10  ;;  %v8591_v15 = vadd.f32 %v8523_v60, %v8383_v1  ;;  %v9008_v36 = vrot.slane %v9003_v17, 4  ;;  %v17623_v1 = vld [vmem:[#allocation14] ss:$0 sm:$0xff] }
 0x8fc   : > { %9132 = vrot.lane.b32.xlu0 %v8998_v35, %s18044_s13  ;;  %v9007_v59 = vsel %vm18534_vm11, %v8999_v2, %v9006_v47  ;;  %v9010_v9 = vshrl.u32 %v15403_v16, 16  ;;  %v9013_v52 = vshll.u32 %v15403_v16, 16  ;;  %v8130_v16 = vadd.f32 %v17623_v1, %v20344_v38  ;;  %v17486_v38 = vld [vmem:[#allocation15 + $0x8] ss:$0 sps:$4 sm:$0x33]  }
 0x8fd   : > { %vm8624_vm8 = vcmp.ge.f32.partialorder %v8592_v57, 0.0  ;;  %v8656_v62 = vmul.f32 0.2, %v8592_v57  ;;  %vm8623_vm10 = vcmp.ge.f32.partialorder %v8591_v15, 0.0  ;;  %v8655_v51 = vmul.f32 0.2, %v8591_v15  ;;  %9134 = vrot.lane.b32.xlu1 %v9007_v59, %s18044_s13 }
 0x8fe   : > { %v8319_v34 = vpop.permute.xlu0 %8318  ;;  %v9012_v63 = vrot.slane %v9010_v9, 7  ;;  %v20521_v53 = vpop.permute.xlu1 %8322  ;;  %v9219_v59 = vld [vmem:[#allocation2 + $0x20] sm:$0x1]  ;;  %v9222_v9 = vld [vmem:[#allocation2 + $0x24] sm:$0xf] }
 0x8ff   : > { %v8688_v14 = vsel %vm8624_vm8, %v8592_v57, %v8656_v62  ;;  %v8687_v20 = vsel %vm8623_vm10, %v8591_v15, %v8655_v51  ;;  %v8385_v44 = vadd.f32 %v8319_v34, %v8129_v18 }
 0x900   : > { %v15405_v8 = vpack.c.bf16 %v8688_v14, %v8688_v14  ;;  %v15404_v45 = vpack.c.bf16 %v8687_v20, %v8687_v20  ;;  %9136 = vrot.lane.b32.xlu0 %v9008_v36, %s18044_s13  ;;  %v9015_v19 = vor.u32 %v9013_v52, %v9012_v63  ;;  %v9016_v13 = vrot.slane %v9012_v63, 4 }
 0x902   : > { %v9027_v22 = vshrl.u32 %v15405_v8, 16  ;;  %v9018_v37 = vshrl.u32 %v15404_v45, 16  ;;  %v8527_v5 = vpop.permute.xlu0 %8526  ;;  %9138 = vrot.lane.b32.xlu1 %v9015_v19, %s18044_s13  ;;  %v9021_v0 = vshll.u32 %v15404_v45, 16  ;;  %v9030_v21 = vshll.u32 %v15405_v8, 16  ;;  %v9226_v45 = vld [vmem:[#allocation2 + $0x2c] sm:$0x1] }
 0x903   : > { %v8593_v23 = vadd.f32 %v8527_v5, %v8385_v44  ;;  %v8131_v44 = vadd.f32 %v17623_v1, %v20338_v25 }
 0x904   : > { %v9020_v4 = vrot.slane %v9018_v37, 7  ;;  %v9029_v50 = vrot.slane %v9027_v22, 7  ;;  %v10056_v37 = vsel %vm9625_vm12, %v17486_v38, 0 }
 0x905   : > { %vm8625_vm13 = vcmp.ge.f32.partialorder %v8593_v23, 0.0  ;;  %v8657_v12 = vmul.f32 0.2, %v8593_v23 }
 0x906   : > { %v9025_v40 = vrot.slane %v9020_v4, 4  ;;  %v9023_v49 = vor.u32 %v9021_v0, %v9020_v4  ;;  %v9032_v58 = vor.u32 %v9030_v21, %v9029_v50  ;;  %v8321_v39 = vpop.permute.xlu0 %8320  ;;  %v9033_v24 = vrot.slane %v9029_v50, 4 }
 0x907   : > { %v8689_v55 = vsel %vm8625_vm13, %v8593_v23, %v8657_v12  ;;  %v8386_v60 = vadd.f32 %v8321_v39, %v8130_v16  ;;  %v8387_v4 = vadd.f32 %v20521_v53, %v8131_v44  ;;  %v9229_v53 = vld [vmem:[#allocation2 + $0x30] sm:$0xf]  ;;  %v9243_v16 = vld [vmem:[#allocation2 + $0x48] sm:$0xf] }
 0x908   : > { %v15406_v48 = vpack.c.bf16 %v8689_v55, %v8689_v55  ;;  %9142 = vrot.lane.b32.xlu0 %v9025_v40, %s18044_s13  ;;  %v9024_v32 = vsel %vm18534_vm11, %v9016_v13, %v9023_v49 }
 0x909   : > { %9140 = vrot.lane.b32.xlu1 %v9024_v32, %s18044_s13 }
 0x90a   : > { %v9035_v29 = vshrl.u32 %v15406_v48, 16  ;;  %v9038_v28 = vshll.u32 %v15406_v48, 16 }
 0x90c   : > { %v9037_v56 = vrot.slane %v9035_v29, 7  ;;  %9144 = vrot.lane.b32.xlu0 %v9032_v58, %s18044_s13 }
 0x90e   : > { %v9061_v61 = vpop.permute.xlu1 %9060  ;;  %v9042_v3 = vrot.slane %v9037_v56, 4  ;;  %v9040_v33 = vor.u32 %v9038_v28, %v9037_v56 }
 0x90f   : > { %v9206_v6 = vsel %vm20526_vm1, %v9061_v61, %v17622_v7  ;;  %v9063_v30 = vpop.permute.xlu0 %9062  ;;  %v9236_v61 = vld [vmem:[#allocation2 + $0x3c] sm:$0xf] }
 0x910   : > { %9207 = vst [vmem:[#allocation2 + $0xc] sm:$0xf] %v9206_v6  ;;  %9209 = vst.msk [vmem:[#allocation2 + $0x10] sm:$0xf] %vm9204_vm0, %v9063_v30  ;;  %9148 = vrot.lane.b32.xlu0 %v9042_v3, %s18044_s13  ;;  %v9041_v26 = vsel %vm18534_vm11, %v9033_v24, %v9040_v33 }
 0x911   : > { %9146 = vrot.lane.b32.xlu1 %v9041_v26, %s18044_s13  ;;  %v20571_v26 = vld [vmem:[#allocation15 + $0x18] sm:$0xff]  }
 0x912   : > { %v9065_v27 = vpop.permute.xlu1 %9064 }
 0x913   : > { %v9213_v42 = vsel %vm20537_vm6, %v9065_v27, %v9212_v31  ;;  %v9240_v31 = vld [vmem:[#allocation2 + $0x44] sm:$0x1] }
 0x914   : > { %9214 = vst [vmem:[#allocation2 + $0x14] sm:$0x1] %v9213_v42  ;;  %v9067_v10 = vpop.permute.xlu0 %9066 }
 0x915   : > { %v9216_v54 = vsel %vm20526_vm1, %v9067_v10, %v9215_v11 }
 0x916   : > { %9217 = vst [vmem:[#allocation2 + $0x18] sm:$0xf] %v9216_v54 }
 0x917   : > { %v9371_v35 = vld [vmem:[#allocation2 + $0xc] sm:$0xf]  ;;  %v9372_v2 = vld [vmem:[#allocation2 + $0x10] sm:$0xf] }
 0x918   : > { %v8529_v47 = vpop.permute.xlu0 %8528  ;;  %v14941_v57 = vcombine.low %v9371_v35, %v9372_v2  ;;  %v9247_v2 = vld [vmem:[#allocation2 + $0x50] sm:$0x1]  ;;  %v17492_v46 = vld [vmem:[#allocation2 + $0x8] sm:$0xff]  }
 0x919   : > { %v8594_v15 = vadd.f32 %v8529_v47, %v8386_v60 }
 0x91a   : > { %16277 = vmatprep.mubr.msk.bf16.mxu1 %vm9552_vm7, %v14941_v57 }
 0x91b   : > { %vm8626_vm8 = vcmp.ge.f32.partialorder %v8594_v15, 0.0  ;;  %v8658_v62 = vmul.f32 0.2, %v8594_v15 }
 0x91c   : > { %v9071_v51 = vpop.permute.xlu1 %9070  ;;  %v9073_v34 = vpop.permute.xlu0 %9072 }
 0x91d   : > { %v8690_v36 = vsel %vm8626_vm8, %v8594_v15, %v8658_v62  ;;  %v9220_v63 = vsel %vm20537_vm6, %v9071_v51, %v9219_v59  ;;  %v9223_v52 = vsel %vm20526_vm1, %v9073_v34, %v9222_v9  ;;  %v17465_v18 = vld [vmem:[#allocation2 + $0x14] sm:$0xff]  }
 0x91e   : > { %v15407_v14 = vpack.c.bf16 %v8690_v36, %v8690_v36  ;;  %9221 = vst [vmem:[#allocation2 + $0x20] sm:$0x1] %v9220_v63  ;;  %9224 = vst [vmem:[#allocation2 + $0x24] sm:$0xf] %v9223_v52  ;;  %16278 = vmatmul.mubr.msk.bf16.vlgmr.msra.gmra.mrb[96].mxu1 %vm9552_vm7, %v17465_v18  ;;  %v9250_v9 = vld [vmem:[#allocation2 + $0x54] sm:$0xf] }
 0x91f   : > { %16326 = vmatpush3.bf16.msra.mxu1 %v20467_v43  ;;  %v9233_v43 = vld [vmem:[#allocation2 + $0x38] sm:$0x1]  ;;  %v9254_v36 = vld [vmem:[#allocation2 + $0x5c] sm:$0x1] }
 0x920   : > { %v9044_v20 = vshrl.u32 %v15407_v14, 16  ;;  %v9069_v8 = vpop.permute.xlu1 %9068  ;;  %v9077_v19 = vpop.permute.xlu0 %9076  ;;  %17075 = vmatprep.subr.msk.bf16.mxu1 %vm9625_vm12, %v17486_v38  ;;  %v9047_v23 = vshll.u32 %v15407_v14, 16  ;;  %v9257_v14 = vld [vmem:[#allocation2 + $0x60] sm:$0xf] }
 0x921   : > { %9218 = vst.msk [vmem:[#allocation2 + $0x1c] sm:$0xf] %vm9204_vm0, %v9069_v8  ;;  %v9227_v22 = vsel %vm20537_vm6, %v9077_v19, %v9226_v45  ;;  %v9261_v45 = vld [vmem:[#allocation2 + $0x68] sm:$0x1] }
 0x922   : > { %v9046_v5 = vrot.slane %v9044_v20, 7  ;;  %9228 = vst [vmem:[#allocation2 + $0x2c] sm:$0x1] %v9227_v22 }
 0x923   : > { %16328 = vmatpush3.bf16.msra.mxu1 %v10056_v37 }
 0x924   : > { %v9075_v0 = vpop.permute.xlu1 %9074  ;;  %v8531_v12 = vpop.permute.xlu0 %8530  ;;  %v9049_v50 = vor.u32 %v9047_v23, %v9046_v5  ;;  %v9050_v6 = vrot.slane %v9046_v5, 4  ;;  %16377 = vmatprep.subr.bf16.mxu1 %v20571_v26  ;;  %v9264_v5 = vld [vmem:[#allocation2 + $0x6c] sm:$0xf] }
 0x925   : > { %9225 = vst.msk [vmem:[#allocation2 + $0x28] sm:$0xf] %vm9204_vm0, %v9075_v0  ;;  %v8595_v25 = vadd.f32 %v8531_v12, %v8387_v4 }
 0x926   : > { %9150 = vrot.lane.b32.xlu1 %v9049_v50, %s18044_s13  ;;  %v9268_v50 = vld [vmem:[#allocation2 + $0x74] sm:$0x1] }
 0x927   : > { %vm8627_vm10 = vcmp.ge.f32.partialorder %v8595_v25, 0.0  ;;  %v8659_v40 = vmul.f32 0.2, %v8595_v25 }
 0x928   : > { %v9083_v13 = vpop.permute.xlu1 %9082  ;;  %v17466_v49 = vld [vmem:[#allocation2 + $0x1c] sm:$0xff]  }
 0x929   : > { %v8691_v55 = vsel %vm8627_vm10, %v8595_v25, %v8659_v40  ;;  %v9234_v21 = vsel %vm20537_vm6, %v9083_v13, %v9233_v43  ;;  %16281 = vmatprep.mubr.msk.bf16.mxu1 %vm9552_vm7, %v17466_v49  ;;  %v9271_v13 = vld [vmem:[#allocation2 + $0x78] sm:$0xf] }
 0x92a   : > { %v15408_v48 = vpack.c.bf16 %v8691_v55, %v8691_v55  ;;  %9235 = vst [vmem:[#allocation2 + $0x38] sm:$0x1] %v9234_v21 }
 0x92c   : > { %v9052_v32 = vshrl.u32 %v15408_v48, 16  ;;  %v9079_v29 = vpop.permute.xlu1 %9078  ;;  %v17467_v58 = vld [vmem:[#allocation2 + $0x24] sm:$0xff]   ;;  %v9055_v28 = vshll.u32 %v15408_v48, 16  ;;  %v9275_v48 = vld [vmem:[#allocation2 + $0x80] sm:$0x1] }
 0x92d   : > { %v9230_v39 = vsel %vm20526_vm1, %v9079_v29, %v9229_v53  ;;  %16282 = vmatmul.mubr.msk.bf16.gmra.mrb[100].mxu1 %vm9552_vm7, %v17467_v58 }
 0x92e   : > { %v9054_v56 = vrot.slane %v9052_v32, 7  ;;  %9231 = vst [vmem:[#allocation2 + $0x30] sm:$0xf] %v9230_v39  ;;  %v9085_v3 = vpop.permute.xlu0 %9084  ;;  %v9278_v39 = vld [vmem:[#allocation2 + $0x84] sm:$0xf] }
 0x92f   : > { %v9237_v24 = vsel %vm20526_vm1, %v9085_v3, %v9236_v61  ;;  %v9282_v3 = vld [vmem:[#allocation2 + $0x8c] sm:$0x1] }
 0x930   : > { %9238 = vst [vmem:[#allocation2 + $0x3c] sm:$0xf] %v9237_v24  ;;  %v9081_v33 = vpop.permute.xlu1 %9080  ;;  %v9059_v7 = vrot.slane %v9054_v56, 4  ;;  %v9057_v30 = vor.u32 %v9055_v28, %v9054_v56 }
 0x931   : > { %9232 = vst.msk [vmem:[#allocation2 + $0x34] sm:$0xf] %vm9204_vm0, %v9081_v33 }
 0x932   : > { %9154 = vrot.lane.b32.xlu0 %v9059_v7, %s18044_s13  ;;  %v9089_v27 = vpop.permute.xlu0 %9088  ;;  %v9058_v42 = vsel %vm18534_vm11, %v9050_v6, %v9057_v30  ;;  %v9285_v6 = vld [vmem:[#allocation2 + $0x90] sm:$0xf] }
 0x933   : > { %v9241_v11 = vsel %vm20537_vm6, %v9089_v27, %v9240_v31  ;;  %9152 = vrot.lane.b32.xlu1 %v9058_v42, %s18044_s13  ;;  %v9289_v27 = vld [vmem:[#allocation2 + $0x98] sm:$0x1]  ;;  %s21753_s13 = scalar_lea.hbm %s21884_s22, %s15441_s12 }
 0x934   : > { %9242 = vst [vmem:[#allocation2 + $0x44] sm:$0x1] %v9241_v11  ;;  %v9087_v10 = vpop.permute.xlu1 %9086 }
 0x935   : > { %9239 = vst.msk [vmem:[#allocation2 + $0x40] sm:$0xf] %vm9204_vm0, %v9087_v10  ;;  %v17468_v1 = vld [vmem:[#allocation2 + $0x2c] sm:$0xff]  }
 0x936   : > { %16285 = vmatprep.mubr.msk.bf16.mxu1 %vm9552_vm7, %v17468_v1 }
 0x938   : > { %v9091_v54 = vpop.permute.xlu1 %9090  ;;  %v17469_v60 = vld [vmem:[#allocation2 + $0x34] sm:$0xff]  }
 0x939   : > { %v9244_v35 = vsel %vm20526_vm1, %v9091_v54, %v9243_v16  ;;  %16286 = vmatmul.mubr.msk.bf16.gmra.mrb[104].mxu1 %vm9552_vm7, %v17469_v60  ;;  %v9292_v16 = vld [vmem:[#allocation2 + $0x9c] sm:$0xf] }
 0x93a   : > { %9245 = vst [vmem:[#allocation2 + $0x48] sm:$0xf] %v9244_v35 }
 0x93c   : > { %v9095_v47 = vpop.permute.xlu0 %9094  ;;  %v17470_v57 = vld [vmem:[#allocation2 + $0x3c] sm:$0xff]  }
 0x93d   : > { %v9248_v15 = vsel %vm20537_vm6, %v9095_v47, %v9247_v2  ;;  %v9093_v59 = vpop.permute.xlu1 %9092  ;;  %16289 = vmatprep.mubr.msk.bf16.mxu1 %vm9552_vm7, %v17470_v57  ;;  %v9296_v47 = vld [vmem:[#allocation2 + $0xa4] sm:$0x1] }
 0x93e   : > { %9249 = vst [vmem:[#allocation2 + $0x50] sm:$0x1] %v9248_v15  ;;  %9246 = vst.msk [vmem:[#allocation2 + $0x4c] sm:$0xf] %vm9204_vm0, %v9093_v59 }
 0x940   : > { %v9097_v62 = vpop.permute.xlu0 %9096 }
 0x941   : > { %v9251_v51 = vsel %vm20526_vm1, %v9097_v62, %v9250_v9  ;;  %v17471_v34 = vld [vmem:[#allocation2 + $0x44] sm:$0xff]   ;;  %v9099_v38 = vpop.permute.xlu1 %9098 }
 0x942   : > { %9252 = vst [vmem:[#allocation2 + $0x54] sm:$0xf] %v9251_v51  ;;  %9253 = vst.msk [vmem:[#allocation2 + $0x58] sm:$0xf] %vm9204_vm0, %v9099_v38  ;;  %16290 = vmatmul.mubr.msk.bf16.gmra.mrb[108].mxu1 %vm9552_vm7, %v17471_v34  ;;  %v9299_v9 = vld [vmem:[#allocation2 + $0xa8] sm:$0xf] }
 0x943   : > { %v9303_v38 = vld [vmem:[#allocation2 + $0xb0] sm:$0x1] }
 0x944   : > { %v9101_v63 = vpop.permute.xlu0 %9100 }
 0x945   : > { %v9255_v52 = vsel %vm20537_vm6, %v9101_v63, %v9254_v36  ;;  %v17472_v18 = vld [vmem:[#allocation2 + $0x4c] sm:$0xff]  }
 0x946   : > { %9256 = vst [vmem:[#allocation2 + $0x5c] sm:$0x1] %v9255_v52  ;;  %v9103_v20 = vpop.permute.xlu1 %9102  ;;  %16293 = vmatprep.mubr.msk.bf16.mxu1 %vm9552_vm7, %v17472_v18 }
 0x947   : > { %v9258_v8 = vsel %vm20526_vm1, %v9103_v20, %v9257_v14  ;;  %v9306_v14 = vld [vmem:[#allocation2 + $0xb4] sm:$0xf] }
 0x948   : > { %9259 = vst [vmem:[#allocation2 + $0x60] sm:$0xf] %v9258_v8  ;;  %v9107_v19 = vpop.permute.xlu0 %9106 }
 0x949   : > { %v9262_v44 = vsel %vm20537_vm6, %v9107_v19, %v9261_v45  ;;  %v17473_v37 = vld [vmem:[#allocation2 + $0x54] sm:$0xff]   ;;  %v9310_v45 = vld [vmem:[#allocation2 + $0xbc] sm:$0x1] }
 0x94a   : > { %9263 = vst [vmem:[#allocation2 + $0x68] sm:$0x1] %v9262_v44  ;;  %v9105_v22 = vpop.permute.xlu1 %9104  ;;  %16294 = vmatmul.mubr.msk.bf16.gmra.mrb[112].mxu1 %vm9552_vm7, %v17473_v37 }
 0x94b   : > { %9260 = vst.msk [vmem:[#allocation2 + $0x64] sm:$0xf] %vm9204_vm0, %v9105_v22 }
 0x94e   : > { %v9109_v23 = vpop.permute.xlu0 %9108 }
 0x94f   : > { %v9265_v4 = vsel %vm20526_vm1, %v9109_v23, %v9264_v5  ;;  %v9111_v0 = vpop.permute.xlu1 %9110  ;;  %v17474_v12 = vld [vmem:[#allocation2 + $0x5c] sm:$0xff]  }
 0x950   : > { %9266 = vst [vmem:[#allocation2 + $0x6c] sm:$0xf] %v9265_v4  ;;  %9267 = vst.msk [vmem:[#allocation2 + $0x70] sm:$0xf] %vm9204_vm0, %v9111_v0  ;;  %16297 = vmatprep.mubr.msk.bf16.mxu1 %vm9552_vm7, %v17474_v12  ;;  %v9313_v23 = vld [vmem:[#allocation2 + $0xc0] sm:$0xf] }
 0x952   : > { %v9113_v25 = vpop.permute.xlu0 %9112  ;;  %v17475_v43 = vld [vmem:[#allocation2 + $0x64] sm:$0xff]  }
 0x953   : > { %v9269_v40 = vsel %vm20537_vm6, %v9113_v25, %v9268_v50  ;;  %16298 = vmatmul.mubr.msk.bf16.gmra.mrb[116].mxu1 %vm9552_vm7, %v17475_v43  ;;  %v9317_v50 = vld [vmem:[#allocation2 + $0xc8] sm:$0x1] }
 0x954   : > { %9270 = vst [vmem:[#allocation2 + $0x74] sm:$0x1] %v9269_v40  ;;  %v9115_v49 = vpop.permute.xlu1 %9114 }
 0x955   : > { %v9272_v55 = vsel %vm20526_vm1, %v9115_v49, %v9271_v13  ;;  %v17490_v13 = vld [vmem:[#allocation2] sm:$0xff]  }
 0x956   : > { %9273 = vst [vmem:[#allocation2 + $0x78] sm:$0xf] %v9272_v55  ;;  %v17504_v55 = vld [vmem:[#allocation15 + $0x20] ss:$0 sps:$4 sm:$0x33]  }
 0x957   : > { %v17477_v21 = vld [vmem:[#allocation2 + $0x6c] sm:$0xff]   ;;  %v10537_v17 = vsel %vm9625_vm12, %v17504_v55, 0 }
 0x958   : > { %16301 = vmatprep.mubr.msk.bf16.mxu1 %vm9552_vm7, %v17477_v21  ;;  %v17493_v21 = vld [vmem:[#allocation2 + $0x10] sm:$0xff]  }
 0x95c   : > { %v9119_v32 = vpop.permute.xlu0 %9118 }
 0x95d   : > { %v9276_v53 = vsel %vm20537_vm6, %v9119_v32, %v9275_v48  ;;  %v9117_v29 = vpop.permute.xlu1 %9116  ;;  %v17478_v58 = vld [vmem:[#allocation2 + $0x74] sm:$0xff]   ;;  %v17495_v32 = vld [vmem:[#allocation2 + $0x20] sm:$0xff]  }
 0x95e   : > { %9277 = vst [vmem:[#allocation2 + $0x80] sm:$0x1] %v9276_v53  ;;  %9274 = vst.msk [vmem:[#allocation2 + $0x7c] sm:$0xf] %vm9204_vm0, %v9117_v29  ;;  %16302 = vmatmul.mubr.msk.bf16.gmra.mrb[120].mxu1 %vm9552_vm7, %v17478_v58  ;;  %v17494_v48 = vld [vmem:[#allocation2 + $0x18] sm:$0xff]   ;;  %v17496_v53 = vld [vmem:[#allocation2 + $0x28] sm:$0xff]  }
 0x95f   : > { %v17497_v29 = vld [vmem:[#allocation2 + $0x30] sm:$0xff]   ;;  %v17499_v58 = vld [vmem:[#allocation2 + $0x40] sm:$0xff]  }
 0x960   : > { %v9121_v56 = vpop.permute.xlu0 %9120 }
 0x961   : > { %v9279_v28 = vsel %vm20526_vm1, %v9121_v56, %v9278_v39  ;;  %v9123_v61 = vpop.permute.xlu1 %9122  ;;  %v17500_v39 = vld [vmem:[#allocation2 + $0x48] sm:$0xff]   ;;  %v17501_v56 = vld [vmem:[#allocation2 + $0x50] sm:$0xff]  }
 0x962   : > { %9280 = vst [vmem:[#allocation2 + $0x84] sm:$0xf] %v9279_v28  ;;  %9281 = vst.msk [vmem:[#allocation2 + $0x88] sm:$0xf] %vm9204_vm0, %v9123_v61  ;;  %v17502_v28 = vld [vmem:[#allocation2 + $0x58] sm:$0xff]   ;;  %v17503_v61 = vld [vmem:[#allocation2 + $0x60] sm:$0xff]  }
 0x964   : > { %v9125_v24 = vpop.permute.xlu0 %9124 }
 0x965   : > { %v9283_v33 = vsel %vm20537_vm6, %v9125_v24, %v9282_v3  ;;  %v17479_v7 = vld [vmem:[#allocation2 + $0x7c] sm:$0xff]   ;;  %v17505_v3 = vld [vmem:[#allocation2 + $0x68] sm:$0xff]   ;;  %v17506_v24 = vld [vmem:[#allocation2 + $0x70] sm:$0xff]  }
 0x966   : > { %9284 = vst [vmem:[#allocation2 + $0x8c] sm:$0x1] %v9283_v33  ;;  %v9127_v30 = vpop.permute.xlu1 %9126  ;;  %16305 = vmatprep.mubr.msk.bf16.mxu1 %vm9552_vm7, %v17479_v7  ;;  %v17507_v33 = vld [vmem:[#allocation2 + $0x78] sm:$0xff]  }
 0x967   : > { %v9286_v31 = vsel %vm20526_vm1, %v9127_v30, %v9285_v6 }
 0x968   : > { %9287 = vst [vmem:[#allocation2 + $0x90] sm:$0xf] %v9286_v31  ;;  %v9131_v42 = vpop.permute.xlu0 %9130 }
 0x969   : > { %v9290_v11 = vsel %vm20537_vm6, %v9131_v42, %v9289_v27  ;;  %v17480_v1 = vld [vmem:[#allocation2 + $0x84] sm:$0xff]  }
 0x96a   : > { %9291 = vst [vmem:[#allocation2 + $0x98] sm:$0x1] %v9290_v11  ;;  %v9129_v10 = vpop.permute.xlu1 %9128  ;;  %16306 = vmatmul.mubr.msk.bf16.gmra.mrb[124].mxu1 %vm9552_vm7, %v17480_v1  ;;  %v17508_v7 = vld [vmem:[#allocation2 + $0x80] sm:$0xff]   ;;  %v17516_v1 = vld [vmem:[#allocation2 + $0x18] sm:$0xff]  }
 0x96b   : > { %9288 = vst.msk [vmem:[#allocation2 + $0x94] sm:$0xf] %vm9204_vm0, %v9129_v10 }
 0x96d   : > { %v17509_v6 = vld [vmem:[#allocation2 + $0x88] sm:$0xff]  }
 0x96e   : > { %v9133_v54 = vpop.permute.xlu0 %9132 }
 0x96f   : > { %v9293_v60 = vsel %vm20526_vm1, %v9133_v54, %v9292_v16  ;;  %v9135_v35 = vpop.permute.xlu1 %9134  ;;  %v17481_v2 = vld [vmem:[#allocation2 + $0x8c] sm:$0xff]   ;;  %v17517_v16 = vld [vmem:[#allocation2 + $0x20] sm:$0xff]  }
 0x970   : > { %9294 = vst [vmem:[#allocation2 + $0x9c] sm:$0xf] %v9293_v60  ;;  %9295 = vst.msk [vmem:[#allocation2 + $0xa0] sm:$0xf] %vm9204_vm0, %v9135_v35  ;;  %16309 = vmatprep.mubr.msk.bf16.mxu1 %vm9552_vm7, %v17481_v2  ;;  %v17518_v54 = vld [vmem:[#allocation2 + $0x28] sm:$0xff]   ;;  %v17519_v60 = vld [vmem:[#allocation2 + $0x30] sm:$0xff]  }
 0x971   : > { %v17520_v35 = vld [vmem:[#allocation2 + $0x38] sm:$0xff]   ;;  %v17521_v2 = vld [vmem:[#allocation2 + $0x40] sm:$0xff]  }
 0x972   : > { %v9137_v57 = vpop.permute.xlu0 %9136  ;;  %v17482_v15 = vld [vmem:[#allocation2 + $0x94] sm:$0xff]  }
 0x973   : > { %v9297_v59 = vsel %vm20537_vm6, %v9137_v57, %v9296_v47  ;;  %16310 = vmatmul.mubr.msk.bf16.gmra.mrb[128].mxu1 %vm9552_vm7, %v17482_v15  ;;  %v17510_v30 = vld [vmem:[#allocation2 + $0x90] sm:$0xff]   ;;  %v17522_v47 = vld [vmem:[#allocation2 + $0x48] sm:$0xff]   ;;  %v17524_v15 = vld [vmem:[#allocation2 + $0x58] sm:$0xff]  }
 0x974   : > { %9298 = vst [vmem:[#allocation2 + $0xa4] sm:$0x1] %v9297_v59  ;;  %v9139_v62 = vpop.permute.xlu1 %9138  ;;  %v17523_v57 = vld [vmem:[#allocation2 + $0x50] sm:$0xff]   ;;  %v17525_v59 = vld [vmem:[#allocation2 + $0x60] sm:$0xff]  }
 0x975   : > { %v9300_v51 = vsel %vm20526_vm1, %v9139_v62, %v9299_v9  ;;  %v17526_v9 = vld [vmem:[#allocation2 + $0x68] sm:$0xff]   ;;  %v17527_v62 = vld [vmem:[#allocation2 + $0x70] sm:$0xff]  }
 0x976   : > { %9301 = vst [vmem:[#allocation2 + $0xa8] sm:$0xf] %v9300_v51  ;;  %v17528_v51 = vld [vmem:[#allocation2 + $0x78] sm:$0xff]  }
 0x977   : > { %v17483_v34 = vld [vmem:[#allocation2 + $0x9c] sm:$0xff]  }
 0x978   : > { %16313 = vmatprep.mubr.msk.bf16.mxu1 %vm9552_vm7, %v17483_v34  ;;  %v17511_v31 = vld [vmem:[#allocation2 + $0x98] sm:$0xff]   ;;  %v17529_v34 = vld [vmem:[#allocation2 + $0x80] sm:$0xff]  }
 0x97a   : > { %v9143_v36 = vpop.permute.xlu0 %9142 }
 0x97b   : > { %v9304_v63 = vsel %vm20537_vm6, %v9143_v36, %v9303_v38  ;;  %v9141_v52 = vpop.permute.xlu1 %9140  ;;  %v17512_v27 = vld [vmem:[#allocation2 + $0xa0] sm:$0xff]   ;;  %v17530_v38 = vld [vmem:[#allocation2 + $0x88] sm:$0xff]   ;;  %v17531_v36 = vld [vmem:[#allocation2 + $0x90] sm:$0xff]  }
 0x97c   : > { %9305 = vst [vmem:[#allocation2 + $0xb0] sm:$0x1] %v9304_v63  ;;  %9302 = vst.msk [vmem:[#allocation2 + $0xac] sm:$0xf] %vm9204_vm0, %v9141_v52  ;;  %v17532_v63 = vld [vmem:[#allocation2 + $0x98] sm:$0xff]   ;;  %v17533_v52 = vld [vmem:[#allocation2 + $0xa0] sm:$0xff]  }
 0x97d   : > { %v17484_v18 = vld [vmem:[#allocation2 + $0xa4] sm:$0xff]  }
 0x97e   : > { %v9145_v20 = vpop.permute.xlu0 %9144  ;;  %16314 = vmatmul.mubr.msk.bf16.gmra.mrb[132].mxu1 %vm9552_vm7, %v17484_v18 }
 0x97f   : > { %v9307_v8 = vsel %vm20526_vm1, %v9145_v20, %v9306_v14 }
 0x980   : > { %9308 = vst [vmem:[#allocation2 + $0xb4] sm:$0xf] %v9307_v8 }
 0x982   : > { %v9149_v19 = vpop.permute.xlu0 %9148 }
 0x983   : > { %v9311_v44 = vsel %vm20537_vm6, %v9149_v19, %v9310_v45  ;;  %v9147_v22 = vpop.permute.xlu1 %9146  ;;  %v17485_v37 = vld [vmem:[#allocation2 + $0xac] sm:$0xff]  }
 0x984   : > { %9312 = vst [vmem:[#allocation2 + $0xbc] sm:$0x1] %v9311_v44  ;;  %9309 = vst.msk [vmem:[#allocation2 + $0xb8] sm:$0xf] %vm9204_vm0, %v9147_v22  ;;  %16317 = vmatprep.mubr.msk.bf16.mxu1 %vm9552_vm7, %v17485_v37  ;;  %v17513_v42 = vld [vmem:[#allocation2 + $0xa8] sm:$0xff]   ;;  %v17539_v19 = vld [vmem:[#allocation2 + $0xd0] sm:$0xff]  }
 0x985   : > { %v17534_v18 = vld [vmem:[#allocation2 + $0xa8] sm:$0xff]  }
 0x987   : > { %v17514_v11 = vld [vmem:[#allocation2 + $0xb0] sm:$0xff]  }
 0x988   : > { %v17535_v14 = vld [vmem:[#allocation2 + $0xb0] sm:$0xff]  }
 0x98b   : > { %v17487_v5 = vld [vmem:[#allocation2 + $0xb4] sm:$0xff]  }
 0x98c   : > { %16318 = vmatmul.mubr.msk.bf16.gmra.mrb[136].mxu1 %vm9552_vm7, %v17487_v5  ;;  %v17515_v10 = vld [vmem:[#allocation2 + $0xb8] sm:$0xff]  }
 0x98d   : > { %v17536_v20 = vld [vmem:[#allocation2 + $0xb8] sm:$0xff]  }
 0x998   : > { %v9151_v4 = vpop.permute.xlu1 %9150 }
 0x999   : > { %v9314_v0 = vsel %vm20526_vm1, %v9151_v4, %v9313_v23 }
 0x99a   : > { %9315 = vst [vmem:[#allocation2 + $0xc0] sm:$0xf] %v9314_v0 }
 0x9a1   : > { %v17488_v12 = vld [vmem:[#allocation2 + $0xbc] sm:$0xff]  }
 0x9a2   : > { %16321 = vmatprep.mubr.msk.bf16.mxu1 %vm9552_vm7, %v17488_v12 }
 0x9a4   : > { %v9155_v25 = vpop.permute.xlu0 %9154 }
 0x9a5   : > { %v9318_v43 = vsel %vm20537_vm6, %v9155_v25, %v9317_v50  ;;  %v9153_v40 = vpop.permute.xlu1 %9152 }
 0x9a6   : > { %9319 = vst [vmem:[#allocation2 + $0xc8] sm:$0x1] %v9318_v43  ;;  %9316 = vst.msk [vmem:[#allocation2 + $0xc4] sm:$0xf] %vm9204_vm0, %v9153_v40 }
 0x9ad   : > { %v17489_v49 = vld [vmem:[#allocation2 + $0xc4] sm:$0xff]  }
 0x9ae   : > { %16322 = vmatmul.mubr.msk.bf16.gmra.mrb[140].mxu1 %vm9552_vm7, %v17489_v49  ;;  %v17537_v8 = vld [vmem:[#allocation2 + $0xc0] sm:$0xff]   ;;  %v17538_v45 = vld [vmem:[#allocation2 + $0xc8] sm:$0xff]  }
 0x9af   : > { %16329 = vmatprep.mubr.msk.bf16.mxu1 %vm9552_vm7, %v17490_v13 }
 0x9b6   : > { %16330 = vmatmul.mubr.msk.bf16.vlgmr.msra.gmra.mrb[96].mxu1 %vm9552_vm7, %v17492_v46 }
 0x9b7   : > { %16378 = vmatpush3.bf16.msra.mxu1 %v20571_v26  ;;  %16333 = vmatprep.mubr.msk.bf16.mxu1 %vm9552_vm7, %v17493_v21  ;;  %v17498_v26 = vld [vmem:[#allocation2 + $0x38] sm:$0xff]  }
 0x9b8   : > { %17076 = vmatprep.subr.msk.bf16.mxu1 %vm9625_vm12, %v17504_v55 }
 0x9bb   : > { %16380 = vmatpush3.bf16.msra.mxu1 %v10537_v17 }
 0x9be   : > { %16334 = vmatmul.mubr.msk.bf16.gmra.mrb[100].mxu1 %vm9552_vm7, %v17494_v48 }
 0x9bf   : > { %16337 = vmatprep.mubr.msk.bf16.mxu1 %vm9552_vm7, %v17495_v32 }
 0x9c6   : > { %16338 = vmatmul.mubr.msk.bf16.gmra.mrb[104].mxu1 %vm9552_vm7, %v17496_v53 }
 0x9c7   : > { %16341 = vmatprep.mubr.msk.bf16.mxu1 %vm9552_vm7, %v17497_v29 }
 0x9ce   : > { %16342 = vmatmul.mubr.msk.bf16.gmra.mrb[108].mxu1 %vm9552_vm7, %v17498_v26 }
 0x9cf   : > { %16345 = vmatprep.mubr.msk.bf16.mxu1 %vm9552_vm7, %v17499_v58 }
 0x9d6   : > { %16346 = vmatmul.mubr.msk.bf16.gmra.mrb[112].mxu1 %vm9552_vm7, %v17500_v39 }
 0x9d7   : > { %16349 = vmatprep.mubr.msk.bf16.mxu1 %vm9552_vm7, %v17501_v56 }
 0x9de   : > { %16350 = vmatmul.mubr.msk.bf16.gmra.mrb[116].mxu1 %vm9552_vm7, %v17502_v28 }
 0x9df   : > { %16353 = vmatprep.mubr.msk.bf16.mxu1 %vm9552_vm7, %v17503_v61 }
 0x9e6   : > { %16354 = vmatmul.mubr.msk.bf16.gmra.mrb[120].mxu1 %vm9552_vm7, %v17505_v3 }
 0x9e7   : > { %16357 = vmatprep.mubr.msk.bf16.mxu1 %vm9552_vm7, %v17506_v24 }
 0x9ee   : > { %16358 = vmatmul.mubr.msk.bf16.gmra.mrb[124].mxu1 %vm9552_vm7, %v17507_v33 }
 0x9ef   : > { %16361 = vmatprep.mubr.msk.bf16.mxu1 %vm9552_vm7, %v17508_v7 }
 0x9f6   : > { %16362 = vmatmul.mubr.msk.bf16.gmra.mrb[128].mxu1 %vm9552_vm7, %v17509_v6 }
 0x9f7   : > { %16365 = vmatprep.mubr.msk.bf16.mxu1 %vm9552_vm7, %v17510_v30 }
 0x9fe   : > { %16366 = vmatmul.mubr.msk.bf16.gmra.mrb[132].mxu1 %vm9552_vm7, %v17511_v31 }
 0x9ff   : > { %16369 = vmatprep.mubr.msk.bf16.mxu1 %vm9552_vm7, %v17512_v27 }
 0xa06   : > { %16370 = vmatmul.mubr.msk.bf16.gmra.mrb[136].mxu1 %vm9552_vm7, %v17513_v42 }
 0xa07   : > { %16373 = vmatprep.mubr.msk.bf16.mxu1 %vm9552_vm7, %v17514_v11 }
 0xa0e   : > { %16374 = vmatmul.mubr.msk.bf16.gmra.mrb[140].mxu1 %vm9552_vm7, %v17515_v10 }
 0xa0f   : > { %16381 = vmatprep.mubr.msk.bf16.mxu1 %vm9552_vm7, %v17516_v1 }
 0xa16   : > { %16382 = vmatmul.mubr.msk.bf16.vlgmr.msra.gmra.mrb[96].mxu1 %vm9552_vm7, %v17517_v16 }
 0xa17   : > { %16385 = vmatprep.mubr.msk.bf16.mxu1 %vm9552_vm7, %v17518_v54 }
 0xa1e   : > { %16386 = vmatmul.mubr.msk.bf16.gmra.mrb[100].mxu1 %vm9552_vm7, %v17519_v60 }
 0xa1f   : > { %16389 = vmatprep.mubr.msk.bf16.mxu1 %vm9552_vm7, %v17520_v35 }
 0xa26   : > { %16390 = vmatmul.mubr.msk.bf16.gmra.mrb[104].mxu1 %vm9552_vm7, %v17521_v2 }
 0xa27   : > { %16393 = vmatprep.mubr.msk.bf16.mxu1 %vm9552_vm7, %v17522_v47 }
 0xa2e   : > { %16394 = vmatmul.mubr.msk.bf16.gmra.mrb[108].mxu1 %vm9552_vm7, %v17523_v57 }
 0xa2f   : > { %16397 = vmatprep.mubr.msk.bf16.mxu1 %vm9552_vm7, %v17524_v15 }
 0xa36   : > { %16398 = vmatmul.mubr.msk.bf16.gmra.mrb[112].mxu1 %vm9552_vm7, %v17525_v59 }
 0xa37   : > { %16401 = vmatprep.mubr.msk.bf16.mxu1 %vm9552_vm7, %v17526_v9 }
 0xa3e   : > { %16402 = vmatmul.mubr.msk.bf16.gmra.mrb[116].mxu1 %vm9552_vm7, %v17527_v62 }
 0xa3f   : > { %16405 = vmatprep.mubr.msk.bf16.mxu1 %vm9552_vm7, %v17528_v51 }
 0xa46   : > { %16406 = vmatmul.mubr.msk.bf16.gmra.mrb[120].mxu1 %vm9552_vm7, %v17529_v34 }
 0xa47   : > { %16409 = vmatprep.mubr.msk.bf16.mxu1 %vm9552_vm7, %v17530_v38 }
 0xa4e   : > { %16410 = vmatmul.mubr.msk.bf16.gmra.mrb[124].mxu1 %vm9552_vm7, %v17531_v36 }
 0xa4f   : > { %16413 = vmatprep.mubr.msk.bf16.mxu1 %vm9552_vm7, %v17532_v63 }
 0xa56   : > { %16414 = vmatmul.mubr.msk.bf16.gmra.mrb[128].mxu1 %vm9552_vm7, %v17533_v52 }
 0xa57   : > { %16417 = vmatprep.mubr.msk.bf16.mxu1 %vm9552_vm7, %v17534_v18 }
 0xa5e   : > { %16418 = vmatmul.mubr.msk.bf16.gmra.mrb[132].mxu1 %vm9552_vm7, %v17535_v14 }
 0xa5f   : > { %16421 = vmatprep.mubr.msk.bf16.mxu1 %vm9552_vm7, %v17536_v20 }
 0xa66   : > { %16422 = vmatmul.mubr.msk.bf16.gmra.mrb[136].mxu1 %vm9552_vm7, %v17537_v8 }
 0xa67   : > { %16425 = vmatprep.mubr.msk.bf16.mxu1 %vm9552_vm7, %v17538_v45 }
 0xa6e   : > { %16426 = vmatmul.mubr.msk.bf16.gmra.mrb[140].mxu1 %vm9552_vm7, %v17539_v19 }
 0xae9   : > { %v16383_v44 = vpop.f32.mrb[96].mxu1 }
 0xaea   : > { %v20708_v22 = vpop.f32.mrb[97].mxu1  ;;  %v10902_v5 = vrot.slane %v16383_v44, 1  ;;  %v11110_v23 = vrot.slane %v16383_v44, 2 }
 0xaeb   : > { %v20710_v37 = vpop.f32.mrb[98].mxu1  ;;  %v10899_v0 = vrot.slane %v20708_v22, 1  ;;  %v11107_v12 = vrot.slane %v20708_v22, 2 }
 0xaec   : > { %v20712_v4 = vpop.f32.mrb[99].mxu1  ;;  %v10904_v21 = vrot.slane %v20710_v37, 1  ;;  %v11112_v17 = vrot.slane %v20710_v37, 2 }
 0xaed   : > { %v10900_v50 = vrot.slane %v20712_v4, 1  ;;  %v11108_v25 = vrot.slane %v20712_v4, 2 }
 0xaef   : > { %v10903_v43 = vsel %vm2778_vm15, %v10900_v50, %v10902_v5  ;;  %v10901_v40 = vsel %vm2778_vm15, %v10899_v0, %v10900_v50  ;;  %v11109_v13 = vsel %vm2987_vm14, %v11107_v12, %v11108_v25  ;;  %v11111_v49 = vsel %vm2987_vm14, %v11108_v25, %v11110_v23 }
 0xaf0   : > { %10981 = vrot.lane.b32.xlu1 %v10903_v43, %s18041_s26  ;;  %10979 = vrot.lane.b32.xlu0 %v10901_v40, %s18041_s26 }
 0xaf1   : > { %v20724_v46 = vpop.f32.mrb[100].mxu1 }
 0xaf2   : > { %v20726_v55 = vpop.f32.mrb[101].mxu1  ;;  %v10909_v29 = vrot.slane %v20724_v46, 1  ;;  %v11117_v26 = vrot.slane %v20724_v46, 2 }
 0xaf3   : > { %v10905_v48 = vrot.slane %v20726_v55, 1  ;;  %v11113_v32 = vrot.slane %v20726_v55, 2  ;;  %v20732_v53 = vpop.f32.mrb[102].mxu1 }
 0xaf4   : > { %v10910_v58 = vrot.slane %v20732_v53, 1  ;;  %v11118_v39 = vrot.slane %v20732_v53, 2  ;;  %11187 = vrot.lane.b32.xlu1 %v11109_v13, %s18040_s24  ;;  %11189 = vrot.lane.b32.xlu0 %v11111_v49, %s18040_s24  ;;  %v10592_v56 = vpop.f32.mrb[103].mxu1 }
 0xaf5   : > { %v10907_v28 = vrot.slane %v10592_v56, 1  ;;  %v11115_v61 = vrot.slane %v10592_v56, 2  ;;  %v11114_v3 = vsel %vm2987_vm14, %v11112_v17, %v11113_v32  ;;  %v10906_v24 = vsel %vm2778_vm15, %v10904_v21, %v10905_v48 }
 0xaf6   : > { %v11119_v33 = vsel %vm2987_vm14, %v11117_v26, %v11118_v39  ;;  %v10911_v7 = vsel %vm2778_vm15, %v10909_v29, %v10910_v58 }
 0xaf7   : > { %v11116_v6 = vsel %vm2987_vm14, %v11113_v32, %v11115_v61  ;;  %v10908_v30 = vsel %vm2778_vm15, %v10905_v48, %v10907_v28 }
 0xaf8   : > { %11191 = vrot.lane.b32.xlu1 %v11114_v3, %s18040_s24  ;;  %10983 = vrot.lane.b32.xlu0 %v10906_v24, %s18041_s26 }
 0xaf9   : > { %v20748_v31 = vpop.f32.mrb[104].mxu1 }
 0xafa   : > { %v10605_v27 = vpop.f32.mrb[105].mxu1  ;;  %v10915_v1 = vrot.slane %v20748_v31, 1  ;;  %v11123_v16 = vrot.slane %v20748_v31, 2 }
 0xafb   : > { %v10912_v42 = vrot.slane %v10605_v27, 1  ;;  %v11120_v11 = vrot.slane %v10605_v27, 2  ;;  %v16392_v10 = vpop.f32.mrb[106].mxu1 }
 0xafc   : > { %v10917_v54 = vrot.slane %v16392_v10, 1  ;;  %v11125_v60 = vrot.slane %v16392_v10, 2  ;;  %11195 = vrot.lane.b32.xlu0 %v11119_v33, %s18040_s24  ;;  %10987 = vrot.lane.b32.xlu1 %v10911_v7, %s18041_s26  ;;  %v20754_v35 = vpop.f32.mrb[107].mxu1 }
 0xafd   : > { %v10914_v2 = vrot.slane %v20754_v35, 1  ;;  %v11122_v47 = vrot.slane %v20754_v35, 2  ;;  %v11121_v57 = vsel %vm2987_vm14, %v11118_v39, %v11120_v11  ;;  %v10913_v15 = vsel %vm2778_vm15, %v10910_v58, %v10912_v42 }
 0xafe   : > { %v10918_v59 = vsel %vm2778_vm15, %v10915_v1, %v10917_v54  ;;  %v11126_v9 = vsel %vm2987_vm14, %v11123_v16, %v11125_v60 }
 0xaff   : > { %v10916_v62 = vsel %vm2778_vm15, %v10914_v2, %v10915_v1  ;;  %v11124_v51 = vsel %vm2987_vm14, %v11122_v47, %v11123_v16 }
 0xb00   : > { %11193 = vrot.lane.b32.xlu1 %v11116_v6, %s18040_s24  ;;  %10985 = vrot.lane.b32.xlu0 %v10908_v30, %s18041_s26 }
 0xb01   : > { %v16395_v34 = vpop.f32.mrb[108].mxu1 }
 0xb02   : > { %v20766_v38 = vpop.f32.mrb[109].mxu1  ;;  %v10922_v63 = vrot.slane %v16395_v34, 1  ;;  %v11130_v52 = vrot.slane %v16395_v34, 2 }
 0xb03   : > { %v20768_v36 = vpop.f32.mrb[110].mxu1  ;;  %v10919_v14 = vrot.slane %v20766_v38, 1  ;;  %v11127_v20 = vrot.slane %v20766_v38, 2 }
 0xb04   : > { %11197 = vrot.lane.b32.xlu1 %v11121_v57, %s18040_s24  ;;  %10989 = vrot.lane.b32.xlu0 %v10913_v15, %s18041_s26  ;;  %v20772_v18 = vpop.f32.mrb[111].mxu1  ;;  %v10924_v50 = vrot.slane %v20768_v36, 1  ;;  %v11132_v25 = vrot.slane %v20768_v36, 2 }
 0xb05   : > { %v10920_v8 = vrot.slane %v20772_v18, 1  ;;  %v11128_v45 = vrot.slane %v20772_v18, 2 }
 0xb07   : > { %v10923_v19 = vsel %vm2778_vm15, %v10920_v8, %v10922_v63  ;;  %v10921_v44 = vsel %vm2778_vm15, %v10919_v14, %v10920_v8  ;;  %v11129_v5 = vsel %vm2987_vm14, %v11127_v20, %v11128_v45  ;;  %v11131_v23 = vsel %vm2987_vm14, %v11128_v45, %v11130_v52 }
 0xb08   : > { %10993 = vrot.lane.b32.xlu1 %v10918_v59, %s18041_s26  ;;  %10991 = vrot.lane.b32.xlu0 %v10916_v62, %s18041_s26 }
 0xb09   : > { %v20784_v0 = vpop.f32.mrb[112].mxu1 }
 0xb0a   : > { %v20786_v12 = vpop.f32.mrb[113].mxu1  ;;  %v10929_v49 = vrot.slane %v20784_v0, 1  ;;  %v11137_v21 = vrot.slane %v20784_v0, 2 }
 0xb0b   : > { %v10925_v43 = vrot.slane %v20786_v12, 1  ;;  %v11133_v40 = vrot.slane %v20786_v12, 2  ;;  %v20792_v13 = vpop.f32.mrb[114].mxu1 }
 0xb0c   : > { %v10930_v17 = vrot.slane %v20792_v13, 1  ;;  %v11138_v48 = vrot.slane %v20792_v13, 2  ;;  %11201 = vrot.lane.b32.xlu1 %v11126_v9, %s18040_s24  ;;  %11199 = vrot.lane.b32.xlu0 %v11124_v51, %s18040_s24  ;;  %v10640_v32 = vpop.f32.mrb[115].mxu1 }
 0xb0d   : > { %v10927_v29 = vrot.slane %v10640_v32, 1  ;;  %v11135_v26 = vrot.slane %v10640_v32, 2  ;;  %v11134_v58 = vsel %vm2987_vm14, %v11132_v25, %v11133_v40  ;;  %v10926_v39 = vsel %vm2778_vm15, %v10924_v50, %v10925_v43 }
 0xb0e   : > { %v11139_v56 = vsel %vm2987_vm14, %v11137_v21, %v11138_v48  ;;  %v10931_v28 = vsel %vm2778_vm15, %v10929_v49, %v10930_v17 }
 0xb0f   : > { %v11136_v61 = vsel %vm2987_vm14, %v11133_v40, %v11135_v26  ;;  %v10928_v3 = vsel %vm2778_vm15, %v10925_v43, %v10927_v29 }
 0xb10   : > { %10997 = vrot.lane.b32.xlu1 %v10923_v19, %s18041_s26  ;;  %10995 = vrot.lane.b32.xlu0 %v10921_v44, %s18041_s26 }
 0xb11   : > { %v20808_v24 = vpop.f32.mrb[116].mxu1 }
 0xb12   : > { %v10653_v33 = vpop.f32.mrb[117].mxu1  ;;  %v10935_v27 = vrot.slane %v20808_v24, 1  ;;  %v11143_v42 = vrot.slane %v20808_v24, 2 }
 0xb13   : > { %v10932_v7 = vrot.slane %v10653_v33, 1  ;;  %v11140_v6 = vrot.slane %v10653_v33, 2  ;;  %v16404_v30 = vpop.f32.mrb[118].mxu1 }
 0xb14   : > { %v10937_v11 = vrot.slane %v16404_v30, 1  ;;  %v11145_v10 = vrot.slane %v16404_v30, 2  ;;  %11203 = vrot.lane.b32.xlu1 %v11129_v5, %s18040_s24  ;;  %11205 = vrot.lane.b32.xlu0 %v11131_v23, %s18040_s24  ;;  %v20814_v1 = vpop.f32.mrb[119].mxu1 }
 0xb15   : > { %v10934_v16 = vrot.slane %v20814_v1, 1  ;;  %v11142_v54 = vrot.slane %v20814_v1, 2  ;;  %v11141_v60 = vsel %vm2987_vm14, %v11138_v48, %v11140_v6  ;;  %v10933_v2 = vsel %vm2778_vm15, %v10930_v17, %v10932_v7 }
 0xb16   : > { %v10938_v47 = vsel %vm2778_vm15, %v10935_v27, %v10937_v11  ;;  %v11146_v57 = vsel %vm2987_vm14, %v11143_v42, %v11145_v10 }
 0xb17   : > { %v10936_v15 = vsel %vm2778_vm15, %v10934_v16, %v10935_v27  ;;  %v11144_v59 = vsel %vm2987_vm14, %v11142_v54, %v11143_v42 }
 0xb18   : > { %11207 = vrot.lane.b32.xlu1 %v11134_v58, %s18040_s24  ;;  %10999 = vrot.lane.b32.xlu0 %v10926_v39, %s18041_s26 }
 0xb19   : > { %v16407_v9 = vpop.f32.mrb[120].mxu1 }
 0xb1a   : > { %v20826_v62 = vpop.f32.mrb[121].mxu1  ;;  %v10942_v34 = vrot.slane %v16407_v9, 1  ;;  %v11150_v63 = vrot.slane %v16407_v9, 2 }
 0xb1b   : > { %v20828_v51 = vpop.f32.mrb[122].mxu1  ;;  %v10939_v14 = vrot.slane %v20826_v62, 1  ;;  %v11147_v20 = vrot.slane %v20826_v62, 2 }
 0xb1c   : > { %11211 = vrot.lane.b32.xlu0 %v11139_v56, %s18040_s24  ;;  %11003 = vrot.lane.b32.xlu1 %v10931_v28, %s18041_s26  ;;  %v20832_v52 = vpop.f32.mrb[123].mxu1  ;;  %v10944_v43 = vrot.slane %v20828_v51, 1  ;;  %v11152_v40 = vrot.slane %v20828_v51, 2 }
 0xb1d   : > { %v10940_v8 = vrot.slane %v20832_v52, 1  ;;  %v11148_v45 = vrot.slane %v20832_v52, 2 }
 0xb1f   : > { %v10943_v19 = vsel %vm2778_vm15, %v10940_v8, %v10942_v34  ;;  %v10941_v44 = vsel %vm2778_vm15, %v10939_v14, %v10940_v8  ;;  %v11149_v5 = vsel %vm2987_vm14, %v11147_v20, %v11148_v45  ;;  %v11151_v23 = vsel %vm2987_vm14, %v11148_v45, %v11150_v63 }
 0xb20   : > { %11209 = vrot.lane.b32.xlu1 %v11136_v61, %s18040_s24  ;;  %11001 = vrot.lane.b32.xlu0 %v10928_v3, %s18041_s26 }
 0xb21   : > { %v20844_v50 = vpop.f32.mrb[124].mxu1 }
 0xb22   : > { %v20846_v25 = vpop.f32.mrb[125].mxu1  ;;  %v10949_v48 = vrot.slane %v20844_v50, 1  ;;  %v11157_v32 = vrot.slane %v20844_v50, 2 }
 0xb23   : > { %v10945_v49 = vrot.slane %v20846_v25, 1  ;;  %v11153_v21 = vrot.slane %v20846_v25, 2  ;;  %v20852_v17 = vpop.f32.mrb[126].mxu1 }
 0xb24   : > { %v10950_v29 = vrot.slane %v20852_v17, 1  ;;  %v11158_v26 = vrot.slane %v20852_v17, 2  ;;  %11213 = vrot.lane.b32.xlu1 %v11141_v60, %s18040_s24  ;;  %11005 = vrot.lane.b32.xlu0 %v10933_v2, %s18041_s26  ;;  %v10688_v58 = vpop.f32.mrb[127].mxu1 }
 0xb25   : > { %v10947_v39 = vrot.slane %v10688_v58, 1  ;;  %v11155_v56 = vrot.slane %v10688_v58, 2  ;;  %v11154_v28 = vsel %vm2987_vm14, %v11152_v40, %v11153_v21  ;;  %v10946_v61 = vsel %vm2778_vm15, %v10944_v43, %v10945_v49 }
 0xb26   : > { %v11159_v3 = vsel %vm2987_vm14, %v11157_v32, %v11158_v26  ;;  %v10951_v33 = vsel %vm2778_vm15, %v10949_v48, %v10950_v29 }
 0xb27   : > { %v20865_v7 = vsel %vm2987_vm14, %v11153_v21, %v11155_v56  ;;  %v20868_v6 = vsel %vm2778_vm15, %v10945_v49, %v10947_v39 }
 0xb28   : > { %11009 = vrot.lane.b32.xlu1 %v10938_v47, %s18041_s26  ;;  %11007 = vrot.lane.b32.xlu0 %v10936_v15, %s18041_s26 }
 0xb29   : > { %v20872_v30 = vpop.f32.mrb[128].mxu1 }
 0xb2a   : > { %v10701_v27 = vpop.f32.mrb[129].mxu1  ;;  %v10955_v16 = vrot.slane %v20872_v30, 1  ;;  %v11163_v54 = vrot.slane %v20872_v30, 2 }
 0xb2b   : > { %v10952_v42 = vrot.slane %v10701_v27, 1  ;;  %v11160_v11 = vrot.slane %v10701_v27, 2  ;;  %v16416_v10 = vpop.f32.mrb[130].mxu1 }
 0xb2c   : > { %v10957_v60 = vrot.slane %v16416_v10, 1  ;;  %v11165_v2 = vrot.slane %v16416_v10, 2  ;;  %11217 = vrot.lane.b32.xlu1 %v11146_v57, %s18040_s24  ;;  %11215 = vrot.lane.b32.xlu0 %v11144_v59, %s18040_s24  ;;  %v20878_v9 = vpop.f32.mrb[131].mxu1 }
 0xb2d   : > { %v10954_v47 = vrot.slane %v20878_v9, 1  ;;  %v11162_v15 = vrot.slane %v20878_v9, 2  ;;  %v11161_v34 = vsel %vm2987_vm14, %v11158_v26, %v11160_v11  ;;  %v10953_v63 = vsel %vm2778_vm15, %v10950_v29, %v10952_v42 }
 0xb2e   : > { %v20885_v14 = vsel %vm2778_vm15, %v10955_v16, %v10957_v60  ;;  %v20888_v20 = vsel %vm2987_vm14, %v11163_v54, %v11165_v2 }
 0xb2f   : > { %v20891_v57 = vsel %vm2778_vm15, %v10954_v47, %v10955_v16  ;;  %v20894_v59 = vsel %vm2987_vm14, %v11162_v15, %v11163_v54 }
 0xb30   : > { %11013 = vrot.lane.b32.xlu1 %v10943_v19, %s18041_s26  ;;  %11011 = vrot.lane.b32.xlu0 %v10941_v44, %s18041_s26 }
 0xb31   : > { %v16419_v8 = vpop.f32.mrb[132].mxu1 }
 0xb32   : > { %v20898_v45 = vpop.f32.mrb[133].mxu1  ;;  %v10962_v40 = vrot.slane %v16419_v8, 1  ;;  %v11170_v49 = vrot.slane %v16419_v8, 2 }
 0xb33   : > { %v20900_v43 = vpop.f32.mrb[134].mxu1  ;;  %v10959_v48 = vrot.slane %v20898_v45, 1  ;;  %v11167_v32 = vrot.slane %v20898_v45, 2 }
 0xb34   : > { %11219 = vrot.lane.b32.xlu1 %v11149_v5, %s18040_s24  ;;  %11221 = vrot.lane.b32.xlu0 %v11151_v23, %s18040_s24  ;;  %v20904_v21 = vpop.f32.mrb[135].mxu1  ;;  %v10964_v56 = vrot.slane %v20900_v43, 1  ;;  %v11172_v27 = vrot.slane %v20900_v43, 2 }
 0xb35   : > { %v10960_v19 = vrot.slane %v20904_v21, 1  ;;  %v11168_v44 = vrot.slane %v20904_v21, 2 }
 0xb37   : > { %v10963_v29 = vsel %vm2778_vm15, %v10960_v19, %v10962_v40  ;;  %v10961_v26 = vsel %vm2778_vm15, %v10959_v48, %v10960_v19  ;;  %v11171_v58 = vsel %vm2987_vm14, %v11168_v44, %v11170_v49  ;;  %v11169_v5 = vsel %vm2987_vm14, %v11167_v32, %v11168_v44 }
 0xb38   : > { %11223 = vrot.lane.b32.xlu1 %v11154_v28, %s18040_s24  ;;  %11015 = vrot.lane.b32.xlu0 %v10946_v61, %s18041_s26 }
 0xb39   : > { %v20916_v23 = vpop.f32.mrb[136].mxu1 }
 0xb3a   : > { %v20918_v39 = vpop.f32.mrb[137].mxu1  ;;  %v10969_v16 = vrot.slane %v20916_v23, 1  ;;  %v11177_v28 = vrot.slane %v20916_v23, 2 }
 0xb3b   : > { %v10965_v42 = vrot.slane %v20918_v39, 1  ;;  %v11173_v11 = vrot.slane %v20918_v39, 2  ;;  %v20924_v10 = vpop.f32.mrb[138].mxu1 }
 0xb3c   : > { %v10970_v61 = vrot.slane %v20924_v10, 1  ;;  %v11178_v54 = vrot.slane %v20924_v10, 2  ;;  %11227 = vrot.lane.b32.xlu0 %v11159_v3, %s18040_s24  ;;  %11019 = vrot.lane.b32.xlu1 %v10951_v33, %s18041_s26  ;;  %v10736_v60 = vpop.f32.mrb[139].mxu1 }
 0xb3d   : > { %v10967_v2 = vrot.slane %v10736_v60, 1  ;;  %v11175_v47 = vrot.slane %v10736_v60, 2  ;;  %v11174_v15 = vsel %vm2987_vm14, %v11172_v27, %v11173_v11  ;;  %v10966_v8 = vsel %vm2778_vm15, %v10964_v56, %v10965_v42 }
 0xb3e   : > { %v10971_v40 = vsel %vm2778_vm15, %v10969_v16, %v10970_v61  ;;  %v11179_v49 = vsel %vm2987_vm14, %v11177_v28, %v11178_v54 }
 0xb3f   : > { %v10968_v48 = vsel %vm2778_vm15, %v10965_v42, %v10967_v2  ;;  %v11176_v32 = vsel %vm2987_vm14, %v11173_v11, %v11175_v47 }
 0xb40   : > { %11225 = vrot.lane.b32.xlu1 %v20865_v7, %s18040_s24  ;;  %11017 = vrot.lane.b32.xlu0 %v20868_v6, %s18041_s26 }
 0xb41   : > { %v20942_v3 = vpop.f32.mrb[140].mxu1 }
 0xb42   : > { %v10749_v33 = vpop.f32.mrb[141].mxu1  ;;  %v10975_v27 = vrot.slane %v20942_v3, 1  ;;  %v11183_v16 = vrot.slane %v20942_v3, 2 }
 0xb43   : > { %v10972_v19 = vrot.slane %v10749_v33, 1  ;;  %v11180_v44 = vrot.slane %v10749_v33, 2  ;;  %v16428_v56 = vpop.f32.mrb[142].mxu1 }
 0xb44   : > { %v10977_v28 = vrot.slane %v16428_v56, 1  ;;  %v11185_v42 = vrot.slane %v16428_v56, 2  ;;  %11229 = vrot.lane.b32.xlu1 %v11161_v34, %s18040_s24  ;;  %11021 = vrot.lane.b32.xlu0 %v10953_v63, %s18041_s26  ;;  %v20948_v7 = vpop.f32.mrb[143].mxu1  ;;  %v17540_v63 = vld [vmem:[#allocation18 + $0xc] sm:$0xff]  }
 0xb45   : > { %v10974_v6 = vrot.slane %v20948_v7, 1  ;;  %v11182_v11 = vrot.slane %v20948_v7, 2  ;;  %v10973_v60 = vsel %vm2778_vm15, %v10970_v61, %v10972_v19  ;;  %v11181_v47 = vsel %vm2987_vm14, %v11178_v54, %v11180_v44  ;;  %16429 = vmatprep.subr.bf16.mxu0 %v17540_v63 }
 0xb46   : > { %v10978_v2 = vsel %vm2778_vm15, %v10975_v27, %v10977_v28  ;;  %v20956_v33 = vsel %vm2987_vm14, %v11183_v16, %v11185_v42  ;;  %16430 = vmatpush3.bf16.msra.mxu0 %v17540_v63 }
 0xb47   : > { %v10976_v56 = vsel %vm2778_vm15, %v10974_v6, %v10975_v27  ;;  %v20960_v34 = vsel %vm2987_vm14, %v11182_v11, %v11183_v16 }
 0xb48   : > { %11025 = vrot.lane.b32.xlu1 %v20885_v14, %s18041_s26  ;;  %11023 = vrot.lane.b32.xlu0 %v20891_v57, %s18041_s26  ;;  %v20978_v14 = vld [vmem:[#allocation17] ss:$0 sm:$0xff] }
 0xb49   : > { %v10823_v16 = vadd.f32 %v20724_v46, %v20978_v14 }
 0xb4c   : > { %11233 = vrot.lane.b32.xlu1 %v20888_v20, %s18040_s24  ;;  %11231 = vrot.lane.b32.xlu0 %v20894_v59, %s18040_s24  ;;  %v10819_v59 = vadd.f32 %v20978_v14, %v20708_v22 }
 0xb50   : > { %11029 = vrot.lane.b32.xlu1 %v10963_v29, %s18041_s26  ;;  %11027 = vrot.lane.b32.xlu0 %v10961_v26, %s18041_s26  ;;  %v10820_v29 = vadd.f32 %v20978_v14, %v20712_v4 }
 0xb54   : > { %11237 = vrot.lane.b32.xlu1 %v11171_v58, %s18040_s24  ;;  %11235 = vrot.lane.b32.xlu0 %v11169_v5, %s18040_s24 }
 0xb58   : > { %11239 = vrot.lane.b32.xlu1 %v11174_v15, %s18040_s24  ;;  %11031 = vrot.lane.b32.xlu0 %v10966_v8, %s18041_s26  ;;  %v10821_v8 = vadd.f32 %v20710_v37, %v20978_v14 }
 0xb5c   : > { %11035 = vrot.lane.b32.xlu1 %v10971_v40, %s18041_s26  ;;  %11033 = vrot.lane.b32.xlu0 %v10968_v48, %s18041_s26 }
 0xb60   : > { %11243 = vrot.lane.b32.xlu1 %v11179_v49, %s18040_s24  ;;  %11241 = vrot.lane.b32.xlu0 %v11176_v32, %s18040_s24 }
 0xb62   : > { %v10982_v20 = vpop.permute.xlu1 %10981  ;;  %v10980_v57 = vpop.permute.xlu0 %10979 }
 0xb63   : > { %v11076_v26 = vadd.f32 %v10982_v20, %v10820_v29  ;;  %v11075_v58 = vadd.f32 %v10980_v57, %v10819_v59  ;;  %v10822_v59 = vadd.f32 %v20978_v14, %v20726_v55  ;;  %v10824_v55 = vadd.f32 %v20732_v53, %v20978_v14 }
 0xb64   : > { %11037 = vrot.lane.b32.xlu0 %v10973_v60, %s18041_s26  ;;  %11041 = vrot.lane.b32.xlu1 %v10978_v2, %s18041_s26 }
 0xb66   : > { %v11188_v5 = vpop.permute.xlu1 %11187  ;;  %v11190_v61 = vpop.permute.xlu0 %11189 }
 0xb67   : > { %v11283_v54 = vadd.f32 %v11188_v5, %v11075_v58  ;;  %v11284_v15 = vadd.f32 %v11190_v61, %v11076_v26 }
 0xb68   : > { %11245 = vrot.lane.b32.xlu0 %v11181_v47, %s18040_s24 }
 0xb69   : > { %vm11315_vm12 = vcmp.ge.f32.partialorder %v11283_v54, 0.0  ;;  %v11347_v22 = vmul.f32 0.2, %v11283_v54  ;;  %vm11316_vm13 = vcmp.ge.f32.partialorder %v11284_v15, 0.0  ;;  %v11348_v40 = vmul.f32 0.2, %v11284_v15 }
 0xb6a   : > { %v11192_v4 = vpop.permute.xlu1 %11191  ;;  %v10984_v49 = vpop.permute.xlu0 %10983 }
 0xb6b   : > { %v11379_v48 = vsel %vm11315_vm12, %v11283_v54, %v11347_v22  ;;  %v11380_v32 = vsel %vm11316_vm13, %v11284_v15, %v11348_v40  ;;  %v11077_v19 = vadd.f32 %v10984_v49, %v10821_v8 }
 0xb6c   : > { %v15409_v44 = vpack.c.bf16 %v11379_v48, %v11379_v48  ;;  %v15410_v27 = vpack.c.bf16 %v11380_v32, %v11380_v32  ;;  %11039 = vrot.lane.b32.xlu0 %v10976_v56, %s18041_s26 }
 0xb6d   : > { %v11285_v28 = vadd.f32 %v11192_v4, %v11077_v19 }
 0xb6e   : > { %v11508_v37 = vshrl.u32 %v15409_v44, 16  ;;  %v11516_v42 = vshrl.u32 %v15410_v27, 16  ;;  %v11196_v6 = vpop.permute.xlu0 %11195  ;;  %v10988_v11 = vpop.permute.xlu1 %10987  ;;  %v11511_v63 = vshll.u32 %v15409_v44, 16  ;;  %v11519_v57 = vshll.u32 %v15410_v27, 16 }
 0xb6f   : > { %vm11317_vm0 = vcmp.ge.f32.partialorder %v11285_v28, 0.0  ;;  %v11349_v60 = vmul.f32 0.2, %v11285_v28  ;;  %v11079_v2 = vadd.f32 %v10988_v11, %v10823_v16  ;;  %v17542_v11 = vld [vmem:[#allocation18 + $0x14] ss:$0 sps:$4 sm:$0xff]  }
 0xb70   : > { %v11510_v47 = vrot.slane %v11508_v37, 7  ;;  %v11518_v20 = vrot.slane %v11516_v42, 7  ;;  %17077 = vmatprep.subr.msk.bf16.mxu0 %vm1523_vm3, %v17542_v11 }
 0xb71   : > { %v11381_v29 = vsel %vm11317_vm0, %v11285_v28, %v11349_v60  ;;  %v11287_v56 = vadd.f32 %v11196_v6, %v11079_v2 }
 0xb72   : > { %v15411_v26 = vpack.c.bf16 %v11381_v29, %v11381_v29  ;;  %v11194_v58 = vpop.permute.xlu1 %11193  ;;  %v10986_v46 = vpop.permute.xlu0 %10985  ;;  %v11513_v5 = vor.u32 %v11511_v63, %v11510_v47  ;;  %v11514_v61 = vrot.slane %v11510_v47, 4  ;;  %v11521_v54 = vor.u32 %v11519_v57, %v11518_v20 }
 0xb73   : > { %vm11319_vm1 = vcmp.ge.f32.partialorder %v11287_v56, 0.0  ;;  %v11351_v15 = vmul.f32 0.2, %v11287_v56  ;;  %v11078_v8 = vadd.f32 %v10986_v46, %v10822_v59  ;;  %v11523_v44 = vrot.slane %v11518_v20, 4 }
 0xb74   : > { %11779 = vrot.lane.b32.xlu1 %v11513_v5, %s18045_s25  ;;  %v11522_v22 = vsel %vm18534_vm11, %v11514_v61, %v11521_v54  ;;  %v11525_v40 = vshrl.u32 %v15411_v26, 16  ;;  %v11528_v16 = vshll.u32 %v15411_v26, 16  ;;  %v12345_v20 = vsel %vm1523_vm3, %v17542_v11, 0 }
 0xb75   : > { %v11383_v4 = vsel %vm11319_vm1, %v11287_v56, %v11351_v15  ;;  %v11286_v49 = vadd.f32 %v11194_v58, %v11078_v8  ;;  %11781 = vrot.lane.b32.xlu0 %v11522_v22, %s18045_s25  ;;  %v10826_v57 = vadd.f32 %v20748_v31, %v20978_v14  ;;  %v10825_v59 = vadd.f32 %v20978_v14, %v20754_v35 }
 0xb76   : > { %v15413_v48 = vpack.c.bf16 %v11383_v4, %v11383_v4  ;;  %v11198_v32 = vpop.permute.xlu1 %11197  ;;  %v10990_v19 = vpop.permute.xlu0 %10989  ;;  %v11527_v27 = vrot.slane %v11525_v40, 7  ;;  %16432 = vmatpush3.bf16.msra.mxu0 %v12345_v20 }
 0xb77   : > { %vm11318_vm5 = vcmp.ge.f32.partialorder %v11286_v49, 0.0  ;;  %v11350_v28 = vmul.f32 0.2, %v11286_v49  ;;  %v11080_v37 = vadd.f32 %v10990_v19, %v10824_v55 }
 0xb78   : > { %11783 = vrot.lane.b32.xlu1 %v11523_v44, %s18045_s25  ;;  %v11530_v42 = vor.u32 %v11528_v16, %v11527_v27  ;;  %v11542_v6 = vshrl.u32 %v15413_v48, 16  ;;  %v11545_v22 = vshll.u32 %v15413_v48, 16  ;;  %v11531_v35 = vrot.slane %v11527_v27, 4 }
 0xb79   : > { %v11382_v60 = vsel %vm11318_vm5, %v11286_v49, %v11350_v28  ;;  %v11288_v53 = vadd.f32 %v11198_v32, %v11080_v37  ;;  %v10827_v27 = vadd.f32 %v20978_v14, %v20766_v38 }
 0xb7a   : > { %v15412_v2 = vpack.c.bf16 %v11382_v60, %v11382_v60  ;;  %v10994_v47 = vpop.permute.xlu1 %10993  ;;  %v10992_v63 = vpop.permute.xlu0 %10991  ;;  %11785 = vrot.lane.b32.xlu0 %v11530_v42, %s18045_s25  ;;  %v11544_v26 = vrot.slane %v11542_v6, 7  ;;  %v10828_v6 = vadd.f32 %v20978_v14, %v20772_v18 }
 0xb7b   : > { %vm11320_vm6 = vcmp.ge.f32.partialorder %v11288_v53, 0.0  ;;  %v11352_v29 = vmul.f32 0.2, %v11288_v53  ;;  %v11082_v46 = vadd.f32 %v10994_v47, %v10826_v57  ;;  %v11081_v5 = vadd.f32 %v10992_v63, %v10825_v59 }
 0xb7c   : > { %v11533_v56 = vshrl.u32 %v15412_v2, 16  ;;  %v11536_v31 = vshll.u32 %v15412_v2, 16  ;;  %v11547_v49 = vor.u32 %v11545_v22, %v11544_v26  ;;  %v11548_v59 = vrot.slane %v11544_v26, 4 }
 0xb7d   : > { %v11384_v58 = vsel %vm11320_vm6, %v11288_v53, %v11352_v29 }
 0xb7e   : > { %v15414_v61 = vpack.c.bf16 %v11384_v58, %v11384_v58  ;;  %v11202_v54 = vpop.permute.xlu1 %11201  ;;  %v11200_v15 = vpop.permute.xlu0 %11199  ;;  %11247 = vrot.lane.b32.xlu0 %v20960_v34, %s18040_s24  ;;  %v11535_v8 = vrot.slane %v11533_v56, 7 }
 0xb7f   : > { %v11290_v40 = vadd.f32 %v11202_v54, %v11082_v46  ;;  %v11289_v55 = vadd.f32 %v11200_v15, %v11081_v5 }
 0xb80   : > { %v11540_v4 = vrot.slane %v11535_v8, 4  ;;  %v11538_v32 = vor.u32 %v11536_v31, %v11535_v8  ;;  %v11550_v19 = vshrl.u32 %v15414_v61, 16  ;;  %v11553_v42 = vshll.u32 %v15414_v61, 16 }
 0xb81   : > { %vm11322_vm7 = vcmp.ge.f32.partialorder %v11290_v40, 0.0  ;;  %v11354_v44 = vmul.f32 0.2, %v11290_v40  ;;  %vm11321_vm8 = vcmp.ge.f32.partialorder %v11289_v55, 0.0  ;;  %v11353_v16 = vmul.f32 0.2, %v11289_v55 }
 0xb82   : > { %v10998_v28 = vpop.permute.xlu1 %10997  ;;  %v10996_v37 = vpop.permute.xlu0 %10995  ;;  %11789 = vrot.lane.b32.xlu1 %v11540_v4, %s18045_s25  ;;  %11791 = vrot.lane.b32.xlu0 %v11547_v49, %s18045_s25  ;;  %v11539_v34 = vsel %vm18534_vm11, %v11531_v35, %v11538_v32  ;;  %v11552_v48 = vrot.slane %v11550_v19, 7  ;;  %v10829_v61 = vadd.f32 %v20768_v36, %v20978_v14 }
 0xb83   : > { %v11386_v11 = vsel %vm11322_vm7, %v11290_v40, %v11354_v44  ;;  %v11385_v60 = vsel %vm11321_vm8, %v11289_v55, %v11353_v16  ;;  %v11084_v20 = vadd.f32 %v10998_v28, %v10828_v6  ;;  %v11083_v57 = vadd.f32 %v10996_v37, %v10827_v27 }
 0xb84   : > { %v15416_v53 = vpack.c.bf16 %v11386_v11, %v11386_v11  ;;  %v15415_v2 = vpack.c.bf16 %v11385_v60, %v11385_v60  ;;  %v11557_v47 = vrot.slane %v11552_v48, 4  ;;  %v11555_v63 = vor.u32 %v11553_v42, %v11552_v48 }
 0xb85   : > { %v10831_v28 = vadd.f32 %v20784_v0, %v20978_v14 }
 0xb86   : > { %v11567_v29 = vshrl.u32 %v15416_v53, 16  ;;  %v11559_v56 = vshrl.u32 %v15415_v2, 16  ;;  %v11204_v58 = vpop.permute.xlu1 %11203  ;;  %v11206_v46 = vpop.permute.xlu0 %11205  ;;  %11787 = vrot.lane.b32.xlu1 %v11539_v34, %s18045_s25  ;;  %11795 = vrot.lane.b32.xlu0 %v11557_v47, %s18045_s25  ;;  %v11556_v18 = vsel %vm18534_vm11, %v11548_v59, %v11555_v63  ;;  %v11570_v15 = vshll.u32 %v15416_v53, 16 }
 0xb87   : > { %v11291_v38 = vadd.f32 %v11204_v58, %v11083_v57  ;;  %v11292_v5 = vadd.f32 %v11206_v46, %v11084_v20  ;;  %v11562_v34 = vshll.u32 %v15415_v2, 16  ;;  %v10830_v20 = vadd.f32 %v20978_v14, %v20786_v12 }
 0xb88   : > { %v11569_v54 = vrot.slane %v11567_v29, 7  ;;  %v11561_v8 = vrot.slane %v11559_v56, 7  ;;  %v10832_v12 = vadd.f32 %v20792_v13, %v20978_v14 }
 0xb89   : > { %vm11323_vm10 = vcmp.ge.f32.partialorder %v11291_v38, 0.0  ;;  %v11355_v26 = vmul.f32 0.2, %v11291_v38  ;;  %vm11324_vm12 = vcmp.ge.f32.partialorder %v11292_v5, 0.0  ;;  %v11356_v22 = vmul.f32 0.2, %v11292_v5 }
 0xb8a   : > { %v11208_v31 = vpop.permute.xlu1 %11207  ;;  %v11000_v40 = vpop.permute.xlu0 %10999  ;;  %11793 = vrot.lane.b32.xlu1 %v11556_v18, %s18045_s25  ;;  %11249 = vrot.lane.b32.xlu0 %v20956_v33, %s18040_s24  ;;  %v11565_v55 = vrot.slane %v11561_v8, 4  ;;  %v11572_v35 = vor.u32 %v11570_v15, %v11569_v54  ;;  %v11574_v44 = vrot.slane %v11569_v54, 4  ;;  %v11564_v63 = vor.u32 %v11562_v34, %v11561_v8 }
 0xb8b   : > { %v11387_v4 = vsel %vm11323_vm10, %v11291_v38, %v11355_v26  ;;  %v11388_v49 = vsel %vm11324_vm12, %v11292_v5, %v11356_v22  ;;  %v11085_v32 = vadd.f32 %v11000_v40, %v10829_v61 }
 0xb8c   : > { %v15417_v36 = vpack.c.bf16 %v11387_v4, %v11387_v4  ;;  %v15418_v19 = vpack.c.bf16 %v11388_v49, %v11388_v49  ;;  %v11573_v16 = vsel %vm18534_vm11, %v11565_v55, %v11572_v35 }
 0xb8d   : > { %v11293_v37 = vadd.f32 %v11208_v31, %v11085_v32 }
 0xb8e   : > { %v11576_v48 = vshrl.u32 %v15417_v36, 16  ;;  %v11584_v42 = vshrl.u32 %v15418_v19, 16  ;;  %v11212_v27 = vpop.permute.xlu0 %11211  ;;  %v11004_v33 = vpop.permute.xlu1 %11003  ;;  %11801 = vrot.lane.b32.xlu1 %v11574_v44, %s18045_s25  ;;  %v11579_v53 = vshll.u32 %v15417_v36, 16  ;;  %v11587_v57 = vshll.u32 %v15418_v19, 16 }
 0xb8f   : > { %vm11325_vm13 = vcmp.ge.f32.partialorder %v11293_v37, 0.0  ;;  %v11357_v6 = vmul.f32 0.2, %v11293_v37  ;;  %v11087_v11 = vadd.f32 %v11004_v33, %v10831_v28  ;;  %v10834_v28 = vadd.f32 %v20808_v24, %v20978_v14 }
 0xb90   : > { %v11578_v60 = vrot.slane %v11576_v48, 7  ;;  %v11586_v47 = vrot.slane %v11584_v42, 7 }
 0xb91   : > { %v11389_v0 = vsel %vm11325_vm13, %v11293_v37, %v11357_v6  ;;  %v11295_v59 = vadd.f32 %v11212_v27, %v11087_v11 }
 0xb92   : > { %v15419_v2 = vpack.c.bf16 %v11389_v0, %v11389_v0  ;;  %v11210_v29 = vpop.permute.xlu1 %11209  ;;  %v11002_v56 = vpop.permute.xlu0 %11001  ;;  %11797 = vrot.lane.b32.xlu1 %v11564_v63, %s18045_s25  ;;  %v11581_v58 = vor.u32 %v11579_v53, %v11578_v60  ;;  %v11582_v46 = vrot.slane %v11578_v60, 4  ;;  %v11589_v18 = vor.u32 %v11587_v57, %v11586_v47 }
 0xb93   : > { %vm11327_vm0 = vcmp.ge.f32.partialorder %v11295_v59, 0.0  ;;  %v11359_v38 = vmul.f32 0.2, %v11295_v59  ;;  %v11086_v5 = vadd.f32 %v11002_v56, %v10830_v20  ;;  %v11591_v31 = vrot.slane %v11586_v47, 4 }
 0xb94   : > { %11803 = vrot.lane.b32.xlu0 %v11581_v58, %s18045_s25  ;;  %v11593_v61 = vshrl.u32 %v15419_v2, 16  ;;  %v11590_v8 = vsel %vm18534_vm11, %v11582_v46, %v11589_v18  ;;  %v11596_v44 = vshll.u32 %v15419_v2, 16 }
 0xb95   : > { %v11391_v54 = vsel %vm11327_vm0, %v11295_v59, %v11359_v38  ;;  %v11294_v15 = vadd.f32 %v11210_v29, %v11086_v5 }
 0xb96   : > { %v11214_v26 = vpop.permute.xlu1 %11213  ;;  %v11006_v22 = vpop.permute.xlu0 %11005  ;;  %11799 = vrot.lane.b32.xlu1 %v11573_v16, %s18045_s25  ;;  %v15421_v35 = vpack.c.bf16 %v11391_v54, %v11391_v54  ;;  %v11595_v4 = vrot.slane %v11593_v61, 7  ;;  %v10833_v16 = vadd.f32 %v20978_v14, %v20814_v1  ;;  %v10836_v54 = vadd.f32 %v20978_v14, %v20832_v52 }
 0xb97   : > { %vm11326_vm1 = vcmp.ge.f32.partialorder %v11294_v15, 0.0  ;;  %v11358_v40 = vmul.f32 0.2, %v11294_v15  ;;  %v11088_v55 = vadd.f32 %v11006_v22, %v10832_v12  ;;  %v10835_v12 = vadd.f32 %v20978_v14, %v20826_v62 }
 0xb98   : > { %11807 = vrot.lane.b32.xlu0 %v11591_v31, %s18045_s25  ;;  %v11598_v34 = vor.u32 %v11596_v44, %v11595_v4  ;;  %v11610_v42 = vshrl.u32 %v15421_v35, 16  ;;  %v11599_v57 = vrot.slane %v11595_v4, 4  ;;  %v11613_v5 = vshll.u32 %v15421_v35, 16 }
 0xb99   : > { %v11390_v49 = vsel %vm11326_vm1, %v11294_v15, %v11358_v40  ;;  %v11296_v32 = vadd.f32 %v11214_v26, %v11088_v55  ;;  %v10837_v35 = vadd.f32 %v20828_v51, %v20978_v14 }
 0xb9a   : > { %v15420_v13 = vpack.c.bf16 %v11390_v49, %v11390_v49  ;;  %v11010_v36 = vpop.permute.xlu1 %11009  ;;  %v11008_v19 = vpop.permute.xlu0 %11007  ;;  %11805 = vrot.lane.b32.xlu1 %v11590_v8, %s18045_s25  ;;  %v11612_v59 = vrot.slane %v11610_v42, 7 }
 0xb9b   : > { %vm11328_vm5 = vcmp.ge.f32.partialorder %v11296_v32, 0.0  ;;  %v11360_v37 = vmul.f32 0.2, %v11296_v32  ;;  %v11090_v33 = vadd.f32 %v11010_v36, %v10834_v28  ;;  %v11089_v6 = vadd.f32 %v11008_v19, %v10833_v16 }
 0xb9c   : > { %v11601_v48 = vshrl.u32 %v15420_v13, 16  ;;  %v11604_v63 = vshll.u32 %v15420_v13, 16  ;;  %v11615_v31 = vor.u32 %v11613_v5, %v11612_v59  ;;  %v11616_v49 = vrot.slane %v11612_v59, 4 }
 0xb9d   : > { %v11392_v27 = vsel %vm11328_vm5, %v11296_v32, %v11360_v37 }
 0xb9e   : > { %v15422_v11 = vpack.c.bf16 %v11392_v27, %v11392_v27  ;;  %v11218_v60 = vpop.permute.xlu1 %11217  ;;  %v11216_v53 = vpop.permute.xlu0 %11215  ;;  %11809 = vrot.lane.b32.xlu1 %v11598_v34, %s18045_s25  ;;  %v11603_v47 = vrot.slane %v11601_v48, 7 }
 0xb9f   : > { %v11298_v20 = vadd.f32 %v11218_v60, %v11090_v33  ;;  %v11297_v24 = vadd.f32 %v11216_v53, %v11089_v6 }
 0xba0   : > { %v11608_v0 = vrot.slane %v11603_v47, 4  ;;  %v11606_v1 = vor.u32 %v11604_v63, %v11603_v47  ;;  %v11618_v2 = vshrl.u32 %v15422_v11, 16  ;;  %v11621_v61 = vshll.u32 %v15422_v11, 16 }
 0xba1   : > { %vm11330_vm6 = vcmp.ge.f32.partialorder %v11298_v20, 0.0  ;;  %v11362_v29 = vmul.f32 0.2, %v11298_v20  ;;  %vm11329_vm7 = vcmp.ge.f32.partialorder %v11297_v24, 0.0  ;;  %v11361_v56 = vmul.f32 0.2, %v11297_v24 }
 0xba2   : > { %v11014_v58 = vpop.permute.xlu1 %11013  ;;  %v11012_v46 = vpop.permute.xlu0 %11011  ;;  %11813 = vrot.lane.b32.xlu0 %v11608_v0, %s18045_s25  ;;  %v11607_v38 = vsel %vm18534_vm11, %v11599_v57, %v11606_v1  ;;  %v11620_v18 = vrot.slane %v11618_v2, 7  ;;  %v10839_v1 = vadd.f32 %v20844_v50, %v20978_v14  ;;  %v10838_v50 = vadd.f32 %v20978_v14, %v20846_v25 }
 0xba3   : > { %v11394_v15 = vsel %vm11330_vm6, %v11298_v20, %v11362_v29  ;;  %v11393_v8 = vsel %vm11329_vm7, %v11297_v24, %v11361_v56  ;;  %11811 = vrot.lane.b32.xlu1 %v11607_v38, %s18045_s25  ;;  %v11092_v55 = vadd.f32 %v11014_v58, %v10836_v54  ;;  %v11091_v4 = vadd.f32 %v11012_v46, %v10835_v12  ;;  %v21071_v46 = vld [vmem:[#allocation18] sm:$0xff]  }
 0xba4   : > { %v15424_v26 = vpack.c.bf16 %v11394_v15, %v11394_v15  ;;  %v15423_v22 = vpack.c.bf16 %v11393_v8, %v11393_v8  ;;  %v11623_v40 = vor.u32 %v11621_v61, %v11620_v18  ;;  %v11625_v28 = vrot.slane %v11620_v18, 4  ;;  %16481 = vmatprep.subr.bf16.mxu0 %v21071_v46 }
 0xba5   : > { %v10840_v25 = vadd.f32 %v20852_v17, %v20978_v14 }
 0xba6   : > { %v11635_v32 = vshrl.u32 %v15424_v26, 16  ;;  %v11627_v13 = vshrl.u32 %v15423_v22, 16  ;;  %v11220_v62 = vpop.permute.xlu1 %11219  ;;  %v11222_v36 = vpop.permute.xlu0 %11221  ;;  %11815 = vrot.lane.b32.xlu0 %v11615_v31, %s18045_s25  ;;  %v11624_v44 = vsel %vm18534_vm11, %v11616_v49, %v11623_v40  ;;  %v11638_v37 = vshll.u32 %v15424_v26, 16 }
 0xba7   : > { %v11299_v52 = vadd.f32 %v11220_v62, %v11091_v4  ;;  %v11300_v19 = vadd.f32 %v11222_v36, %v11092_v55  ;;  %v11630_v48 = vshll.u32 %v15423_v22, 16  ;;  %11817 = vrot.lane.b32.xlu1 %v11624_v44, %s18045_s25 }
 0xba8   : > { %v11637_v16 = vrot.slane %v11635_v32, 7  ;;  %v11629_v34 = vrot.slane %v11627_v13, 7 }
 0xba9   : > { %vm11331_vm8 = vcmp.ge.f32.partialorder %v11299_v52, 0.0  ;;  %v11363_v51 = vmul.f32 0.2, %v11299_v52  ;;  %vm11332_vm10 = vcmp.ge.f32.partialorder %v11300_v19, 0.0  ;;  %v11364_v42 = vmul.f32 0.2, %v11300_v19 }
 0xbaa   : > { %v11224_v27 = vpop.permute.xlu1 %11223  ;;  %v11016_v33 = vpop.permute.xlu0 %11015  ;;  %11819 = vrot.lane.b32.xlu0 %v11625_v28, %s18045_s25  ;;  %v11632_v6 = vor.u32 %v11630_v48, %v11629_v34  ;;  %v11633_v11 = vrot.slane %v11629_v34, 4  ;;  %v11640_v60 = vor.u32 %v11638_v37, %v11637_v16  ;;  %v11642_v57 = vrot.slane %v11637_v16, 4 }
 0xbab   : > { %v11395_v53 = vsel %vm11331_vm8, %v11299_v52, %v11363_v51  ;;  %v11396_v47 = vsel %vm11332_vm10, %v11300_v19, %v11364_v42  ;;  %v11093_v63 = vadd.f32 %v11016_v33, %v10837_v35 }
 0xbac   : > { %v15425_v20 = vpack.c.bf16 %v11395_v53, %v11395_v53  ;;  %v15426_v24 = vpack.c.bf16 %v11396_v47, %v11396_v47  ;;  %11821 = vrot.lane.b32.xlu1 %v11632_v6, %s18045_s25  ;;  %v11641_v0 = vsel %vm18534_vm11, %v11633_v11, %v11640_v60  ;;  %v10842_v11 = vadd.f32 %v20872_v30, %v20978_v14 }
 0xbad   : > { %v11301_v59 = vadd.f32 %v11224_v27, %v11093_v63  ;;  %v10841_v60 = vadd.f32 %v20978_v14, %v20878_v9 }
 0xbae   : > { %v11644_v2 = vshrl.u32 %v15425_v20, 16  ;;  %v11652_v29 = vshrl.u32 %v15426_v24, 16  ;;  %v11228_v56 = vpop.permute.xlu0 %11227  ;;  %v11020_v58 = vpop.permute.xlu1 %11019  ;;  %11825 = vrot.lane.b32.xlu0 %v11642_v57, %s18045_s25  ;;  %v11647_v61 = vshll.u32 %v15425_v20, 16  ;;  %v11655_v54 = vshll.u32 %v15426_v24, 16 }
 0xbaf   : > { %vm11333_vm12 = vcmp.ge.f32.partialorder %v11301_v59, 0.0  ;;  %v11365_v38 = vmul.f32 0.2, %v11301_v59  ;;  %v11095_v5 = vadd.f32 %v11020_v58, %v10839_v1 }
 0xbb0   : > { %v11646_v18 = vrot.slane %v11644_v2, 7  ;;  %v11654_v12 = vrot.slane %v11652_v29, 7  ;;  %11823 = vrot.lane.b32.xlu1 %v11641_v0, %s18045_s25 }
 0xbb1   : > { %v11397_v15 = vsel %vm11333_vm12, %v11301_v59, %v11365_v38  ;;  %v11303_v8 = vadd.f32 %v11228_v56, %v11095_v5 }
 0xbb2   : > { %v15427_v26 = vpack.c.bf16 %v11397_v15, %v11397_v15  ;;  %v11226_v22 = vpop.permute.xlu1 %11225  ;;  %v11018_v31 = vpop.permute.xlu0 %11017  ;;  %v11649_v40 = vor.u32 %v11647_v61, %v11646_v18  ;;  %v11650_v55 = vrot.slane %v11646_v18, 4  ;;  %v11657_v4 = vor.u32 %v11655_v54, %v11654_v12 }
 0xbb3   : > { %vm11335_vm13 = vcmp.ge.f32.partialorder %v11303_v8, 0.0  ;;  %v11367_v49 = vmul.f32 0.2, %v11303_v8  ;;  %v11094_v35 = vadd.f32 %v11018_v31, %v10838_v50  ;;  %v11659_v44 = vrot.slane %v11654_v12, 4 }
 0xbb4   : > { %11827 = vrot.lane.b32.xlu0 %v11649_v40, %s18045_s25  ;;  %v11658_v32 = vsel %vm18534_vm11, %v11650_v55, %v11657_v4  ;;  %v11661_v13 = vshrl.u32 %v15427_v26, 16  ;;  %v11664_v16 = vshll.u32 %v15427_v26, 16  ;;  %v10843_v31 = vadd.f32 %v20978_v14, %v20898_v45 }
 0xbb5   : > { %v11399_v62 = vsel %vm11335_vm13, %v11303_v8, %v11367_v49  ;;  %v11302_v36 = vadd.f32 %v11226_v22, %v11094_v35  ;;  %11829 = vrot.lane.b32.xlu1 %v11658_v32, %s18045_s25  ;;  %v10844_v40 = vadd.f32 %v20978_v14, %v20904_v21 }
 0xbb6   : > { %v11230_v52 = vpop.permute.xlu1 %11229  ;;  %v11022_v19 = vpop.permute.xlu0 %11021  ;;  %v11663_v28 = vrot.slane %v11661_v13, 7  ;;  %v15429_v48 = vpack.c.bf16 %v11399_v62, %v11399_v62 }
 0xbb7   : > { %vm11334_vm0 = vcmp.ge.f32.partialorder %v11302_v36, 0.0  ;;  %v11366_v37 = vmul.f32 0.2, %v11302_v36  ;;  %v11096_v34 = vadd.f32 %v11022_v19, %v10840_v25 }
 0xbb8   : > { %11831 = vrot.lane.b32.xlu0 %v11659_v44, %s18045_s25  ;;  %v11666_v51 = vor.u32 %v11664_v16, %v11663_v28  ;;  %v11678_v63 = vshrl.u32 %v15429_v48, 16  ;;  %v11667_v38 = vrot.slane %v11663_v28, 4  ;;  %v11681_v8 = vshll.u32 %v15429_v48, 16 }
 0xbb9   : > { %v11398_v42 = vsel %vm11334_vm0, %v11302_v36, %v11366_v37  ;;  %v11304_v27 = vadd.f32 %v11230_v52, %v11096_v34  ;;  %v10845_v52 = vadd.f32 %v20900_v43, %v20978_v14 }
 0xbba   : > { %v15428_v33 = vpack.c.bf16 %v11398_v42, %v11398_v42  ;;  %v11026_v17 = vpop.permute.xlu1 %11025  ;;  %v11024_v6 = vpop.permute.xlu0 %11023  ;;  %11833 = vrot.lane.b32.xlu1 %v11666_v51, %s18045_s25  ;;  %v11680_v18 = vrot.slane %v11678_v63, 7 }
 0xbbb   : > { %vm11336_vm1 = vcmp.ge.f32.partialorder %v11304_v27, 0.0  ;;  %v11368_v53 = vmul.f32 0.2, %v11304_v27  ;;  %v11098_v24 = vadd.f32 %v11026_v17, %v10842_v11  ;;  %v11097_v57 = vadd.f32 %v11024_v6, %v10841_v60 }
 0xbbc   : > { %v11669_v47 = vshrl.u32 %v15428_v33, 16  ;;  %v11672_v29 = vshll.u32 %v15428_v33, 16  ;;  %v11683_v32 = vor.u32 %v11681_v8, %v11680_v18  ;;  %v11684_v36 = vrot.slane %v11680_v18, 4 }
 0xbbd   : > { %v11400_v20 = vsel %vm11336_vm1, %v11304_v27, %v11368_v53  ;;  %vm11923_vm1 = vcmask 191648  }
 0xbbe   : > { %v15430_v0 = vpack.c.bf16 %v11400_v20, %v11400_v20  ;;  %v11234_v1 = vpop.permute.xlu1 %11233  ;;  %v11232_v59 = vpop.permute.xlu0 %11231  ;;  %v11671_v2 = vrot.slane %v11669_v47, 7 }
 0xbbf   : > { %v11306_v56 = vadd.f32 %v11234_v1, %v11098_v24  ;;  %v11305_v58 = vadd.f32 %v11232_v59, %v11097_v57 }
 0xbc0   : > { %v11676_v5 = vrot.slane %v11671_v2, 4  ;;  %v11674_v30 = vor.u32 %v11672_v29, %v11671_v2  ;;  %v11686_v61 = vshrl.u32 %v15430_v0, 16  ;;  %v11689_v22 = vshll.u32 %v15430_v0, 16 }
 0xbc1   : > { %vm11338_vm5 = vcmp.ge.f32.partialorder %v11306_v56, 0.0  ;;  %v11370_v9 = vmul.f32 0.2, %v11306_v56  ;;  %vm11337_vm6 = vcmp.ge.f32.partialorder %v11305_v58, 0.0  ;;  %v11369_v12 = vmul.f32 0.2, %v11305_v58 }
 0xbc2   : > { %v11030_v54 = vpop.permute.xlu1 %11029  ;;  %v11028_v50 = vpop.permute.xlu0 %11027  ;;  %11837 = vrot.lane.b32.xlu0 %v11676_v5, %s18045_s25  ;;  %v11675_v15 = vsel %vm18534_vm11, %v11667_v38, %v11674_v30  ;;  %v11688_v26 = vrot.slane %v11686_v61, 7  ;;  %v10847_v38 = vadd.f32 %v20916_v23, %v20978_v14  ;;  %v10846_v5 = vadd.f32 %v20978_v14, %v20918_v39 }
 0xbc3   : > { %v11402_v55 = vsel %vm11338_vm5, %v11306_v56, %v11370_v9  ;;  %v11401_v4 = vsel %vm11337_vm6, %v11305_v58, %v11369_v12  ;;  %11835 = vrot.lane.b32.xlu1 %v11675_v15, %s18045_s25  ;;  %v11100_v25 = vadd.f32 %v11030_v54, %v10844_v40  ;;  %v11099_v62 = vadd.f32 %v11028_v50, %v10843_v31  ;;  %vm21130_vm5 = vmand %vm11923_vm1, %vm607_vm4 }
 0xbc4   : > { %v15432_v49 = vpack.c.bf16 %v11402_v55, %v11402_v55  ;;  %v15431_v35 = vpack.c.bf16 %v11401_v4, %v11401_v4  ;;  %v11691_v13 = vor.u32 %v11689_v22, %v11688_v26  ;;  %v11693_v34 = vrot.slane %v11688_v26, 4 }
 0xbc5   : > { %vm11929_vm6 = vcmask 188576  }
 0xbc6   : > { %v11703_v19 = vshrl.u32 %v15432_v49, 16  ;;  %v11695_v44 = vshrl.u32 %v15431_v35, 16  ;;  %v11238_v45 = vpop.permute.xlu1 %11237  ;;  %v11236_v28 = vpop.permute.xlu0 %11235  ;;  %11839 = vrot.lane.b32.xlu0 %v11683_v32, %s18045_s25  ;;  %v11692_v37 = vsel %vm18534_vm11, %v11684_v36, %v11691_v13  ;;  %v11706_v51 = vshll.u32 %v15432_v49, 16  ;;  %vm21141_vm4 = vmand %vm11929_vm6, %vm550_vm2 }
 0xbc7   : > { %v11308_v21 = vadd.f32 %v11238_v45, %v11100_v25  ;;  %v11307_v16 = vadd.f32 %v11236_v28, %v11099_v62  ;;  %v11698_v27 = vshll.u32 %v15431_v35, 16  ;;  %11841 = vrot.lane.b32.xlu1 %v11692_v37, %s18045_s25  ;;  %vm12271_vm2 = vcmask 195584  }
 0xbc8   : > { %v11705_v48 = vrot.slane %v11703_v19, 7  ;;  %v11697_v42 = vrot.slane %v11695_v44, 7 }
 0xbc9   : > { %vm11340_vm7 = vcmp.ge.f32.partialorder %v11308_v21, 0.0  ;;  %v11372_v43 = vmul.f32 0.2, %v11308_v21  ;;  %vm11339_vm8 = vcmp.ge.f32.partialorder %v11307_v16, 0.0  ;;  %v11371_v33 = vmul.f32 0.2, %v11307_v16 }
 0xbca   : > { %v11240_v17 = vpop.permute.xlu1 %11239  ;;  %v11032_v6 = vpop.permute.xlu0 %11031  ;;  %11843 = vrot.lane.b32.xlu0 %v11693_v34, %s18045_s25  ;;  %v11700_v11 = vor.u32 %v11698_v27, %v11697_v42  ;;  %v11701_v60 = vrot.slane %v11697_v42, 4  ;;  %v11708_v53 = vor.u32 %v11706_v51, %v11705_v48  ;;  %v11710_v0 = vrot.slane %v11705_v48, 4 }
 0xbcb   : > { %v11404_v47 = vsel %vm11340_vm7, %v11308_v21, %v11372_v43  ;;  %v11403_v63 = vsel %vm11339_vm8, %v11307_v16, %v11371_v33  ;;  %v11101_v20 = vadd.f32 %v11032_v6, %v10845_v52  ;;  %v10848_v52 = vadd.f32 %v20924_v10, %v20978_v14 }
 0xbcc   : > { %v15434_v24 = vpack.c.bf16 %v11404_v47, %v11404_v47  ;;  %v15433_v57 = vpack.c.bf16 %v11403_v63, %v11403_v63  ;;  %11845 = vrot.lane.b32.xlu1 %v11700_v11, %s18045_s25  ;;  %v11709_v1 = vsel %vm18534_vm11, %v11701_v60, %v11708_v53 }
 0xbcd   : > { %v11309_v59 = vadd.f32 %v11240_v17, %v11101_v20 }
 0xbce   : > { %v11720_v2 = vshrl.u32 %v15434_v24, 16  ;;  %v11712_v29 = vshrl.u32 %v15433_v57, 16  ;;  %v11036_v56 = vpop.permute.xlu1 %11035  ;;  %v11034_v58 = vpop.permute.xlu0 %11033  ;;  %11849 = vrot.lane.b32.xlu0 %v11710_v0, %s18045_s25  ;;  %v11723_v61 = vshll.u32 %v15434_v24, 16  ;;  %v11715_v12 = vshll.u32 %v15433_v57, 16 }
 0xbcf   : > { %vm11341_vm10 = vcmp.ge.f32.partialorder %v11309_v59, 0.0  ;;  %v11373_v30 = vmul.f32 0.2, %v11309_v59  ;;  %v11103_v50 = vadd.f32 %v11036_v56, %v10847_v38  ;;  %v11102_v15 = vadd.f32 %v11034_v58, %v10846_v5  ;;  %v17624_v58 = vld [vmem:[#allocation2 + $0xc] sm:$0xf] }
 0xbd0   : > { %v11722_v18 = vrot.slane %v11720_v2, 7  ;;  %v11714_v9 = vrot.slane %v11712_v29, 7  ;;  %11847 = vrot.lane.b32.xlu1 %v11709_v1, %s18045_s25 }
 0xbd1   : > { %v11405_v54 = vsel %vm11341_vm10, %v11309_v59, %v11373_v30 }
 0xbd2   : > { %v15435_v8 = vpack.c.bf16 %v11405_v54, %v11405_v54  ;;  %v11244_v26 = vpop.permute.xlu1 %11243  ;;  %v11242_v22 = vpop.permute.xlu0 %11241  ;;  %v11717_v31 = vor.u32 %v11715_v12, %v11714_v9  ;;  %v11718_v40 = vrot.slane %v11714_v9, 4  ;;  %v11725_v23 = vor.u32 %v11723_v61, %v11722_v18  ;;  %v11931_v61 = vld [vmem:[#allocation2 + $0x14] sm:$0x1]  ;;  %v11934_v54 = vld [vmem:[#allocation2 + $0x18] sm:$0xf] }
 0xbd3   : > { %v11311_v55 = vadd.f32 %v11244_v26, %v11103_v50  ;;  %v11310_v4 = vadd.f32 %v11242_v22, %v11102_v15  ;;  %v11727_v25 = vrot.slane %v11722_v18, 4  ;;  %v17625_v15 = vld [vmem:[#allocation17] ss:$0 sm:$0xff] }
 0xbd4   : > { %11851 = vrot.lane.b32.xlu0 %v11717_v31, %s18045_s25  ;;  %v11726_v39 = vsel %vm18534_vm11, %v11718_v40, %v11725_v23  ;;  %v11729_v49 = vshrl.u32 %v15435_v8, 16  ;;  %v11732_v36 = vshll.u32 %v15435_v8, 16  ;;  %v10849_v8 = vadd.f32 %v17625_v15, %v20948_v7 }
 0xbd5   : > { %vm11343_vm12 = vcmp.ge.f32.partialorder %v11311_v55, 0.0  ;;  %v11375_v35 = vmul.f32 0.2, %v11311_v55  ;;  %vm11342_vm13 = vcmp.ge.f32.partialorder %v11310_v4, 0.0  ;;  %v11374_v32 = vmul.f32 0.2, %v11310_v4  ;;  %11853 = vrot.lane.b32.xlu1 %v11726_v39, %s18045_s25 }
 0xbd6   : > { %v11038_v13 = vpop.permute.xlu0 %11037  ;;  %v11731_v62 = vrot.slane %v11729_v49, 7  ;;  %v21125_v47 = vpop.permute.xlu1 %11041  ;;  %v11941_v49 = vld [vmem:[#allocation2 + $0x24] sm:$0xf] }
 0xbd7   : > { %v11407_v19 = vsel %vm11343_vm12, %v11311_v55, %v11375_v35  ;;  %v11406_v44 = vsel %vm11342_vm13, %v11310_v4, %v11374_v32  ;;  %v11104_v16 = vadd.f32 %v11038_v13, %v10848_v52  ;;  %v11938_v55 = vld [vmem:[#allocation2 + $0x20] sm:$0x1]  ;;  %v17564_v32 = vld [vmem:[#allocation18 + $0x8] ss:$0 sps:$4 sm:$0xff]  }
 0xbd8   : > { %v15437_v45 = vpack.c.bf16 %v11407_v19, %v11407_v19  ;;  %v15436_v28 = vpack.c.bf16 %v11406_v44, %v11406_v44  ;;  %11855 = vrot.lane.b32.xlu0 %v11727_v25, %s18045_s25  ;;  %v11734_v21 = vor.u32 %v11732_v36, %v11731_v62  ;;  %v11735_v14 = vrot.slane %v11731_v62, 4  ;;  %v11945_v44 = vld [vmem:[#allocation2 + $0x2c] sm:$0x1] }
 0xbda   : > { %v11746_v37 = vshrl.u32 %v15437_v45, 16  ;;  %v11737_v34 = vshrl.u32 %v15436_v28, 16  ;;  %v11246_v48 = vpop.permute.xlu0 %11245  ;;  %11857 = vrot.lane.b32.xlu1 %v11734_v21, %s18045_s25  ;;  %v11740_v27 = vshll.u32 %v15436_v28, 16  ;;  %v11749_v11 = vshll.u32 %v15437_v45, 16 }
 0xbdb   : > { %v11312_v51 = vadd.f32 %v11246_v48, %v11104_v16  ;;  %v10850_v28 = vadd.f32 %v17625_v15, %v20942_v3  ;;  %v12774_v16 = vsel %vm1523_vm3, %v17564_v32, 0 }
 0xbdc   : > { %v11739_v42 = vrot.slane %v11737_v34, 7  ;;  %v11748_v33 = vrot.slane %v11746_v37, 7 }
 0xbdd   : > { %vm11344_vm0 = vcmp.ge.f32.partialorder %v11312_v51, 0.0  ;;  %v11376_v43 = vmul.f32 0.2, %v11312_v51  ;;  %v11106_v48 = vadd.f32 %v21125_v47, %v10850_v28 }
 0xbde   : > { %v11744_v10 = vrot.slane %v11739_v42, 4  ;;  %v11742_v17 = vor.u32 %v11740_v27, %v11739_v42  ;;  %v11751_v20 = vor.u32 %v11749_v11, %v11748_v33  ;;  %v11040_v24 = vpop.permute.xlu0 %11039  ;;  %v11752_v29 = vrot.slane %v11748_v33, 4 }
 0xbdf   : > { %v11408_v6 = vsel %vm11344_vm0, %v11312_v51, %v11376_v43  ;;  %v11105_v22 = vadd.f32 %v11040_v24, %v10849_v8 }
 0xbe0   : > { %v15438_v60 = vpack.c.bf16 %v11408_v6, %v11408_v6  ;;  %11861 = vrot.lane.b32.xlu0 %v11744_v10, %s18045_s25  ;;  %v11743_v53 = vsel %vm18534_vm11, %v11735_v14, %v11742_v17 }
 0xbe1   : > { %11859 = vrot.lane.b32.xlu1 %v11743_v53, %s18045_s25 }
 0xbe2   : > { %v11754_v63 = vshrl.u32 %v15438_v60, 16  ;;  %v11757_v0 = vshll.u32 %v15438_v60, 16  ;;  %v11948_v60 = vld [vmem:[#allocation2 + $0x30] sm:$0xf] }
 0xbe4   : > { %v11756_v57 = vrot.slane %v11754_v63, 7  ;;  %11863 = vrot.lane.b32.xlu0 %v11751_v20, %s18045_s25 }
 0xbe6   : > { %v11780_v59 = vpop.permute.xlu1 %11779  ;;  %v11761_v2 = vrot.slane %v11756_v57, 4  ;;  %v11759_v56 = vor.u32 %v11757_v0, %v11756_v57  ;;  %v11955_v57 = vld [vmem:[#allocation2 + $0x3c] sm:$0xf] }
 0xbe7   : > { %v11925_v38 = vsel %vm21130_vm5, %v11780_v59, %v17624_v58  ;;  %v11782_v5 = vpop.permute.xlu0 %11781 }
 0xbe8   : > { %11926 = vst [vmem:[#allocation2 + $0xc] sm:$0xf] %v11925_v38  ;;  %11928 = vst.msk [vmem:[#allocation2 + $0x10] sm:$0xf] %vm11923_vm1, %v11782_v5  ;;  %11867 = vrot.lane.b32.xlu0 %v11761_v2, %s18045_s25  ;;  %v11760_v30 = vsel %vm18534_vm11, %v11752_v29, %v11759_v56  ;;  %v21175_v38 = vld [vmem:[#allocation18 + $0x18] sm:$0xff]  }
 0xbe9   : > { %11865 = vrot.lane.b32.xlu1 %v11760_v30, %s18045_s25  ;;  %v11959_v5 = vld [vmem:[#allocation2 + $0x44] sm:$0x1] }
 0xbea   : > { %v11784_v9 = vpop.permute.xlu1 %11783 }
 0xbeb   : > { %v11932_v12 = vsel %vm21141_vm4, %v11784_v9, %v11931_v61 }
 0xbec   : > { %11933 = vst [vmem:[#allocation2 + $0x14] sm:$0x1] %v11932_v12  ;;  %v11786_v50 = vpop.permute.xlu0 %11785 }
 0xbed   : > { %v11935_v26 = vsel %vm21130_vm5, %v11786_v50, %v11934_v54  ;;  %v11962_v50 = vld [vmem:[#allocation2 + $0x48] sm:$0xf] }
 0xbee   : > { %11936 = vst [vmem:[#allocation2 + $0x18] sm:$0xf] %v11935_v26  ;;  %v11966_v26 = vld [vmem:[#allocation2 + $0x50] sm:$0x1] }
 0xbef   : > { %v17541_v31 = vld [vmem:[#allocation2 + $0xc] sm:$0xff]  }
 0xbf0   : > { %v11248_v40 = vpop.permute.xlu0 %11247  ;;  %16433 = vmatprep.mubr.msk.bf16.mxu0 %vm12271_vm2, %v17541_v31  ;;  %v17570_v1 = vld [vmem:[#allocation2 + $0x8] sm:$0xff]  }
 0xbf1   : > { %v11313_v23 = vadd.f32 %v11248_v40, %v11105_v22 }
 0xbf3   : > { %vm11345_vm7 = vcmp.ge.f32.partialorder %v11313_v23, 0.0  ;;  %v11377_v4 = vmul.f32 0.2, %v11313_v23 }
 0xbf4   : > { %v11790_v39 = vpop.permute.xlu1 %11789  ;;  %v11792_v35 = vpop.permute.xlu0 %11791 }
 0xbf5   : > { %v11409_v13 = vsel %vm11345_vm7, %v11313_v23, %v11377_v4  ;;  %v11939_v7 = vsel %vm21141_vm4, %v11790_v39, %v11938_v55  ;;  %v11942_v25 = vsel %vm21130_vm5, %v11792_v35, %v11941_v49  ;;  %v17543_v62 = vld [vmem:[#allocation2 + $0x14] sm:$0xff]  }
 0xbf6   : > { %v15439_v36 = vpack.c.bf16 %v11409_v13, %v11409_v13  ;;  %11940 = vst [vmem:[#allocation2 + $0x20] sm:$0x1] %v11939_v7  ;;  %11943 = vst [vmem:[#allocation2 + $0x24] sm:$0xf] %v11942_v25  ;;  %16434 = vmatmul.mubr.msk.bf16.vlgmr.msra.gmra.mrb[96].mxu0 %vm12271_vm2, %v17543_v62  ;;  %v11969_v55 = vld [vmem:[#allocation2 + $0x54] sm:$0xf] }
 0xbf7   : > { %16482 = vmatpush3.bf16.msra.mxu0 %v21071_v46  ;;  %v11952_v46 = vld [vmem:[#allocation2 + $0x38] sm:$0x1]  ;;  %v11976_v62 = vld [vmem:[#allocation2 + $0x60] sm:$0xf] }
 0xbf8   : > { %v11763_v52 = vshrl.u32 %v15439_v36, 16  ;;  %v11788_v19 = vpop.permute.xlu1 %11787  ;;  %v11796_v45 = vpop.permute.xlu0 %11795  ;;  %17078 = vmatprep.subr.msk.bf16.mxu0 %vm1523_vm3, %v17564_v32  ;;  %v11766_v34 = vshll.u32 %v15439_v36, 16  ;;  %v11973_v32 = vld [vmem:[#allocation2 + $0x5c] sm:$0x1] }
 0xbf9   : > { %11937 = vst.msk [vmem:[#allocation2 + $0x1c] sm:$0xf] %vm11923_vm1, %v11788_v19  ;;  %v11946_v21 = vsel %vm21141_vm4, %v11796_v45, %v11945_v44  ;;  %v11980_v19 = vld [vmem:[#allocation2 + $0x68] sm:$0x1] }
 0xbfa   : > { %v11765_v37 = vrot.slane %v11763_v52, 7  ;;  %11947 = vst [vmem:[#allocation2 + $0x2c] sm:$0x1] %v11946_v21 }
 0xbfb   : > { %16484 = vmatpush3.bf16.msra.mxu0 %v12774_v16  ;;  %v11983_v16 = vld [vmem:[#allocation2 + $0x6c] sm:$0xf] }
 0xbfc   : > { %v11794_v51 = vpop.permute.xlu1 %11793  ;;  %v11250_v42 = vpop.permute.xlu0 %11249  ;;  %v11768_v27 = vor.u32 %v11766_v34, %v11765_v37  ;;  %v11769_v56 = vrot.slane %v11765_v37, 4  ;;  %16533 = vmatprep.subr.bf16.mxu0 %v21175_v38 }
 0xbfd   : > { %11944 = vst.msk [vmem:[#allocation2 + $0x28] sm:$0xf] %vm11923_vm1, %v11794_v51  ;;  %v11314_v3 = vadd.f32 %v11250_v42, %v11106_v48  ;;  %v11987_v42 = vld [vmem:[#allocation2 + $0x74] sm:$0x1] }
 0xbfe   : > { %11869 = vrot.lane.b32.xlu1 %v11768_v27, %s18045_s25 }
 0xbff   : > { %vm11346_vm8 = vcmp.ge.f32.partialorder %v11314_v3, 0.0  ;;  %v11378_v43 = vmul.f32 0.2, %v11314_v3 }
 0xc00   : > { %v11802_v33 = vpop.permute.xlu1 %11801  ;;  %v17544_v10 = vld [vmem:[#allocation2 + $0x1c] sm:$0xff]  }
 0xc01   : > { %v11410_v14 = vsel %vm11346_vm8, %v11314_v3, %v11378_v43  ;;  %v11953_v17 = vsel %vm21141_vm4, %v11802_v33, %v11952_v46  ;;  %16437 = vmatprep.mubr.msk.bf16.mxu0 %vm12271_vm2, %v17544_v10  ;;  %v11990_v43 = vld [vmem:[#allocation2 + $0x78] sm:$0xf] }
 0xc02   : > { %v15440_v6 = vpack.c.bf16 %v11410_v14, %v11410_v14  ;;  %11954 = vst [vmem:[#allocation2 + $0x38] sm:$0x1] %v11953_v17  ;;  %v11994_v17 = vld [vmem:[#allocation2 + $0x80] sm:$0x1] }
 0xc04   : > { %v11771_v11 = vshrl.u32 %v15440_v6, 16  ;;  %v11798_v53 = vpop.permute.xlu1 %11797  ;;  %v17545_v47 = vld [vmem:[#allocation2 + $0x24] sm:$0xff]   ;;  %v11774_v24 = vshll.u32 %v15440_v6, 16 }
 0xc05   : > { %v11949_v63 = vsel %vm21130_vm5, %v11798_v53, %v11948_v60  ;;  %16438 = vmatmul.mubr.msk.bf16.gmra.mrb[100].mxu0 %vm12271_vm2, %v17545_v47  ;;  %v11997_v47 = vld [vmem:[#allocation2 + $0x84] sm:$0xf] }
 0xc06   : > { %v11773_v20 = vrot.slane %v11771_v11, 7  ;;  %11950 = vst [vmem:[#allocation2 + $0x30] sm:$0xf] %v11949_v63  ;;  %v11804_v0 = vpop.permute.xlu0 %11803 }
 0xc07   : > { %v11956_v59 = vsel %vm21130_vm5, %v11804_v0, %v11955_v57  ;;  %v12001_v57 = vld [vmem:[#allocation2 + $0x8c] sm:$0x1] }
 0xc08   : > { %11957 = vst [vmem:[#allocation2 + $0x3c] sm:$0xf] %v11956_v59  ;;  %v11800_v2 = vpop.permute.xlu1 %11799  ;;  %v11778_v29 = vrot.slane %v11773_v20, 4  ;;  %v11776_v58 = vor.u32 %v11774_v24, %v11773_v20 }
 0xc09   : > { %11951 = vst.msk [vmem:[#allocation2 + $0x34] sm:$0xf] %vm11923_vm1, %v11800_v2 }
 0xc0a   : > { %11873 = vrot.lane.b32.xlu0 %v11778_v29, %s18045_s25  ;;  %v11808_v30 = vpop.permute.xlu0 %11807  ;;  %v11777_v61 = vsel %vm18534_vm11, %v11769_v56, %v11776_v58  ;;  %v12004_v29 = vld [vmem:[#allocation2 + $0x90] sm:$0xf] }
 0xc0b   : > { %v11960_v9 = vsel %vm21141_vm4, %v11808_v30, %v11959_v5  ;;  %11871 = vrot.lane.b32.xlu1 %v11777_v61, %s18045_s25  ;;  %v12008_v5 = vld [vmem:[#allocation2 + $0x98] sm:$0x1]  ;;  %s18047_s25 = smov [#allocation21]  }
 0xc0c   : > { %11961 = vst [vmem:[#allocation2 + $0x44] sm:$0x1] %v11960_v9  ;;  %v11806_v12 = vpop.permute.xlu1 %11805 }
 0xc0d   : > { %11958 = vst.msk [vmem:[#allocation2 + $0x40] sm:$0xf] %vm11923_vm1, %v11806_v12  ;;  %v17546_v54 = vld [vmem:[#allocation2 + $0x2c] sm:$0xff]  }
 0xc0e   : > { %16441 = vmatprep.mubr.msk.bf16.mxu0 %vm12271_vm2, %v17546_v54  ;;  %v12011_v54 = vld [vmem:[#allocation2 + $0x9c] sm:$0xf] }
 0xc10   : > { %v11810_v15 = vpop.permute.xlu1 %11809  ;;  %v17547_v8 = vld [vmem:[#allocation2 + $0x34] sm:$0xff]  }
 0xc11   : > { %v11963_v41 = vsel %vm21130_vm5, %v11810_v15, %v11962_v50  ;;  %16442 = vmatmul.mubr.msk.bf16.gmra.mrb[104].mxu0 %vm12271_vm2, %v17547_v8 }
 0xc12   : > { %11964 = vst [vmem:[#allocation2 + $0x48] sm:$0xf] %v11963_v41 }
 0xc14   : > { %v11814_v22 = vpop.permute.xlu0 %11813  ;;  %v17548_v31 = vld [vmem:[#allocation2 + $0x3c] sm:$0xff]  }
 0xc15   : > { %v11967_v40 = vsel %vm21141_vm4, %v11814_v22, %v11966_v26  ;;  %v11812_v23 = vpop.permute.xlu1 %11811  ;;  %16445 = vmatprep.mubr.msk.bf16.mxu0 %vm12271_vm2, %v17548_v31  ;;  %v12015_v26 = vld [vmem:[#allocation2 + $0xa4] sm:$0x1] }
 0xc16   : > { %11968 = vst [vmem:[#allocation2 + $0x50] sm:$0x1] %v11967_v40  ;;  %11965 = vst.msk [vmem:[#allocation2 + $0x4c] sm:$0xf] %vm11923_vm1, %v11812_v23  ;;  %v12018_v23 = vld [vmem:[#allocation2 + $0xa8] sm:$0xf] }
 0xc18   : > { %v11816_v4 = vpop.permute.xlu0 %11815 }
 0xc19   : > { %v11970_v39 = vsel %vm21130_vm5, %v11816_v4, %v11969_v55  ;;  %v17549_v49 = vld [vmem:[#allocation2 + $0x44] sm:$0xff]   ;;  %v11818_v35 = vpop.permute.xlu1 %11817 }
 0xc1a   : > { %11971 = vst [vmem:[#allocation2 + $0x54] sm:$0xf] %v11970_v39  ;;  %11972 = vst.msk [vmem:[#allocation2 + $0x58] sm:$0xf] %vm11923_vm1, %v11818_v35  ;;  %16446 = vmatmul.mubr.msk.bf16.gmra.mrb[108].mxu0 %vm12271_vm2, %v17549_v49  ;;  %v12022_v49 = vld [vmem:[#allocation2 + $0xb0] sm:$0x1] }
 0xc1c   : > { %v11820_v13 = vpop.permute.xlu0 %11819 }
 0xc1d   : > { %v11974_v7 = vsel %vm21141_vm4, %v11820_v13, %v11973_v32  ;;  %v17550_v25 = vld [vmem:[#allocation2 + $0x4c] sm:$0xff]  }
 0xc1e   : > { %11975 = vst [vmem:[#allocation2 + $0x5c] sm:$0x1] %v11974_v7  ;;  %v11822_v36 = vpop.permute.xlu1 %11821  ;;  %16449 = vmatprep.mubr.msk.bf16.mxu0 %vm12271_vm2, %v17550_v25  ;;  %v12025_v25 = vld [vmem:[#allocation2 + $0xb4] sm:$0xf] }
 0xc1f   : > { %v11977_v52 = vsel %vm21130_vm5, %v11822_v36, %v11976_v62 }
 0xc20   : > { %11978 = vst [vmem:[#allocation2 + $0x60] sm:$0xf] %v11977_v52  ;;  %v11826_v44 = vpop.permute.xlu0 %11825  ;;  %v12029_v52 = vld [vmem:[#allocation2 + $0xbc] sm:$0x1] }
 0xc21   : > { %v11981_v45 = vsel %vm21141_vm4, %v11826_v44, %v11980_v19  ;;  %v17551_v21 = vld [vmem:[#allocation2 + $0x54] sm:$0xff]  }
 0xc22   : > { %11982 = vst [vmem:[#allocation2 + $0x68] sm:$0x1] %v11981_v45  ;;  %v11824_v28 = vpop.permute.xlu1 %11823  ;;  %16450 = vmatmul.mubr.msk.bf16.gmra.mrb[112].mxu0 %vm12271_vm2, %v17551_v21 }
 0xc23   : > { %11979 = vst.msk [vmem:[#allocation2 + $0x64] sm:$0xf] %vm11923_vm1, %v11824_v28 }
 0xc26   : > { %v11828_v37 = vpop.permute.xlu0 %11827 }
 0xc27   : > { %v11984_v34 = vsel %vm21130_vm5, %v11828_v37, %v11983_v16  ;;  %v11830_v48 = vpop.permute.xlu1 %11829  ;;  %v17552_v51 = vld [vmem:[#allocation2 + $0x5c] sm:$0xff]  }
 0xc28   : > { %11985 = vst [vmem:[#allocation2 + $0x6c] sm:$0xf] %v11984_v34  ;;  %11986 = vst.msk [vmem:[#allocation2 + $0x70] sm:$0xf] %vm11923_vm1, %v11830_v48  ;;  %16453 = vmatprep.mubr.msk.bf16.mxu0 %vm12271_vm2, %v17552_v51  ;;  %v12032_v16 = vld [vmem:[#allocation2 + $0xc0] sm:$0xf] }
 0xc29   : > { %v12036_v51 = vld [vmem:[#allocation2 + $0xc8] sm:$0x1] }
 0xc2a   : > { %v11832_v27 = vpop.permute.xlu0 %11831  ;;  %v17553_v3 = vld [vmem:[#allocation2 + $0x64] sm:$0xff]  }
 0xc2b   : > { %v11988_v46 = vsel %vm21141_vm4, %v11832_v27, %v11987_v42  ;;  %16454 = vmatmul.mubr.msk.bf16.gmra.mrb[116].mxu0 %vm12271_vm2, %v17553_v3 }
 0xc2c   : > { %11989 = vst [vmem:[#allocation2 + $0x74] sm:$0x1] %v11988_v46  ;;  %v11834_v33 = vpop.permute.xlu1 %11833  ;;  %v17568_v46 = vld [vmem:[#allocation2] sm:$0xff]  }
 0xc2d   : > { %v11991_v10 = vsel %vm21130_vm5, %v11834_v33, %v11990_v43  ;;  %v17582_v33 = vld [vmem:[#allocation18 + $0x20] ss:$0 sps:$4 sm:$0xff]  }
 0xc2e   : > { %11992 = vst [vmem:[#allocation2 + $0x78] sm:$0xf] %v11991_v10  ;;  %v17571_v10 = vld [vmem:[#allocation2 + $0x10] sm:$0xff]   ;;  %v13255_v18 = vsel %vm1523_vm3, %v17582_v33, 0 }
 0xc2f   : > { %v17555_v14 = vld [vmem:[#allocation2 + $0x6c] sm:$0xff]  }
 0xc30   : > { %16457 = vmatprep.mubr.msk.bf16.mxu0 %vm12271_vm2, %v17555_v14  ;;  %v17572_v14 = vld [vmem:[#allocation2 + $0x18] sm:$0xff]  }
 0xc34   : > { %v11838_v6 = vpop.permute.xlu0 %11837 }
 0xc35   : > { %v11995_v11 = vsel %vm21141_vm4, %v11838_v6, %v11994_v17  ;;  %v11836_v60 = vpop.permute.xlu1 %11835  ;;  %v17556_v53 = vld [vmem:[#allocation2 + $0x74] sm:$0xff]   ;;  %v17573_v17 = vld [vmem:[#allocation2 + $0x20] sm:$0xff]   ;;  %v17574_v6 = vld [vmem:[#allocation2 + $0x28] sm:$0xff]  }
 0xc36   : > { %11996 = vst [vmem:[#allocation2 + $0x80] sm:$0x1] %v11995_v11  ;;  %11993 = vst.msk [vmem:[#allocation2 + $0x7c] sm:$0xf] %vm11923_vm1, %v11836_v60  ;;  %16458 = vmatmul.mubr.msk.bf16.gmra.mrb[120].mxu0 %vm12271_vm2, %v17556_v53  ;;  %v17575_v11 = vld [vmem:[#allocation2 + $0x30] sm:$0xff]   ;;  %v17577_v60 = vld [vmem:[#allocation2 + $0x40] sm:$0xff]  }
 0xc37   : > { %v17578_v53 = vld [vmem:[#allocation2 + $0x48] sm:$0xff]  }
 0xc38   : > { %v11840_v63 = vpop.permute.xlu0 %11839 }
 0xc39   : > { %v11998_v20 = vsel %vm21130_vm5, %v11840_v63, %v11997_v47  ;;  %v11842_v24 = vpop.permute.xlu1 %11841  ;;  %v17579_v47 = vld [vmem:[#allocation2 + $0x50] sm:$0xff]   ;;  %v17580_v63 = vld [vmem:[#allocation2 + $0x58] sm:$0xff]  }
 0xc3a   : > { %11999 = vst [vmem:[#allocation2 + $0x84] sm:$0xf] %v11998_v20  ;;  %12000 = vst.msk [vmem:[#allocation2 + $0x88] sm:$0xf] %vm11923_vm1, %v11842_v24  ;;  %v17581_v20 = vld [vmem:[#allocation2 + $0x60] sm:$0xff]   ;;  %v17583_v24 = vld [vmem:[#allocation2 + $0x68] sm:$0xff]  }
 0xc3c   : > { %v11844_v0 = vpop.permute.xlu0 %11843 }
 0xc3d   : > { %v12002_v59 = vsel %vm21141_vm4, %v11844_v0, %v12001_v57  ;;  %v17557_v2 = vld [vmem:[#allocation2 + $0x7c] sm:$0xff]   ;;  %v17584_v57 = vld [vmem:[#allocation2 + $0x70] sm:$0xff]  }
 0xc3e   : > { %12003 = vst [vmem:[#allocation2 + $0x8c] sm:$0x1] %v12002_v59  ;;  %v11846_v56 = vpop.permute.xlu1 %11845  ;;  %16461 = vmatprep.mubr.msk.bf16.mxu0 %vm12271_vm2, %v17557_v2  ;;  %v17585_v0 = vld [vmem:[#allocation2 + $0x78] sm:$0xff]  }
 0xc3f   : > { %v12005_v58 = vsel %vm21130_vm5, %v11846_v56, %v12004_v29 }
 0xc40   : > { %12006 = vst [vmem:[#allocation2 + $0x90] sm:$0xf] %v12005_v58  ;;  %v11850_v30 = vpop.permute.xlu0 %11849 }
 0xc41   : > { %v12009_v61 = vsel %vm21141_vm4, %v11850_v30, %v12008_v5  ;;  %v17558_v12 = vld [vmem:[#allocation2 + $0x84] sm:$0xff]  }
 0xc42   : > { %12010 = vst [vmem:[#allocation2 + $0x98] sm:$0x1] %v12009_v61  ;;  %v11848_v9 = vpop.permute.xlu1 %11847  ;;  %16462 = vmatmul.mubr.msk.bf16.gmra.mrb[124].mxu0 %vm12271_vm2, %v17558_v12  ;;  %v17586_v59 = vld [vmem:[#allocation2 + $0x80] sm:$0xff]  }
 0xc43   : > { %12007 = vst.msk [vmem:[#allocation2 + $0x94] sm:$0xf] %vm11923_vm1, %v11848_v9  ;;  %v17594_v9 = vld [vmem:[#allocation2 + $0x18] sm:$0xff]   ;;  %v17595_v12 = vld [vmem:[#allocation2 + $0x20] sm:$0xff]  }
 0xc45   : > { %v17587_v2 = vld [vmem:[#allocation2 + $0x88] sm:$0xff]  }
 0xc46   : > { %v11852_v50 = vpop.permute.xlu0 %11851 }
 0xc47   : > { %v12012_v15 = vsel %vm21130_vm5, %v11852_v50, %v12011_v54  ;;  %v11854_v8 = vpop.permute.xlu1 %11853  ;;  %v17559_v41 = vld [vmem:[#allocation2 + $0x8c] sm:$0xff]  }
 0xc48   : > { %12013 = vst [vmem:[#allocation2 + $0x9c] sm:$0xf] %v12012_v15  ;;  %12014 = vst.msk [vmem:[#allocation2 + $0xa0] sm:$0xf] %vm11923_vm1, %v11854_v8  ;;  %16465 = vmatprep.mubr.msk.bf16.mxu0 %vm12271_vm2, %v17559_v41  ;;  %v17596_v54 = vld [vmem:[#allocation2 + $0x28] sm:$0xff]   ;;  %v17597_v50 = vld [vmem:[#allocation2 + $0x30] sm:$0xff]  }
 0xc49   : > { %v17598_v15 = vld [vmem:[#allocation2 + $0x38] sm:$0xff]   ;;  %v17599_v8 = vld [vmem:[#allocation2 + $0x40] sm:$0xff]   ;;  %v17600_v41 = vld [vmem:[#allocation2 + $0x48] sm:$0xff]  }
 0xc4a   : > { %v11856_v22 = vpop.permute.xlu0 %11855  ;;  %v17560_v31 = vld [vmem:[#allocation2 + $0x94] sm:$0xff]  }
 0xc4b   : > { %v12016_v40 = vsel %vm21141_vm4, %v11856_v22, %v12015_v26  ;;  %16466 = vmatmul.mubr.msk.bf16.gmra.mrb[128].mxu0 %vm12271_vm2, %v17560_v31  ;;  %v17588_v29 = vld [vmem:[#allocation2 + $0x90] sm:$0xff]   ;;  %v17602_v22 = vld [vmem:[#allocation2 + $0x58] sm:$0xff]   ;;  %v17603_v31 = vld [vmem:[#allocation2 + $0x60] sm:$0xff]  }
 0xc4c   : > { %12017 = vst [vmem:[#allocation2 + $0xa4] sm:$0x1] %v12016_v40  ;;  %v11858_v55 = vpop.permute.xlu1 %11857  ;;  %v17601_v26 = vld [vmem:[#allocation2 + $0x50] sm:$0xff]   ;;  %v17604_v40 = vld [vmem:[#allocation2 + $0x68] sm:$0xff]  }
 0xc4d   : > { %v12019_v4 = vsel %vm21130_vm5, %v11858_v55, %v12018_v23  ;;  %v17605_v23 = vld [vmem:[#allocation2 + $0x70] sm:$0xff]   ;;  %v17606_v55 = vld [vmem:[#allocation2 + $0x78] sm:$0xff]  }
 0xc4e   : > { %12020 = vst [vmem:[#allocation2 + $0xa8] sm:$0xf] %v12019_v4  ;;  %v17607_v4 = vld [vmem:[#allocation2 + $0x80] sm:$0xff]  }
 0xc4f   : > { %v17561_v39 = vld [vmem:[#allocation2 + $0x9c] sm:$0xff]  }
 0xc50   : > { %16469 = vmatprep.mubr.msk.bf16.mxu0 %vm12271_vm2, %v17561_v39  ;;  %v17589_v56 = vld [vmem:[#allocation2 + $0x98] sm:$0xff]   ;;  %v17608_v39 = vld [vmem:[#allocation2 + $0x88] sm:$0xff]  }
 0xc52   : > { %v11862_v35 = vpop.permute.xlu0 %11861 }
 0xc53   : > { %v12023_v32 = vsel %vm21141_vm4, %v11862_v35, %v12022_v49  ;;  %v11860_v13 = vpop.permute.xlu1 %11859  ;;  %v17590_v58 = vld [vmem:[#allocation2 + $0xa0] sm:$0xff]   ;;  %v17609_v49 = vld [vmem:[#allocation2 + $0x90] sm:$0xff]   ;;  %v17610_v35 = vld [vmem:[#allocation2 + $0x98] sm:$0xff]  }
 0xc54   : > { %12024 = vst [vmem:[#allocation2 + $0xb0] sm:$0x1] %v12023_v32  ;;  %12021 = vst.msk [vmem:[#allocation2 + $0xac] sm:$0xf] %vm11923_vm1, %v11860_v13  ;;  %v17611_v32 = vld [vmem:[#allocation2 + $0xa0] sm:$0xff]  }
 0xc55   : > { %v17562_v7 = vld [vmem:[#allocation2 + $0xa4] sm:$0xff]  }
 0xc56   : > { %v11864_v62 = vpop.permute.xlu0 %11863  ;;  %16470 = vmatmul.mubr.msk.bf16.gmra.mrb[132].mxu0 %vm12271_vm2, %v17562_v7 }
 0xc57   : > { %v12026_v36 = vsel %vm21130_vm5, %v11864_v62, %v12025_v25 }
 0xc58   : > { %12027 = vst [vmem:[#allocation2 + $0xb4] sm:$0xf] %v12026_v36 }
 0xc5a   : > { %v11868_v19 = vpop.permute.xlu0 %11867 }
 0xc5b   : > { %v12030_v44 = vsel %vm21141_vm4, %v11868_v19, %v12029_v52  ;;  %v11866_v45 = vpop.permute.xlu1 %11865  ;;  %v17563_v28 = vld [vmem:[#allocation2 + $0xac] sm:$0xff]  }
 0xc5c   : > { %12031 = vst [vmem:[#allocation2 + $0xbc] sm:$0x1] %v12030_v44  ;;  %12028 = vst.msk [vmem:[#allocation2 + $0xb8] sm:$0xf] %vm11923_vm1, %v11866_v45  ;;  %16473 = vmatprep.mubr.msk.bf16.mxu0 %vm12271_vm2, %v17563_v28  ;;  %v17591_v5 = vld [vmem:[#allocation2 + $0xa8] sm:$0xff]   ;;  %v17617_v52 = vld [vmem:[#allocation2 + $0xd0] sm:$0xff]  }
 0xc5d   : > { %v17612_v13 = vld [vmem:[#allocation2 + $0xa8] sm:$0xff]  }
 0xc5f   : > { %v17592_v30 = vld [vmem:[#allocation2 + $0xb0] sm:$0xff]  }
 0xc60   : > { %v17613_v7 = vld [vmem:[#allocation2 + $0xb0] sm:$0xff]  }
 0xc63   : > { %v17565_v21 = vld [vmem:[#allocation2 + $0xb4] sm:$0xff]  }
 0xc64   : > { %16474 = vmatmul.mubr.msk.bf16.gmra.mrb[136].mxu0 %vm12271_vm2, %v17565_v21  ;;  %v17593_v61 = vld [vmem:[#allocation2 + $0xb8] sm:$0xff]  }
 0xc65   : > { %v17614_v25 = vld [vmem:[#allocation2 + $0xb8] sm:$0xff]  }
 0xc70   : > { %v11870_v37 = vpop.permute.xlu1 %11869 }
 0xc71   : > { %v12033_v34 = vsel %vm21130_vm5, %v11870_v37, %v12032_v16 }
 0xc72   : > { %12034 = vst [vmem:[#allocation2 + $0xc0] sm:$0xf] %v12033_v34 }
 0xc79   : > { %v17566_v48 = vld [vmem:[#allocation2 + $0xbc] sm:$0xff]  }
 0xc7a   : > { %16477 = vmatprep.mubr.msk.bf16.mxu0 %vm12271_vm2, %v17566_v48 }
 0xc7c   : > { %v11874_v42 = vpop.permute.xlu0 %11873 }
 0xc7d   : > { %v12037_v27 = vsel %vm21141_vm4, %v11874_v42, %v12036_v51  ;;  %v11872_v3 = vpop.permute.xlu1 %11871 }
 0xc7e   : > { %12038 = vst [vmem:[#allocation2 + $0xc8] sm:$0x1] %v12037_v27  ;;  %12035 = vst.msk [vmem:[#allocation2 + $0xc4] sm:$0xf] %vm11923_vm1, %v11872_v3 }
 0xc85   : > { %v17567_v43 = vld [vmem:[#allocation2 + $0xc4] sm:$0xff]  }
 0xc86   : > { %16478 = vmatmul.mubr.msk.bf16.gmra.mrb[140].mxu0 %vm12271_vm2, %v17567_v43  ;;  %v17615_v62 = vld [vmem:[#allocation2 + $0xc0] sm:$0xff]   ;;  %v17616_v36 = vld [vmem:[#allocation2 + $0xc8] sm:$0xff]  }
 0xc87   : > { %16485 = vmatprep.mubr.msk.bf16.mxu0 %vm12271_vm2, %v17568_v46 }
 0xc8e   : > { %16486 = vmatmul.mubr.msk.bf16.vlgmr.msra.gmra.mrb[96].mxu0 %vm12271_vm2, %v17570_v1 }
 0xc8f   : > { %16534 = vmatpush3.bf16.msra.mxu0 %v21175_v38  ;;  %16489 = vmatprep.mubr.msk.bf16.mxu0 %vm12271_vm2, %v17571_v10  ;;  %v17576_v38 = vld [vmem:[#allocation2 + $0x38] sm:$0xff]  }
 0xc90   : > { %17079 = vmatprep.subr.msk.bf16.mxu0 %vm1523_vm3, %v17582_v33 }
 0xc93   : > { %16536 = vmatpush3.bf16.msra.mxu0 %v13255_v18 }
 0xc96   : > { %16490 = vmatmul.mubr.msk.bf16.gmra.mrb[100].mxu0 %vm12271_vm2, %v17572_v14 }
 0xc97   : > { %16493 = vmatprep.mubr.msk.bf16.mxu0 %vm12271_vm2, %v17573_v17 }
 0xc9e   : > { %16494 = vmatmul.mubr.msk.bf16.gmra.mrb[104].mxu0 %vm12271_vm2, %v17574_v6 }
 0xc9f   : > { %16497 = vmatprep.mubr.msk.bf16.mxu0 %vm12271_vm2, %v17575_v11 }
 0xca6   : > { %16498 = vmatmul.mubr.msk.bf16.gmra.mrb[108].mxu0 %vm12271_vm2, %v17576_v38 }
 0xca7   : > { %16501 = vmatprep.mubr.msk.bf16.mxu0 %vm12271_vm2, %v17577_v60 }
 0xcae   : > { %16502 = vmatmul.mubr.msk.bf16.gmra.mrb[112].mxu0 %vm12271_vm2, %v17578_v53 }
 0xcaf   : > { %16505 = vmatprep.mubr.msk.bf16.mxu0 %vm12271_vm2, %v17579_v47 }
 0xcb6   : > { %16506 = vmatmul.mubr.msk.bf16.gmra.mrb[116].mxu0 %vm12271_vm2, %v17580_v63 }
 0xcb7   : > { %16509 = vmatprep.mubr.msk.bf16.mxu0 %vm12271_vm2, %v17581_v20 }
 0xcbe   : > { %16510 = vmatmul.mubr.msk.bf16.gmra.mrb[120].mxu0 %vm12271_vm2, %v17583_v24 }
 0xcbf   : > { %16513 = vmatprep.mubr.msk.bf16.mxu0 %vm12271_vm2, %v17584_v57 }
 0xcc6   : > { %16514 = vmatmul.mubr.msk.bf16.gmra.mrb[124].mxu0 %vm12271_vm2, %v17585_v0 }
 0xcc7   : > { %16517 = vmatprep.mubr.msk.bf16.mxu0 %vm12271_vm2, %v17586_v59 }
 0xcce   : > { %16518 = vmatmul.mubr.msk.bf16.gmra.mrb[128].mxu0 %vm12271_vm2, %v17587_v2 }
 0xccf   : > { %16521 = vmatprep.mubr.msk.bf16.mxu0 %vm12271_vm2, %v17588_v29 }
 0xcd6   : > { %16522 = vmatmul.mubr.msk.bf16.gmra.mrb[132].mxu0 %vm12271_vm2, %v17589_v56 }
 0xcd7   : > { %16525 = vmatprep.mubr.msk.bf16.mxu0 %vm12271_vm2, %v17590_v58 }
 0xcde   : > { %16526 = vmatmul.mubr.msk.bf16.gmra.mrb[136].mxu0 %vm12271_vm2, %v17591_v5 }
 0xcdf   : > { %16529 = vmatprep.mubr.msk.bf16.mxu0 %vm12271_vm2, %v17592_v30 }
 0xce6   : > { %16530 = vmatmul.mubr.msk.bf16.gmra.mrb[140].mxu0 %vm12271_vm2, %v17593_v61 }
 0xce7   : > { %16537 = vmatprep.mubr.msk.bf16.mxu0 %vm12271_vm2, %v17594_v9 }
 0xcee   : > { %16538 = vmatmul.mubr.msk.bf16.vlgmr.msra.gmra.mrb[96].mxu0 %vm12271_vm2, %v17595_v12 }
 0xcef   : > { %16541 = vmatprep.mubr.msk.bf16.mxu0 %vm12271_vm2, %v17596_v54 }
 0xcf6   : > { %16542 = vmatmul.mubr.msk.bf16.gmra.mrb[100].mxu0 %vm12271_vm2, %v17597_v50 }
 0xcf7   : > { %16545 = vmatprep.mubr.msk.bf16.mxu0 %vm12271_vm2, %v17598_v15 }
 0xcfe   : > { %16546 = vmatmul.mubr.msk.bf16.gmra.mrb[104].mxu0 %vm12271_vm2, %v17599_v8 }
 0xcff   : > { %16549 = vmatprep.mubr.msk.bf16.mxu0 %vm12271_vm2, %v17600_v41 }
 0xd06   : > { %16550 = vmatmul.mubr.msk.bf16.gmra.mrb[108].mxu0 %vm12271_vm2, %v17601_v26 }
 0xd07   : > { %16553 = vmatprep.mubr.msk.bf16.mxu0 %vm12271_vm2, %v17602_v22 }
 0xd0e   : > { %16554 = vmatmul.mubr.msk.bf16.gmra.mrb[112].mxu0 %vm12271_vm2, %v17603_v31 }
 0xd0f   : > { %16557 = vmatprep.mubr.msk.bf16.mxu0 %vm12271_vm2, %v17604_v40 }
 0xd16   : > { %16558 = vmatmul.mubr.msk.bf16.gmra.mrb[116].mxu0 %vm12271_vm2, %v17605_v23 }
 0xd17   : > { %16561 = vmatprep.mubr.msk.bf16.mxu0 %vm12271_vm2, %v17606_v55 }
 0xd1e   : > { %16562 = vmatmul.mubr.msk.bf16.gmra.mrb[120].mxu0 %vm12271_vm2, %v17607_v4 }
 0xd1f   : > { %16565 = vmatprep.mubr.msk.bf16.mxu0 %vm12271_vm2, %v17608_v39 }
 0xd26   : > { %16566 = vmatmul.mubr.msk.bf16.gmra.mrb[124].mxu0 %vm12271_vm2, %v17609_v49 }
 0xd27   : > { %16569 = vmatprep.mubr.msk.bf16.mxu0 %vm12271_vm2, %v17610_v35 }
 0xd2e   : > { %16570 = vmatmul.mubr.msk.bf16.gmra.mrb[128].mxu0 %vm12271_vm2, %v17611_v32 }
 0xd2f   : > { %16573 = vmatprep.mubr.msk.bf16.mxu0 %vm12271_vm2, %v17612_v13 }
 0xd36   : > { %16574 = vmatmul.mubr.msk.bf16.gmra.mrb[132].mxu0 %vm12271_vm2, %v17613_v7 }
 0xd37   : > { %16577 = vmatprep.mubr.msk.bf16.mxu0 %vm12271_vm2, %v17614_v25 }
 0xd3e   : > { %16578 = vmatmul.mubr.msk.bf16.gmra.mrb[136].mxu0 %vm12271_vm2, %v17615_v62 }
 0xd3f   : > { %16581 = vmatprep.mubr.msk.bf16.mxu0 %vm12271_vm2, %v17616_v36 }
 0xd46   : > { %16582 = vmatmul.mubr.msk.bf16.gmra.mrb[140].mxu0 %vm12271_vm2, %v17617_v52 }
 0xdc1   : > { %v16539_v19 = vpop.f32.mrb[96].mxu0 }
 0xdc2   : > { %v21312_v44 = vpop.f32.mrb[97].mxu0  ;;  %v13620_v28 = vrot.slane %v16539_v19, 1  ;;  %v13828_v21 = vrot.slane %v16539_v19, 2 }
 0xdc3   : > { %v21314_v45 = vpop.f32.mrb[98].mxu0  ;;  %v13617_v37 = vrot.slane %v21312_v44, 1  ;;  %v13825_v34 = vrot.slane %v21312_v44, 2 }
 0xdc4   : > { %v21316_v16 = vpop.f32.mrb[99].mxu0  ;;  %v13622_v33 = vrot.slane %v21314_v45, 1  ;;  %v13830_v10 = vrot.slane %v21314_v45, 2 }
 0xdc5   : > { %v13618_v48 = vrot.slane %v21316_v16, 1  ;;  %v13826_v51 = vrot.slane %v21316_v16, 2 }
 0xdc7   : > { %v13621_v42 = vsel %vm2778_vm15, %v13618_v48, %v13620_v28  ;;  %v13619_v27 = vsel %vm2778_vm15, %v13617_v37, %v13618_v48  ;;  %v13829_v3 = vsel %vm2987_vm14, %v13826_v51, %v13828_v21  ;;  %v13827_v46 = vsel %vm2987_vm14, %v13825_v34, %v13826_v51 }
 0xdc8   : > { %13699 = vrot.lane.b32.xlu1 %v13621_v42, %s18040_s24  ;;  %13697 = vrot.lane.b32.xlu0 %v13619_v27, %s18040_s24 }
 0xdc9   : > { %v21328_v43 = vpop.f32.mrb[100].mxu0 }
 0xdca   : > { %v21330_v1 = vpop.f32.mrb[101].mxu0  ;;  %v13627_v6 = vrot.slane %v21328_v43, 1  ;;  %v13835_v11 = vrot.slane %v21328_v43, 2 }
 0xdcb   : > { %v13623_v18 = vrot.slane %v21330_v1, 1  ;;  %v13831_v14 = vrot.slane %v21330_v1, 2  ;;  %v21336_v17 = vpop.f32.mrb[102].mxu0 }
 0xdcc   : > { %v13628_v38 = vrot.slane %v21336_v17, 1  ;;  %v13836_v60 = vrot.slane %v21336_v17, 2  ;;  %13907 = vrot.lane.b32.xlu1 %v13829_v3, %s18046_s30  ;;  %13905 = vrot.lane.b32.xlu0 %v13827_v46, %s18046_s30  ;;  %v13310_v53 = vpop.f32.mrb[103].mxu0 }
 0xdcd   : > { %v13625_v47 = vrot.slane %v13310_v53, 1  ;;  %v13833_v63 = vrot.slane %v13310_v53, 2  ;;  %v13624_v20 = vsel %vm2778_vm15, %v13622_v33, %v13623_v18  ;;  %v13832_v24 = vsel %vm2987_vm14, %v13830_v10, %v13831_v14 }
 0xdce   : > { %v13629_v57 = vsel %vm2778_vm15, %v13627_v6, %v13628_v38  ;;  %v13837_v0 = vsel %vm2987_vm14, %v13835_v11, %v13836_v60 }
 0xdcf   : > { %v13626_v59 = vsel %vm2778_vm15, %v13623_v18, %v13625_v47  ;;  %v13834_v2 = vsel %vm2987_vm14, %v13831_v14, %v13833_v63 }
 0xdd0   : > { %13701 = vrot.lane.b32.xlu0 %v13624_v20, %s18040_s24  ;;  %13703 = vrot.lane.b32.xlu1 %v13626_v59, %s18040_s24 }
 0xdd1   : > { %v21352_v29 = vpop.f32.mrb[104].mxu0 }
 0xdd2   : > { %v13323_v56 = vpop.f32.mrb[105].mxu0  ;;  %v13633_v61 = vrot.slane %v21352_v29, 1  ;;  %v13841_v9 = vrot.slane %v21352_v29, 2 }
 0xdd3   : > { %v13630_v58 = vrot.slane %v13323_v56, 1  ;;  %v13838_v5 = vrot.slane %v13323_v56, 2  ;;  %v16548_v30 = vpop.f32.mrb[106].mxu0 }
 0xdd4   : > { %v13635_v12 = vrot.slane %v16548_v30, 1  ;;  %v13843_v54 = vrot.slane %v16548_v30, 2  ;;  %13909 = vrot.lane.b32.xlu0 %v13832_v24, %s18046_s30  ;;  %13911 = vrot.lane.b32.xlu1 %v13834_v2, %s18046_s30  ;;  %v21358_v50 = vpop.f32.mrb[107].mxu0 }
 0xdd5   : > { %v13632_v15 = vrot.slane %v21358_v50, 1  ;;  %v13840_v8 = vrot.slane %v21358_v50, 2  ;;  %v13631_v41 = vsel %vm2778_vm15, %v13628_v38, %v13630_v58  ;;  %v13839_v26 = vsel %vm2987_vm14, %v13836_v60, %v13838_v5 }
 0xdd6   : > { %v13636_v22 = vsel %vm2778_vm15, %v13633_v61, %v13635_v12  ;;  %v13844_v31 = vsel %vm2987_vm14, %v13841_v9, %v13843_v54 }
 0xdd7   : > { %v13634_v40 = vsel %vm2778_vm15, %v13632_v15, %v13633_v61  ;;  %v13842_v23 = vsel %vm2987_vm14, %v13840_v8, %v13841_v9 }
 0xdd8   : > { %13705 = vrot.lane.b32.xlu0 %v13629_v57, %s18040_s24  ;;  %13707 = vrot.lane.b32.xlu1 %v13631_v41, %s18040_s24 }
 0xdd9   : > { %v16551_v55 = vpop.f32.mrb[108].mxu0 }
 0xdda   : > { %v21370_v4 = vpop.f32.mrb[109].mxu0  ;;  %v13640_v49 = vrot.slane %v16551_v55, 1  ;;  %v13848_v35 = vrot.slane %v16551_v55, 2 }
 0xddb   : > { %v21372_v39 = vpop.f32.mrb[110].mxu0  ;;  %v13637_v13 = vrot.slane %v21370_v4, 1  ;;  %v13845_v7 = vrot.slane %v21370_v4, 2 }
 0xddc   : > { %13913 = vrot.lane.b32.xlu0 %v13837_v0, %s18046_s30  ;;  %13915 = vrot.lane.b32.xlu1 %v13839_v26, %s18046_s30  ;;  %v21376_v32 = vpop.f32.mrb[111].mxu0  ;;  %v13642_v34 = vrot.slane %v21372_v39, 1  ;;  %v13850_v48 = vrot.slane %v21372_v39, 2 }
 0xddd   : > { %v13638_v25 = vrot.slane %v21376_v32, 1  ;;  %v13846_v62 = vrot.slane %v21376_v32, 2 }
 0xddf   : > { %v13641_v36 = vsel %vm2778_vm15, %v13638_v25, %v13640_v49  ;;  %v13639_v52 = vsel %vm2778_vm15, %v13637_v13, %v13638_v25  ;;  %v13849_v19 = vsel %vm2987_vm14, %v13846_v62, %v13848_v35  ;;  %v13847_v28 = vsel %vm2987_vm14, %v13845_v7, %v13846_v62 }
 0xde0   : > { %13711 = vrot.lane.b32.xlu1 %v13636_v22, %s18040_s24  ;;  %13709 = vrot.lane.b32.xlu0 %v13634_v40, %s18040_s24 }
 0xde1   : > { %v21388_v21 = vpop.f32.mrb[112].mxu0 }
 0xde2   : > { %v21390_v37 = vpop.f32.mrb[113].mxu0  ;;  %v13647_v3 = vrot.slane %v21388_v21, 1  ;;  %v13855_v46 = vrot.slane %v21388_v21, 2 }
 0xde3   : > { %v13643_v51 = vrot.slane %v21390_v37, 1  ;;  %v13851_v42 = vrot.slane %v21390_v37, 2  ;;  %v21396_v27 = vpop.f32.mrb[114].mxu0 }
 0xde4   : > { %v13648_v33 = vrot.slane %v21396_v27, 1  ;;  %v13856_v10 = vrot.slane %v21396_v27, 2  ;;  %13919 = vrot.lane.b32.xlu1 %v13844_v31, %s18046_s30  ;;  %13917 = vrot.lane.b32.xlu0 %v13842_v23, %s18046_s30  ;;  %v13358_v18 = vpop.f32.mrb[115].mxu0 }
 0xde5   : > { %v13645_v14 = vrot.slane %v13358_v18, 1  ;;  %v13853_v6 = vrot.slane %v13358_v18, 2  ;;  %v13644_v11 = vsel %vm2778_vm15, %v13642_v34, %v13643_v51  ;;  %v13852_v38 = vsel %vm2987_vm14, %v13850_v48, %v13851_v42 }
 0xde6   : > { %v13649_v60 = vsel %vm2778_vm15, %v13647_v3, %v13648_v33  ;;  %v13857_v53 = vsel %vm2987_vm14, %v13855_v46, %v13856_v10 }
 0xde7   : > { %v13646_v47 = vsel %vm2778_vm15, %v13643_v51, %v13645_v14  ;;  %v13854_v63 = vsel %vm2987_vm14, %v13851_v42, %v13853_v6 }
 0xde8   : > { %13715 = vrot.lane.b32.xlu1 %v13641_v36, %s18040_s24  ;;  %13713 = vrot.lane.b32.xlu0 %v13639_v52, %s18040_s24 }
 0xde9   : > { %v21412_v20 = vpop.f32.mrb[116].mxu0 }
 0xdea   : > { %v13371_v24 = vpop.f32.mrb[117].mxu0  ;;  %v13653_v2 = vrot.slane %v21412_v20, 1  ;;  %v13861_v56 = vrot.slane %v21412_v20, 2 }
 0xdeb   : > { %v13650_v57 = vrot.slane %v13371_v24, 1  ;;  %v13858_v0 = vrot.slane %v13371_v24, 2  ;;  %v16560_v59 = vpop.f32.mrb[118].mxu0 }
 0xdec   : > { %v13655_v58 = vrot.slane %v16560_v59, 1  ;;  %v13863_v5 = vrot.slane %v16560_v59, 2  ;;  %13923 = vrot.lane.b32.xlu1 %v13849_v19, %s18046_s30  ;;  %13921 = vrot.lane.b32.xlu0 %v13847_v28, %s18046_s30  ;;  %v21418_v30 = vpop.f32.mrb[119].mxu0 }
 0xded   : > { %v13652_v61 = vrot.slane %v21418_v30, 1  ;;  %v13860_v9 = vrot.slane %v21418_v30, 2  ;;  %v13651_v12 = vsel %vm2778_vm15, %v13648_v33, %v13650_v57  ;;  %v13859_v54 = vsel %vm2987_vm14, %v13856_v10, %v13858_v0 }
 0xdee   : > { %v13656_v15 = vsel %vm2778_vm15, %v13653_v2, %v13655_v58  ;;  %v13864_v8 = vsel %vm2987_vm14, %v13861_v56, %v13863_v5 }
 0xdef   : > { %v13654_v41 = vsel %vm2778_vm15, %v13652_v61, %v13653_v2  ;;  %v13862_v26 = vsel %vm2987_vm14, %v13860_v9, %v13861_v56 }
 0xdf0   : > { %13717 = vrot.lane.b32.xlu0 %v13644_v11, %s18040_s24  ;;  %13719 = vrot.lane.b32.xlu1 %v13646_v47, %s18040_s24 }
 0xdf1   : > { %v16563_v22 = vpop.f32.mrb[120].mxu0 }
 0xdf2   : > { %v21430_v31 = vpop.f32.mrb[121].mxu0  ;;  %v13660_v23 = vrot.slane %v16563_v22, 1  ;;  %v13868_v55 = vrot.slane %v16563_v22, 2 }
 0xdf3   : > { %v21432_v40 = vpop.f32.mrb[122].mxu0  ;;  %v13657_v35 = vrot.slane %v21430_v31, 1  ;;  %v13865_v13 = vrot.slane %v21430_v31, 2 }
 0xdf4   : > { %13925 = vrot.lane.b32.xlu0 %v13852_v38, %s18046_s30  ;;  %13927 = vrot.lane.b32.xlu1 %v13854_v63, %s18046_s30  ;;  %v21436_v49 = vpop.f32.mrb[123].mxu0  ;;  %v13662_v48 = vrot.slane %v21432_v40, 1  ;;  %v13870_v51 = vrot.slane %v21432_v40, 2 }
 0xdf5   : > { %v13658_v7 = vrot.slane %v21436_v49, 1  ;;  %v13866_v25 = vrot.slane %v21436_v49, 2 }
 0xdf7   : > { %v13661_v62 = vsel %vm2778_vm15, %v13658_v7, %v13660_v23  ;;  %v13659_v36 = vsel %vm2778_vm15, %v13657_v35, %v13658_v7  ;;  %v13869_v52 = vsel %vm2987_vm14, %v13866_v25, %v13868_v55  ;;  %v13867_v19 = vsel %vm2987_vm14, %v13865_v13, %v13866_v25 }
 0xdf8   : > { %13721 = vrot.lane.b32.xlu0 %v13649_v60, %s18040_s24  ;;  %13723 = vrot.lane.b32.xlu1 %v13651_v12, %s18040_s24 }
 0xdf9   : > { %v21448_v28 = vpop.f32.mrb[124].mxu0 }
 0xdfa   : > { %v21450_v34 = vpop.f32.mrb[125].mxu0  ;;  %v13667_v33 = vrot.slane %v21448_v28, 1  ;;  %v13875_v10 = vrot.slane %v21448_v28, 2 }
 0xdfb   : > { %v13663_v42 = vrot.slane %v21450_v34, 1  ;;  %v13871_v3 = vrot.slane %v21450_v34, 2  ;;  %v21456_v46 = vpop.f32.mrb[126].mxu0 }
 0xdfc   : > { %v13668_v18 = vrot.slane %v21456_v46, 1  ;;  %v13876_v14 = vrot.slane %v21456_v46, 2  ;;  %13929 = vrot.lane.b32.xlu0 %v13857_v53, %s18046_s30  ;;  %13931 = vrot.lane.b32.xlu1 %v13859_v54, %s18046_s30  ;;  %v13406_v6 = vpop.f32.mrb[127].mxu0 }
 0xdfd   : > { %v13665_v11 = vrot.slane %v13406_v6, 1  ;;  %v13873_v38 = vrot.slane %v13406_v6, 2  ;;  %v13664_v60 = vsel %vm2778_vm15, %v13662_v48, %v13663_v42  ;;  %v13872_v47 = vsel %vm2987_vm14, %v13870_v51, %v13871_v3 }
 0xdfe   : > { %v21467_v63 = vsel %vm2778_vm15, %v13667_v33, %v13668_v18  ;;  %v21470_v24 = vsel %vm2987_vm14, %v13875_v10, %v13876_v14 }
 0xdff   : > { %v13666_v57 = vsel %vm2778_vm15, %v13663_v42, %v13665_v11  ;;  %v13874_v0 = vsel %vm2987_vm14, %v13871_v3, %v13873_v38 }
 0xe00   : > { %13727 = vrot.lane.b32.xlu1 %v13656_v15, %s18040_s24  ;;  %13725 = vrot.lane.b32.xlu0 %v13654_v41, %s18040_s24 }
 0xe01   : > { %v21476_v53 = vpop.f32.mrb[128].mxu0 }
 0xe02   : > { %v13419_v59 = vpop.f32.mrb[129].mxu0  ;;  %v13673_v5 = vrot.slane %v21476_v53, 1  ;;  %v13881_v61 = vrot.slane %v21476_v53, 2 }
 0xe03   : > { %v13670_v2 = vrot.slane %v13419_v59, 1  ;;  %v13878_v56 = vrot.slane %v13419_v59, 2  ;;  %v16572_v58 = vpop.f32.mrb[130].mxu0 }
 0xe04   : > { %v13675_v9 = vrot.slane %v16572_v58, 1  ;;  %v13883_v12 = vrot.slane %v16572_v58, 2  ;;  %13935 = vrot.lane.b32.xlu1 %v13864_v8, %s18046_s30  ;;  %13933 = vrot.lane.b32.xlu0 %v13862_v26, %s18046_s30  ;;  %v21482_v54 = vpop.f32.mrb[131].mxu0 }
 0xe05   : > { %v13672_v15 = vrot.slane %v21482_v54, 1  ;;  %v13880_v41 = vrot.slane %v21482_v54, 2  ;;  %v13671_v22 = vsel %vm2778_vm15, %v13668_v18, %v13670_v2  ;;  %v13879_v23 = vsel %vm2987_vm14, %v13876_v14, %v13878_v56 }
 0xe06   : > { %v21489_v55 = vsel %vm2778_vm15, %v13673_v5, %v13675_v9  ;;  %v21492_v35 = vsel %vm2987_vm14, %v13881_v61, %v13883_v12 }
 0xe07   : > { %v21495_v8 = vsel %vm2778_vm15, %v13672_v15, %v13673_v5  ;;  %v21498_v26 = vsel %vm2987_vm14, %v13880_v41, %v13881_v61 }
 0xe08   : > { %13731 = vrot.lane.b32.xlu1 %v13661_v62, %s18040_s24  ;;  %13729 = vrot.lane.b32.xlu0 %v13659_v36, %s18040_s24 }
 0xe09   : > { %v16575_v13 = vpop.f32.mrb[132].mxu0 }
 0xe0a   : > { %v21502_v7 = vpop.f32.mrb[133].mxu0  ;;  %v13680_v48 = vrot.slane %v16575_v13, 1  ;;  %v13888_v51 = vrot.slane %v16575_v13, 2 }
 0xe0b   : > { %v21504_v25 = vpop.f32.mrb[134].mxu0  ;;  %v13677_v3 = vrot.slane %v21502_v7, 1  ;;  %v13885_v33 = vrot.slane %v21502_v7, 2 }
 0xe0c   : > { %13939 = vrot.lane.b32.xlu1 %v13869_v52, %s18046_s30  ;;  %13937 = vrot.lane.b32.xlu0 %v13867_v19, %s18046_s30  ;;  %v21508_v42 = vpop.f32.mrb[135].mxu0  ;;  %v13682_v11 = vrot.slane %v21504_v25, 1  ;;  %v13890_v38 = vrot.slane %v21504_v25, 2 }
 0xe0d   : > { %v13678_v62 = vrot.slane %v21508_v42, 1  ;;  %v13886_v36 = vrot.slane %v21508_v42, 2 }
 0xe0f   : > { %v13681_v10 = vsel %vm2778_vm15, %v13678_v62, %v13680_v48  ;;  %v13679_v18 = vsel %vm2778_vm15, %v13677_v3, %v13678_v62  ;;  %v13889_v14 = vsel %vm2987_vm14, %v13886_v36, %v13888_v51  ;;  %v13887_v52 = vsel %vm2987_vm14, %v13885_v33, %v13886_v36 }
 0xe10   : > { %13733 = vrot.lane.b32.xlu0 %v13664_v60, %s18040_s24  ;;  %13735 = vrot.lane.b32.xlu1 %v13666_v57, %s18040_s24 }
 0xe11   : > { %v21520_v19 = vpop.f32.mrb[136].mxu0 }
 0xe12   : > { %v21522_v6 = vpop.f32.mrb[137].mxu0  ;;  %v13687_v58 = vrot.slane %v21520_v19, 1  ;;  %v13895_v60 = vrot.slane %v21520_v19, 2 }
 0xe13   : > { %v13683_v59 = vrot.slane %v21522_v6, 1  ;;  %v13891_v2 = vrot.slane %v21522_v6, 2  ;;  %v21528_v56 = vpop.f32.mrb[138].mxu0 }
 0xe14   : > { %v13688_v57 = vrot.slane %v21528_v56, 1  ;;  %v13896_v5 = vrot.slane %v21528_v56, 2  ;;  %13941 = vrot.lane.b32.xlu0 %v13872_v47, %s18046_s30  ;;  %13943 = vrot.lane.b32.xlu1 %v13874_v0, %s18046_s30  ;;  %v13454_v61 = vpop.f32.mrb[139].mxu0 }
 0xe15   : > { %v13685_v9 = vrot.slane %v13454_v61, 1  ;;  %v13893_v12 = vrot.slane %v13454_v61, 2  ;;  %v13684_v15 = vsel %vm2778_vm15, %v13682_v11, %v13683_v59  ;;  %v13892_v41 = vsel %vm2987_vm14, %v13890_v38, %v13891_v2 }
 0xe16   : > { %v13689_v13 = vsel %vm2778_vm15, %v13687_v58, %v13688_v57  ;;  %v13897_v48 = vsel %vm2987_vm14, %v13895_v60, %v13896_v5 }
 0xe17   : > { %v13686_v51 = vsel %vm2778_vm15, %v13683_v59, %v13685_v9  ;;  %v13894_v3 = vsel %vm2987_vm14, %v13891_v2, %v13893_v12 }
 0xe18   : > { %13737 = vrot.lane.b32.xlu0 %v21467_v63, %s18040_s24  ;;  %13739 = vrot.lane.b32.xlu1 %v13671_v22, %s18040_s24 }
 0xe19   : > { %v21545_v47 = vpop.f32.mrb[140].mxu0 }
 0xe1a   : > { %v13467_v0 = vpop.f32.mrb[141].mxu0  ;;  %v13693_v11 = vrot.slane %v21545_v47, 1  ;;  %v13901_v38 = vrot.slane %v21545_v47, 2 }
 0xe1b   : > { %v13690_v33 = vrot.slane %v13467_v0, 1  ;;  %v13898_v62 = vrot.slane %v13467_v0, 2  ;;  %v16584_v36 = vpop.f32.mrb[142].mxu0 }
 0xe1c   : > { %v13695_v58 = vrot.slane %v16584_v36, 1  ;;  %v13903_v60 = vrot.slane %v16584_v36, 2  ;;  %13945 = vrot.lane.b32.xlu0 %v21470_v24, %s18046_s30  ;;  %13947 = vrot.lane.b32.xlu1 %v13879_v23, %s18046_s30  ;;  %v21552_v63 = vpop.f32.mrb[143].mxu0  ;;  %v21578_v23 = vld [vmem:[#allocation20] ss:$0 sm:$0xff] }
 0xe1d   : > { %v13692_v22 = vrot.slane %v21552_v63, 1  ;;  %v13900_v59 = vrot.slane %v21552_v63, 2  ;;  %v13691_v2 = vsel %vm2778_vm15, %v13688_v57, %v13690_v33  ;;  %v13899_v61 = vsel %vm2987_vm14, %v13896_v5, %v13898_v62 }
 0xe1e   : > { %v13696_v9 = vsel %vm2778_vm15, %v13693_v11, %v13695_v58  ;;  %v13904_v12 = vsel %vm2987_vm14, %v13901_v38, %v13903_v60  ;;  %v13539_v33 = vadd.f32 %v21314_v45, %v21578_v23  ;;  %v13540_v62 = vadd.f32 %v21578_v23, %v21330_v1  ;;  %v14067_v60 = vld [vmem:[%s18457_s1 + $0x10] sm:$0xff] }
 0xe1f   : > { %v13694_v0 = vsel %vm2778_vm15, %v13692_v22, %v13693_v11  ;;  %v13902_v24 = vsel %vm2987_vm14, %v13900_v59, %v13901_v38  ;;  %v14068_v22 = vld [vmem:[%s18457_s1 + $0x18] sm:$0xff] }
 0xe20   : > { %13743 = vrot.lane.b32.xlu1 %v21489_v55, %s18040_s24  ;;  %13741 = vrot.lane.b32.xlu0 %v21495_v8, %s18040_s24  ;;  %v13538_v8 = vadd.f32 %v21578_v23, %v21316_v16 }
 0xe24   : > { %13951 = vrot.lane.b32.xlu1 %v21492_v35, %s18046_s30  ;;  %13949 = vrot.lane.b32.xlu0 %v21498_v26, %s18046_s30  ;;  %v13537_v26 = vadd.f32 %v21578_v23, %v21312_v44 }
 0xe28   : > { %13747 = vrot.lane.b32.xlu1 %v13681_v10, %s18040_s24  ;;  %13745 = vrot.lane.b32.xlu0 %v13679_v18, %s18040_s24 }
 0xe2c   : > { %13955 = vrot.lane.b32.xlu1 %v13889_v14, %s18046_s30  ;;  %13953 = vrot.lane.b32.xlu0 %v13887_v52, %s18046_s30 }
 0xe30   : > { %13749 = vrot.lane.b32.xlu0 %v13684_v15, %s18040_s24  ;;  %13751 = vrot.lane.b32.xlu1 %v13686_v51, %s18040_s24  ;;  %v14066_v15 = vld [vmem:[%s18457_s1 + $0x8] sm:$0xff] }
 0xe34   : > { %13957 = vrot.lane.b32.xlu0 %v13892_v41, %s18046_s30  ;;  %13959 = vrot.lane.b32.xlu1 %v13894_v3, %s18046_s30  ;;  %v14065_v41 = vld [vmem:[%s18457_s1] sm:$0xff] }
 0xe38   : > { %13753 = vrot.lane.b32.xlu0 %v13689_v13, %s18040_s24  ;;  %13755 = vrot.lane.b32.xlu1 %v13691_v2, %s18040_s24 }
 0xe3a   : > { %v13700_v55 = vpop.permute.xlu1 %13699  ;;  %v13698_v35 = vpop.permute.xlu0 %13697 }
 0xe3b   : > { %v13794_v10 = vadd.f32 %v13700_v55, %v13538_v8  ;;  %v13793_v18 = vadd.f32 %v13698_v35, %v13537_v26  ;;  %v13542_v55 = vadd.f32 %v21336_v17, %v21578_v23 }
 0xe3c   : > { %13961 = vrot.lane.b32.xlu0 %v13897_v48, %s18046_s30  ;;  %13963 = vrot.lane.b32.xlu1 %v13899_v61, %s18046_s30 }
 0xe3e   : > { %v13908_v14 = vpop.permute.xlu1 %13907  ;;  %v13906_v52 = vpop.permute.xlu0 %13905 }
 0xe3f   : > { %v14002_v57 = vadd.f32 %v13908_v14, %v13794_v10  ;;  %v14001_v5 = vadd.f32 %v13906_v52, %v13793_v18  ;;  %v14069_v52 = vld [vmem:[%s18457_s1 + $0x20] sm:$0xff] }
 0xe40   : > { %13759 = vrot.lane.b32.xlu1 %v13696_v9, %s18040_s24  ;;  %13757 = vrot.lane.b32.xlu0 %v13694_v0, %s18040_s24 }
 0xe41   : > { %v14034_v16 = vmul.f32 0.2, %v14002_v57  ;;  %v14033_v13 = vmul.f32 0.2, %v14001_v5  ;;  %v14070_v57 = vld [vmem:[%s18457_s1 + $0x28] sm:$0xff] }
 0xe42   : > { %v13702_v44 = vpop.permute.xlu0 %13701  ;;  %v13704_v51 = vpop.permute.xlu1 %13703 }
 0xe43   : > { %v14098_v48 = vadd.f32 %v14066_v15, %v14034_v16  ;;  %v14097_v3 = vadd.f32 %v14065_v41, %v14033_v13  ;;  %v13795_v36 = vadd.f32 %v13702_v44, %v13539_v33  ;;  %v13796_v11 = vadd.f32 %v13704_v51, %v13540_v62 }
 0xe44   : > { %13967 = vrot.lane.b32.xlu1 %v13904_v12, %s18046_s30  ;;  %13965 = vrot.lane.b32.xlu0 %v13902_v24, %s18046_s30  ;;  %v13541_v24 = vadd.f32 %v21328_v43, %v21578_v23  ;;  %v13544_v13 = vadd.f32 %v21352_v29, %v21578_v23  ;;  %v13543_v44 = vadd.f32 %v21578_v23, %v21358_v50  ;;  %s17940_s30 = sshll.u32 %s18047_s25, 4  ;;  %s17941_s30 = int_to_ptr.vmem [resolvable:$false] %s17940_s30 }
 0xe45   : > { %14130 = vst.msk [vmem:[%s21600_s14 + $0x8] sm:$0xff] %vm1450_vm9, %v14098_v48  ;;  %14129 = vst.msk [vmem:[%s21600_s14] sm:$0xff] %vm1450_vm9, %v14097_v3  ;;  %s17942_s12 = scalar_lea.vmem %s17941_s30, 8192  ;;  %p17943_p4 = scmp.lt.s32.totalorder %s21755_s21, %s17941_s30 }
 0xe46   : > { %v13910_v45 = vpop.permute.xlu0 %13909  ;;  %v13912_v38 = vpop.permute.xlu1 %13911 }
 0xe47   : > { %v14003_v1 = vadd.f32 %v13910_v45, %v13795_v36  ;;  %v14004_v58 = vadd.f32 %v13912_v38, %v13796_v11  ;;  %v14072_v11 = vld [vmem:[%s18457_s1 + $0x38] sm:$0xff]  ;;  %v14071_v45 = vld [vmem:[%s18457_s1 + $0x30] sm:$0xff] }
 0xe49   : > { %v14035_v59 = vmul.f32 0.2, %v14003_v1  ;;  %v14036_v2 = vmul.f32 0.2, %v14004_v58 }
 0xe4a   : > { %v13706_v61 = vpop.permute.xlu0 %13705  ;;  %v13708_v9 = vpop.permute.xlu1 %13707 }
 0xe4b   : > { %v14099_v12 = vadd.f32 %v14067_v60, %v14035_v59  ;;  %v14100_v0 = vadd.f32 %v14068_v22, %v14036_v2  ;;  %v13797_v35 = vadd.f32 %v13706_v61, %v13541_v24  ;;  %v13798_v8 = vadd.f32 %v13708_v9, %v13542_v55  ;;  %v14074_v55 = vld [vmem:[%s18457_s1 + $0x48] sm:$0xff] }
 0xe4c   : > { %v13546_v22 = vadd.f32 %v21578_v23, %v21376_v32  ;;  %v13545_v59 = vadd.f32 %v21578_v23, %v21370_v4 }
 0xe4d   : > { %14131 = vst.msk [vmem:[%s21600_s14 + $0x10] sm:$0xff] %vm1450_vm9, %v14099_v12  ;;  %14132 = vst.msk [vmem:[%s21600_s14 + $0x18] sm:$0xff] %vm1450_vm9, %v14100_v0 }
 0xe4e   : > { %v13914_v26 = vpop.permute.xlu0 %13913  ;;  %v13916_v10 = vpop.permute.xlu1 %13915 }
 0xe4f   : > { %v14005_v18 = vadd.f32 %v13914_v26, %v13797_v35  ;;  %v14006_v14 = vadd.f32 %v13916_v10, %v13798_v8  ;;  %v14073_v35 = vld [vmem:[%s18457_s1 + $0x40] sm:$0xff] }
 0xe51   : > { %v14037_v5 = vmul.f32 0.2, %v14005_v18  ;;  %v14038_v43 = vmul.f32 0.2, %v14006_v14  ;;  %v13547_v14 = vadd.f32 %v21372_v39, %v21578_v23 }
 0xe52   : > { %v13712_v15 = vpop.permute.xlu1 %13711  ;;  %v13710_v17 = vpop.permute.xlu0 %13709 }
 0xe53   : > { %v14101_v41 = vadd.f32 %v14069_v52, %v14037_v5  ;;  %v14102_v16 = vadd.f32 %v14070_v57, %v14038_v43  ;;  %v13800_v51 = vadd.f32 %v13712_v15, %v13544_v13  ;;  %v13799_v48 = vadd.f32 %v13710_v17, %v13543_v44  ;;  %v14076_v13 = vld [vmem:[%s18457_s1 + $0x58] sm:$0xff] }
 0xe54   : > { %v13548_v52 = vadd.f32 %v21578_v23, %v21390_v37 }
 0xe55   : > { %14133 = vst.msk [vmem:[%s21600_s14 + $0x20] sm:$0xff] %vm1450_vm9, %v14101_v41  ;;  %14134 = vst.msk [vmem:[%s21600_s14 + $0x28] sm:$0xff] %vm1450_vm9, %v14102_v16  ;;  %v14075_v16 = vld [vmem:[%s18457_s1 + $0x50] sm:$0xff] }
 0xe56   : > { %v13920_v3 = vpop.permute.xlu1 %13919  ;;  %v13918_v33 = vpop.permute.xlu0 %13917 }
 0xe57   : > { %v14008_v62 = vadd.f32 %v13920_v3, %v13800_v51  ;;  %v14007_v36 = vadd.f32 %v13918_v33, %v13799_v48  ;;  %v13549_v33 = vadd.f32 %v21388_v21, %v21578_v23 }
 0xe59   : > { %v14040_v38 = vmul.f32 0.2, %v14008_v62  ;;  %v14039_v29 = vmul.f32 0.2, %v14007_v36  ;;  %v13550_v62 = vadd.f32 %v21396_v27, %v21578_v23 }
 0xe5a   : > { %v13716_v1 = vpop.permute.xlu1 %13715  ;;  %v13714_v50 = vpop.permute.xlu0 %13713 }
 0xe5b   : > { %v14104_v58 = vadd.f32 %v14072_v11, %v14040_v38  ;;  %v14103_v60 = vadd.f32 %v14071_v45, %v14039_v29  ;;  %v13802_v2 = vadd.f32 %v13716_v1, %v13546_v22  ;;  %v13801_v61 = vadd.f32 %v13714_v50, %v13545_v59  ;;  %v14077_v50 = vld [vmem:[%s18457_s1 + $0x60] sm:$0xff] }
 0xe5d   : > { %14136 = vst.msk [vmem:[%s21600_s14 + $0x38] sm:$0xff] %vm1450_vm9, %v14104_v58  ;;  %14135 = vst.msk [vmem:[%s21600_s14 + $0x30] sm:$0xff] %vm1450_vm9, %v14103_v60  ;;  %v14078_v58 = vld [vmem:[%s18457_s1 + $0x68] sm:$0xff] }
 0xe5e   : > { %v13924_v9 = vpop.permute.xlu1 %13923  ;;  %v13922_v12 = vpop.permute.xlu0 %13921 }
 0xe5f   : > { %v14010_v0 = vadd.f32 %v13924_v9, %v13802_v2  ;;  %v14009_v24 = vadd.f32 %v13922_v12, %v13801_v61  ;;  %v13552_v61 = vadd.f32 %v21412_v20, %v21578_v23  ;;  %v13551_v9 = vadd.f32 %v21578_v23, %v21418_v30 }
 0xe61   : > { %v14042_v8 = vmul.f32 0.2, %v14010_v0  ;;  %v14041_v32 = vmul.f32 0.2, %v14009_v24 }
 0xe62   : > { %v13718_v26 = vpop.permute.xlu0 %13717  ;;  %v13720_v4 = vpop.permute.xlu1 %13719 }
 0xe63   : > { %v14106_v10 = vadd.f32 %v14074_v55, %v14042_v8  ;;  %v14105_v18 = vadd.f32 %v14073_v35, %v14041_v32  ;;  %v13803_v57 = vadd.f32 %v13718_v26, %v13547_v14  ;;  %v13804_v5 = vadd.f32 %v13720_v4, %v13548_v52  ;;  %v14080_v32 = vld [vmem:[%s18457_s1 + $0x78] sm:$0xff]  ;;  %v14079_v26 = vld [vmem:[%s18457_s1 + $0x70] sm:$0xff] }
 0xe64   : > { %v13554_v52 = vadd.f32 %v21578_v23, %v21436_v49 }
 0xe65   : > { %14138 = vst.msk [vmem:[%s21600_s14 + $0x48] sm:$0xff] %vm1450_vm9, %v14106_v10  ;;  %14137 = vst.msk [vmem:[%s21600_s14 + $0x40] sm:$0xff] %vm1450_vm9, %v14105_v18 }
 0xe66   : > { %v13926_v43 = vpop.permute.xlu0 %13925  ;;  %v13928_v15 = vpop.permute.xlu1 %13927 }
 0xe67   : > { %v14011_v17 = vadd.f32 %v13926_v43, %v13803_v57  ;;  %v14012_v41 = vadd.f32 %v13928_v15, %v13804_v5  ;;  %v13553_v57 = vadd.f32 %v21578_v23, %v21430_v31 }
 0xe69   : > { %v14043_v44 = vmul.f32 0.2, %v14011_v17  ;;  %v14044_v39 = vmul.f32 0.2, %v14012_v41 }
 0xe6a   : > { %v13722_v51 = vpop.permute.xlu0 %13721  ;;  %v13724_v37 = vpop.permute.xlu1 %13723 }
 0xe6b   : > { %v14107_v48 = vadd.f32 %v14075_v16, %v14043_v44  ;;  %v14108_v3 = vadd.f32 %v14076_v13, %v14044_v39  ;;  %v13805_v36 = vadd.f32 %v13722_v51, %v13549_v33  ;;  %v13806_v11 = vadd.f32 %v13724_v37, %v13550_v62  ;;  %v14082_v13 = vld [vmem:[%s18457_s1 + $0x88] sm:$0xff]  ;;  %v14081_v44 = vld [vmem:[%s18457_s1 + $0x80] sm:$0xff] }
 0xe6c   : > { %v13556_v33 = vadd.f32 %v21578_v23, %v21450_v34 }
 0xe6d   : > { %14139 = vst.msk [vmem:[%s21600_s14 + $0x50] sm:$0xff] %vm1450_vm9, %v14107_v48  ;;  %14140 = vst.msk [vmem:[%s21600_s14 + $0x58] sm:$0xff] %vm1450_vm9, %v14108_v3  ;;  %v13555_v3 = vadd.f32 %v21432_v40, %v21578_v23 }
 0xe6e   : > { %v13930_v45 = vpop.permute.xlu0 %13929  ;;  %v13932_v38 = vpop.permute.xlu1 %13931 }
 0xe6f   : > { %v14013_v29 = vadd.f32 %v13930_v45, %v13805_v36  ;;  %v14014_v1 = vadd.f32 %v13932_v38, %v13806_v11 }
 0xe71   : > { %v14045_v60 = vmul.f32 0.2, %v14013_v29  ;;  %v14046_v21 = vmul.f32 0.2, %v14014_v1  ;;  %v14083_v1 = vld [vmem:[%s18457_s1 + $0x90] sm:$0xff] }
 0xe72   : > { %v13728_v22 = vpop.permute.xlu1 %13727  ;;  %v13726_v27 = vpop.permute.xlu0 %13725 }
 0xe73   : > { %v14109_v59 = vadd.f32 %v14077_v50, %v14045_v60  ;;  %v14110_v2 = vadd.f32 %v14078_v58, %v14046_v21  ;;  %v13808_v12 = vadd.f32 %v13728_v22, %v13552_v61  ;;  %v13807_v0 = vadd.f32 %v13726_v27, %v13551_v9  ;;  %v14084_v50 = vld [vmem:[%s18457_s1 + $0x98] sm:$0xff] }
 0xe74   : > { %v13557_v27 = vadd.f32 %v21448_v28, %v21578_v23 }
 0xe75   : > { %14141 = vst.msk [vmem:[%s21600_s14 + $0x60] sm:$0xff] %vm1450_vm9, %v14109_v59  ;;  %14142 = vst.msk [vmem:[%s21600_s14 + $0x68] sm:$0xff] %vm1450_vm9, %v14110_v2  ;;  %v13558_v59 = vadd.f32 %v21456_v46, %v21578_v23 }
 0xe76   : > { %v13936_v24 = vpop.permute.xlu1 %13935  ;;  %v13934_v55 = vpop.permute.xlu0 %13933 }
 0xe77   : > { %v14016_v35 = vadd.f32 %v13936_v24, %v13808_v12  ;;  %v14015_v8 = vadd.f32 %v13934_v55, %v13807_v0  ;;  %v14085_v55 = vld [vmem:[%s18457_s1 + $0xa0] sm:$0xff] }
 0xe79   : > { %v14048_v4 = vmul.f32 0.2, %v14016_v35  ;;  %v14047_v20 = vmul.f32 0.2, %v14015_v8  ;;  %v14086_v35 = vld [vmem:[%s18457_s1 + $0xa8] sm:$0xff] }
 0xe7a   : > { %v13732_v10 = vpop.permute.xlu1 %13731  ;;  %v13730_v30 = vpop.permute.xlu0 %13729 }
 0xe7b   : > { %v14112_v18 = vadd.f32 %v14080_v32, %v14048_v4  ;;  %v14111_v14 = vadd.f32 %v14079_v26, %v14047_v20  ;;  %v13810_v5 = vadd.f32 %v13732_v10, %v13554_v52  ;;  %v13809_v43 = vadd.f32 %v13730_v30, %v13553_v57 }
 0xe7c   : > { %v13560_v20 = vadd.f32 %v21476_v53, %v21578_v23  ;;  %v13559_v10 = vadd.f32 %v21578_v23, %v21482_v54 }
 0xe7d   : > { %14144 = vst.msk [vmem:[%s21600_s14 + $0x78] sm:$0xff] %vm1450_vm9, %v14112_v18  ;;  %14143 = vst.msk [vmem:[%s21600_s14 + $0x70] sm:$0xff] %vm1450_vm9, %v14111_v14 }
 0xe7e   : > { %v13940_v15 = vpop.permute.xlu1 %13939  ;;  %v13938_v17 = vpop.permute.xlu0 %13937 }
 0xe7f   : > { %v14018_v41 = vadd.f32 %v13940_v15, %v13810_v5  ;;  %v14017_v16 = vadd.f32 %v13938_v17, %v13809_v43  ;;  %v14088_v43 = vld [vmem:[%s18457_s1 + $0xb8] sm:$0xff]  ;;  %v14087_v15 = vld [vmem:[%s18457_s1 + $0xb0] sm:$0xff] }
 0xe81   : > { %v14050_v39 = vmul.f32 0.2, %v14018_v41  ;;  %v14049_v49 = vmul.f32 0.2, %v14017_v16 }
 0xe82   : > { %v13734_v51 = vpop.permute.xlu0 %13733  ;;  %v13736_v31 = vpop.permute.xlu1 %13735 }
 0xe83   : > { %v14114_v37 = vadd.f32 %v14082_v13, %v14050_v39  ;;  %v14113_v48 = vadd.f32 %v14081_v44, %v14049_v49  ;;  %v13811_v62 = vadd.f32 %v13734_v51, %v13555_v3  ;;  %v13812_v36 = vadd.f32 %v13736_v31, %v13556_v33  ;;  %v14090_v33 = vld [vmem:[%s18457_s1 + $0xc8] sm:$0xff] }
 0xe84   : > { %v13562_v44 = vadd.f32 %v21578_v23, %v21508_v42  ;;  %v13561_v39 = vadd.f32 %v21578_v23, %v21502_v7 }
 0xe85   : > { %14146 = vst.msk [vmem:[%s21600_s14 + $0x88] sm:$0xff] %vm1450_vm9, %v14114_v37  ;;  %14145 = vst.msk [vmem:[%s21600_s14 + $0x80] sm:$0xff] %vm1450_vm9, %v14113_v48 }
 0xe86   : > { %v13942_v11 = vpop.permute.xlu0 %13941  ;;  %v13944_v45 = vpop.permute.xlu1 %13943 }
 0xe87   : > { %v14019_v38 = vadd.f32 %v13942_v11, %v13811_v62  ;;  %v14020_v29 = vadd.f32 %v13944_v45, %v13812_v36  ;;  %v14089_v62 = vld [vmem:[%s18457_s1 + $0xc0] sm:$0xff] }
 0xe89   : > { %v14051_v58 = vmul.f32 0.2, %v14019_v38  ;;  %v14052_v40 = vmul.f32 0.2, %v14020_v29  ;;  %v13563_v29 = vadd.f32 %v21504_v25, %v21578_v23 }
 0xe8a   : > { %v13738_v60 = vpop.permute.xlu0 %13737  ;;  %v13740_v34 = vpop.permute.xlu1 %13739 }
 0xe8b   : > { %v14115_v21 = vadd.f32 %v14083_v1, %v14051_v58  ;;  %v14116_v22 = vadd.f32 %v14084_v50, %v14052_v40  ;;  %v13813_v2 = vadd.f32 %v13738_v60, %v13557_v27  ;;  %v13814_v61 = vadd.f32 %v13740_v34, %v13558_v59  ;;  %v14092_v27 = vld [vmem:[%s18457_s1 + $0xd8] sm:$0xff] }
 0xe8c   : > { %v13564_v1 = vadd.f32 %v21578_v23, %v21522_v6 }
 0xe8d   : > { %14147 = vst.msk [vmem:[%s21600_s14 + $0x90] sm:$0xff] %vm1450_vm9, %v14115_v21  ;;  %14148 = vst.msk [vmem:[%s21600_s14 + $0x98] sm:$0xff] %vm1450_vm9, %v14116_v22  ;;  %v14091_v22 = vld [vmem:[%s18457_s1 + $0xd0] sm:$0xff] }
 0xe8e   : > { %v13946_v9 = vpop.permute.xlu0 %13945  ;;  %v13948_v12 = vpop.permute.xlu1 %13947 }
 0xe8f   : > { %v14021_v0 = vadd.f32 %v13946_v9, %v13813_v2  ;;  %v14022_v24 = vadd.f32 %v13948_v12, %v13814_v61  ;;  %v13565_v12 = vadd.f32 %v21520_v19, %v21578_v23 }
 0xe91   : > { %v14053_v8 = vmul.f32 0.2, %v14021_v0  ;;  %v14054_v28 = vmul.f32 0.2, %v14022_v24  ;;  %v13566_v0 = vadd.f32 %v21528_v56, %v21578_v23 }
 0xe92   : > { %v13744_v32 = vpop.permute.xlu1 %13743  ;;  %v13742_v46 = vpop.permute.xlu0 %13741 }
 0xe93   : > { %v14117_v26 = vadd.f32 %v14085_v55, %v14053_v8  ;;  %v14118_v4 = vadd.f32 %v14086_v35, %v14054_v28  ;;  %v13816_v30 = vadd.f32 %v13744_v32, %v13560_v20  ;;  %v13815_v18 = vadd.f32 %v13742_v46, %v13559_v10  ;;  %v14093_v46 = vld [vmem:[%s18457_s1 + $0xe0] sm:$0xff] }
 0xe94   : > { %v13567_v10 = vadd.f32 %v21578_v23, %v21552_v63  ;;  %v14096_v63 = vld [vmem:[%s18457_s1 + $0xf8] sm:$0xff] }
 0xe95   : > { %14149 = vst.msk [vmem:[%s21600_s14 + $0xa0] sm:$0xff] %vm1450_vm9, %v14117_v26  ;;  %14150 = vst.msk [vmem:[%s21600_s14 + $0xa8] sm:$0xff] %vm1450_vm9, %v14118_v4  ;;  %v14094_v26 = vld [vmem:[%s18457_s1 + $0xe8] sm:$0xff] }
 0xe96   : > { %v13952_v14 = vpop.permute.xlu1 %13951  ;;  %v13950_v52 = vpop.permute.xlu0 %13949 }
 0xe97   : > { %v14024_v57 = vadd.f32 %v13952_v14, %v13816_v30  ;;  %v14023_v5 = vadd.f32 %v13950_v52, %v13815_v18  ;;  %v13568_v14 = vadd.f32 %v21545_v47, %v21578_v23 }
 0xe99   : > { %v14056_v17 = vmul.f32 0.2, %v14024_v57  ;;  %v14055_v53 = vmul.f32 0.2, %v14023_v5 }
 0xe9a   : > { %v13748_v41 = vpop.permute.xlu1 %13747  ;;  %v13746_v54 = vpop.permute.xlu0 %13745 }
 0xe9b   : > { %v14120_v16 = vadd.f32 %v14088_v43, %v14056_v17  ;;  %v14119_v13 = vadd.f32 %v14087_v15, %v14055_v53  ;;  %v13818_v49 = vadd.f32 %v13748_v41, %v13562_v44  ;;  %v13817_v51 = vadd.f32 %v13746_v54, %v13561_v39  ;;  %v14095_v53 = vld [vmem:[%s18457_s1 + $0xf0] sm:$0xff]  ;;  %s17936_s1 = scalar_lea.vmem %s21755_s21, 4096 }
 0xe9c   : > { %p17937_p13 = scmp.ne.s32.totalorder %s21755_s21, %s17936_s1  ;;  %p17944_p10 = scmp.lt.s32.totalorder %s17942_s12, %s17936_s1 }
 0xe9d   : > { %14152 = vst.msk [vmem:[%s21600_s14 + $0xb8] sm:$0xff] %vm1450_vm9, %v14120_v16  ;;  %14151 = vst.msk [vmem:[%s21600_s14 + $0xb0] sm:$0xff] %vm1450_vm9, %v14119_v13 }
 0xe9e   : > { %v13956_v31 = vpop.permute.xlu1 %13955  ;;  %v13954_v37 = vpop.permute.xlu0 %13953  ;;  %p17938_p2 = pnand %p17937_p13, %p21885_p0  ;;  %p17945_p11 = por %p17944_p10, %p17943_p4 }
 0xe9f   : > { %v14026_v48 = vadd.f32 %v13956_v31, %v13818_v49  ;;  %v14025_v3 = vadd.f32 %v13954_v37, %v13817_v51 }
 0xea0   : > { %p17939_p8 = pneg %p17938_p2 }
 0xea1   : > { %v14058_v36 = vmul.f32 0.2, %v14026_v48  ;;  %v14057_v42 = vmul.f32 0.2, %v14025_v3 }
 0xea2   : > { %v13750_v11 = vpop.permute.xlu0 %13749  ;;  %v13752_v7 = vpop.permute.xlu1 %13751  ;;  %p17946_p3 = pnand %p17945_p11, %p17939_p8 }
 0xea3   : > { %v14122_v45 = vadd.f32 %v14090_v33, %v14058_v36  ;;  %v14121_v38 = vadd.f32 %v14089_v62, %v14057_v42  ;;  %v13819_v50 = vadd.f32 %v13750_v11, %v13563_v29  ;;  %v13820_v58 = vadd.f32 %v13752_v7, %v13564_v1 }
 0xea5   : > { %14154 = vst.msk [vmem:[%s21600_s14 + $0xc8] sm:$0xff] %vm1450_vm9, %v14122_v45  ;;  %14153 = vst.msk [vmem:[%s21600_s14 + $0xc0] sm:$0xff] %vm1450_vm9, %v14121_v38 }
 0xea6   : > { %v13958_v40 = vpop.permute.xlu0 %13957  ;;  %v13960_v60 = vpop.permute.xlu1 %13959 }
 0xea7   : > { %v14027_v34 = vadd.f32 %v13958_v40, %v13819_v50  ;;  %v14028_v21 = vadd.f32 %v13960_v60, %v13820_v58 }
 0xea9   : > { %v14059_v59 = vmul.f32 0.2, %v14027_v34  ;;  %v14060_v25 = vmul.f32 0.2, %v14028_v21 }
 0xeaa   : > { %v13754_v2 = vpop.permute.xlu0 %13753  ;;  %v13756_v6 = vpop.permute.xlu1 %13755 }
 0xeab   : > { %v14123_v61 = vadd.f32 %v14091_v22, %v14059_v59  ;;  %v14124_v9 = vadd.f32 %v14092_v27, %v14060_v25  ;;  %v13821_v24 = vadd.f32 %v13754_v2, %v13565_v12  ;;  %v13822_v55 = vadd.f32 %v13756_v6, %v13566_v0 }
 0xead   : > { %14155 = vst.msk [vmem:[%s21600_s14 + $0xd0] sm:$0xff] %vm1450_vm9, %v14123_v61  ;;  %14156 = vst.msk [vmem:[%s21600_s14 + $0xd8] sm:$0xff] %vm1450_vm9, %v14124_v9 }
 0xeae   : > { %v13962_v35 = vpop.permute.xlu0 %13961  ;;  %v13964_v8 = vpop.permute.xlu1 %13963 }
 0xeaf   : > { %v14029_v28 = vadd.f32 %v13962_v35, %v13821_v24  ;;  %v14030_v32 = vadd.f32 %v13964_v8, %v13822_v55 }
 0xeb1   : > { %v14061_v4 = vmul.f32 0.2, %v14029_v28  ;;  %v14062_v19 = vmul.f32 0.2, %v14030_v32 }
 0xeb2   : > { %v13760_v20 = vpop.permute.xlu1 %13759  ;;  %v13758_v56 = vpop.permute.xlu0 %13757 }
 0xeb3   : > { %v14125_v30 = vadd.f32 %v14093_v46, %v14061_v4  ;;  %v14126_v18 = vadd.f32 %v14094_v26, %v14062_v19  ;;  %v13824_v52 = vadd.f32 %v13760_v20, %v13568_v14  ;;  %v13823_v57 = vadd.f32 %v13758_v56, %v13567_v10 }
 0xeb5   : > { %14157 = vst.msk [vmem:[%s21600_s14 + $0xe0] sm:$0xff] %vm1450_vm9, %v14125_v30  ;;  %14158 = vst.msk [vmem:[%s21600_s14 + $0xe8] sm:$0xff] %vm1450_vm9, %v14126_v18 }
 0xeb6   : > { %v13968_v5 = vpop.permute.xlu1 %13967  ;;  %v13966_v43 = vpop.permute.xlu0 %13965 }
 0xeb7   : > { %v14032_v15 = vadd.f32 %v13968_v5, %v13824_v52  ;;  %v14031_v17 = vadd.f32 %v13966_v43, %v13823_v57 }
 0xeb9   : > { %v14064_v41 = vmul.f32 0.2, %v14032_v15  ;;  %v14063_v47 = vmul.f32 0.2, %v14031_v17 }
 0xebb   : > { %v14128_v23 = vadd.f32 %v14096_v63, %v14064_v41  ;;  %v14127_v54 = vadd.f32 %v14095_v53, %v14063_v47 }
 0xebd   : > { %14160 = vst.msk [vmem:[%s21600_s14 + $0xf8] sm:$0xff] %vm1450_vm9, %v14128_v23  ;;  %14159 = vst.msk [vmem:[%s21600_s14 + $0xf0] sm:$0xff] %vm1450_vm9, %v14127_v54 }
 0xebe   : > { %17949 = shalt.err (!%p17946_p3)
}
 0xebf   : > { %s17950_s14 = scalar_lea.hbm %s21753_s13, 4096  ;;  %s17954_s25 = scalar_lea.hbm %s21884_s22, 8192 }
 0xec0   : > { %p17951_p5 = scmp.ne.s32.totalorder %s21753_s13, %s17950_s14  ;;  %p17955_p9 = scmp.lt.u32.totalorder %s21753_s13, %s21884_s22 }
 0xec1   : > { %p17956_p12 = scmp.lt.u32.totalorder %s17954_s25, %s17950_s14  ;;  %p17958_p13 = scmp.lt.u32.totalorder %s17950_s14, %s21753_s13 }
 0xec2   : > { %p17952_p7 = pnand %p17951_p5, %p21885_p0 }
 0xec3   : > { %p17957_p1 = por %p17956_p12, %p17955_p9 }
 0xec4   : > { %p17953_p6 = pneg %p17952_p7 }
 0xec5   : > { %p17959_p2 = por %p17958_p13, %p17957_p1 }
 0xec7   : > { %p17960_p8 = pnand %p17959_p2, %p17953_p6 }
 0xec9   : > { %17963 = shalt.err (!%p17960_p8)
}
 0xeca   : > { %s18048_s1 = smov 128   ;;  %s21886_s12 = scalar_lea.sflag [#allocation5], %s18451_s15 }
 0xecb   : > { %17122 = dma.vmem_to_hbm [thread:$0]  (%p21885_p0), %s21755_s21, 4096, %s21753_s13, %s21886_s12, %s18048_s1, %s18048_s1, %s18042_s16  }
 0xecc PF: > { %s14190_s23 = sand.u32 1, %s18010_s17   ;;  %p21887_p4 = scmp.ne.s32.totalorder %s21837_s11, 0 }
 0xecd   : > { %p21888_p10 = scmp.ge.s32.totalorder %s18022_s20, 2  ;;  %s14191_s14 = scalar_lea.sflag [#allocation5], %s14190_s23 }
 0xecf   : > { %p17160_p11 = pnand %p21888_p10, %p21887_p4 }
 0xed1   : > { %18005 = dma.done.wait (!%p17160_p11), %s14191_s14, 4096  }
 0xed2   : > { %18007 = vsyncadd (!%p17160_p11), %s14191_s14, 4294963200  ;;  %p29_p3 = scmp.ge.s32.totalorder %s18372_s27, 4   ;;  %s21889_s17 = smov %s18014_s18 }
 0xed3   : > { %s21890_s18 = smov %s18018_s19  ;;  %s21891_s19 = smov %s18383_s0 }
 0xed4   : > { %s21892_s20 = smov %s18372_s27  ;;  %31 = sbr.rel (!%p29_p3) target bundleno = 14 (0xe), region = 162 }
 0xedb   :  { %14196 = vsyncpa [#allocation4], 1 }
 0xedc   :  { %14198 = vsyncpa [#allocation4 + $0x1], 1 }
 0xedd   :  { %14199 = vsyncpa [#allocation7], 1 }
 0xede   :  { %14200 = vsyncpa [#allocation10], 1 }
 0xedf   :  { %14201 = vsyncpa [#allocation13], 1 }
 0xee0   :  { %14202 = vsyncpa [#allocation16], 1 }
 0xee1   :  { %14203 = vsyncpa [#allocation19], 1 }
 0xee2   :  { %14204 = vsyncpa [#allocation5], 1 }
 0xee3   :  { %14206 = vsyncpa [#allocation5 + $0x1], 1 }

</bundles_post_ra>
